<compile_context>
chip_gen: v7x
topology: tpu7x:2x2x1
jax: 0.10.0
libtpu: 0.0.40
codegen_flags: <defaults>
</compile_context>

<pallas_src>
import functools

import numpy as np
import jax
import jax.numpy as jnp
from jax import lax
from jax.experimental import pallas as pl
from jax.experimental.pallas import tpu as pltpu


# Matmul operand dtype.  jnp.float32 keeps the validation tight; on v6e/v7x set
# to jnp.bfloat16 for MXU rate (re-validate with a looser tolerance).
_MATMUL_DTYPE = jnp.float32


def _round8(n):
    return ((n + 7) // 8) * 8


def _pick_bb(B, HW, max_lanes=2048):
    """Number of batch elements stacked along the lane axis per grid block."""
    bb = max(1, min(B, max_lanes // max(HW, 1)))
    while B % bb:
        bb -= 1
    if (bb * HW) % 128 and bb != B:
        bb = B  # fall back to one block == full lane dim (always legal)
    return bb


# -----------------------------------------------------------------------------
# Host-side constants: boundary masks for roll-based 'same'-conv im2col
# -----------------------------------------------------------------------------
def _boundary_masks(H, W, kh, kw, bb):
    """(ntap, 1, bb*H*W) 0/1 masks: mask[j, 0, q] == 1 iff, for tap j, the
    source pixel of flattened position q lies inside its own image.  Because a
    circular lane roll only crosses image (or batch) boundaries at positions
    where the mask is 0, roll+mask reproduces zero-padded 'same' conv exactly."""
    HW = H * W
    ph, pw = kh // 2, kw // 2
    q = np.arange(HW)
    y, x = q // W, q % W
    rows = []
    for dy in range(kh):
        for dx in range(kw):
            dyy, dxx = dy - ph, dx - pw
            valid = ((y + dyy >= 0) & (y + dyy < H)
                     & (x + dxx >= 0) & (x + dxx < W)).astype(np.float32)
            rows.append(np.tile(valid, bb))
    return jnp.asarray(np.stack(rows)[:, None, :])


# -----------------------------------------------------------------------------
# Weight folding: the 6 convs of one ST-LSTM cell -> two im2col weight matrices
# -----------------------------------------------------------------------------
def _fold_gate(p, hd, kh, kw, cin_block):
    """Fold wx/wh/wm into one (7*hd, kh*kw*(cin_block + 2*hd)) im2col weight +
    (7*hd, 1) bias.  Output-row blocks (size hd): [g, g2, i, f, i2, f2, o] so
    the kernel can do one fused tanh (rows 0:2hd) and one fused sigmoid
    (rows 2hd:6hd).  Input-column order per tap: [x (padded), h, m]."""
    ntap = kh * kw
    cch = cin_block + 2 * hd
    wx = p["wx_w"].astype(jnp.float32)
    wh = p["wh_w"].astype(jnp.float32)
    wm = p["wm_w"].astype(jnp.float32)
    bx = p["wx_b"].astype(jnp.float32)
    bh = p["wh_b"].astype(jnp.float32)
    bm = p["wm_b"].astype(jnp.float32)
    cin = wx.shape[1]
    zero = jnp.zeros((hd, hd, kh, kw), jnp.float32)

    def xb(k): return wx[k * hd:(k + 1) * hd]
    def hb(k): return wh[k * hd:(k + 1) * hd]
    def mb(k): return wm[k * hd:(k + 1) * hd]

    def block(xw, hw, mw):
        xw_p = jnp.zeros((hd, cin_block, kh, kw), jnp.float32).at[:, :cin].set(xw)
        return jnp.concatenate([xw_p, hw, mw], axis=1)

    rows = [
        block(xb(0), hb(0), zero),   # g
        block(xb(3), zero, mb(0)),   # g2
        block(xb(1), hb(1), zero),   # i
        block(xb(2), hb(2), zero),   # f
        block(xb(4), zero, mb(1)),   # i2
        block(xb(5), zero, mb(2)),   # f2
        block(xb(6), hb(3), zero),   # o (x + h part)
    ]
    wg = jnp.concatenate(rows, axis=0)                         # (7hd, cch, kh, kw)
    # im2col rows are tap-major then channel -> flatten weight as (O, kh, kw, I).
    wg_col = jnp.transpose(wg, (0, 2, 3, 1)).reshape(7 * hd, ntap * cch)

    def bxs(k): return bx[k * hd:(k + 1) * hd]
    def bhs(k): return bh[k * hd:(k + 1) * hd]
    def bms(k): return bm[k * hd:(k + 1) * hd]
    bg = jnp.concatenate([
        bxs(0) + bhs(0), bxs(3) + bms(0),
        bxs(1) + bhs(1), bxs(2) + bhs(2),
        bxs(4) + bms(1), bxs(5) + bms(2),
        bxs(6) + bhs(3)]).reshape(7 * hd, 1)
    return wg_col, bg


def _fold_out(p, hd, kh, kw):
    """Fold wcl/wml (o-gate convs on c'/m') plus the 1x1 conv on [c', m'] into
    one (2*hd, kh*kw*2*hd) im2col weight + (2*hd, 1) bias.
    Rows 0:hd = o-gate extra terms, rows hd:2hd = the 1x1 conv (centre tap)."""
    ntap = kh * kw
    ph, pw = kh // 2, kw // 2
    wo = jnp.zeros((2 * hd, 2 * hd, kh, kw), jnp.float32)
    wo = wo.at[0:hd, 0:hd].set(p["wcl_w"].astype(jnp.float32))
    wo = wo.at[0:hd, hd:2 * hd].set(p["wml_w"].astype(jnp.float32))
    wo = wo.at[hd:2 * hd, :, ph, pw].set(p["h_w"][:, :, 0, 0].astype(jnp.float32))
    wo_col = jnp.transpose(wo, (0, 2, 3, 1)).reshape(2 * hd, ntap * 2 * hd)
    bo = jnp.concatenate([p["wcl_b"] + p["wml_b"], p["h_b"]]).astype(
        jnp.float32).reshape(2 * hd, 1)
    return wo_col, bo


# -----------------------------------------------------------------------------
# Fused Pallas kernel: one timestep (4 ST-LSTM cells + head) per grid step
# -----------------------------------------------------------------------------
def _make_kernel(T, hd, LB, W, kh, kw):
    ntap = kh * kw
    ph, pw = kh // 2, kw // 2
    offs = [(dy - ph) * W + (dx - pw) for dy in range(kh) for dx in range(kw)]

    def kernel(x_ref, mask_ref, wg1_ref, wg234_ref, wo_ref, bg_ref, bo_ref,
               hw_ref, hb_ref, cmask_ref, out_ref,
               h_ref, c_ref, m_ref, prev_ref):
        t = pl.program_id(1)

        @pl.when(t == 0)
        def _init():
            h_ref[...] = jnp.zeros_like(h_ref)
            c_ref[...] = jnp.zeros_like(c_ref)
            m_ref[...] = jnp.zeros_like(m_ref)
            prev_ref[...] = jnp.zeros_like(prev_ref)

        # Hoist the boundary masks: ntap loads of (1, LB) per grid step.
        masks = [mask_ref[j] for j in range(ntap)]

        def im2col(a):
            # a: (C, LB) -> (ntap*C, LB).  Spatial shift = lane roll (XLU);
            # out-of-image / cross-image taps are zeroed by the mask (VPU).
            # The MXU only ever sees the real conv matmul.
            blocks = []
            for j, off in enumerate(offs):
                if off == 0:
                    blocks.append(a)
                else:
                    blocks.append(pltpu.roll(a, (-off) % LB, 1) * masks[j])
            return jnp.concatenate(blocks, axis=0)

        def cell(wg, bg, wo, bo, x_in, h, c, m):
            xcol = im2col(jnp.concatenate([x_in, h, m], axis=0))
            pre = jnp.dot(wg, xcol.astype(wg.dtype),
                          preferred_element_type=jnp.float32) + bg
            # Row order [g, g2, i, f, i2, f2, o]: fused tanh + fused sigmoid.
            tg = jnp.tanh(pre[0:2 * hd])
            sg = jax.nn.sigmoid(pre[2 * hd:6 * hd])
            c_nxt = sg[hd:2 * hd] * c + sg[0:hd] * tg[0:hd]
            m_nxt = sg[3 * hd:4 * hd] * m + sg[2 * hd:3 * hd] * tg[hd:2 * hd]
            cmcol = im2col(jnp.concatenate([c_nxt, m_nxt], axis=0))
            r = jnp.dot(wo, cmcol.astype(wo.dtype),
                        preferred_element_type=jnp.float32) + bo
            o = jax.nn.sigmoid(pre[6 * hd:7 * hd] + r[0:hd])
            return o * jnp.tanh(r[hd:2 * hd]), c_nxt, m_nxt

        # Real frame while t < T, autoregressive feedback afterwards.
        use_x = (t < T).astype(jnp.float32)
        feed = use_x * x_ref[0] + (1.0 - use_x) * prev_ref[...]

        m = m_ref[...]
        for l in range(4):
            wg = wg1_ref[...] if l == 0 else wg234_ref[l - 1]
            feed, c_new, m = cell(wg, bg_ref[l], wo_ref[l], bo_ref[l],
                                  feed, h_ref[l], c_ref[l], m)
            h_ref[l] = feed
            c_ref[l] = c_new
        m_ref[...] = m

        head = jnp.dot(hw_ref[...], feed.astype(hw_ref.dtype),
                       preferred_element_type=jnp.float32) + hb_ref[...]
        pred = cmask_ref[...] * jax.nn.sigmoid(head)   # padded channels -> exact 0
        prev_ref[...] = pred
        out_ref[0] = pred

    return kernel


@functools.lru_cache(maxsize=None)
def _generator_call(B, T, F, cp, hd, H, W, kh, kw, bb):
    HW = H * W
    LB = bb * HW
    nb = B // bb
    ntap = kh * kw
    kernel = _make_kernel(T, hd, LB, W, kh, kw)

    def full(shape):
        n = len(shape)
        return pl.BlockSpec(shape, lambda b, t, n=n: (0,) * n)

    cch1 = cp + 2 * hd
    in_specs = [
        # Per-timestep frame block (clamped to the last real frame for t >= T;
        # the value is then ignored in favour of the fed-back prediction).
        pl.BlockSpec((1, cp, LB), lambda b, t: (jnp.minimum(t, T - 1), 0, b)),
        full((ntap, 1, LB)),                       # boundary masks
        full((7 * hd, ntap * cch1)),               # cell1 gate weight
        full((3, 7 * hd, ntap * 3 * hd)),          # cell2-4 gate weights
        full((4, 2 * hd, ntap * 2 * hd)),          # per-cell output-conv weights
        full((4, 7 * hd, 1)),                      # per-cell gate biases
        full((4, 2 * hd, 1)),                      # per-cell output-conv biases
        full((cp, hd)),                            # head weight (1x1 conv)
        full((cp, 1)),                             # head bias
        full((cp, 1)),                             # real-channel mask
    ]
    out_specs = pl.BlockSpec((1, cp, LB), lambda b, t: (t, 0, b))
    scratch_shapes = [
        pltpu.VMEM((4, hd, LB), jnp.float32),      # h (4 cells)
        pltpu.VMEM((4, hd, LB), jnp.float32),      # c (4 cells)
        pltpu.VMEM((hd, LB), jnp.float32),         # m
        pltpu.VMEM((cp, LB), jnp.float32),         # fed-back prediction
    ]
    return pl.pallas_call(
        kernel,
        out_shape=jax.ShapeDtypeStruct((T + F, cp, B * HW), jnp.float32),
        grid=(nb, T + F),
        in_specs=in_specs,
        out_specs=out_specs,
        scratch_shapes=scratch_shapes,
        compiler_params=pltpu.CompilerParams(
            dimension_semantics=("parallel", "arbitrary"),
            vmem_limit_bytes=16 * 1024 * 1024,
        ),
    )


# -----------------------------------------------------------------------------
# Forward wrapper (pure glue: layout, weight folding, one pallas_call)
# -----------------------------------------------------------------------------
def generator_forward(params, input_sequence, future=11):
    B, T, C, H, W = input_sequence.shape
    hd = params["cell1"]["wh_w"].shape[1]
    kh, kw = params["cell1"]["wx_w"].shape[2], params["cell1"]["wx_w"].shape[3]
    cp = _round8(C)          # pad frame channels to a sublane multiple
    HW = H * W
    bb = _pick_bb(B, HW)

    # (B, T, C, H, W) -> (T, cp, B*HW): channels on sublanes, batch*pixels on lanes.
    x = input_sequence.astype(jnp.float32).reshape(B, T, C, HW)
    x = jnp.transpose(x, (1, 2, 0, 3)).reshape(T, C, B * HW)
    if cp != C:
        x = jnp.concatenate(
            [x, jnp.zeros((T, cp - C, B * HW), jnp.float32)], axis=1)

    masks = _boundary_masks(H, W, kh, kw, bb)

    wg1, bg1 = _fold_gate(params["cell1"], hd, kh, kw, cp)
    wgs, bgs = [], [bg1]
    for name in ("cell2", "cell3", "cell4"):
        wg, bg = _fold_gate(params[name], hd, kh, kw, hd)
        wgs.append(wg)
        bgs.append(bg)
    wg234 = jnp.stack(wgs)                         # (3, 7hd, ntap*3hd)
    bg_all = jnp.stack(bgs)                        # (4, 7hd, 1)

    wos, bos = [], []
    for name in ("cell1", "cell2", "cell3", "cell4"):
        wo, bo = _fold_out(params[name], hd, kh, kw)
        wos.append(wo)
        bos.append(bo)
    wo_all = jnp.stack(wos)                        # (4, 2hd, ntap*2hd)
    bo_all = jnp.stack(bos)                        # (4, 2hd, 1)

    w_head = jnp.zeros((cp, hd), jnp.float32).at[:C].set(
        params["head_w"][:, :, 0, 0].astype(jnp.float32))
    b_head = jnp.zeros((cp, 1), jnp.float32).at[:C, 0].set(
        params["head_b"].astype(jnp.float32))
    cmask = jnp.zeros((cp, 1), jnp.float32).at[:C].set(1.0)

    mmdt = jnp.dtype(_MATMUL_DTYPE)
    wg1, wg234, wo_all, w_head = (a.astype(mmdt)
                                  for a in (wg1, wg234, wo_all, w_head))

    fn = _generator_call(B, T, future, cp, hd, H, W, kh, kw, bb)
    out = fn(x, masks, wg1, wg234, wo_all, bg_all, bo_all,
             w_head, b_head, cmask)                # (T+F, cp, B*HW)
    out = out[:, :C].reshape(T + future, C, B, HW)
    out = jnp.transpose(out, (2, 0, 1, 3)).reshape(B, T + future, C, H, W)
    return out


# -----------------------------------------------------------------------------
# Pure-JAX reference (for correctness validation)
# -----------------------------------------------------------------------------
def _ref_conv(x, w, b):
    y = lax.conv_general_dilated(x, w, (1, 1), "SAME",
                                 dimension_numbers=("NCHW", "OIHW", "NCHW"))
    return y + b[None, :, None, None]


def _ref_cell(p, x, h, c, m, hd):
    wx = _ref_conv(x, p["wx_w"], p["wx_b"])
    wh = _ref_conv(h, p["wh_w"], p["wh_b"])
    wm = _ref_conv(m, p["wm_w"], p["wm_b"])
    sx = lambda a, k: a[:, k * hd:(k + 1) * hd]
    g = jnp.tanh(sx(wx, 0) + sx(wh, 0))
    i = jax.nn.sigmoid(sx(wx, 1) + sx(wh, 1))
    f = jax.nn.sigmoid(sx(wx, 2) + sx(wh, 2))
    c_next = f * c + i * g
    g2 = jnp.tanh(sx(wx, 3) + sx(wm, 0))
    i2 = jax.nn.sigmoid(sx(wx, 4) + sx(wm, 1))
    f2 = jax.nn.sigmoid(sx(wx, 5) + sx(wm, 2))
    m_next = f2 * m + i2 * g2
    o = jax.nn.sigmoid(sx(wx, 6) + sx(wh, 3)
                       + _ref_conv(c_next, p["wcl_w"], p["wcl_b"])
                       + _ref_conv(m_next, p["wml_w"], p["wml_b"]))
    h_next = o * jnp.tanh(_ref_conv(jnp.concatenate([c_next, m_next], axis=1),
                                    p["h_w"], p["h_b"]))
    return h_next, c_next, m_next


def reference_forward(params, input_sequence, future=11):
    B, T, _, H, W = input_sequence.shape
    hd = params["cell1"]["wh_w"].shape[1]
    zeros = jnp.zeros((B, hd, H, W), jnp.float32)
    h1 = c1 = m1 = zeros
    h2 = c2 = zeros
    h3 = c3 = zeros
    h4 = c4 = zeros
    m4 = zeros
    outputs = []

    def step(x_in, h1, c1, m1, h2, c2, h3, c3, h4, c4):
        h1, c1, m1 = _ref_cell(params["cell1"], x_in, h1, c1, m1, hd)
        h2, c2, m2 = _ref_cell(params["cell2"], h1, h2, c2, m1, hd)
        h3, c3, m3 = _ref_cell(params["cell3"], h2, h3, c3, m2, hd)
        h4, c4, m4 = _ref_cell(params["cell4"], h3, h4, c4, m3, hd)
        out = jax.nn.sigmoid(_ref_conv(h4, params["head_w"], params["head_b"]))
        return out, h1, c1, h2, c2, h3, c3, h4, c4, m4

    for t in range(T):
        if t:
            m1 = m4
        out, h1, c1, h2, c2, h3, c3, h4, c4, m4 = step(
            input_sequence[:, t], h1, c1, m1, h2, c2, h3, c3, h4, c4)
        outputs.append(out)
    for _ in range(future):
        m1 = m4
        out, h1, c1, h2, c2, h3, c3, h4, c4, m4 = step(
            outputs[-1], h1, c1, m1, h2, c2, h3, c3, h4, c4)
        outputs.append(out)
    return jnp.stack(outputs, axis=1)


# -----------------------------------------------------------------------------
# Deterministic parameter init (PyTorch-layout weights)
# -----------------------------------------------------------------------------
def _init_cell(key, cin, hd, k):
    ks = jax.random.split(key, 12)
    w = lambda kk, co, ci, kh, kw: 0.1 * jax.random.normal(kk, (co, ci, kh, kw), jnp.float32)
    b = lambda kk, co: 0.01 * jax.random.normal(kk, (co,), jnp.float32)
    return {
        "wx_w": w(ks[0], 7 * hd, cin, k, k), "wx_b": b(ks[1], 7 * hd),
        "wh_w": w(ks[2], 4 * hd, hd, k, k), "wh_b": b(ks[3], 4 * hd),
        "wm_w": w(ks[4], 3 * hd, hd, k, k), "wm_b": b(ks[5], 3 * hd),
        "wcl_w": w(ks[6], hd, hd, k, k), "wcl_b": b(ks[7], hd),
        "wml_w": w(ks[8], hd, hd, k, k), "wml_b": b(ks[9], hd),
        "h_w": w(ks[10], hd, 2 * hd, 1, 1), "h_b": b(ks[11], hd),
    }


def init_generator_params(key, input_dim, hidden_dim, kernel_size):
    k = kernel_size[0]
    ks = jax.random.split(key, 6)
    return {
        "cell1": _init_cell(ks[0], input_dim, hidden_dim, k),
        "cell2": _init_cell(ks[1], hidden_dim, hidden_dim, k),
        "cell3": _init_cell(ks[2], hidden_dim, hidden_dim, k),
        "cell4": _init_cell(ks[3], hidden_dim, hidden_dim, k),
        "head_w": 0.1 * jax.random.normal(ks[4], (input_dim, hidden_dim, 1, 1), jnp.float32),
        "head_b": 0.01 * jax.random.normal(ks[5], (input_dim,), jnp.float32),
    }


# -----------------------------------------------------------------------------
# Main
# -----------------------------------------------------------------------------
if __name__ == "__main__":
    # cfg: input_size=(16,16), hidden_dim=8, input_dim=1, kernel_size=(3,3)
    B, T, C, H, W = 2, 3, 1, 16, 16
    HD = 8
    FUTURE = 2

    key = jax.random.PRNGKey(0)
    kp, kx = jax.random.split(key)
    params = init_generator_params(kp, input_dim=C, hidden_dim=HD, kernel_size=(3, 3))
    x = jax.random.uniform(kx, (B, T, C, H, W), dtype=jnp.float32)

    fwd = jax.jit(generator_forward, static_argnames=("future",))
    out = jax.block_until_ready(fwd(params, x, future=FUTURE))

    ref = jax.block_until_ready(reference_forward(params, x, future=FUTURE))
    assert out.shape == (B, T + FUTURE, C, H, W), out.shape
    # Both the kernel dots and the reference convs run at default TPU MXU
    # precision (bf16-rounded f32 operands), so ~1e-3-level differences are
    # expected even though the refactor is algebraically exact.
    max_err = float(jnp.max(jnp.abs(out - ref)))
    assert max_err < 5e-3, f"mismatch vs reference: max abs err = {max_err}"

    print("KERNEL_OK")
</pallas_src>

<mosaic_0001>
module attributes {stable_mosaic.version = 11 : i64} {
  func.func @kernel(%arg0: i32, %arg1: i32, %arg2: memref<1x8x512xf32, #tpu.memory_space<vmem>>, %arg3: memref<9x1x512xf32, #tpu.memory_space<vmem>>, %arg4: memref<56x216xf32, #tpu.memory_space<vmem>>, %arg5: memref<3x56x216xf32, #tpu.memory_space<vmem>>, %arg6: memref<4x16x144xf32, #tpu.memory_space<vmem>>, %arg7: memref<4x56x1xf32, #tpu.memory_space<vmem>>, %arg8: memref<4x16x1xf32, #tpu.memory_space<vmem>>, %arg9: memref<8x8xf32, #tpu.memory_space<vmem>>, %arg10: memref<8x1xf32, #tpu.memory_space<vmem>>, %arg11: memref<8x1xf32, #tpu.memory_space<vmem>>, %arg12: memref<1x8x512xf32, #tpu.memory_space<vmem>>, %arg13: memref<4x8x512xf32, #tpu.memory_space<vmem>>, %arg14: memref<4x8x512xf32, #tpu.memory_space<vmem>>, %arg15: memref<8x512xf32, #tpu.memory_space<vmem>>, %arg16: memref<8x512xf32, #tpu.memory_space<vmem>>) attributes {dimension_semantics = [#tpu.dimension_semantics<parallel>, #tpu.dimension_semantics<arbitrary>], iteration_bounds = array<i64: 1, 5>, scalar_prefetch = 0 : i64, scratch_operands = 4 : i64, tpu.core_type = #tpu.core_type<tc>, window_params = [{transform_indices = @transform_0, window_bounds = array<i64: 1, 8, 512>}, {pipeline_mode = #tpu.pipeline_mode<synchronous>, transform_indices = @transform_1, window_bounds = array<i64: 9, 1, 512>}, {pipeline_mode = #tpu.pipeline_mode<synchronous>, transform_indices = @transform_2, window_bounds = array<i64: 56, 216>}, {pipeline_mode = #tpu.pipeline_mode<synchronous>, transform_indices = @transform_3, window_bounds = array<i64: 3, 56, 216>}, {pipeline_mode = #tpu.pipeline_mode<synchronous>, transform_indices = @transform_4, window_bounds = array<i64: 4, 16, 144>}, {pipeline_mode = #tpu.pipeline_mode<synchronous>, transform_indices = @transform_5, window_bounds = array<i64: 4, 56, 1>}, {pipeline_mode = #tpu.pipeline_mode<synchronous>, transform_indices = @transform_6, window_bounds = array<i64: 4, 16, 1>}, {pipeline_mode = #tpu.pipeline_mode<synchronous>, transform_indices = @transform_7, window_bounds = array<i64: 8, 8>}, {pipeline_mode = #tpu.pipeline_mode<synchronous>, transform_indices = @transform_8, window_bounds = array<i64: 8, 1>}, {pipeline_mode = #tpu.pipeline_mode<synchronous>, transform_indices = @transform_9, window_bounds = array<i64: 8, 1>}, {transform_indices = @transform_10, window_bounds = array<i64: 1, 8, 512>}]} {
    %c0_i32 = arith.constant 0 : i32
    %0 = arith.cmpi eq, %arg1, %c0_i32 : i32
    %1 = arith.extui %0 : i1 to i32
    %c0_i32_0 = arith.constant 0 : i32
    %2 = arith.cmpi ne, %1, %c0_i32_0 : i32
    scf.if %2 {
      %cst_206 = arith.constant 0.000000e+00 : f32
      %477 = vector.broadcast %cst_206 : f32 to vector<4x8x512xf32>
      %c0_207 = arith.constant 0 : index
      %c0_208 = arith.constant 0 : index
      %c0_209 = arith.constant 0 : index
      %478 = vector.load %arg13[%c0_207, %c0_208, %c0_209] : memref<4x8x512xf32, #tpu.memory_space<vmem>>, vector<4x8x512xf32>
      tpu.vector_store %arg13[%c0_207, %c0_208, %c0_209], %477 {strides = array<i32>} : memref<4x8x512xf32, #tpu.memory_space<vmem>>, vector<4x8x512xf32>,
      %cst_210 = arith.constant 0.000000e+00 : f32
      %479 = vector.broadcast %cst_210 : f32 to vector<4x8x512xf32>
      %c0_211 = arith.constant 0 : index
      %c0_212 = arith.constant 0 : index
      %c0_213 = arith.constant 0 : index
      %480 = vector.load %arg14[%c0_211, %c0_212, %c0_213] : memref<4x8x512xf32, #tpu.memory_space<vmem>>, vector<4x8x512xf32>
      tpu.vector_store %arg14[%c0_211, %c0_212, %c0_213], %479 {strides = array<i32>} : memref<4x8x512xf32, #tpu.memory_space<vmem>>, vector<4x8x512xf32>,
      %cst_214 = arith.constant 0.000000e+00 : f32
      %481 = vector.broadcast %cst_214 : f32 to vector<8x512xf32>
      %c0_215 = arith.constant 0 : index
      %c0_216 = arith.constant 0 : index
      %482 = vector.load %arg15[%c0_215, %c0_216] : memref<8x512xf32, #tpu.memory_space<vmem>>, vector<8x512xf32>
      tpu.vector_store %arg15[%c0_215, %c0_216], %481 {strides = array<i32>} : memref<8x512xf32, #tpu.memory_space<vmem>>, vector<8x512xf32>,
      %cst_217 = arith.constant 0.000000e+00 : f32
      %483 = vector.broadcast %cst_217 : f32 to vector<8x512xf32>
      %c0_218 = arith.constant 0 : index
      %c0_219 = arith.constant 0 : index
      %484 = vector.load %arg16[%c0_218, %c0_219] : memref<8x512xf32, #tpu.memory_space<vmem>>, vector<8x512xf32>
      tpu.vector_store %arg16[%c0_218, %c0_219], %483 {strides = array<i32>} : memref<8x512xf32, #tpu.memory_space<vmem>>, vector<8x512xf32>,
    } else {
    }
    %c0 = arith.constant 0 : index
    %c0_1 = arith.constant 0 : index
    %c0_2 = arith.constant 0 : index
    %3 = vector.load %arg3[%c0, %c0_1, %c0_2] : memref<9x1x512xf32, #tpu.memory_space<vmem>>, vector<1x1x512xf32>
    %4 = vector.shape_cast %3 : vector<1x1x512xf32> to vector<1x512xf32>
    %c1 = arith.constant 1 : index
    %c0_3 = arith.constant 0 : index
    %c0_4 = arith.constant 0 : index
    %5 = vector.load %arg3[%c1, %c0_3, %c0_4] : memref<9x1x512xf32, #tpu.memory_space<vmem>>, vector<1x1x512xf32>
    %6 = vector.shape_cast %5 : vector<1x1x512xf32> to vector<1x512xf32>
    %c2 = arith.constant 2 : index
    %c0_5 = arith.constant 0 : index
    %c0_6 = arith.constant 0 : index
    %7 = vector.load %arg3[%c2, %c0_5, %c0_6] : memref<9x1x512xf32, #tpu.memory_space<vmem>>, vector<1x1x512xf32>
    %8 = vector.shape_cast %7 : vector<1x1x512xf32> to vector<1x512xf32>
    %c3 = arith.constant 3 : index
    %c0_7 = arith.constant 0 : index
    %c0_8 = arith.constant 0 : index
    %9 = vector.load %arg3[%c3, %c0_7, %c0_8] : memref<9x1x512xf32, #tpu.memory_space<vmem>>, vector<1x1x512xf32>
    %10 = vector.shape_cast %9 : vector<1x1x512xf32> to vector<1x512xf32>
    %c5 = arith.constant 5 : index
    %c0_9 = arith.constant 0 : index
    %c0_10 = arith.constant 0 : index
    %11 = vector.load %arg3[%c5, %c0_9, %c0_10] : memref<9x1x512xf32, #tpu.memory_space<vmem>>, vector<1x1x512xf32>
    %12 = vector.shape_cast %11 : vector<1x1x512xf32> to vector<1x512xf32>
    %c6 = arith.constant 6 : index
    %c0_11 = arith.constant 0 : index
    %c0_12 = arith.constant 0 : index
    %13 = vector.load %arg3[%c6, %c0_11, %c0_12] : memref<9x1x512xf32, #tpu.memory_space<vmem>>, vector<1x1x512xf32>
    %14 = vector.shape_cast %13 : vector<1x1x512xf32> to vector<1x512xf32>
    %c7 = arith.constant 7 : index
    %c0_13 = arith.constant 0 : index
    %c0_14 = arith.constant 0 : index
    %15 = vector.load %arg3[%c7, %c0_13, %c0_14] : memref<9x1x512xf32, #tpu.memory_space<vmem>>, vector<1x1x512xf32>
    %16 = vector.shape_cast %15 : vector<1x1x512xf32> to vector<1x512xf32>
    %c8 = arith.constant 8 : index
    %c0_15 = arith.constant 0 : index
    %c0_16 = arith.constant 0 : index
    %17 = vector.load %arg3[%c8, %c0_15, %c0_16] : memref<9x1x512xf32, #tpu.memory_space<vmem>>, vector<1x1x512xf32>
    %18 = vector.shape_cast %17 : vector<1x1x512xf32> to vector<1x512xf32>
    %c3_i32 = arith.constant 3 : i32
    %19 = arith.cmpi slt, %arg1, %c3_i32 : i32
    %20 = arith.extui %19 : i1 to i32
    %21 = arith.sitofp %20 : i32 to f32
    %c0_17 = arith.constant 0 : index
    %c0_18 = arith.constant 0 : index
    %c0_19 = arith.constant 0 : index
    %22 = vector.load %arg2[%c0_17, %c0_18, %c0_19] : memref<1x8x512xf32, #tpu.memory_space<vmem>>, vector<1x8x512xf32>
    %23 = vector.shape_cast %22 : vector<1x8x512xf32> to vector<8x512xf32>
    %24 = vector.broadcast %21 : f32 to vector<8x512xf32>
    %25 = arith.mulf %24, %23 : vector<8x512xf32>
    %cst = arith.constant 1.000000e+00 : f32
    %26 = arith.subf %cst, %21 : f32
    %c0_20 = arith.constant 0 : index
    %c0_21 = arith.constant 0 : index
    %27 = vector.load %arg16[%c0_20, %c0_21] : memref<8x512xf32, #tpu.memory_space<vmem>>, vector<8x512xf32>
    %28 = vector.broadcast %26 : f32 to vector<8x512xf32>
    %29 = arith.mulf %28, %27 : vector<8x512xf32>
    %30 = arith.addf %25, %29 : vector<8x512xf32>
    %c0_22 = arith.constant 0 : index
    %c0_23 = arith.constant 0 : index
    %31 = vector.load %arg15[%c0_22, %c0_23] : memref<8x512xf32, #tpu.memory_space<vmem>>, vector<8x512xf32>
    %c0_24 = arith.constant 0 : index
    %c0_25 = arith.constant 0 : index
    %32 = vector.load %arg4[%c0_24, %c0_25] : memref<56x216xf32, #tpu.memory_space<vmem>>, vector<56x216xf32>
    %c0_26 = arith.constant 0 : index
    %c0_27 = arith.constant 0 : index
    %c0_28 = arith.constant 0 : index
    %33 = vector.load %arg7[%c0_26, %c0_27, %c0_28] : memref<4x56x1xf32, #tpu.memory_space<vmem>>, vector<1x56x1xf32>
    %34 = vector.shape_cast %33 : vector<1x56x1xf32> to vector<56x1xf32>
    %c0_29 = arith.constant 0 : index
    %c0_30 = arith.constant 0 : index
    %c0_31 = arith.constant 0 : index
    %35 = vector.load %arg6[%c0_29, %c0_30, %c0_31] : memref<4x16x144xf32, #tpu.memory_space<vmem>>, vector<1x16x144xf32>
    %36 = vector.shape_cast %35 : vector<1x16x144xf32> to vector<16x144xf32>
    %c0_32 = arith.constant 0 : index
    %c0_33 = arith.constant 0 : index
    %c0_34 = arith.constant 0 : index
    %37 = vector.load %arg8[%c0_32, %c0_33, %c0_34] : memref<4x16x1xf32, #tpu.memory_space<vmem>>, vector<1x16x1xf32>
    %38 = vector.shape_cast %37 : vector<1x16x1xf32> to vector<16x1xf32>
    %c0_35 = arith.constant 0 : index
    %c0_36 = arith.constant 0 : index
    %c0_37 = arith.constant 0 : index
    %39 = vector.load %arg13[%c0_35, %c0_36, %c0_37] : memref<4x8x512xf32, #tpu.memory_space<vmem>>, vector<1x8x512xf32>
    %40 = vector.shape_cast %39 : vector<1x8x512xf32> to vector<8x512xf32>
    %c0_38 = arith.constant 0 : index
    %c0_39 = arith.constant 0 : index
    %c0_40 = arith.constant 0 : index
    %41 = vector.load %arg14[%c0_38, %c0_39, %c0_40] : memref<4x8x512xf32, #tpu.memory_space<vmem>>, vector<1x8x512xf32>
    %42 = vector.shape_cast %41 : vector<1x8x512xf32> to vector<8x512xf32>
    %43 = tpu.concatenate %30, %40, %31 in 0 : vector<8x512xf32>, vector<8x512xf32>, vector<8x512xf32> -> vector<24x512xf32>
    %c17_i32 = arith.constant 17 : i32
    %44 = tpu.dynamic_rotate %43 by %c17_i32 dim 1 : vector<24x512xf32>, i32 -> vector<24x512xf32>
    %45 = vector.broadcast %4 : vector<1x512xf32> to vector<24x512xf32>
    %46 = arith.mulf %44, %45 : vector<24x512xf32>
    %c16_i32 = arith.constant 16 : i32
    %47 = tpu.dynamic_rotate %43 by %c16_i32 dim 1 : vector<24x512xf32>, i32 -> vector<24x512xf32>
    %48 = vector.broadcast %6 : vector<1x512xf32> to vector<24x512xf32>
    %49 = arith.mulf %47, %48 : vector<24x512xf32>
    %c15_i32 = arith.constant 15 : i32
    %50 = tpu.dynamic_rotate %43 by %c15_i32 dim 1 : vector<24x512xf32>, i32 -> vector<24x512xf32>
    %51 = vector.broadcast %8 : vector<1x512xf32> to vector<24x512xf32>
    %52 = arith.mulf %50, %51 : vector<24x512xf32>
    %c1_i32 = arith.constant 1 : i32
    %53 = tpu.dynamic_rotate %43 by %c1_i32 dim 1 : vector<24x512xf32>, i32 -> vector<24x512xf32>
    %54 = vector.broadcast %10 : vector<1x512xf32> to vector<24x512xf32>
    %55 = arith.mulf %53, %54 : vector<24x512xf32>
    %c511_i32 = arith.constant 511 : i32
    %56 = tpu.dynamic_rotate %43 by %c511_i32 dim 1 : vector<24x512xf32>, i32 -> vector<24x512xf32>
    %57 = vector.broadcast %12 : vector<1x512xf32> to vector<24x512xf32>
    %58 = arith.mulf %56, %57 : vector<24x512xf32>
    %c497_i32 = arith.constant 497 : i32
    %59 = tpu.dynamic_rotate %43 by %c497_i32 dim 1 : vector<24x512xf32>, i32 -> vector<24x512xf32>
    %60 = vector.broadcast %14 : vector<1x512xf32> to vector<24x512xf32>
    %61 = arith.mulf %59, %60 : vector<24x512xf32>
    %c496_i32 = arith.constant 496 : i32
    %62 = tpu.dynamic_rotate %43 by %c496_i32 dim 1 : vector<24x512xf32>, i32 -> vector<24x512xf32>
    %63 = vector.broadcast %16 : vector<1x512xf32> to vector<24x512xf32>
    %64 = arith.mulf %62, %63 : vector<24x512xf32>
    %c495_i32 = arith.constant 495 : i32
    %65 = tpu.dynamic_rotate %43 by %c495_i32 dim 1 : vector<24x512xf32>, i32 -> vector<24x512xf32>
    %66 = vector.broadcast %18 : vector<1x512xf32> to vector<24x512xf32>
    %67 = arith.mulf %65, %66 : vector<24x512xf32>
    %68 = tpu.concatenate %46, %49, %52, %55, %43, %58, %61, %64, %67 in 0 : vector<24x512xf32>, vector<24x512xf32>, vector<24x512xf32>, vector<24x512xf32>, vector<24x512xf32>, vector<24x512xf32>, vector<24x512xf32>, vector<24x512xf32>, vector<24x512xf32> -> vector<216x512xf32>
    %cst_41 = arith.constant dense<0.000000e+00> : vector<56x512xf32>
    %69 = tpu.matmul %32, %68, %cst_41 {dimension_numbers = #tpu.dot_dimension_numbers<[1], [0], [0], [1], [0, 0, 1, 1], [], []>} : vector<56x216xf32>, vector<216x512xf32>, vector<56x512xf32> -> vector<56x512xf32>
    %70 = vector.broadcast %34 : vector<56x1xf32> to vector<56x512xf32>
    %71 = arith.addf %69, %70 : vector<56x512xf32>
    %72 = vector.extract_strided_slice %71 {offsets = [0, 0], sizes = [16, 512], strides = [1, 1]} : vector<56x512xf32> to vector<16x512xf32>
    %73 = math.tanh %72 : vector<16x512xf32>
    %74 = vector.extract_strided_slice %71 {offsets = [16, 0], sizes = [32, 512], strides = [1, 1]} : vector<56x512xf32> to vector<32x512xf32>
    %75 = arith.negf %74 : vector<32x512xf32>
    %76 = math.exp %75 : vector<32x512xf32>
    %cst_42 = arith.constant 1.000000e+00 : f32
    %77 = vector.broadcast %cst_42 : f32 to vector<32x512xf32>
    %78 = arith.addf %77, %76 : vector<32x512xf32>
    %79 = arith.divf %77, %78 : vector<32x512xf32>
    %80 = vector.extract_strided_slice %79 {offsets = [8, 0], sizes = [8, 512], strides = [1, 1]} : vector<32x512xf32> to vector<8x512xf32>
    %81 = arith.mulf %80, %42 : vector<8x512xf32>
    %82 = vector.extract_strided_slice %79 {offsets = [0, 0], sizes = [8, 512], strides = [1, 1]} : vector<32x512xf32> to vector<8x512xf32>
    %83 = vector.extract_strided_slice %73 {offsets = [0, 0], sizes = [8, 512], strides = [1, 1]} : vector<16x512xf32> to vector<8x512xf32>
    %84 = arith.mulf %82, %83 : vector<8x512xf32>
    %85 = arith.addf %81, %84 : vector<8x512xf32>
    %86 = vector.extract_strided_slice %79 {offsets = [24, 0], sizes = [8, 512], strides = [1, 1]} : vector<32x512xf32> to vector<8x512xf32>
    %87 = arith.mulf %86, %31 : vector<8x512xf32>
    %88 = vector.extract_strided_slice %79 {offsets = [16, 0], sizes = [8, 512], strides = [1, 1]} : vector<32x512xf32> to vector<8x512xf32>
    %89 = vector.extract_strided_slice %73 {offsets = [8, 0], sizes = [8, 512], strides = [1, 1]} : vector<16x512xf32> to vector<8x512xf32>
    %90 = arith.mulf %88, %89 : vector<8x512xf32>
    %91 = arith.addf %87, %90 : vector<8x512xf32>
    %92 = tpu.concatenate %85, %91 in 0 : vector<8x512xf32>, vector<8x512xf32> -> vector<16x512xf32>
    %c17_i32_43 = arith.constant 17 : i32
    %93 = tpu.dynamic_rotate %92 by %c17_i32_43 dim 1 : vector<16x512xf32>, i32 -> vector<16x512xf32>
    %94 = vector.broadcast %4 : vector<1x512xf32> to vector<16x512xf32>
    %95 = arith.mulf %93, %94 : vector<16x512xf32>
    %c16_i32_44 = arith.constant 16 : i32
    %96 = tpu.dynamic_rotate %92 by %c16_i32_44 dim 1 : vector<16x512xf32>, i32 -> vector<16x512xf32>
    %97 = vector.broadcast %6 : vector<1x512xf32> to vector<16x512xf32>
    %98 = arith.mulf %96, %97 : vector<16x512xf32>
    %c15_i32_45 = arith.constant 15 : i32
    %99 = tpu.dynamic_rotate %92 by %c15_i32_45 dim 1 : vector<16x512xf32>, i32 -> vector<16x512xf32>
    %100 = vector.broadcast %8 : vector<1x512xf32> to vector<16x512xf32>
    %101 = arith.mulf %99, %100 : vector<16x512xf32>
    %c1_i32_46 = arith.constant 1 : i32
    %102 = tpu.dynamic_rotate %92 by %c1_i32_46 dim 1 : vector<16x512xf32>, i32 -> vector<16x512xf32>
    %103 = vector.broadcast %10 : vector<1x512xf32> to vector<16x512xf32>
    %104 = arith.mulf %102, %103 : vector<16x512xf32>
    %c511_i32_47 = arith.constant 511 : i32
    %105 = tpu.dynamic_rotate %92 by %c511_i32_47 dim 1 : vector<16x512xf32>, i32 -> vector<16x512xf32>
    %106 = vector.broadcast %12 : vector<1x512xf32> to vector<16x512xf32>
    %107 = arith.mulf %105, %106 : vector<16x512xf32>
    %c497_i32_48 = arith.constant 497 : i32
    %108 = tpu.dynamic_rotate %92 by %c497_i32_48 dim 1 : vector<16x512xf32>, i32 -> vector<16x512xf32>
    %109 = vector.broadcast %14 : vector<1x512xf32> to vector<16x512xf32>
    %110 = arith.mulf %108, %109 : vector<16x512xf32>
    %c496_i32_49 = arith.constant 496 : i32
    %111 = tpu.dynamic_rotate %92 by %c496_i32_49 dim 1 : vector<16x512xf32>, i32 -> vector<16x512xf32>
    %112 = vector.broadcast %16 : vector<1x512xf32> to vector<16x512xf32>
    %113 = arith.mulf %111, %112 : vector<16x512xf32>
    %c495_i32_50 = arith.constant 495 : i32
    %114 = tpu.dynamic_rotate %92 by %c495_i32_50 dim 1 : vector<16x512xf32>, i32 -> vector<16x512xf32>
    %115 = vector.broadcast %18 : vector<1x512xf32> to vector<16x512xf32>
    %116 = arith.mulf %114, %115 : vector<16x512xf32>
    %117 = tpu.concatenate %95, %98, %101, %104, %92, %107, %110, %113, %116 in 0 : vector<16x512xf32>, vector<16x512xf32>, vector<16x512xf32>, vector<16x512xf32>, vector<16x512xf32>, vector<16x512xf32>, vector<16x512xf32>, vector<16x512xf32>, vector<16x512xf32> -> vector<144x512xf32>
    %cst_51 = arith.constant dense<0.000000e+00> : vector<16x512xf32>
    %118 = tpu.matmul %36, %117, %cst_51 {dimension_numbers = #tpu.dot_dimension_numbers<[1], [0], [0], [1], [0, 0, 1, 1], [], []>} : vector<16x144xf32>, vector<144x512xf32>, vector<16x512xf32> -> vector<16x512xf32>
    %119 = vector.broadcast %38 : vector<16x1xf32> to vector<16x512xf32>
    %120 = arith.addf %118, %119 : vector<16x512xf32>
    %121 = vector.extract_strided_slice %71 {offsets = [48, 0], sizes = [8, 512], strides = [1, 1]} : vector<56x512xf32> to vector<8x512xf32>
    %122 = vector.extract_strided_slice %120 {offsets = [0, 0], sizes = [8, 512], strides = [1, 1]} : vector<16x512xf32> to vector<8x512xf32>
    %123 = arith.addf %121, %122 : vector<8x512xf32>
    %124 = arith.negf %123 : vector<8x512xf32>
    %125 = math.exp %124 : vector<8x512xf32>
    %cst_52 = arith.constant 1.000000e+00 : f32
    %126 = vector.broadcast %cst_52 : f32 to vector<8x512xf32>
    %127 = arith.addf %126, %125 : vector<8x512xf32>
    %128 = arith.divf %126, %127 : vector<8x512xf32>
    %129 = vector.extract_strided_slice %120 {offsets = [8, 0], sizes = [8, 512], strides = [1, 1]} : vector<16x512xf32> to vector<8x512xf32>
    %130 = math.tanh %129 : vector<8x512xf32>
    %131 = arith.mulf %128, %130 : vector<8x512xf32>
    %c0_53 = arith.constant 0 : index
    %c0_54 = arith.constant 0 : index
    %c0_55 = arith.constant 0 : index
    %132 = vector.load %arg13[%c0_53, %c0_54, %c0_55] : memref<4x8x512xf32, #tpu.memory_space<vmem>>, vector<1x8x512xf32>
    %133 = vector.shape_cast %132 : vector<1x8x512xf32> to vector<8x512xf32>
    %134 = vector.shape_cast %131 : vector<8x512xf32> to vector<1x8x512xf32>
    tpu.vector_store %arg13[%c0_53, %c0_54, %c0_55], %134 {strides = array<i32>} : memref<4x8x512xf32, #tpu.memory_space<vmem>>, vector<1x8x512xf32>,
    %c0_56 = arith.constant 0 : index
    %c0_57 = arith.constant 0 : index
    %c0_58 = arith.constant 0 : index
    %135 = vector.load %arg14[%c0_56, %c0_57, %c0_58] : memref<4x8x512xf32, #tpu.memory_space<vmem>>, vector<1x8x512xf32>
    %136 = vector.shape_cast %135 : vector<1x8x512xf32> to vector<8x512xf32>
    %137 = vector.shape_cast %85 : vector<8x512xf32> to vector<1x8x512xf32>
    tpu.vector_store %arg14[%c0_56, %c0_57, %c0_58], %137 {strides = array<i32>} : memref<4x8x512xf32, #tpu.memory_space<vmem>>, vector<1x8x512xf32>,
    %c0_59 = arith.constant 0 : index
    %c0_60 = arith.constant 0 : index
    %c0_61 = arith.constant 0 : index
    %138 = vector.load %arg5[%c0_59, %c0_60, %c0_61] : memref<3x56x216xf32, #tpu.memory_space<vmem>>, vector<1x56x216xf32>
    %139 = vector.shape_cast %138 : vector<1x56x216xf32> to vector<56x216xf32>
    %c1_62 = arith.constant 1 : index
    %c0_63 = arith.constant 0 : index
    %c0_64 = arith.constant 0 : index
    %140 = vector.load %arg7[%c1_62, %c0_63, %c0_64] : memref<4x56x1xf32, #tpu.memory_space<vmem>>, vector<1x56x1xf32>
    %141 = vector.shape_cast %140 : vector<1x56x1xf32> to vector<56x1xf32>
    %c1_65 = arith.constant 1 : index
    %c0_66 = arith.constant 0 : index
    %c0_67 = arith.constant 0 : index
    %142 = vector.load %arg6[%c1_65, %c0_66, %c0_67] : memref<4x16x144xf32, #tpu.memory_space<vmem>>, vector<1x16x144xf32>
    %143 = vector.shape_cast %142 : vector<1x16x144xf32> to vector<16x144xf32>
    %c1_68 = arith.constant 1 : index
    %c0_69 = arith.constant 0 : index
    %c0_70 = arith.constant 0 : index
    %144 = vector.load %arg8[%c1_68, %c0_69, %c0_70] : memref<4x16x1xf32, #tpu.memory_space<vmem>>, vector<1x16x1xf32>
    %145 = vector.shape_cast %144 : vector<1x16x1xf32> to vector<16x1xf32>
    %c1_71 = arith.constant 1 : index
    %c0_72 = arith.constant 0 : index
    %c0_73 = arith.constant 0 : index
    %146 = vector.load %arg13[%c1_71, %c0_72, %c0_73] : memref<4x8x512xf32, #tpu.memory_space<vmem>>, vector<1x8x512xf32>
    %147 = vector.shape_cast %146 : vector<1x8x512xf32> to vector<8x512xf32>
    %c1_74 = arith.constant 1 : index
    %c0_75 = arith.constant 0 : index
    %c0_76 = arith.constant 0 : index
    %148 = vector.load %arg14[%c1_74, %c0_75, %c0_76] : memref<4x8x512xf32, #tpu.memory_space<vmem>>, vector<1x8x512xf32>
    %149 = vector.shape_cast %148 : vector<1x8x512xf32> to vector<8x512xf32>
    %150 = tpu.concatenate %131, %147, %91 in 0 : vector<8x512xf32>, vector<8x512xf32>, vector<8x512xf32> -> vector<24x512xf32>
    %c17_i32_77 = arith.constant 17 : i32
    %151 = tpu.dynamic_rotate %150 by %c17_i32_77 dim 1 : vector<24x512xf32>, i32 -> vector<24x512xf32>
    %152 = vector.broadcast %4 : vector<1x512xf32> to vector<24x512xf32>
    %153 = arith.mulf %151, %152 : vector<24x512xf32>
    %c16_i32_78 = arith.constant 16 : i32
    %154 = tpu.dynamic_rotate %150 by %c16_i32_78 dim 1 : vector<24x512xf32>, i32 -> vector<24x512xf32>
    %155 = vector.broadcast %6 : vector<1x512xf32> to vector<24x512xf32>
    %156 = arith.mulf %154, %155 : vector<24x512xf32>
    %c15_i32_79 = arith.constant 15 : i32
    %157 = tpu.dynamic_rotate %150 by %c15_i32_79 dim 1 : vector<24x512xf32>, i32 -> vector<24x512xf32>
    %158 = vector.broadcast %8 : vector<1x512xf32> to vector<24x512xf32>
    %159 = arith.mulf %157, %158 : vector<24x512xf32>
    %c1_i32_80 = arith.constant 1 : i32
    %160 = tpu.dynamic_rotate %150 by %c1_i32_80 dim 1 : vector<24x512xf32>, i32 -> vector<24x512xf32>
    %161 = vector.broadcast %10 : vector<1x512xf32> to vector<24x512xf32>
    %162 = arith.mulf %160, %161 : vector<24x512xf32>
    %c511_i32_81 = arith.constant 511 : i32
    %163 = tpu.dynamic_rotate %150 by %c511_i32_81 dim 1 : vector<24x512xf32>, i32 -> vector<24x512xf32>
    %164 = vector.broadcast %12 : vector<1x512xf32> to vector<24x512xf32>
    %165 = arith.mulf %163, %164 : vector<24x512xf32>
    %c497_i32_82 = arith.constant 497 : i32
    %166 = tpu.dynamic_rotate %150 by %c497_i32_82 dim 1 : vector<24x512xf32>, i32 -> vector<24x512xf32>
    %167 = vector.broadcast %14 : vector<1x512xf32> to vector<24x512xf32>
    %168 = arith.mulf %166, %167 : vector<24x512xf32>
    %c496_i32_83 = arith.constant 496 : i32
    %169 = tpu.dynamic_rotate %150 by %c496_i32_83 dim 1 : vector<24x512xf32>, i32 -> vector<24x512xf32>
    %170 = vector.broadcast %16 : vector<1x512xf32> to vector<24x512xf32>
    %171 = arith.mulf %169, %170 : vector<24x512xf32>
    %c495_i32_84 = arith.constant 495 : i32
    %172 = tpu.dynamic_rotate %150 by %c495_i32_84 dim 1 : vector<24x512xf32>, i32 -> vector<24x512xf32>
    %173 = vector.broadcast %18 : vector<1x512xf32> to vector<24x512xf32>
    %174 = arith.mulf %172, %173 : vector<24x512xf32>
    %175 = tpu.concatenate %153, %156, %159, %162, %150, %165, %168, %171, %174 in 0 : vector<24x512xf32>, vector<24x512xf32>, vector<24x512xf32>, vector<24x512xf32>, vector<24x512xf32>, vector<24x512xf32>, vector<24x512xf32>, vector<24x512xf32>, vector<24x512xf32> -> vector<216x512xf32>
    %cst_85 = arith.constant dense<0.000000e+00> : vector<56x512xf32>
    %176 = tpu.matmul %139, %175, %cst_85 {dimension_numbers = #tpu.dot_dimension_numbers<[1], [0], [0], [1], [0, 0, 1, 1], [], []>} : vector<56x216xf32>, vector<216x512xf32>, vector<56x512xf32> -> vector<56x512xf32>
    %177 = vector.broadcast %141 : vector<56x1xf32> to vector<56x512xf32>
    %178 = arith.addf %176, %177 : vector<56x512xf32>
    %179 = vector.extract_strided_slice %178 {offsets = [0, 0], sizes = [16, 512], strides = [1, 1]} : vector<56x512xf32> to vector<16x512xf32>
    %180 = math.tanh %179 : vector<16x512xf32>
    %181 = vector.extract_strided_slice %178 {offsets = [16, 0], sizes = [32, 512], strides = [1, 1]} : vector<56x512xf32> to vector<32x512xf32>
    %182 = arith.negf %181 : vector<32x512xf32>
    %183 = math.exp %182 : vector<32x512xf32>
    %cst_86 = arith.constant 1.000000e+00 : f32
    %184 = vector.broadcast %cst_86 : f32 to vector<32x512xf32>
    %185 = arith.addf %184, %183 : vector<32x512xf32>
    %186 = arith.divf %184, %185 : vector<32x512xf32>
    %187 = vector.extract_strided_slice %186 {offsets = [8, 0], sizes = [8, 512], strides = [1, 1]} : vector<32x512xf32> to vector<8x512xf32>
    %188 = arith.mulf %187, %149 : vector<8x512xf32>
    %189 = vector.extract_strided_slice %186 {offsets = [0, 0], sizes = [8, 512], strides = [1, 1]} : vector<32x512xf32> to vector<8x512xf32>
    %190 = vector.extract_strided_slice %180 {offsets = [0, 0], sizes = [8, 512], strides = [1, 1]} : vector<16x512xf32> to vector<8x512xf32>
    %191 = arith.mulf %189, %190 : vector<8x512xf32>
    %192 = arith.addf %188, %191 : vector<8x512xf32>
    %193 = vector.extract_strided_slice %186 {offsets = [24, 0], sizes = [8, 512], strides = [1, 1]} : vector<32x512xf32> to vector<8x512xf32>
    %194 = arith.mulf %193, %91 : vector<8x512xf32>
    %195 = vector.extract_strided_slice %186 {offsets = [16, 0], sizes = [8, 512], strides = [1, 1]} : vector<32x512xf32> to vector<8x512xf32>
    %196 = vector.extract_strided_slice %180 {offsets = [8, 0], sizes = [8, 512], strides = [1, 1]} : vector<16x512xf32> to vector<8x512xf32>
    %197 = arith.mulf %195, %196 : vector<8x512xf32>
    %198 = arith.addf %194, %197 : vector<8x512xf32>
    %199 = tpu.concatenate %192, %198 in 0 : vector<8x512xf32>, vector<8x512xf32> -> vector<16x512xf32>
    %c17_i32_87 = arith.constant 17 : i32
    %200 = tpu.dynamic_rotate %199 by %c17_i32_87 dim 1 : vector<16x512xf32>, i32 -> vector<16x512xf32>
    %201 = vector.broadcast %4 : vector<1x512xf32> to vector<16x512xf32>
    %202 = arith.mulf %200, %201 : vector<16x512xf32>
    %c16_i32_88 = arith.constant 16 : i32
    %203 = tpu.dynamic_rotate %199 by %c16_i32_88 dim 1 : vector<16x512xf32>, i32 -> vector<16x512xf32>
    %204 = vector.broadcast %6 : vector<1x512xf32> to vector<16x512xf32>
    %205 = arith.mulf %203, %204 : vector<16x512xf32>
    %c15_i32_89 = arith.constant 15 : i32
    %206 = tpu.dynamic_rotate %199 by %c15_i32_89 dim 1 : vector<16x512xf32>, i32 -> vector<16x512xf32>
    %207 = vector.broadcast %8 : vector<1x512xf32> to vector<16x512xf32>
    %208 = arith.mulf %206, %207 : vector<16x512xf32>
    %c1_i32_90 = arith.constant 1 : i32
    %209 = tpu.dynamic_rotate %199 by %c1_i32_90 dim 1 : vector<16x512xf32>, i32 -> vector<16x512xf32>
    %210 = vector.broadcast %10 : vector<1x512xf32> to vector<16x512xf32>
    %211 = arith.mulf %209, %210 : vector<16x512xf32>
    %c511_i32_91 = arith.constant 511 : i32
    %212 = tpu.dynamic_rotate %199 by %c511_i32_91 dim 1 : vector<16x512xf32>, i32 -> vector<16x512xf32>
    %213 = vector.broadcast %12 : vector<1x512xf32> to vector<16x512xf32>
    %214 = arith.mulf %212, %213 : vector<16x512xf32>
    %c497_i32_92 = arith.constant 497 : i32
    %215 = tpu.dynamic_rotate %199 by %c497_i32_92 dim 1 : vector<16x512xf32>, i32 -> vector<16x512xf32>
    %216 = vector.broadcast %14 : vector<1x512xf32> to vector<16x512xf32>
    %217 = arith.mulf %215, %216 : vector<16x512xf32>
    %c496_i32_93 = arith.constant 496 : i32
    %218 = tpu.dynamic_rotate %199 by %c496_i32_93 dim 1 : vector<16x512xf32>, i32 -> vector<16x512xf32>
    %219 = vector.broadcast %16 : vector<1x512xf32> to vector<16x512xf32>
    %220 = arith.mulf %218, %219 : vector<16x512xf32>
    %c495_i32_94 = arith.constant 495 : i32
    %221 = tpu.dynamic_rotate %199 by %c495_i32_94 dim 1 : vector<16x512xf32>, i32 -> vector<16x512xf32>
    %222 = vector.broadcast %18 : vector<1x512xf32> to vector<16x512xf32>
    %223 = arith.mulf %221, %222 : vector<16x512xf32>
    %224 = tpu.concatenate %202, %205, %208, %211, %199, %214, %217, %220, %223 in 0 : vector<16x512xf32>, vector<16x512xf32>, vector<16x512xf32>, vector<16x512xf32>, vector<16x512xf32>, vector<16x512xf32>, vector<16x512xf32>, vector<16x512xf32>, vector<16x512xf32> -> vector<144x512xf32>
    %cst_95 = arith.constant dense<0.000000e+00> : vector<16x512xf32>
    %225 = tpu.matmul %143, %224, %cst_95 {dimension_numbers = #tpu.dot_dimension_numbers<[1], [0], [0], [1], [0, 0, 1, 1], [], []>} : vector<16x144xf32>, vector<144x512xf32>, vector<16x512xf32> -> vector<16x512xf32>
    %226 = vector.broadcast %145 : vector<16x1xf32> to vector<16x512xf32>
    %227 = arith.addf %225, %226 : vector<16x512xf32>
    %228 = vector.extract_strided_slice %178 {offsets = [48, 0], sizes = [8, 512], strides = [1, 1]} : vector<56x512xf32> to vector<8x512xf32>
    %229 = vector.extract_strided_slice %227 {offsets = [0, 0], sizes = [8, 512], strides = [1, 1]} : vector<16x512xf32> to vector<8x512xf32>
    %230 = arith.addf %228, %229 : vector<8x512xf32>
    %231 = arith.negf %230 : vector<8x512xf32>
    %232 = math.exp %231 : vector<8x512xf32>
    %cst_96 = arith.constant 1.000000e+00 : f32
    %233 = vector.broadcast %cst_96 : f32 to vector<8x512xf32>
    %234 = arith.addf %233, %232 : vector<8x512xf32>
    %235 = arith.divf %233, %234 : vector<8x512xf32>
    %236 = vector.extract_strided_slice %227 {offsets = [8, 0], sizes = [8, 512], strides = [1, 1]} : vector<16x512xf32> to vector<8x512xf32>
    %237 = math.tanh %236 : vector<8x512xf32>
    %238 = arith.mulf %235, %237 : vector<8x512xf32>
    %c1_97 = arith.constant 1 : index
    %c0_98 = arith.constant 0 : index
    %c0_99 = arith.constant 0 : index
    %239 = vector.load %arg13[%c1_97, %c0_98, %c0_99] : memref<4x8x512xf32, #tpu.memory_space<vmem>>, vector<1x8x512xf32>
    %240 = vector.shape_cast %239 : vector<1x8x512xf32> to vector<8x512xf32>
    %241 = vector.shape_cast %238 : vector<8x512xf32> to vector<1x8x512xf32>
    tpu.vector_store %arg13[%c1_97, %c0_98, %c0_99], %241 {strides = array<i32>} : memref<4x8x512xf32, #tpu.memory_space<vmem>>, vector<1x8x512xf32>,
    %c1_100 = arith.constant 1 : index
    %c0_101 = arith.constant 0 : index
    %c0_102 = arith.constant 0 : index
    %242 = vector.load %arg14[%c1_100, %c0_101, %c0_102] : memref<4x8x512xf32, #tpu.memory_space<vmem>>, vector<1x8x512xf32>
    %243 = vector.shape_cast %242 : vector<1x8x512xf32> to vector<8x512xf32>
    %244 = vector.shape_cast %192 : vector<8x512xf32> to vector<1x8x512xf32>
    tpu.vector_store %arg14[%c1_100, %c0_101, %c0_102], %244 {strides = array<i32>} : memref<4x8x512xf32, #tpu.memory_space<vmem>>, vector<1x8x512xf32>,
    %c1_103 = arith.constant 1 : index
    %c0_104 = arith.constant 0 : index
    %c0_105 = arith.constant 0 : index
    %245 = vector.load %arg5[%c1_103, %c0_104, %c0_105] : memref<3x56x216xf32, #tpu.memory_space<vmem>>, vector<1x56x216xf32>
    %246 = vector.shape_cast %245 : vector<1x56x216xf32> to vector<56x216xf32>
    %c2_106 = arith.constant 2 : index
    %c0_107 = arith.constant 0 : index
    %c0_108 = arith.constant 0 : index
    %247 = vector.load %arg7[%c2_106, %c0_107, %c0_108] : memref<4x56x1xf32, #tpu.memory_space<vmem>>, vector<1x56x1xf32>
    %248 = vector.shape_cast %247 : vector<1x56x1xf32> to vector<56x1xf32>
    %c2_109 = arith.constant 2 : index
    %c0_110 = arith.constant 0 : index
    %c0_111 = arith.constant 0 : index
    %249 = vector.load %arg6[%c2_109, %c0_110, %c0_111] : memref<4x16x144xf32, #tpu.memory_space<vmem>>, vector<1x16x144xf32>
    %250 = vector.shape_cast %249 : vector<1x16x144xf32> to vector<16x144xf32>
    %c2_112 = arith.constant 2 : index
    %c0_113 = arith.constant 0 : index
    %c0_114 = arith.constant 0 : index
    %251 = vector.load %arg8[%c2_112, %c0_113, %c0_114] : memref<4x16x1xf32, #tpu.memory_space<vmem>>, vector<1x16x1xf32>
    %252 = vector.shape_cast %251 : vector<1x16x1xf32> to vector<16x1xf32>
    %c2_115 = arith.constant 2 : index
    %c0_116 = arith.constant 0 : index
    %c0_117 = arith.constant 0 : index
    %253 = vector.load %arg13[%c2_115, %c0_116, %c0_117] : memref<4x8x512xf32, #tpu.memory_space<vmem>>, vector<1x8x512xf32>
    %254 = vector.shape_cast %253 : vector<1x8x512xf32> to vector<8x512xf32>
    %c2_118 = arith.constant 2 : index
    %c0_119 = arith.constant 0 : index
    %c0_120 = arith.constant 0 : index
    %255 = vector.load %arg14[%c2_118, %c0_119, %c0_120] : memref<4x8x512xf32, #tpu.memory_space<vmem>>, vector<1x8x512xf32>
    %256 = vector.shape_cast %255 : vector<1x8x512xf32> to vector<8x512xf32>
    %257 = tpu.concatenate %238, %254, %198 in 0 : vector<8x512xf32>, vector<8x512xf32>, vector<8x512xf32> -> vector<24x512xf32>
    %c17_i32_121 = arith.constant 17 : i32
    %258 = tpu.dynamic_rotate %257 by %c17_i32_121 dim 1 : vector<24x512xf32>, i32 -> vector<24x512xf32>
    %259 = vector.broadcast %4 : vector<1x512xf32> to vector<24x512xf32>
    %260 = arith.mulf %258, %259 : vector<24x512xf32>
    %c16_i32_122 = arith.constant 16 : i32
    %261 = tpu.dynamic_rotate %257 by %c16_i32_122 dim 1 : vector<24x512xf32>, i32 -> vector<24x512xf32>
    %262 = vector.broadcast %6 : vector<1x512xf32> to vector<24x512xf32>
    %263 = arith.mulf %261, %262 : vector<24x512xf32>
    %c15_i32_123 = arith.constant 15 : i32
    %264 = tpu.dynamic_rotate %257 by %c15_i32_123 dim 1 : vector<24x512xf32>, i32 -> vector<24x512xf32>
    %265 = vector.broadcast %8 : vector<1x512xf32> to vector<24x512xf32>
    %266 = arith.mulf %264, %265 : vector<24x512xf32>
    %c1_i32_124 = arith.constant 1 : i32
    %267 = tpu.dynamic_rotate %257 by %c1_i32_124 dim 1 : vector<24x512xf32>, i32 -> vector<24x512xf32>
    %268 = vector.broadcast %10 : vector<1x512xf32> to vector<24x512xf32>
    %269 = arith.mulf %267, %268 : vector<24x512xf32>
    %c511_i32_125 = arith.constant 511 : i32
    %270 = tpu.dynamic_rotate %257 by %c511_i32_125 dim 1 : vector<24x512xf32>, i32 -> vector<24x512xf32>
    %271 = vector.broadcast %12 : vector<1x512xf32> to vector<24x512xf32>
    %272 = arith.mulf %270, %271 : vector<24x512xf32>
    %c497_i32_126 = arith.constant 497 : i32
    %273 = tpu.dynamic_rotate %257 by %c497_i32_126 dim 1 : vector<24x512xf32>, i32 -> vector<24x512xf32>
    %274 = vector.broadcast %14 : vector<1x512xf32> to vector<24x512xf32>
    %275 = arith.mulf %273, %274 : vector<24x512xf32>
    %c496_i32_127 = arith.constant 496 : i32
    %276 = tpu.dynamic_rotate %257 by %c496_i32_127 dim 1 : vector<24x512xf32>, i32 -> vector<24x512xf32>
    %277 = vector.broadcast %16 : vector<1x512xf32> to vector<24x512xf32>
    %278 = arith.mulf %276, %277 : vector<24x512xf32>
    %c495_i32_128 = arith.constant 495 : i32
    %279 = tpu.dynamic_rotate %257 by %c495_i32_128 dim 1 : vector<24x512xf32>, i32 -> vector<24x512xf32>
    %280 = vector.broadcast %18 : vector<1x512xf32> to vector<24x512xf32>
    %281 = arith.mulf %279, %280 : vector<24x512xf32>
    %282 = tpu.concatenate %260, %263, %266, %269, %257, %272, %275, %278, %281 in 0 : vector<24x512xf32>, vector<24x512xf32>, vector<24x512xf32>, vector<24x512xf32>, vector<24x512xf32>, vector<24x512xf32>, vector<24x512xf32>, vector<24x512xf32>, vector<24x512xf32> -> vector<216x512xf32>
    %cst_129 = arith.constant dense<0.000000e+00> : vector<56x512xf32>
    %283 = tpu.matmul %246, %282, %cst_129 {dimension_numbers = #tpu.dot_dimension_numbers<[1], [0], [0], [1], [0, 0, 1, 1], [], []>} : vector<56x216xf32>, vector<216x512xf32>, vector<56x512xf32> -> vector<56x512xf32>
    %284 = vector.broadcast %248 : vector<56x1xf32> to vector<56x512xf32>
    %285 = arith.addf %283, %284 : vector<56x512xf32>
    %286 = vector.extract_strided_slice %285 {offsets = [0, 0], sizes = [16, 512], strides = [1, 1]} : vector<56x512xf32> to vector<16x512xf32>
    %287 = math.tanh %286 : vector<16x512xf32>
    %288 = vector.extract_strided_slice %285 {offsets = [16, 0], sizes = [32, 512], strides = [1, 1]} : vector<56x512xf32> to vector<32x512xf32>
    %289 = arith.negf %288 : vector<32x512xf32>
    %290 = math.exp %289 : vector<32x512xf32>
    %cst_130 = arith.constant 1.000000e+00 : f32
    %291 = vector.broadcast %cst_130 : f32 to vector<32x512xf32>
    %292 = arith.addf %291, %290 : vector<32x512xf32>
    %293 = arith.divf %291, %292 : vector<32x512xf32>
    %294 = vector.extract_strided_slice %293 {offsets = [8, 0], sizes = [8, 512], strides = [1, 1]} : vector<32x512xf32> to vector<8x512xf32>
    %295 = arith.mulf %294, %256 : vector<8x512xf32>
    %296 = vector.extract_strided_slice %293 {offsets = [0, 0], sizes = [8, 512], strides = [1, 1]} : vector<32x512xf32> to vector<8x512xf32>
    %297 = vector.extract_strided_slice %287 {offsets = [0, 0], sizes = [8, 512], strides = [1, 1]} : vector<16x512xf32> to vector<8x512xf32>
    %298 = arith.mulf %296, %297 : vector<8x512xf32>
    %299 = arith.addf %295, %298 : vector<8x512xf32>
    %300 = vector.extract_strided_slice %293 {offsets = [24, 0], sizes = [8, 512], strides = [1, 1]} : vector<32x512xf32> to vector<8x512xf32>
    %301 = arith.mulf %300, %198 : vector<8x512xf32>
    %302 = vector.extract_strided_slice %293 {offsets = [16, 0], sizes = [8, 512], strides = [1, 1]} : vector<32x512xf32> to vector<8x512xf32>
    %303 = vector.extract_strided_slice %287 {offsets = [8, 0], sizes = [8, 512], strides = [1, 1]} : vector<16x512xf32> to vector<8x512xf32>
    %304 = arith.mulf %302, %303 : vector<8x512xf32>
    %305 = arith.addf %301, %304 : vector<8x512xf32>
    %306 = tpu.concatenate %299, %305 in 0 : vector<8x512xf32>, vector<8x512xf32> -> vector<16x512xf32>
    %c17_i32_131 = arith.constant 17 : i32
    %307 = tpu.dynamic_rotate %306 by %c17_i32_131 dim 1 : vector<16x512xf32>, i32 -> vector<16x512xf32>
    %308 = vector.broadcast %4 : vector<1x512xf32> to vector<16x512xf32>
    %309 = arith.mulf %307, %308 : vector<16x512xf32>
    %c16_i32_132 = arith.constant 16 : i32
    %310 = tpu.dynamic_rotate %306 by %c16_i32_132 dim 1 : vector<16x512xf32>, i32 -> vector<16x512xf32>
    %311 = vector.broadcast %6 : vector<1x512xf32> to vector<16x512xf32>
    %312 = arith.mulf %310, %311 : vector<16x512xf32>
    %c15_i32_133 = arith.constant 15 : i32
    %313 = tpu.dynamic_rotate %306 by %c15_i32_133 dim 1 : vector<16x512xf32>, i32 -> vector<16x512xf32>
    %314 = vector.broadcast %8 : vector<1x512xf32> to vector<16x512xf32>
    %315 = arith.mulf %313, %314 : vector<16x512xf32>
    %c1_i32_134 = arith.constant 1 : i32
    %316 = tpu.dynamic_rotate %306 by %c1_i32_134 dim 1 : vector<16x512xf32>, i32 -> vector<16x512xf32>
    %317 = vector.broadcast %10 : vector<1x512xf32> to vector<16x512xf32>
    %318 = arith.mulf %316, %317 : vector<16x512xf32>
    %c511_i32_135 = arith.constant 511 : i32
    %319 = tpu.dynamic_rotate %306 by %c511_i32_135 dim 1 : vector<16x512xf32>, i32 -> vector<16x512xf32>
    %320 = vector.broadcast %12 : vector<1x512xf32> to vector<16x512xf32>
    %321 = arith.mulf %319, %320 : vector<16x512xf32>
    %c497_i32_136 = arith.constant 497 : i32
    %322 = tpu.dynamic_rotate %306 by %c497_i32_136 dim 1 : vector<16x512xf32>, i32 -> vector<16x512xf32>
    %323 = vector.broadcast %14 : vector<1x512xf32> to vector<16x512xf32>
    %324 = arith.mulf %322, %323 : vector<16x512xf32>
    %c496_i32_137 = arith.constant 496 : i32
    %325 = tpu.dynamic_rotate %306 by %c496_i32_137 dim 1 : vector<16x512xf32>, i32 -> vector<16x512xf32>
    %326 = vector.broadcast %16 : vector<1x512xf32> to vector<16x512xf32>
    %327 = arith.mulf %325, %326 : vector<16x512xf32>
    %c495_i32_138 = arith.constant 495 : i32
    %328 = tpu.dynamic_rotate %306 by %c495_i32_138 dim 1 : vector<16x512xf32>, i32 -> vector<16x512xf32>
    %329 = vector.broadcast %18 : vector<1x512xf32> to vector<16x512xf32>
    %330 = arith.mulf %328, %329 : vector<16x512xf32>
    %331 = tpu.concatenate %309, %312, %315, %318, %306, %321, %324, %327, %330 in 0 : vector<16x512xf32>, vector<16x512xf32>, vector<16x512xf32>, vector<16x512xf32>, vector<16x512xf32>, vector<16x512xf32>, vector<16x512xf32>, vector<16x512xf32>, vector<16x512xf32> -> vector<144x512xf32>
    %cst_139 = arith.constant dense<0.000000e+00> : vector<16x512xf32>
    %332 = tpu.matmul %250, %331, %cst_139 {dimension_numbers = #tpu.dot_dimension_numbers<[1], [0], [0], [1], [0, 0, 1, 1], [], []>} : vector<16x144xf32>, vector<144x512xf32>, vector<16x512xf32> -> vector<16x512xf32>
    %333 = vector.broadcast %252 : vector<16x1xf32> to vector<16x512xf32>
    %334 = arith.addf %332, %333 : vector<16x512xf32>
    %335 = vector.extract_strided_slice %285 {offsets = [48, 0], sizes = [8, 512], strides = [1, 1]} : vector<56x512xf32> to vector<8x512xf32>
    %336 = vector.extract_strided_slice %334 {offsets = [0, 0], sizes = [8, 512], strides = [1, 1]} : vector<16x512xf32> to vector<8x512xf32>
    %337 = arith.addf %335, %336 : vector<8x512xf32>
    %338 = arith.negf %337 : vector<8x512xf32>
    %339 = math.exp %338 : vector<8x512xf32>
    %cst_140 = arith.constant 1.000000e+00 : f32
    %340 = vector.broadcast %cst_140 : f32 to vector<8x512xf32>
    %341 = arith.addf %340, %339 : vector<8x512xf32>
    %342 = arith.divf %340, %341 : vector<8x512xf32>
    %343 = vector.extract_strided_slice %334 {offsets = [8, 0], sizes = [8, 512], strides = [1, 1]} : vector<16x512xf32> to vector<8x512xf32>
    %344 = math.tanh %343 : vector<8x512xf32>
    %345 = arith.mulf %342, %344 : vector<8x512xf32>
    %c2_141 = arith.constant 2 : index
    %c0_142 = arith.constant 0 : index
    %c0_143 = arith.constant 0 : index
    %346 = vector.load %arg13[%c2_141, %c0_142, %c0_143] : memref<4x8x512xf32, #tpu.memory_space<vmem>>, vector<1x8x512xf32>
    %347 = vector.shape_cast %346 : vector<1x8x512xf32> to vector<8x512xf32>
    %348 = vector.shape_cast %345 : vector<8x512xf32> to vector<1x8x512xf32>
    tpu.vector_store %arg13[%c2_141, %c0_142, %c0_143], %348 {strides = array<i32>} : memref<4x8x512xf32, #tpu.memory_space<vmem>>, vector<1x8x512xf32>,
    %c2_144 = arith.constant 2 : index
    %c0_145 = arith.constant 0 : index
    %c0_146 = arith.constant 0 : index
    %349 = vector.load %arg14[%c2_144, %c0_145, %c0_146] : memref<4x8x512xf32, #tpu.memory_space<vmem>>, vector<1x8x512xf32>
    %350 = vector.shape_cast %349 : vector<1x8x512xf32> to vector<8x512xf32>
    %351 = vector.shape_cast %299 : vector<8x512xf32> to vector<1x8x512xf32>
    tpu.vector_store %arg14[%c2_144, %c0_145, %c0_146], %351 {strides = array<i32>} : memref<4x8x512xf32, #tpu.memory_space<vmem>>, vector<1x8x512xf32>,
    %c2_147 = arith.constant 2 : index
    %c0_148 = arith.constant 0 : index
    %c0_149 = arith.constant 0 : index
    %352 = vector.load %arg5[%c2_147, %c0_148, %c0_149] : memref<3x56x216xf32, #tpu.memory_space<vmem>>, vector<1x56x216xf32>
    %353 = vector.shape_cast %352 : vector<1x56x216xf32> to vector<56x216xf32>
    %c3_150 = arith.constant 3 : index
    %c0_151 = arith.constant 0 : index
    %c0_152 = arith.constant 0 : index
    %354 = vector.load %arg7[%c3_150, %c0_151, %c0_152] : memref<4x56x1xf32, #tpu.memory_space<vmem>>, vector<1x56x1xf32>
    %355 = vector.shape_cast %354 : vector<1x56x1xf32> to vector<56x1xf32>
    %c3_153 = arith.constant 3 : index
    %c0_154 = arith.constant 0 : index
    %c0_155 = arith.constant 0 : index
    %356 = vector.load %arg6[%c3_153, %c0_154, %c0_155] : memref<4x16x144xf32, #tpu.memory_space<vmem>>, vector<1x16x144xf32>
    %357 = vector.shape_cast %356 : vector<1x16x144xf32> to vector<16x144xf32>
    %c3_156 = arith.constant 3 : index
    %c0_157 = arith.constant 0 : index
    %c0_158 = arith.constant 0 : index
    %358 = vector.load %arg8[%c3_156, %c0_157, %c0_158] : memref<4x16x1xf32, #tpu.memory_space<vmem>>, vector<1x16x1xf32>
    %359 = vector.shape_cast %358 : vector<1x16x1xf32> to vector<16x1xf32>
    %c3_159 = arith.constant 3 : index
    %c0_160 = arith.constant 0 : index
    %c0_161 = arith.constant 0 : index
    %360 = vector.load %arg13[%c3_159, %c0_160, %c0_161] : memref<4x8x512xf32, #tpu.memory_space<vmem>>, vector<1x8x512xf32>
    %361 = vector.shape_cast %360 : vector<1x8x512xf32> to vector<8x512xf32>
    %c3_162 = arith.constant 3 : index
    %c0_163 = arith.constant 0 : index
    %c0_164 = arith.constant 0 : index
    %362 = vector.load %arg14[%c3_162, %c0_163, %c0_164] : memref<4x8x512xf32, #tpu.memory_space<vmem>>, vector<1x8x512xf32>
    %363 = vector.shape_cast %362 : vector<1x8x512xf32> to vector<8x512xf32>
    %364 = tpu.concatenate %345, %361, %305 in 0 : vector<8x512xf32>, vector<8x512xf32>, vector<8x512xf32> -> vector<24x512xf32>
    %c17_i32_165 = arith.constant 17 : i32
    %365 = tpu.dynamic_rotate %364 by %c17_i32_165 dim 1 : vector<24x512xf32>, i32 -> vector<24x512xf32>
    %366 = vector.broadcast %4 : vector<1x512xf32> to vector<24x512xf32>
    %367 = arith.mulf %365, %366 : vector<24x512xf32>
    %c16_i32_166 = arith.constant 16 : i32
    %368 = tpu.dynamic_rotate %364 by %c16_i32_166 dim 1 : vector<24x512xf32>, i32 -> vector<24x512xf32>
    %369 = vector.broadcast %6 : vector<1x512xf32> to vector<24x512xf32>
    %370 = arith.mulf %368, %369 : vector<24x512xf32>
    %c15_i32_167 = arith.constant 15 : i32
    %371 = tpu.dynamic_rotate %364 by %c15_i32_167 dim 1 : vector<24x512xf32>, i32 -> vector<24x512xf32>
    %372 = vector.broadcast %8 : vector<1x512xf32> to vector<24x512xf32>
    %373 = arith.mulf %371, %372 : vector<24x512xf32>
    %c1_i32_168 = arith.constant 1 : i32
    %374 = tpu.dynamic_rotate %364 by %c1_i32_168 dim 1 : vector<24x512xf32>, i32 -> vector<24x512xf32>
    %375 = vector.broadcast %10 : vector<1x512xf32> to vector<24x512xf32>
    %376 = arith.mulf %374, %375 : vector<24x512xf32>
    %c511_i32_169 = arith.constant 511 : i32
    %377 = tpu.dynamic_rotate %364 by %c511_i32_169 dim 1 : vector<24x512xf32>, i32 -> vector<24x512xf32>
    %378 = vector.broadcast %12 : vector<1x512xf32> to vector<24x512xf32>
    %379 = arith.mulf %377, %378 : vector<24x512xf32>
    %c497_i32_170 = arith.constant 497 : i32
    %380 = tpu.dynamic_rotate %364 by %c497_i32_170 dim 1 : vector<24x512xf32>, i32 -> vector<24x512xf32>
    %381 = vector.broadcast %14 : vector<1x512xf32> to vector<24x512xf32>
    %382 = arith.mulf %380, %381 : vector<24x512xf32>
    %c496_i32_171 = arith.constant 496 : i32
    %383 = tpu.dynamic_rotate %364 by %c496_i32_171 dim 1 : vector<24x512xf32>, i32 -> vector<24x512xf32>
    %384 = vector.broadcast %16 : vector<1x512xf32> to vector<24x512xf32>
    %385 = arith.mulf %383, %384 : vector<24x512xf32>
    %c495_i32_172 = arith.constant 495 : i32
    %386 = tpu.dynamic_rotate %364 by %c495_i32_172 dim 1 : vector<24x512xf32>, i32 -> vector<24x512xf32>
    %387 = vector.broadcast %18 : vector<1x512xf32> to vector<24x512xf32>
    %388 = arith.mulf %386, %387 : vector<24x512xf32>
    %389 = tpu.concatenate %367, %370, %373, %376, %364, %379, %382, %385, %388 in 0 : vector<24x512xf32>, vector<24x512xf32>, vector<24x512xf32>, vector<24x512xf32>, vector<24x512xf32>, vector<24x512xf32>, vector<24x512xf32>, vector<24x512xf32>, vector<24x512xf32> -> vector<216x512xf32>
    %cst_173 = arith.constant dense<0.000000e+00> : vector<56x512xf32>
    %390 = tpu.matmul %353, %389, %cst_173 {dimension_numbers = #tpu.dot_dimension_numbers<[1], [0], [0], [1], [0, 0, 1, 1], [], []>} : vector<56x216xf32>, vector<216x512xf32>, vector<56x512xf32> -> vector<56x512xf32>
    %391 = vector.broadcast %355 : vector<56x1xf32> to vector<56x512xf32>
    %392 = arith.addf %390, %391 : vector<56x512xf32>
    %393 = vector.extract_strided_slice %392 {offsets = [0, 0], sizes = [16, 512], strides = [1, 1]} : vector<56x512xf32> to vector<16x512xf32>
    %394 = math.tanh %393 : vector<16x512xf32>
    %395 = vector.extract_strided_slice %392 {offsets = [16, 0], sizes = [32, 512], strides = [1, 1]} : vector<56x512xf32> to vector<32x512xf32>
    %396 = arith.negf %395 : vector<32x512xf32>
    %397 = math.exp %396 : vector<32x512xf32>
    %cst_174 = arith.constant 1.000000e+00 : f32
    %398 = vector.broadcast %cst_174 : f32 to vector<32x512xf32>
    %399 = arith.addf %398, %397 : vector<32x512xf32>
    %400 = arith.divf %398, %399 : vector<32x512xf32>
    %401 = vector.extract_strided_slice %400 {offsets = [8, 0], sizes = [8, 512], strides = [1, 1]} : vector<32x512xf32> to vector<8x512xf32>
    %402 = arith.mulf %401, %363 : vector<8x512xf32>
    %403 = vector.extract_strided_slice %400 {offsets = [0, 0], sizes = [8, 512], strides = [1, 1]} : vector<32x512xf32> to vector<8x512xf32>
    %404 = vector.extract_strided_slice %394 {offsets = [0, 0], sizes = [8, 512], strides = [1, 1]} : vector<16x512xf32> to vector<8x512xf32>
    %405 = arith.mulf %403, %404 : vector<8x512xf32>
    %406 = arith.addf %402, %405 : vector<8x512xf32>
    %407 = vector.extract_strided_slice %400 {offsets = [24, 0], sizes = [8, 512], strides = [1, 1]} : vector<32x512xf32> to vector<8x512xf32>
    %408 = arith.mulf %407, %305 : vector<8x512xf32>
    %409 = vector.extract_strided_slice %400 {offsets = [16, 0], sizes = [8, 512], strides = [1, 1]} : vector<32x512xf32> to vector<8x512xf32>
    %410 = vector.extract_strided_slice %394 {offsets = [8, 0], sizes = [8, 512], strides = [1, 1]} : vector<16x512xf32> to vector<8x512xf32>
    %411 = arith.mulf %409, %410 : vector<8x512xf32>
    %412 = arith.addf %408, %411 : vector<8x512xf32>
    %413 = tpu.concatenate %406, %412 in 0 : vector<8x512xf32>, vector<8x512xf32> -> vector<16x512xf32>
    %c17_i32_175 = arith.constant 17 : i32
    %414 = tpu.dynamic_rotate %413 by %c17_i32_175 dim 1 : vector<16x512xf32>, i32 -> vector<16x512xf32>
    %415 = vector.broadcast %4 : vector<1x512xf32> to vector<16x512xf32>
    %416 = arith.mulf %414, %415 : vector<16x512xf32>
    %c16_i32_176 = arith.constant 16 : i32
    %417 = tpu.dynamic_rotate %413 by %c16_i32_176 dim 1 : vector<16x512xf32>, i32 -> vector<16x512xf32>
    %418 = vector.broadcast %6 : vector<1x512xf32> to vector<16x512xf32>
    %419 = arith.mulf %417, %418 : vector<16x512xf32>
    %c15_i32_177 = arith.constant 15 : i32
    %420 = tpu.dynamic_rotate %413 by %c15_i32_177 dim 1 : vector<16x512xf32>, i32 -> vector<16x512xf32>
    %421 = vector.broadcast %8 : vector<1x512xf32> to vector<16x512xf32>
    %422 = arith.mulf %420, %421 : vector<16x512xf32>
    %c1_i32_178 = arith.constant 1 : i32
    %423 = tpu.dynamic_rotate %413 by %c1_i32_178 dim 1 : vector<16x512xf32>, i32 -> vector<16x512xf32>
    %424 = vector.broadcast %10 : vector<1x512xf32> to vector<16x512xf32>
    %425 = arith.mulf %423, %424 : vector<16x512xf32>
    %c511_i32_179 = arith.constant 511 : i32
    %426 = tpu.dynamic_rotate %413 by %c511_i32_179 dim 1 : vector<16x512xf32>, i32 -> vector<16x512xf32>
    %427 = vector.broadcast %12 : vector<1x512xf32> to vector<16x512xf32>
    %428 = arith.mulf %426, %427 : vector<16x512xf32>
    %c497_i32_180 = arith.constant 497 : i32
    %429 = tpu.dynamic_rotate %413 by %c497_i32_180 dim 1 : vector<16x512xf32>, i32 -> vector<16x512xf32>
    %430 = vector.broadcast %14 : vector<1x512xf32> to vector<16x512xf32>
    %431 = arith.mulf %429, %430 : vector<16x512xf32>
    %c496_i32_181 = arith.constant 496 : i32
    %432 = tpu.dynamic_rotate %413 by %c496_i32_181 dim 1 : vector<16x512xf32>, i32 -> vector<16x512xf32>
    %433 = vector.broadcast %16 : vector<1x512xf32> to vector<16x512xf32>
    %434 = arith.mulf %432, %433 : vector<16x512xf32>
    %c495_i32_182 = arith.constant 495 : i32
    %435 = tpu.dynamic_rotate %413 by %c495_i32_182 dim 1 : vector<16x512xf32>, i32 -> vector<16x512xf32>
    %436 = vector.broadcast %18 : vector<1x512xf32> to vector<16x512xf32>
    %437 = arith.mulf %435, %436 : vector<16x512xf32>
    %438 = tpu.concatenate %416, %419, %422, %425, %413, %428, %431, %434, %437 in 0 : vector<16x512xf32>, vector<16x512xf32>, vector<16x512xf32>, vector<16x512xf32>, vector<16x512xf32>, vector<16x512xf32>, vector<16x512xf32>, vector<16x512xf32>, vector<16x512xf32> -> vector<144x512xf32>
    %cst_183 = arith.constant dense<0.000000e+00> : vector<16x512xf32>
    %439 = tpu.matmul %357, %438, %cst_183 {dimension_numbers = #tpu.dot_dimension_numbers<[1], [0], [0], [1], [0, 0, 1, 1], [], []>} : vector<16x144xf32>, vector<144x512xf32>, vector<16x512xf32> -> vector<16x512xf32>
    %440 = vector.broadcast %359 : vector<16x1xf32> to vector<16x512xf32>
    %441 = arith.addf %439, %440 : vector<16x512xf32>
    %442 = vector.extract_strided_slice %392 {offsets = [48, 0], sizes = [8, 512], strides = [1, 1]} : vector<56x512xf32> to vector<8x512xf32>
    %443 = vector.extract_strided_slice %441 {offsets = [0, 0], sizes = [8, 512], strides = [1, 1]} : vector<16x512xf32> to vector<8x512xf32>
    %444 = arith.addf %442, %443 : vector<8x512xf32>
    %445 = arith.negf %444 : vector<8x512xf32>
    %446 = math.exp %445 : vector<8x512xf32>
    %cst_184 = arith.constant 1.000000e+00 : f32
    %447 = vector.broadcast %cst_184 : f32 to vector<8x512xf32>
    %448 = arith.addf %447, %446 : vector<8x512xf32>
    %449 = arith.divf %447, %448 : vector<8x512xf32>
    %450 = vector.extract_strided_slice %441 {offsets = [8, 0], sizes = [8, 512], strides = [1, 1]} : vector<16x512xf32> to vector<8x512xf32>
    %451 = math.tanh %450 : vector<8x512xf32>
    %452 = arith.mulf %449, %451 : vector<8x512xf32>
    %c3_185 = arith.constant 3 : index
    %c0_186 = arith.constant 0 : index
    %c0_187 = arith.constant 0 : index
    %453 = vector.load %arg13[%c3_185, %c0_186, %c0_187] : memref<4x8x512xf32, #tpu.memory_space<vmem>>, vector<1x8x512xf32>
    %454 = vector.shape_cast %453 : vector<1x8x512xf32> to vector<8x512xf32>
    %455 = vector.shape_cast %452 : vector<8x512xf32> to vector<1x8x512xf32>
    tpu.vector_store %arg13[%c3_185, %c0_186, %c0_187], %455 {strides = array<i32>} : memref<4x8x512xf32, #tpu.memory_space<vmem>>, vector<1x8x512xf32>,
    %c3_188 = arith.constant 3 : index
    %c0_189 = arith.constant 0 : index
    %c0_190 = arith.constant 0 : index
    %456 = vector.load %arg14[%c3_188, %c0_189, %c0_190] : memref<4x8x512xf32, #tpu.memory_space<vmem>>, vector<1x8x512xf32>
    %457 = vector.shape_cast %456 : vector<1x8x512xf32> to vector<8x512xf32>
    %458 = vector.shape_cast %406 : vector<8x512xf32> to vector<1x8x512xf32>
    tpu.vector_store %arg14[%c3_188, %c0_189, %c0_190], %458 {strides = array<i32>} : memref<4x8x512xf32, #tpu.memory_space<vmem>>, vector<1x8x512xf32>,
    %c0_191 = arith.constant 0 : index
    %c0_192 = arith.constant 0 : index
    %459 = vector.load %arg15[%c0_191, %c0_192] : memref<8x512xf32, #tpu.memory_space<vmem>>, vector<8x512xf32>
    tpu.vector_store %arg15[%c0_191, %c0_192], %412 {strides = array<i32>} : memref<8x512xf32, #tpu.memory_space<vmem>>, vector<8x512xf32>,
    %c0_193 = arith.constant 0 : index
    %c0_194 = arith.constant 0 : index
    %460 = vector.load %arg9[%c0_193, %c0_194] : memref<8x8xf32, #tpu.memory_space<vmem>>, vector<8x8xf32>
    %cst_195 = arith.constant dense<0.000000e+00> : vector<8x512xf32>
    %461 = tpu.matmul %460, %452, %cst_195 {dimension_numbers = #tpu.dot_dimension_numbers<[1], [0], [0], [1], [0, 0, 1, 1], [], []>} : vector<8x8xf32>, vector<8x512xf32>, vector<8x512xf32> -> vector<8x512xf32>
    %c0_196 = arith.constant 0 : index
    %c0_197 = arith.constant 0 : index
    %462 = vector.load %arg10[%c0_196, %c0_197] : memref<8x1xf32, #tpu.memory_space<vmem>>, vector<8x1xf32>
    %463 = vector.broadcast %462 : vector<8x1xf32> to vector<8x512xf32>
    %464 = arith.addf %461, %463 : vector<8x512xf32>
    %c0_198 = arith.constant 0 : index
    %c0_199 = arith.constant 0 : index
    %465 = vector.load %arg11[%c0_198, %c0_199] : memref<8x1xf32, #tpu.memory_space<vmem>>, vector<8x1xf32>
    %466 = arith.negf %464 : vector<8x512xf32>
    %467 = math.exp %466 : vector<8x512xf32>
    %cst_200 = arith.constant 1.000000e+00 : f32
    %468 = vector.broadcast %cst_200 : f32 to vector<8x512xf32>
    %469 = arith.addf %468, %467 : vector<8x512xf32>
    %470 = arith.divf %468, %469 : vector<8x512xf32>
    %471 = vector.broadcast %465 : vector<8x1xf32> to vector<8x512xf32>
    %472 = arith.mulf %471, %470 : vector<8x512xf32>
    %c0_201 = arith.constant 0 : index
    %c0_202 = arith.constant 0 : index
    %473 = vector.load %arg16[%c0_201, %c0_202] : memref<8x512xf32, #tpu.memory_space<vmem>>, vector<8x512xf32>
    tpu.vector_store %arg16[%c0_201, %c0_202], %472 {strides = array<i32>} : memref<8x512xf32, #tpu.memory_space<vmem>>, vector<8x512xf32>,
    %c0_203 = arith.constant 0 : index
    %c0_204 = arith.constant 0 : index
    %c0_205 = arith.constant 0 : index
    %474 = vector.load %arg12[%c0_203, %c0_204, %c0_205] : memref<1x8x512xf32, #tpu.memory_space<vmem>>, vector<1x8x512xf32>
    %475 = vector.shape_cast %474 : vector<1x8x512xf32> to vector<8x512xf32>
    %476 = vector.shape_cast %472 : vector<8x512xf32> to vector<1x8x512xf32>
    tpu.vector_store %arg12[%c0_203, %c0_204, %c0_205], %476 {strides = array<i32>} : memref<1x8x512xf32, #tpu.memory_space<vmem>>, vector<1x8x512xf32>,
    return
  }
  func.func @transform_0(%arg0: i32, %arg1: i32) -> (i32, i32, i32) {
    %c2_i32 = arith.constant 2 : i32
    %0 = arith.minsi %arg1, %c2_i32 : i32
    %c0_i32 = arith.constant 0 : i32
    %c0_i32_0 = arith.constant 0 : i32
    return %0, %c0_i32, %arg0 : i32, i32, i32
  }
  func.func @transform_1(%arg0: i32, %arg1: i32) -> (i32, i32, i32) {
    %c0_i32 = arith.constant 0 : i32
    %c0_i32_0 = arith.constant 0 : i32
    %c0_i32_1 = arith.constant 0 : i32
    %c0_i32_2 = arith.constant 0 : i32
    return %c0_i32, %c0_i32_0, %c0_i32_1 : i32, i32, i32
  }
  func.func @transform_2(%arg0: i32, %arg1: i32) -> (i32, i32) {
    %c0_i32 = arith.constant 0 : i32
    %c0_i32_0 = arith.constant 0 : i32
    %c0_i32_1 = arith.constant 0 : i32
    return %c0_i32, %c0_i32_0 : i32, i32
  }
  func.func @transform_3(%arg0: i32, %arg1: i32) -> (i32, i32, i32) {
    %c0_i32 = arith.constant 0 : i32
    %c0_i32_0 = arith.constant 0 : i32
    %c0_i32_1 = arith.constant 0 : i32
    %c0_i32_2 = arith.constant 0 : i32
    return %c0_i32, %c0_i32_0, %c0_i32_1 : i32, i32, i32
  }
  func.func @transform_4(%arg0: i32, %arg1: i32) -> (i32, i32, i32) {
    %c0_i32 = arith.constant 0 : i32
    %c0_i32_0 = arith.constant 0 : i32
    %c0_i32_1 = arith.constant 0 : i32
    %c0_i32_2 = arith.constant 0 : i32
    return %c0_i32, %c0_i32_0, %c0_i32_1 : i32, i32, i32
  }
  func.func @transform_5(%arg0: i32, %arg1: i32) -> (i32, i32, i32) {
    %c0_i32 = arith.constant 0 : i32
    %c0_i32_0 = arith.constant 0 : i32
    %c0_i32_1 = arith.constant 0 : i32
    %c0_i32_2 = arith.constant 0 : i32
    return %c0_i32, %c0_i32_0, %c0_i32_1 : i32, i32, i32
  }
  func.func @transform_6(%arg0: i32, %arg1: i32) -> (i32, i32, i32) {
    %c0_i32 = arith.constant 0 : i32
    %c0_i32_0 = arith.constant 0 : i32
    %c0_i32_1 = arith.constant 0 : i32
    %c0_i32_2 = arith.constant 0 : i32
    return %c0_i32, %c0_i32_0, %c0_i32_1 : i32, i32, i32
  }
  func.func @transform_7(%arg0: i32, %arg1: i32) -> (i32, i32) {
    %c0_i32 = arith.constant 0 : i32
    %c0_i32_0 = arith.constant 0 : i32
    %c0_i32_1 = arith.constant 0 : i32
    return %c0_i32, %c0_i32_0 : i32, i32
  }
  func.func @transform_8(%arg0: i32, %arg1: i32) -> (i32, i32) {
    %c0_i32 = arith.constant 0 : i32
    %c0_i32_0 = arith.constant 0 : i32
    %c0_i32_1 = arith.constant 0 : i32
    return %c0_i32, %c0_i32_0 : i32, i32
  }
  func.func @transform_9(%arg0: i32, %arg1: i32) -> (i32, i32) {
    %c0_i32 = arith.constant 0 : i32
    %c0_i32_0 = arith.constant 0 : i32
    %c0_i32_1 = arith.constant 0 : i32
    return %c0_i32, %c0_i32_0 : i32, i32
  }
  func.func @transform_10(%arg0: i32, %arg1: i32) -> (i32, i32, i32) {
    %c0_i32 = arith.constant 0 : i32
    %c0_i32_0 = arith.constant 0 : i32
    return %arg1, %c0_i32, %arg0 : i32, i32, i32
  }
}

</mosaic_0001>

<bundles_post_ra>
// kernel: generator_forward.1
= control target key start
LH: loop header
LB: loop body
LE: loop exit
PB: predicated region body
PF: predicated region fallthrough
CT: control target
= control target key end

     0   :  { %s7325_s13 = smov 0   ;;  %s7327_s14 = smov 0   ;;  %s12492_s0 = inlined_call_operand.vmem [shape: f32[3,8,512], index: 0, kind: input, shape index: {}]   ;;  %s12493_s1 = inlined_call_operand.vmem [shape: f32[9,1,512], index: 1, kind: input, shape index: {}]   ;;  %s12494_s2 = inlined_call_operand.vmem [shape: f32[56,216], index: 2, kind: input, shape index: {}]   ;;  %s12495_s3 = inlined_call_operand.vmem [shape: f32[3,56,216], index: 3, kind: input, shape index: {}]   ;;  %s12496_s4 = inlined_call_operand.vmem [shape: f32[4,16,144], index: 4, kind: input, shape index: {}]   ;;  %s12497_s5 = inlined_call_operand.vmem [shape: f32[4,56,1], index: 5, kind: input, shape index: {}]   ;;  %s12498_s6 = inlined_call_operand.vmem [shape: f32[4,16,1], index: 6, kind: input, shape index: {}]   ;;  %s12499_s7 = inlined_call_operand.vmem [shape: f32[8,8], index: 7, kind: input, shape index: {}]   ;;  %s12500_s8 = inlined_call_operand.vmem [shape: f32[8,1], index: 8, kind: input, shape index: {}]   ;;  %s12501_s9 = inlined_call_operand.vmem [shape: f32[8,1], index: 9, kind: input, shape index: {}]   ;;  %s12502_s10 = inlined_call_operand.vmem [shape: f32[5,8,512], index: 10, kind: output, shape index: {}]  }
   0x1   :  { %s7329_s15 = smov 0  }
   0x2 LB: > { %s29_s16 = sadd.s32 1, %s7253_s14  ;;  %p5753_p0 = scmp.ge.s32.totalorder %s7257_s15, 1  ;;  %s7257_s15 = sphi %s7329_s15, %s20_s15   ;;  %s7253_s14 = sphi %s7327_s14, %s13386_s14   ;;  %s7249_s13 = sphi %s7325_s13, %s13385_s13  }
   0x3   : > { %p30_p1 = scmp.ge.s32.totalorder %s29_s16, 5  ;;  %p341_p2 = scmp.lt.s32.totalorder %s7257_s15, 6 }
   0x5   : > { %s13388_s16 = smov (%p30_p1, %s29_s16), 0  ;;  %p342_p3 = pnand %p5753_p0, %p341_p2 }
   0x7   : > { %345 = sbr.rel (%p342_p3) target bundleno = 4329 (0x10e9), region = 60 }
   0xe   : > { %p389_p4 = scmp.lt.s32.totalorder %s7249_s13, 2  ;;  %p404_p5 = scmp.lt.s32.totalorder %s7249_s13, 4 }
   0xf   : > { %p5761_p6 = scmp.ne.s32.totalorder %s7249_s13, 0 }
  0x10   : > { %s390_s17 = scalar_select %p389_p4, %s7249_s13, 2 }
  0x11   : > { %s405_s18 = scalar_select %p404_p5, %s7249_s13, 4 }
  0x12   : > { %s13390_s17 = smov (!%p389_p4, %s390_s17), 2  ;;  %416 = sbr.rel (%p5761_p6) target bundleno = 40 (0x28), region = 64 }
  0x13   : > { %s5997_s19 = sshll.u32 %s405_s18, 5  ;;  %s5996_s20 = sshll.u32 %s13390_s17, 5  ;;  %v7259_v0 = vmov (!%p5761_p6), 0.0  }
  0x14   : > { %s7352_s23 = scalar_lea.vmem %s12502_s10, %s5997_s19  ;;  %s7357_s26 = scalar_lea.vmem %s12492_s0, %s5996_s20  ;;  %417 = vst [vmem:[#allocation2] sm:$0xff] (!%p5761_p6), %v7259_v0  ;;  %418 = vst [vmem:[#allocation2 + $0x8] sm:$0xff] (!%p5761_p6), %v7259_v0 }
  0x15   : > { %419 = vst [vmem:[#allocation2 + $0x10] sm:$0xff] (!%p5761_p6), %v7259_v0  ;;  %420 = vst [vmem:[#allocation2 + $0x18] sm:$0xff] (!%p5761_p6), %v7259_v0 }
  0x16   : > { %421 = vst [vmem:[#allocation2 + $0x20] sm:$0xff] (!%p5761_p6), %v7259_v0  ;;  %422 = vst [vmem:[#allocation2 + $0x28] sm:$0xff] (!%p5761_p6), %v7259_v0 }
  0x17   : > { %423 = vst [vmem:[#allocation2 + $0x30] sm:$0xff] (!%p5761_p6), %v7259_v0  ;;  %424 = vst [vmem:[#allocation2 + $0x38] sm:$0xff] (!%p5761_p6), %v7259_v0 }
  0x18   : > { %425 = vst [vmem:[#allocation2 + $0x40] sm:$0xff] (!%p5761_p6), %v7259_v0  ;;  %426 = vst [vmem:[#allocation2 + $0x48] sm:$0xff] (!%p5761_p6), %v7259_v0 }
  0x19   : > { %427 = vst [vmem:[#allocation2 + $0x50] sm:$0xff] %v7259_v0  ;;  %428 = vst [vmem:[#allocation2 + $0x58] sm:$0xff] %v7259_v0 }
  0x1a   : > { %429 = vst [vmem:[#allocation2 + $0x60] sm:$0xff] %v7259_v0  ;;  %430 = vst [vmem:[#allocation2 + $0x68] sm:$0xff] %v7259_v0 }
  0x1b   : > { %431 = vst [vmem:[#allocation2 + $0x70] sm:$0xff] %v7259_v0  ;;  %432 = vst [vmem:[#allocation2 + $0x78] sm:$0xff] %v7259_v0 }
  0x1c   : > { %433 = vst [vmem:[#allocation3] sm:$0xff] %v7259_v0  ;;  %434 = vst [vmem:[#allocation3 + $0x8] sm:$0xff] %v7259_v0 }
  0x1d   : > { %435 = vst [vmem:[#allocation3 + $0x10] sm:$0xff] %v7259_v0  ;;  %436 = vst [vmem:[#allocation3 + $0x18] sm:$0xff] %v7259_v0 }
  0x1e   : > { %437 = vst [vmem:[#allocation3 + $0x20] sm:$0xff] %v7259_v0  ;;  %438 = vst [vmem:[#allocation3 + $0x28] sm:$0xff] %v7259_v0 }
  0x1f   : > { %439 = vst [vmem:[#allocation3 + $0x30] sm:$0xff] %v7259_v0  ;;  %440 = vst [vmem:[#allocation3 + $0x38] sm:$0xff] %v7259_v0 }
  0x20   : > { %441 = vst [vmem:[#allocation3 + $0x40] sm:$0xff] %v7259_v0  ;;  %442 = vst [vmem:[#allocation3 + $0x48] sm:$0xff] %v7259_v0 }
  0x21   : > { %443 = vst [vmem:[#allocation3 + $0x50] sm:$0xff] %v7259_v0  ;;  %444 = vst [vmem:[#allocation3 + $0x58] sm:$0xff] %v7259_v0 }
  0x22   : > { %445 = vst [vmem:[#allocation3 + $0x60] sm:$0xff] %v7259_v0  ;;  %446 = vst [vmem:[#allocation3 + $0x68] sm:$0xff] %v7259_v0 }
  0x23   : > { %447 = vst [vmem:[#allocation3 + $0x70] sm:$0xff] %v7259_v0  ;;  %448 = vst [vmem:[#allocation3 + $0x78] sm:$0xff] %v7259_v0 }
  0x24   : > { %449 = vst [vmem:[#allocation4] sm:$0xff] %v7259_v0  ;;  %450 = vst [vmem:[#allocation4 + $0x8] sm:$0xff] %v7259_v0 }
  0x25   : > { %451 = vst [vmem:[#allocation4 + $0x10] sm:$0xff] %v7259_v0  ;;  %452 = vst [vmem:[#allocation4 + $0x18] sm:$0xff] %v7259_v0 }
  0x26   : > { %453 = vst [vmem:[#allocation5] sm:$0xff] %v7259_v0  ;;  %454 = vst [vmem:[#allocation5 + $0x8] sm:$0xff] %v7259_v0 }
  0x27   : > { %455 = vst [vmem:[#allocation5 + $0x10] sm:$0xff] %v7259_v0  ;;  %456 = vst [vmem:[#allocation5 + $0x18] sm:$0xff] %v7259_v0 }
  0x28 PF: > { %p472_p7 = scmp.lt.s32.totalorder %s7249_s13, 3  ;;  %s7260_s27 = smov 17   ;;  %v476_v4 = vld [vmem:[%s7357_s26 + $0x8] sm:$0xff]  ;;  %v475_v5 = vld [vmem:[%s7357_s26] sm:$0xff]  ;;  %v477_v10 = vld [vmem:[%s7357_s26 + $0x10] sm:$0xff]  ;;  %v561_v31 = vlaneseq  ;;  %vm1134_vm3 = vcmask 719872  }
  0x29   : > { %v478_v19 = vld [vmem:[%s7357_s26 + $0x18] sm:$0xff]  ;;  %s7261_s11 = smov 16   ;;  %s7262_s12 = smov 15   ;;  %v457_v38 = vld [vmem:[%s12493_s1] sm:$0xf]  ;;  %vm1764_vm9 = vcmask 130048  }
  0x2a   : > { %v7360_v1 = vld [vmem:[#allocation2 + $0x8] sm:$0xff]  ;;  %v7365_v2 = vld [vmem:[#allocation2] sm:$0xff]  ;;  %s473_s28 = scalar_select %p472_p7, 1, 0  ;;  %v578_v33 = vshrl.u32 %v561_v31, 7  ;;  %v7505_v34 = vand.u32 127, %v561_v31 }
  0x2b   : > { %545 = vrot.lane.b32.xlu1 %v7360_v1, %s7260_s27  ;;  %v7367_v3 = vld [vmem:[#allocation2 + $0x10] sm:$0xff]  ;;  %539 = vrot.lane.b32.xlu0 %v7365_v2, %s7260_s27  ;;  %v7375_v6 = vld [vmem:[#allocation2 + $0x18] sm:$0xff]  ;;  %v7391_v26 = vld [vmem:[#allocation4 + $0x8] sm:$0xff]  ;;  %s7263_s13 = smov 1   ;;  %s7264_s17 = smov 127   ;;  %vm5474_vm10 = vcmask 64512  }
  0x2c   : > { %s474_s29 = scvt.s32.f32 %s473_s28  ;;  %v7399_v28 = vld [vmem:[#allocation4 + $0x18] sm:$0xff]  ;;  %v7405_v29 = vld [vmem:[#allocation4] sm:$0xff]  ;;  %v7411_v30 = vld [vmem:[#allocation4 + $0x10] sm:$0xff]  ;;  %s7265_s18 = smov 113   ;;  %v7511_v37 = vsub.s32 1, %v578_v33  ;;  %vm563_vm0 = vcmp.lt.s32.totalorder %v7505_v34, 17 }
  0x2d   : > { %v486_v7 = vld [vmem:[#allocation5 + $0x8] sm:$0xff]  ;;  %v485_v9 = vld [vmem:[#allocation5] sm:$0xff]  ;;  %v7528_v45 = vsub.s32 0, %v578_v33  ;;  %v7530_v46 = vsub.s32 3, %v578_v33  ;;  %v7538_v52 = vsub.s32 2, %v578_v33  ;;  %vm633_vm1 = vcmp.lt.s32.totalorder %v7505_v34, 16 }
  0x2e   : > { %v479_v8 = vstv %s474_s29  ;;  %s484_s30 = ssub.f32 1.0, %s474_s29  ;;  %v487_v11 = vld [vmem:[#allocation5 + $0x10] sm:$0xff]  ;;  %v488_v20 = vld [vmem:[#allocation5 + $0x18] sm:$0xff]  ;;  %v7522_v40 = vrot.slane %v457_v38, %v7511_v37  ;;  %s7266_s24 = smov 112   ;;  %vm703_vm2 = vcmp.lt.s32.totalorder %v7505_v34, 15  ;;  %vm773_vm4 = vcmp.lt.s32.totalorder %v7505_v34, 1 }
  0x2f   : > { %551 = vrot.lane.b32.xlu1 %v7367_v3, %s7260_s27  ;;  %v481_v12 = vmul.f32 %v479_v8, %v476_v4  ;;  %v480_v13 = vmul.f32 %v479_v8, %v475_v5  ;;  %v482_v17 = vmul.f32 %v479_v8, %v477_v10  ;;  %v483_v24 = vmul.f32 %v479_v8, %v478_v19  ;;  %s7267_s28 = smov 111  }
  0x30   : > { %v489_v14 = vstv %s484_s30  ;;  %12854 = vst [vmem:[#allocation6_spill] sm:$0xff] %v7522_v40  ;;  %v7541_v53 = vrot.slane %v457_v38, %v7528_v45  ;;  %v7544_v54 = vrot.slane %v457_v38, %v7530_v46  ;;  %v7559_v61 = vrot.slane %v457_v38, %v7538_v52 }
  0x31   : > { %v491_v15 = vmul.f32 %v489_v14, %v486_v7  ;;  %v490_v16 = vmul.f32 %v489_v14, %v485_v9  ;;  %v492_v18 = vmul.f32 %v489_v14, %v487_v11  ;;  %v493_v25 = vmul.f32 %v489_v14, %v488_v20 }
  0x32   : > { %vm843_vm5 = vcmp.lt.s32.totalorder %v7505_v34, 127  ;;  %vm913_vm6 = vcmp.lt.s32.totalorder %v7505_v34, 113  ;;  %vm983_vm7 = vcmp.lt.s32.totalorder %v7505_v34, 112  ;;  %vm1053_vm8 = vcmp.lt.s32.totalorder %v7505_v34, 111  ;;  %v5947_v34 = vld [vmem:[%s12496_s4 + $0x78] sm:$0xff] }
  0x33   : > { %557 = vrot.lane.b32.xlu1 %v7375_v6, %s7260_s27  ;;  %v7381_v21 = vadd.f32 %v491_v15, %v481_v12  ;;  %v7383_v22 = vadd.f32 %v490_v16, %v480_v13  ;;  %v7389_v23 = vadd.f32 %v492_v18, %v482_v17  ;;  %v7397_v27 = vadd.f32 %v493_v25, %v483_v24  ;;  %v5762_v15 = vld [vmem:[%s12493_s1 + $0x4] sm:$0xf] }
  0x34   : > { %v7583_v18 = vrot.slane %v5762_v15, %v7528_v45  ;;  %v7595_v24 = vrot.slane %v5762_v15, %v7511_v37  ;;  %v7601_v33 = vrot.slane %v5762_v15, %v7530_v46 }
  0x35   : > { %537 = vrot.lane.b32.xlu0 %v7383_v22, %s7260_s27 }
  0x37   : > { %543 = vrot.lane.b32.xlu1 %v7381_v21, %s7260_s27 }
  0x39   : > { %549 = vrot.lane.b32.xlu0 %v7389_v23, %s7260_s27 }
  0x3b   : > { %547 = vrot.lane.b32.xlu1 %v7391_v26, %s7260_s27 }
  0x3d   : > { %555 = vrot.lane.b32.xlu0 %v7397_v27, %s7260_s27 }
  0x3f   : > { %559 = vrot.lane.b32.xlu1 %v7399_v28, %s7260_s27 }
  0x41   : > { %541 = vrot.lane.b32.xlu0 %v7405_v29, %s7260_s27 }
  0x43   : > { %615 = vrot.lane.b32.xlu1 %v7381_v21, %s7261_s11 }
  0x45   : > { %553 = vrot.lane.b32.xlu0 %v7411_v30, %s7260_s27 }
  0x47   : > { %627 = vrot.lane.b32.xlu1 %v7397_v27, %s7261_s11 }
  0x49   : > { %609 = vrot.lane.b32.xlu0 %v7383_v22, %s7261_s11 }
  0x4b   : > { %613 = vrot.lane.b32.xlu1 %v7405_v29, %s7261_s11 }
  0x4d   : > { %621 = vrot.lane.b32.xlu0 %v7389_v23, %s7261_s11 }
  0x4f   : > { %619 = vrot.lane.b32.xlu1 %v7391_v26, %s7261_s11 }
  0x51   : > { %611 = vrot.lane.b32.xlu0 %v7365_v2, %s7261_s11 }
  0x53   : > { %625 = vrot.lane.b32.xlu1 %v7411_v30, %s7261_s11 }
  0x55   : > { %617 = vrot.lane.b32.xlu0 %v7360_v1, %s7261_s11 }
  0x57   : > { %631 = vrot.lane.b32.xlu1 %v7399_v28, %s7261_s11 }
  0x59   : > { %623 = vrot.lane.b32.xlu0 %v7367_v3, %s7261_s11 }
  0x5b   : > { %681 = vrot.lane.b32.xlu1 %v7365_v2, %s7262_s12 }
  0x5d   : > { %629 = vrot.lane.b32.xlu0 %v7375_v6, %s7261_s11 }
  0x5f   : > { %687 = vrot.lane.b32.xlu1 %v7360_v1, %s7262_s12 }
  0x61   : > { %679 = vrot.lane.b32.xlu0 %v7383_v22, %s7262_s12 }
  0x63   : > { %693 = vrot.lane.b32.xlu1 %v7367_v3, %s7262_s12 }
  0x65   : > { %685 = vrot.lane.b32.xlu0 %v7381_v21, %s7262_s12 }
  0x67   : > { %699 = vrot.lane.b32.xlu1 %v7375_v6, %s7262_s12 }
  0x69   : > { %691 = vrot.lane.b32.xlu0 %v7389_v23, %s7262_s12 }
  0x6b   : > { %689 = vrot.lane.b32.xlu1 %v7391_v26, %s7262_s12 }
  0x6d   : > { %697 = vrot.lane.b32.xlu0 %v7397_v27, %s7262_s12 }
  0x6f   : > { %701 = vrot.lane.b32.xlu1 %v7399_v28, %s7262_s12 }
  0x71   : > { %683 = vrot.lane.b32.xlu0 %v7405_v29, %s7262_s12 }
  0x73   : > { %755 = vrot.lane.b32.xlu1 %v7381_v21, %s7263_s13 }
  0x75   : > { %695 = vrot.lane.b32.xlu0 %v7411_v30, %s7262_s12 }
  0x77   : > { %767 = vrot.lane.b32.xlu1 %v7397_v27, %s7263_s13 }
  0x79   : > { %749 = vrot.lane.b32.xlu0 %v7383_v22, %s7263_s13 }
  0x7b   : > { %753 = vrot.lane.b32.xlu1 %v7405_v29, %s7263_s13 }
  0x7d   : > { %761 = vrot.lane.b32.xlu0 %v7389_v23, %s7263_s13 }
  0x7f   : > { %759 = vrot.lane.b32.xlu1 %v7391_v26, %s7263_s13 }
  0x81   : > { %751 = vrot.lane.b32.xlu0 %v7365_v2, %s7263_s13 }
  0x83   : > { %765 = vrot.lane.b32.xlu1 %v7411_v30, %s7263_s13 }
  0x85   : > { %757 = vrot.lane.b32.xlu0 %v7360_v1, %s7263_s13 }
  0x87   : > { %771 = vrot.lane.b32.xlu1 %v7399_v28, %s7263_s13 }
  0x89   : > { %763 = vrot.lane.b32.xlu0 %v7367_v3, %s7263_s13 }
  0x8b   : > { %825 = vrot.lane.b32.xlu1 %v7381_v21, %s7264_s17 }
  0x8d   : > { %769 = vrot.lane.b32.xlu0 %v7375_v6, %s7263_s13 }
  0x8f   : > { %837 = vrot.lane.b32.xlu1 %v7397_v27, %s7264_s17 }
  0x91   : > { %819 = vrot.lane.b32.xlu0 %v7383_v22, %s7264_s17 }
  0x93   : > { %823 = vrot.lane.b32.xlu1 %v7405_v29, %s7264_s17 }
  0x95   : > { %831 = vrot.lane.b32.xlu0 %v7389_v23, %s7264_s17 }
  0x97   : > { %829 = vrot.lane.b32.xlu1 %v7391_v26, %s7264_s17 }
  0x99   : > { %821 = vrot.lane.b32.xlu0 %v7365_v2, %s7264_s17 }
  0x9b   : > { %835 = vrot.lane.b32.xlu1 %v7411_v30, %s7264_s17 }
  0x9d   : > { %v546_v32 = vpop.permute.xlu1 %545  ;;  %827 = vrot.lane.b32.xlu0 %v7360_v1, %s7264_s17  ;;  %v540_v36 = vpop.permute.xlu0 %539 }
  0x9e   : > { %v571_v41 = vsel %vm563_vm0, %v540_v36, %v546_v32 }
  0x9f   : > { %841 = vrot.lane.b32.xlu1 %v7399_v28, %s7264_s17  ;;  %v602_v48 = vmul.f32 %v7522_v40, %v571_v41 }
  0xa1   : > { %v552_v35 = vpop.permute.xlu1 %551  ;;  %833 = vrot.lane.b32.xlu0 %v7367_v3, %s7264_s17 }
  0xa2   : > { %v568_v58 = vsel %vm563_vm0, %v546_v32, %v552_v35  ;;  %v7598_v32 = vrot.slane %v5762_v15, %v7538_v52 }
  0xa3   : > { %891 = vrot.lane.b32.xlu1 %v7365_v2, %s7265_s18  ;;  %v603_v13 = vmul.f32 %v7559_v61, %v568_v58 }
  0xa5   : > { %v558_v39 = vpop.permute.xlu1 %557  ;;  %839 = vrot.lane.b32.xlu0 %v7375_v6, %s7264_s17 }
  0xa6   : > { %v574_v55 = vsel %vm563_vm0, %v558_v39, %v540_v36  ;;  %v565_v56 = vsel %vm563_vm0, %v552_v35, %v558_v39 }
  0xa7   : > { %897 = vrot.lane.b32.xlu1 %v7360_v1, %s7265_s18  ;;  %v538_v43 = vpop.permute.xlu0 %537  ;;  %v601_v63 = vmul.f32 %v7541_v53, %v574_v55  ;;  %v604_v4 = vmul.f32 %v7544_v54, %v565_v56 }
  0xa9   : > { %v544_v42 = vpop.permute.xlu1 %543  ;;  %889 = vrot.lane.b32.xlu0 %v7383_v22, %s7265_s18 }
  0xaa   : > { %v570_v44 = vsel %vm563_vm0, %v538_v43, %v544_v42 }
  0xab   : > { %903 = vrot.lane.b32.xlu1 %v7367_v3, %s7265_s18  ;;  %v598_v47 = vmul.f32 %v7522_v40, %v570_v44  ;;  %v550_v50 = vpop.permute.xlu0 %549 }
  0xac   : > { %v567_v57 = vsel %vm563_vm0, %v544_v42, %v550_v50 }
  0xad   : > { %v548_v49 = vpop.permute.xlu1 %547  ;;  %v5998_v51 = vpack.c.bf16 %v602_v48, %v598_v47  ;;  %895 = vrot.lane.b32.xlu0 %v7381_v21, %s7265_s18  ;;  %v599_v8 = vmul.f32 %v7559_v61, %v567_v57 }
  0xaf   : > { %909 = vrot.lane.b32.xlu1 %v7375_v6, %s7265_s18  ;;  %5999 = vmatprep.subr.bf16.mxu0 %v5998_v51  ;;  %v556_v60 = vpop.permute.xlu0 %555  ;;  %v6052_v14 = vpack.c.bf16 %v603_v13, %v599_v8 }
  0xb0   : > { %v573_v62 = vsel %vm563_vm0, %v556_v60, %v538_v43  ;;  %v564_v0 = vsel %vm563_vm0, %v550_v50, %v556_v60 }
  0xb1   : > { %v560_v59 = vpop.permute.xlu1 %559  ;;  %901 = vrot.lane.b32.xlu0 %v7389_v23, %s7265_s18  ;;  %v597_v5 = vmul.f32 %v7541_v53, %v573_v62  ;;  %v600_v7 = vmul.f32 %v7544_v54, %v564_v0 }
  0xb3   : > { %899 = vrot.lane.b32.xlu1 %v7391_v26, %s7265_s18  ;;  %v542_v10 = vpop.permute.xlu0 %541  ;;  %v6000_v11 = vpack.c.bf16 %v601_v63, %v597_v5  ;;  %v6050_v12 = vpack.c.bf16 %v604_v4, %v600_v7 }
  0xb4   : > { %v572_v19 = vsel %vm563_vm0, %v542_v10, %v548_v49  ;;  %v575_v20 = vsel %vm563_vm0, %v560_v59, %v542_v10 }
  0xb5   : > { %v616_v9 = vpop.permute.xlu1 %615  ;;  %907 = vrot.lane.b32.xlu0 %v7397_v27, %s7265_s18  ;;  %6001 = vmatpush1.bf16.msra.mxu0 %v6000_v11  ;;  %v605_v35 = vmul.f32 %v7541_v53, %v575_v20  ;;  %v606_v36 = vmul.f32 %v7522_v40, %v572_v19 }
  0xb6   : > { %6051 = vmatprep.subr.bf16.mxu1 %v6050_v12 }
  0xb7   : > { %911 = vrot.lane.b32.xlu1 %v7399_v28, %s7265_s18  ;;  %6053 = vmatpush1.bf16.msra.mxu1 %v6052_v14  ;;  %v554_v17 = vpop.permute.xlu0 %553 }
  0xb8   : > { %v569_v41 = vsel %vm563_vm0, %v548_v49, %v554_v17  ;;  %v566_v44 = vsel %vm563_vm0, %v554_v17, %v560_v59 }
  0xb9   : > { %v628_v16 = vpop.permute.xlu1 %627  ;;  %893 = vrot.lane.b32.xlu0 %v7405_v29, %s7265_s18  ;;  %v607_v55 = vmul.f32 %v7559_v61, %v569_v41  ;;  %v608_v57 = vmul.f32 %v7544_v54, %v566_v44 }
  0xbb   : > { %965 = vrot.lane.b32.xlu1 %v7381_v21, %s7266_s24  ;;  %v610_v31 = vpop.permute.xlu0 %609 }
  0xbc   : > { %v640_v38 = vsel %vm633_vm1, %v610_v31, %v616_v9  ;;  %v643_v39 = vsel %vm633_vm1, %v628_v16, %v610_v31 }
  0xbd   : > { %v614_v25 = vpop.permute.xlu1 %613  ;;  %v667_v42 = vmul.f32 %v7583_v18, %v643_v39  ;;  %v668_v43 = vmul.f32 %v7595_v24, %v640_v38  ;;  %905 = vrot.lane.b32.xlu0 %v7411_v30, %s7265_s18 }
  0xbf   : > { %977 = vrot.lane.b32.xlu1 %v7397_v27, %s7266_s24  ;;  %v622_v48 = vpop.permute.xlu0 %621  ;;  %v6002_v50 = vpack.c.bf16 %v668_v43, %v606_v36  ;;  %v6004_v51 = vpack.c.bf16 %v667_v42, %v605_v35 }
  0xc0   : > { %v634_v49 = vsel %vm633_vm1, %v622_v48, %v628_v16  ;;  %v637_v56 = vsel %vm633_vm1, %v616_v9, %v622_v48 }
  0xc1   : > { %v620_v47 = vpop.permute.xlu1 %619  ;;  %v669_v58 = vmul.f32 %v7598_v32, %v637_v56  ;;  %v670_v60 = vmul.f32 %v7601_v33, %v634_v49  ;;  %959 = vrot.lane.b32.xlu0 %v7383_v22, %s7266_s24  ;;  %6003 = vmatprep.subr.bf16.mxu0 %v6002_v50 }
  0xc2   : > { %6005 = vmatpush1.bf16.msra.mxu0 %v6004_v51  ;;  %v642_v4 = vsel %vm633_vm1, %v614_v25, %v620_v47 }
  0xc3   : > { %963 = vrot.lane.b32.xlu1 %v7405_v29, %s7266_s24  ;;  %v612_v62 = vpop.permute.xlu0 %611  ;;  %v6054_v63 = vpack.c.bf16 %v670_v60, %v608_v57  ;;  %v6056_v0 = vpack.c.bf16 %v669_v58, %v607_v55  ;;  %v676_v5 = vmul.f32 %v7595_v24, %v642_v4 }
  0xc5   : > { %v626_v59 = vpop.permute.xlu1 %625  ;;  %971 = vrot.lane.b32.xlu0 %v7389_v23, %s7266_s24  ;;  %6055 = vmatprep.subr.bf16.mxu1 %v6054_v63 }
  0xc6   : > { %6057 = vmatpush1.bf16.msra.mxu1 %v6056_v0  ;;  %v639_v15 = vsel %vm633_vm1, %v620_v47, %v626_v59 }
  0xc7   : > { %969 = vrot.lane.b32.xlu1 %v7391_v26, %s7266_s24  ;;  %v618_v8 = vpop.permute.xlu0 %617  ;;  %v677_v35 = vmul.f32 %v7598_v32, %v639_v15 }
  0xc8   : > { %v641_v9 = vsel %vm633_vm1, %v612_v62, %v618_v8 }
  0xc9   : > { %v632_v7 = vpop.permute.xlu1 %631  ;;  %v672_v10 = vmul.f32 %v7595_v24, %v641_v9  ;;  %961 = vrot.lane.b32.xlu0 %v7365_v2, %s7266_s24 }
  0xca   : > { %v636_v14 = vsel %vm633_vm1, %v626_v59, %v632_v7  ;;  %v645_v16 = vsel %vm633_vm1, %v632_v7, %v614_v25  ;;  %v5763_v25 = vld [vmem:[%s12493_s1 + $0x8] sm:$0xf] }
  0xcb   : > { %975 = vrot.lane.b32.xlu1 %v7411_v30, %s7266_s24  ;;  %v624_v12 = vpop.permute.xlu0 %623  ;;  %v6006_v13 = vpack.c.bf16 %v676_v5, %v672_v10  ;;  %v678_v19 = vmul.f32 %v7601_v33, %v636_v14  ;;  %v675_v36 = vmul.f32 %v7583_v18, %v645_v16  ;;  %v7676_v44 = vrot.slane %v5763_v25, %v7511_v37 }
  0xcc   : > { %v638_v17 = vsel %vm633_vm1, %v618_v8, %v624_v12  ;;  %v7696_v5 = vrot.slane %v5763_v25, %v7538_v52  ;;  %v7701_v8 = vrot.slane %v5763_v25, %v7528_v45 }
  0xcd   : > { %v682_v11 = vpop.permute.xlu1 %681  ;;  %967 = vrot.lane.b32.xlu0 %v7360_v1, %s7266_s24  ;;  %6007 = vmatprep.subr.bf16.mxu0 %v6006_v13  ;;  %v673_v41 = vmul.f32 %v7598_v32, %v638_v17 }
  0xcf   : > { %981 = vrot.lane.b32.xlu1 %v7399_v28, %s7266_s24  ;;  %v630_v31 = vpop.permute.xlu0 %629  ;;  %v6060_v49 = vpack.c.bf16 %v677_v35, %v673_v41  ;;  %v503_v41 = vld [vmem:[%s12494_s2 + $0x8] sm:$0xff] }
  0xd0   : > { %v635_v38 = vsel %vm633_vm1, %v624_v12, %v630_v31  ;;  %v644_v39 = vsel %vm633_vm1, %v630_v31, %v612_v62  ;;  %v7693_v62 = vrot.slane %v5763_v25, %v7530_v46  ;;  %5776 = vmatprep.mubr.msk.f32.mxu1 %vm1134_vm3, %v503_v41  ;;  %5769 = vmatprep.mubr.msk.f32.mxu0 %vm1134_vm3, %v503_v41 }
  0xd1   : > { %v688_v20 = vpop.permute.xlu1 %687  ;;  %v671_v42 = vmul.f32 %v7583_v18, %v644_v39  ;;  %v674_v43 = vmul.f32 %v7601_v33, %v635_v38  ;;  %973 = vrot.lane.b32.xlu0 %v7367_v3, %s7266_s24 }
  0xd2   : > { %v711_v55 = vsel %vm703_vm2, %v682_v11, %v688_v20 }
  0xd3   : > { %1031 = vrot.lane.b32.xlu1 %v7365_v2, %s7267_s28  ;;  %v680_v48 = vpop.permute.xlu0 %679  ;;  %v6008_v50 = vpack.c.bf16 %v675_v36, %v671_v42  ;;  %v6058_v51 = vpack.c.bf16 %v678_v19, %v674_v43  ;;  %v742_v56 = vmul.f32 %v7676_v44, %v711_v55  ;;  %v5764_v43 = vld [vmem:[%s12493_s1 + $0xc] sm:$0xf] }
  0xd5   : > { %v694_v47 = vpop.permute.xlu1 %693  ;;  %979 = vrot.lane.b32.xlu0 %v7375_v6, %s7266_s24  ;;  %6009 = vmatpush1.bf16.msra.mxu0 %v6008_v50  ;;  %v7743_v50 = vrot.slane %v5764_v43, %v7528_v45 }
  0xd6   : > { %6059 = vmatprep.subr.bf16.mxu1 %v6058_v51  ;;  %v708_v9 = vsel %vm703_vm2, %v688_v20, %v694_v47  ;;  %v7746_v51 = vrot.slane %v5764_v43, %v7511_v37 }
  0xd7   : > { %1037 = vrot.lane.b32.xlu1 %v7360_v1, %s7267_s28  ;;  %6061 = vmatpush1.bf16.msra.mxu1 %v6060_v49  ;;  %v686_v58 = vpop.permute.xlu0 %685  ;;  %v743_v16 = vmul.f32 %v7696_v5, %v708_v9 }
  0xd8   : > { %v710_v60 = vsel %vm703_vm2, %v680_v48, %v686_v58 }
  0xd9   : > { %v700_v57 = vpop.permute.xlu1 %699  ;;  %v738_v59 = vmul.f32 %v7676_v44, %v710_v60  ;;  %1029 = vrot.lane.b32.xlu0 %v7383_v22, %s7267_s28 }
  0xda   : > { %v705_v7 = vsel %vm703_vm2, %v694_v47, %v700_v57  ;;  %v714_v10 = vsel %vm703_vm2, %v700_v57, %v682_v11 }
  0xdb   : > { %1043 = vrot.lane.b32.xlu1 %v7367_v3, %s7267_s28  ;;  %v692_v0 = vpop.permute.xlu0 %691  ;;  %v6010_v4 = vpack.c.bf16 %v742_v56, %v738_v59  ;;  %v744_v13 = vmul.f32 %v7693_v62, %v705_v7  ;;  %v741_v17 = vmul.f32 %v7701_v8, %v714_v10  ;;  %v7757_v59 = vrot.slane %v5764_v43, %v7538_v52 }
  0xdc   : > { %v707_v12 = vsel %vm703_vm2, %v686_v58, %v692_v0 }
  0xdd   : > { %v690_v63 = vpop.permute.xlu1 %689  ;;  %1035 = vrot.lane.b32.xlu0 %v7381_v21, %s7267_s28  ;;  %6011 = vmatprep.subr.bf16.mxu0 %v6010_v4  ;;  %v739_v20 = vmul.f32 %v7696_v5, %v707_v12  ;;  %12855 = vst [vmem:[#allocation7_spill] sm:$0xff] %v7757_v59 }
  0xdf   : > { %1049 = vrot.lane.b32.xlu1 %v7375_v6, %s7267_s28  ;;  %v698_v15 = vpop.permute.xlu0 %697  ;;  %v6064_v42 = vpack.c.bf16 %v743_v16, %v739_v20 }
  0xe0   : > { %v704_v11 = vsel %vm703_vm2, %v692_v0, %v698_v15  ;;  %v713_v19 = vsel %vm703_vm2, %v698_v15, %v680_v48  ;;  %v7760_v0 = vrot.slane %v5764_v43, %v7530_v46 }
  0xe1   : > { %v702_v14 = vpop.permute.xlu1 %701  ;;  %v737_v31 = vmul.f32 %v7701_v8, %v713_v19  ;;  %v740_v35 = vmul.f32 %v7693_v62, %v704_v11  ;;  %1041 = vrot.lane.b32.xlu0 %v7389_v23, %s7267_s28 }
  0xe3   : > { %1039 = vrot.lane.b32.xlu1 %v7391_v26, %s7267_s28  ;;  %v684_v25 = vpop.permute.xlu0 %683  ;;  %v6012_v38 = vpack.c.bf16 %v741_v17, %v737_v31  ;;  %v6062_v39 = vpack.c.bf16 %v744_v13, %v740_v35 }
  0xe4   : > { %v712_v55 = vsel %vm703_vm2, %v684_v25, %v690_v63  ;;  %v715_v49 = vsel %vm703_vm2, %v702_v14, %v684_v25 }
  0xe5   : > { %v756_v36 = vpop.permute.xlu1 %755  ;;  %1047 = vrot.lane.b32.xlu0 %v7397_v27, %s7267_s28  ;;  %6013 = vmatpush1.bf16.msra.mxu0 %v6012_v38  ;;  %v745_v4 = vmul.f32 %v7701_v8, %v715_v49  ;;  %v746_v7 = vmul.f32 %v7676_v44, %v712_v55  ;;  %v519_v49 = vld [vmem:[%s12497_s5 + $0x18] sm:$0xff] }
  0xe6   : > { %6063 = vmatprep.subr.bf16.mxu1 %v6062_v39 }
  0xe7   : > { %1051 = vrot.lane.b32.xlu1 %v7399_v28, %s7267_s28  ;;  %6065 = vmatpush1.bf16.msra.mxu1 %v6064_v42  ;;  %v696_v48 = vpop.permute.xlu0 %695 }
  0xe8   : > { %v706_v12 = vsel %vm703_vm2, %v696_v48, %v702_v14  ;;  %v709_v13 = vsel %vm703_vm2, %v690_v63, %v696_v48 }
  0xe9   : > { %v768_v47 = vpop.permute.xlu1 %767  ;;  %1033 = vrot.lane.b32.xlu0 %v7405_v29, %s7267_s28  ;;  %v747_v31 = vmul.f32 %v7696_v5, %v709_v13  ;;  %v748_v35 = vmul.f32 %v7693_v62, %v706_v12  ;;  %v521_v12 = vld [vmem:[%s12497_s5 + $0x28] sm:$0xff] }
  0xeb   : > { %v750_v57 = vpop.permute.xlu0 %749 }
  0xec   : > { %v780_v58 = vsel %vm773_vm4, %v750_v57, %v756_v36  ;;  %v783_v60 = vsel %vm773_vm4, %v768_v47, %v750_v57  ;;  %v518_v57 = vld [vmem:[%s12497_s5 + $0x10] sm:$0xff] }
  0xed   : > { %v754_v56 = vpop.permute.xlu1 %753  ;;  %v807_v9 = vmul.f32 %v7743_v50, %v783_v60  ;;  %v808_v10 = vmul.f32 %v7746_v51, %v780_v58  ;;  %1045 = vrot.lane.b32.xlu0 %v7411_v30, %s7267_s28  ;;  %v7268_v58 = vmov 0  }
  0xee   : > { %6786 = vset.pattern.permute.xlu1 %v7268_v58  ;;  %6785 = vset.pattern.permute.xlu0 %v7268_v58 }
  0xef   : > { %v762_v16 = vpop.permute.xlu0 %761  ;;  %v6014_v17 = vpack.c.bf16 %v808_v10, %v746_v7  ;;  %v6016_v11 = vpack.c.bf16 %v807_v9, %v745_v4  ;;  %1116 = vperm.xlu1 %6786, %v519_v49   ;;  %v520_v10 = vld [vmem:[%s12497_s5 + $0x20] sm:$0xff] }
  0xf0   : > { %v774_v19 = vsel %vm773_vm4, %v762_v16, %v768_v47  ;;  %v777_v20 = vsel %vm773_vm4, %v756_v36, %v762_v16 }
  0xf1   : > { %v760_v15 = vpop.permute.xlu1 %759  ;;  %v809_v25 = vmul.f32 %v7757_v59, %v777_v20  ;;  %v810_v14 = vmul.f32 %v7760_v0, %v774_v19  ;;  %6015 = vmatprep.subr.bf16.mxu0 %v6014_v17  ;;  %1111 = vperm.xlu0 %6785, %v518_v57   ;;  %v6074_v57 = vpack.c.bf16 %v7375_v6, %v7397_v27 }
  0xf2   : > { %6017 = vmatpush1.bf16.msra.mxu0 %v6016_v11  ;;  %v782_v42 = vsel %vm773_vm4, %v754_v56, %v760_v15  ;;  %v5765_v11 = vld [vmem:[%s12493_s1 + $0x14] sm:$0xf]  ;;  %v6024_v6 = vpack.c.bf16 %v7365_v2, %v7383_v22  ;;  %v6076_v27 = vpack.c.bf16 %v7367_v3, %v7389_v23 }
  0xf3   : > { %v752_v38 = vpop.permute.xlu0 %751  ;;  %v6066_v39 = vpack.c.bf16 %v810_v14, %v748_v35  ;;  %v6068_v41 = vpack.c.bf16 %v809_v25, %v747_v31  ;;  %v816_v36 = vmul.f32 %v7746_v51, %v782_v42  ;;  %1121 = vperm.xlu1 %6786, %v520_v10   ;;  %v516_v14 = vld [vmem:[%s12497_s5] sm:$0xff] }
  0xf5   : > { %v766_v63 = vpop.permute.xlu1 %765  ;;  %6067 = vmatprep.subr.bf16.mxu1 %v6066_v39  ;;  %1126 = vperm.xlu0 %6785, %v521_v12  }
  0xf6   : > { %6069 = vmatpush1.bf16.msra.mxu1 %v6068_v41  ;;  %v779_v13 = vsel %vm773_vm4, %v760_v15, %v766_v63 }
  0xf7   : > { %v758_v47 = vpop.permute.xlu0 %757  ;;  %v817_v15 = vmul.f32 %v7757_v59, %v779_v13  ;;  %1101 = vperm.xlu1 %6786, %v516_v14  }
  0xf8   : > { %v781_v48 = vsel %vm773_vm4, %v752_v38, %v758_v47 }
  0xf9   : > { %v772_v43 = vpop.permute.xlu1 %771  ;;  %v812_v55 = vmul.f32 %v7746_v51, %v781_v48 }
  0xfa   : > { %v776_v9 = vsel %vm773_vm4, %v766_v63, %v772_v43  ;;  %v785_v17 = vsel %vm773_vm4, %v772_v43, %v754_v56  ;;  %v517_v63 = vld [vmem:[%s12497_s5 + $0x8] sm:$0xff]  ;;  %v7830_v43 = vrot.slane %v5765_v11, %v7528_v45 }
  0xfb   : > { %v764_v4 = vpop.permute.xlu0 %763  ;;  %v6018_v7 = vpack.c.bf16 %v816_v36, %v812_v55  ;;  %v818_v19 = vmul.f32 %v7760_v0, %v776_v9  ;;  %v815_v39 = vmul.f32 %v7743_v50, %v785_v17  ;;  %v7827_v36 = vrot.slane %v5765_v11, %v7530_v46  ;;  %1106 = vperm.xlu0 %6785, %v517_v63  }
  0xfc   : > { %v778_v16 = vsel %vm773_vm4, %v758_v47, %v764_v4  ;;  %12857 = vst [vmem:[#allocation9_spill] sm:$0xff] %v7830_v43  ;;  %v7842_v9 = vrot.slane %v5765_v11, %v7538_v52 }
  0xfd   : > { %v826_v60 = vpop.permute.xlu1 %825  ;;  %6019 = vmatprep.subr.bf16.mxu0 %v6018_v7  ;;  %v813_v35 = vmul.f32 %v7757_v59, %v778_v16  ;;  %12856 = vst [vmem:[#allocation8_spill] sm:$0xff] %v7827_v36  ;;  %v7839_v7 = vrot.slane %v5765_v11, %v7511_v37 }
  0xfe   : > { %12859 = vst [vmem:[#allocation11_spill] sm:$0xff] %v7842_v9 }
  0xff   : > { %v770_v31 = vpop.permute.xlu0 %769  ;;  %12858 = vst [vmem:[#allocation10_spill] sm:$0xff] %v7839_v7 }
 0x100   : > { %v775_v25 = vsel %vm773_vm4, %v764_v4, %v770_v31  ;;  %v784_v56 = vsel %vm773_vm4, %v770_v31, %v752_v38  ;;  %v6022_v38 = vpack.c.bf16 %v7360_v1, %v7381_v21  ;;  %v6072_v4 = vpack.c.bf16 %v817_v15, %v813_v35 }
 0x101   : > { %v838_v20 = vpop.permute.xlu1 %837  ;;  %v811_v41 = vmul.f32 %v7743_v50, %v784_v56  ;;  %v814_v42 = vmul.f32 %v7760_v0, %v775_v25 }
 0x103   : > { %v820_v48 = vpop.permute.xlu0 %819  ;;  %v6020_v55 = vpack.c.bf16 %v815_v39, %v811_v41  ;;  %v6070_v49 = vpack.c.bf16 %v818_v19, %v814_v42 }
 0x104   : > { %v853_v58 = vsel %vm843_vm5, %v838_v20, %v820_v48  ;;  %v850_v1 = vsel %vm843_vm5, %v820_v48, %v826_v60 }
 0x105   : > { %v824_v47 = vpop.permute.xlu1 %823  ;;  %v880_v21 = vmul.f32 %v7827_v36, %v853_v58  ;;  %6021 = vmatpush1.bf16.msra.mxu0 %v6020_v55  ;;  %6071 = vmatprep.subr.bf16.mxu1 %v6070_v49  ;;  %v877_v13 = vmul.f32 %v7830_v43, %v850_v1 }
 0x106   : > { %6073 = vmatpush1.bf16.msra.mxu1 %v6072_v4  ;;  %6023 = vmatprep.subr.bf16.mxu0 %v6022_v38 }
 0x107   : > { %v832_v12 = vpop.permute.xlu0 %831  ;;  %6075 = vmatprep.subr.bf16.mxu1 %v6074_v57  ;;  %v6078_v22 = vpack.c.bf16 %v880_v21, %v7399_v28 }
 0x108   : > { %v844_v16 = vsel %vm843_vm5, %v832_v12, %v838_v20  ;;  %v847_v17 = vsel %vm843_vm5, %v826_v60, %v832_v12  ;;  %v6028_v20 = vpack.c.bf16 %v877_v13, %v7405_v29  ;;  %v5766_v13 = vld [vmem:[%s12493_s1 + $0x18] sm:$0xf] }
 0x109   : > { %v830_v10 = vpop.permute.xlu1 %829  ;;  %v878_v11 = vmul.f32 %v7839_v7, %v847_v17  ;;  %v879_v2 = vmul.f32 %v7842_v9, %v844_v16  ;;  %6025 = vmatpush1.bf16.msra.mxu0 %v6024_v6  ;;  %v7891_v16 = vrot.slane %v5766_v13, %v7511_v37 }
 0x10a   : > { %6077 = vmatpush1.bf16.msra.mxu1 %v6076_v27  ;;  %v852_v28 = vsel %vm843_vm5, %v824_v47, %v830_v10 }
 0x10b   : > { %v822_v23 = vpop.permute.xlu0 %821  ;;  %6079 = vmatprep.subr.bf16.mxu1 %v6078_v22  ;;  %v6026_v19 = vpack.c.bf16 %v878_v11, %v7391_v26  ;;  %v6080_v31 = vpack.c.bf16 %v879_v2, %v7411_v30  ;;  %v885_v29 = vmul.f32 %v7830_v43, %v852_v28  ;;  %12860 = vst [vmem:[#allocation12_spill] sm:$0xff] %v7891_v16 }
 0x10c   : > { %v7894_v2 = vrot.slane %v5766_v13, %v7528_v45 }
 0x10d   : > { %v836_v3 = vpop.permute.xlu1 %835  ;;  %6027 = vmatprep.subr.bf16.mxu0 %v6026_v19 }
 0x10e   : > { %6029 = vmatpush1.bf16.msra.mxu0 %v6028_v20  ;;  %6081 = vmatpush1.bf16.msra.mxu1 %v6080_v31  ;;  %v849_v35 = vsel %vm843_vm5, %v830_v10, %v836_v3  ;;  %12861 = vst [vmem:[#allocation13_spill] sm:$0xff] %v7894_v2  ;;  %v7904_v31 = vrot.slane %v5766_v13, %v7538_v52 }
 0x10f   : > { %v828_v15 = vpop.permute.xlu0 %827  ;;  %v886_v26 = vmul.f32 %v7839_v7, %v849_v35 }
 0x110   : > { %v851_v25 = vsel %vm843_vm5, %v822_v23, %v828_v15  ;;  %12862 = vst [vmem:[#allocation14_spill] sm:$0xff] %v7904_v31 }
 0x111   : > { %v842_v60 = vpop.permute.xlu1 %841  ;;  %v881_v63 = vmul.f32 %v7830_v43, %v851_v25 }
 0x112   : > { %v846_v14 = vsel %vm843_vm5, %v836_v3, %v842_v60  ;;  %v855_v42 = vsel %vm843_vm5, %v842_v60, %v824_v47 }
 0x113   : > { %v834_v30 = vpop.permute.xlu0 %833  ;;  %v887_v38 = vmul.f32 %v7842_v9, %v846_v14  ;;  %v6032_v4 = vpack.c.bf16 %v885_v29, %v881_v63  ;;  %v888_v1 = vmul.f32 %v7827_v36, %v855_v42 }
 0x114   : > { %v848_v39 = vsel %vm843_vm5, %v828_v15, %v834_v30 }
 0x115   : > { %v892_v56 = vpop.permute.xlu1 %891  ;;  %v882_v41 = vmul.f32 %v7839_v7, %v848_v39 }
 0x117   : > { %v840_v55 = vpop.permute.xlu0 %839  ;;  %v6030_v49 = vpack.c.bf16 %v886_v26, %v882_v41  ;;  %v7913_v26 = vrot.slane %v5766_v13, %v7530_v46 }
 0x118   : > { %v845_v57 = vsel %vm843_vm5, %v834_v30, %v840_v55  ;;  %v854_v58 = vsel %vm843_vm5, %v840_v55, %v822_v23 }
 0x119   : > { %v898_v48 = vpop.permute.xlu1 %897  ;;  %v883_v21 = vmul.f32 %v7842_v9, %v845_v57  ;;  %v884_v6 = vmul.f32 %v7827_v36, %v854_v58  ;;  %6031 = vmatprep.subr.bf16.mxu0 %v6030_v49  ;;  %12863 = vst [vmem:[#allocation15_spill] sm:$0xff] %v7913_v26 }
 0x11a   : > { %6033 = vmatpush1.bf16.msra.mxu0 %v6032_v4  ;;  %v921_v3 = vsel %vm913_vm6, %v892_v56, %v898_v48 }
 0x11b   : > { %v890_v27 = vpop.permute.xlu0 %889  ;;  %v6082_v10 = vpack.c.bf16 %v888_v1, %v884_v6  ;;  %v6084_v12 = vpack.c.bf16 %v887_v38, %v883_v21  ;;  %v951_v15 = vmul.f32 %v7894_v2, %v921_v3  ;;  %v5767_v21 = vld [vmem:[%s12493_s1 + $0x1c] sm:$0xf] }
 0x11d   : > { %v904_v47 = vpop.permute.xlu1 %903  ;;  %6083 = vmatprep.subr.bf16.mxu1 %v6082_v10 }
 0x11e   : > { %6085 = vmatpush1.bf16.msra.mxu1 %v6084_v12  ;;  %v918_v22 = vsel %vm913_vm6, %v898_v48, %v904_v47 }
 0x11f   : > { %v896_v11 = vpop.permute.xlu0 %895  ;;  %v952_v19 = vmul.f32 %v7891_v16, %v918_v22  ;;  %v7941_v22 = vrot.slane %v5767_v21, %v7511_v37 }
 0x120   : > { %v920_v23 = vsel %vm913_vm6, %v890_v27, %v896_v11 }
 0x121   : > { %v910_v17 = vpop.permute.xlu1 %909  ;;  %v947_v28 = vmul.f32 %v7894_v2, %v920_v23  ;;  %12866 = vst [vmem:[#allocation18_spill] sm:$0xff] %v7941_v22 }
 0x122   : > { %v915_v35 = vsel %vm913_vm6, %v904_v47, %v910_v17  ;;  %v924_v29 = vsel %vm913_vm6, %v910_v17, %v892_v56 }
 0x123   : > { %v902_v60 = vpop.permute.xlu0 %901  ;;  %v953_v14 = vmul.f32 %v7904_v31, %v915_v35  ;;  %v6036_v48 = vpack.c.bf16 %v951_v15, %v947_v28  ;;  %v954_v55 = vmul.f32 %v7913_v26, %v924_v29 }
 0x124   : > { %v917_v25 = vsel %vm913_vm6, %v896_v11, %v902_v60  ;;  %v7938_v11 = vrot.slane %v5767_v21, %v7528_v45 }
 0x125   : > { %v900_v20 = vpop.permute.xlu1 %899  ;;  %v948_v30 = vmul.f32 %v7891_v16, %v917_v25 }
 0x126   : > { %12865 = vst [vmem:[#allocation17_spill] sm:$0xff] %v7938_v11 }
 0x127   : > { %v908_v39 = vpop.permute.xlu0 %907  ;;  %v6034_v41 = vpack.c.bf16 %v952_v19, %v948_v30 }
 0x128   : > { %v914_v42 = vsel %vm913_vm6, %v902_v60, %v908_v39  ;;  %v923_v38 = vsel %vm913_vm6, %v908_v39, %v890_v27  ;;  %v7931_v27 = vrot.slane %v5767_v21, %v7530_v46  ;;  %v7948_v60 = vrot.slane %v5767_v21, %v7538_v52 }
 0x129   : > { %v912_v63 = vpop.permute.xlu1 %911  ;;  %v949_v49 = vmul.f32 %v7904_v31, %v914_v42  ;;  %v950_v57 = vmul.f32 %v7913_v26, %v923_v38  ;;  %6035 = vmatprep.subr.bf16.mxu0 %v6034_v41 }
 0x12a   : > { %6037 = vmatpush1.bf16.msra.mxu0 %v6036_v48  ;;  %12864 = vst [vmem:[#allocation16_spill] sm:$0xff] %v7931_v27  ;;  %12867 = vst [vmem:[#allocation19_spill] sm:$0xff] %v7948_v60 }
 0x12b   : > { %v894_v58 = vpop.permute.xlu0 %893  ;;  %v6086_v4 = vpack.c.bf16 %v954_v55, %v950_v57  ;;  %v6088_v1 = vpack.c.bf16 %v953_v14, %v949_v49 }
 0x12c   : > { %v925_v10 = vsel %vm913_vm6, %v912_v63, %v894_v58  ;;  %v922_v28 = vsel %vm913_vm6, %v894_v58, %v900_v20 }
 0x12d   : > { %v966_v56 = vpop.permute.xlu1 %965  ;;  %6087 = vmatprep.subr.bf16.mxu1 %v6086_v4  ;;  %v958_v3 = vmul.f32 %v7913_v26, %v925_v10 }
 0x12e   : > { %6089 = vmatpush1.bf16.msra.mxu1 %v6088_v1 }
 0x12f   : > { %v906_v47 = vpop.permute.xlu0 %905 }
 0x130   : > { %v916_v15 = vsel %vm913_vm6, %v906_v47, %v912_v63  ;;  %v919_v35 = vsel %vm913_vm6, %v900_v20, %v906_v47  ;;  %v955_v20 = vmul.f32 %v7894_v2, %v922_v28 }
 0x131   : > { %v978_v6 = vpop.permute.xlu1 %977  ;;  %v956_v42 = vmul.f32 %v7891_v16, %v919_v35  ;;  %v957_v63 = vmul.f32 %v7904_v31, %v916_v15 }
 0x133   : > { %v960_v13 = vpop.permute.xlu0 %959 }
 0x134   : > { %v993_v17 = vsel %vm983_vm7, %v978_v6, %v960_v13  ;;  %v990_v23 = vsel %vm983_vm7, %v960_v13, %v966_v56 }
 0x135   : > { %v964_v12 = vpop.permute.xlu1 %963  ;;  %v1020_v19 = vmul.f32 %v7931_v27, %v993_v17  ;;  %v1017_v14 = vmul.f32 %v7938_v11, %v990_v23 }
 0x137   : > { %v972_v30 = vpop.permute.xlu0 %971  ;;  %v6090_v29 = vpack.c.bf16 %v1020_v19, %v958_v3  ;;  %v6040_v4 = vpack.c.bf16 %v1017_v14, %v955_v20 }
 0x138   : > { %v984_v39 = vsel %vm983_vm7, %v972_v30, %v978_v6  ;;  %v987_v41 = vsel %vm983_vm7, %v966_v56, %v972_v30 }
 0x139   : > { %v970_v25 = vpop.permute.xlu1 %969  ;;  %v1018_v38 = vmul.f32 %v7941_v22, %v987_v41  ;;  %v1019_v48 = vmul.f32 %v7948_v60, %v984_v39  ;;  %6091 = vmatprep.subr.bf16.mxu1 %v6090_v29 }
 0x13a   : > { %v992_v6 = vsel %vm983_vm7, %v964_v12, %v970_v25 }
 0x13b   : > { %v962_v49 = vpop.permute.xlu0 %961  ;;  %v6038_v57 = vpack.c.bf16 %v1018_v38, %v956_v42  ;;  %v6092_v58 = vpack.c.bf16 %v1019_v48, %v957_v63  ;;  %v1025_v3 = vmul.f32 %v7938_v11, %v992_v6 }
 0x13d   : > { %v976_v55 = vpop.permute.xlu1 %975  ;;  %6039 = vmatprep.subr.bf16.mxu0 %v6038_v57  ;;  %6093 = vmatpush1.bf16.msra.mxu1 %v6092_v58  ;;  %v5768_v58 = vld [vmem:[%s12493_s1 + $0x20] sm:$0xf] }
 0x13e   : > { %6041 = vmatpush1.bf16.msra.mxu0 %v6040_v4  ;;  %v989_v21 = vsel %vm983_vm7, %v970_v25, %v976_v55 }
 0x13f   : > { %v968_v1 = vpop.permute.xlu0 %967  ;;  %v1026_v10 = vmul.f32 %v7941_v22, %v989_v21 }
 0x140   : > { %v991_v47 = vsel %vm983_vm7, %v962_v49, %v968_v1 }
 0x141   : > { %v982_v56 = vpop.permute.xlu1 %981  ;;  %v1021_v19 = vmul.f32 %v7938_v11, %v991_v47 }
 0x142   : > { %v986_v23 = vsel %vm983_vm7, %v976_v55, %v982_v56  ;;  %v995_v28 = vsel %vm983_vm7, %v982_v56, %v964_v12 }
 0x143   : > { %v974_v17 = vpop.permute.xlu0 %973  ;;  %v1027_v25 = vmul.f32 %v7948_v60, %v986_v23  ;;  %v6044_v42 = vpack.c.bf16 %v1025_v3, %v1021_v19  ;;  %v1028_v63 = vmul.f32 %v7931_v27, %v995_v28 }
 0x144   : > { %v988_v15 = vsel %vm983_vm7, %v968_v1, %v974_v17  ;;  %v7998_v1 = vrot.slane %v5768_v58, %v7528_v45 }
 0x145   : > { %v1032_v13 = vpop.permute.xlu1 %1031  ;;  %v1022_v35 = vmul.f32 %v7941_v22, %v988_v15 }
 0x146   : > { %12869 = vst [vmem:[#allocation21_spill] sm:$0xff] %v7998_v1 }
 0x147   : > { %v980_v29 = vpop.permute.xlu0 %979  ;;  %v6042_v14 = vpack.c.bf16 %v1026_v10, %v1022_v35  ;;  %v8017_v35 = vrot.slane %v5768_v58, %v7530_v46 }
 0x148   : > { %v985_v39 = vsel %vm983_vm7, %v974_v17, %v980_v29  ;;  %v994_v41 = vsel %vm983_vm7, %v980_v29, %v962_v49  ;;  %v7995_v49 = vrot.slane %v5768_v58, %v7511_v37  ;;  %v8008_v17 = vrot.slane %v5768_v58, %v7538_v52 }
 0x149   : > { %v1038_v30 = vpop.permute.xlu1 %1037  ;;  %v1023_v38 = vmul.f32 %v7948_v60, %v985_v39  ;;  %v1024_v48 = vmul.f32 %v7931_v27, %v994_v41  ;;  %6043 = vmatprep.subr.bf16.mxu0 %v6042_v14  ;;  %12871 = vst [vmem:[#allocation23_spill] sm:$0xff] %v8017_v35 }
 0x14a   : > { %6045 = vmatpush1.bf16.msra.mxu0 %v6044_v42  ;;  %12868 = vst [vmem:[#allocation20_spill] sm:$0xff] %v7995_v49  ;;  %v1061_v6 = vsel %vm1053_vm8, %v1032_v13, %v1038_v30  ;;  %12870 = vst [vmem:[#allocation22_spill] sm:$0xff] %v8008_v17 }
 0x14b   : > { %v1030_v20 = vpop.permute.xlu0 %1029  ;;  %v6094_v55 = vpack.c.bf16 %v1028_v63, %v1024_v48  ;;  %v6096_v57 = vpack.c.bf16 %v1027_v25, %v1023_v38  ;;  %v1091_v23 = vmul.f32 %v7998_v1, %v1061_v6 }
 0x14d   : > { %v1044_v12 = vpop.permute.xlu1 %1043  ;;  %6095 = vmatprep.subr.bf16.mxu1 %v6094_v55 }
 0x14e   : > { %6097 = vmatpush1.bf16.msra.mxu1 %v6096_v57  ;;  %v1058_v21 = vsel %vm1053_vm8, %v1038_v30, %v1044_v12 }
 0x14f   : > { %v1036_v56 = vpop.permute.xlu0 %1035  ;;  %v1092_v10 = vmul.f32 %v7995_v49, %v1058_v21 }
 0x150   : > { %v1060_v47 = vsel %vm1053_vm8, %v1030_v20, %v1036_v56 }
 0x151   : > { %v1050_v4 = vpop.permute.xlu1 %1049  ;;  %v1087_v19 = vmul.f32 %v7998_v1, %v1060_v47  ;;  %v502_v47 = vld [vmem:[%s12494_s2] sm:$0xff] }
 0x152   : > { %v1055_v45 = vsel %vm1053_vm8, %v1044_v12, %v1050_v4  ;;  %v1064_v52 = vsel %vm1053_vm8, %v1050_v4, %v1032_v13 }
 0x153   : > { %v1042_v37 = vpop.permute.xlu0 %1041  ;;  %v1093_v25 = vmul.f32 %v8008_v17, %v1055_v45  ;;  %v6048_v41 = vpack.c.bf16 %v1091_v23, %v1087_v19  ;;  %v1094_v42 = vmul.f32 %v8017_v35, %v1064_v52  ;;  %v507_v23 = vld [vmem:[%s12494_s2 + $0x28] sm:$0xff]  ;;  %v506_v45 = vld [vmem:[%s12494_s2 + $0x20] sm:$0xff]  ;;  %v509_v19 = vld [vmem:[%s12494_s2 + $0x38] sm:$0xff] }
 0x154   : > { %v1057_v15 = vsel %vm1053_vm8, %v1036_v56, %v1042_v37  ;;  %v510_v52 = vld [vmem:[%s12494_s2 + $0x40] sm:$0xff] }
 0x155   : > { %v1040_v3 = vpop.permute.xlu1 %1039  ;;  %v1088_v28 = vmul.f32 %v7995_v49, %v1057_v15  ;;  %v508_v15 = vld [vmem:[%s12494_s2 + $0x30] sm:$0xff] }
 0x157   : > { %v1048_v30 = vpop.permute.xlu0 %1047  ;;  %v6046_v29 = vpack.c.bf16 %v1092_v10, %v1088_v28  ;;  %v511_v28 = vld [vmem:[%s12494_s2 + $0x48] sm:$0xff] }
 0x158   : > { %v1054_v14 = vsel %vm1053_vm8, %v1042_v37, %v1048_v30  ;;  %v1063_v39 = vsel %vm1053_vm8, %v1048_v30, %v1030_v20  ;;  %v505_v37 = vld [vmem:[%s12494_s2 + $0x18] sm:$0xff]  ;;  %v512_v30 = vld [vmem:[%s12494_s2 + $0x50] sm:$0xff] }
 0x159   : > { %v1089_v46 = vmul.f32 %v8008_v17, %v1054_v14  ;;  %v1090_v63 = vmul.f32 %v8017_v35, %v1063_v39  ;;  %6047 = vmatprep.subr.bf16.mxu0 %v6046_v29  ;;  %v1052_v38 = vpop.permute.xlu1 %1051 }
 0x15a   : > { %6049 = vmatpush1.bf16.msra.mxu0 %v6048_v41 }
 0x15b   : > { %v1034_v13 = vpop.permute.xlu0 %1033  ;;  %v6098_v48 = vpack.c.bf16 %v1094_v42, %v1090_v63  ;;  %v6100_v12 = vpack.c.bf16 %v1093_v25, %v1089_v46  ;;  %v513_v25 = vld [vmem:[%s12494_s2 + $0x58] sm:$0xff] }
 0x15c   : > { %v1065_v55 = vsel %vm1053_vm8, %v1052_v38, %v1034_v13  ;;  %v1062_v20 = vsel %vm1053_vm8, %v1034_v13, %v1040_v3 }
 0x15d   : > { %6099 = vmatprep.subr.bf16.mxu1 %v6098_v48  ;;  %v1098_v57 = vmul.f32 %v8017_v35, %v1065_v55  ;;  %v1095_v10 = vmul.f32 %v7998_v1, %v1062_v20 }
 0x15e   : > { %6101 = vmatpush1.bf16.msra.mxu1 %v6100_v12 }
 0x15f   : > { %v1046_v58 = vpop.permute.xlu0 %1045  ;;  %1315 = vmatprep.subr.mxu1 %v1098_v57 }
 0x160   : > { %v1056_v4 = vsel %vm1053_vm8, %v1046_v58, %v1052_v38  ;;  %v1059_v56 = vsel %vm1053_vm8, %v1040_v3, %v1046_v58  ;;  %v504_v3 = vld [vmem:[%s12494_s2 + $0x10] sm:$0xff] }
 0x161   : > { %v1096_v21 = vmul.f32 %v7995_v49, %v1059_v56  ;;  %v1097_v6 = vmul.f32 %v8008_v17, %v1056_v4 }
 0x163   : > { %1208 = vmatprep.subr.mxu0 %v1096_v21  ;;  %1316 = vmatpush1.msra.mxu1 %v1097_v6 }
 0x164   : > { %1209 = vmatpush1.msra.mxu0 %v1095_v10  ;;  %1328 = vmatmul.mubr.f32.vlgmr.msra.gmra.mrb[0].mxu1 %v502_v47 }
 0x165   : > { %1221 = vmatmul.mubr.f32.vlgmr.msra.gmra.mrb[0].mxu0 %v502_v47  ;;  %5777 = vmatprep.mubr.msk.f32.mxu1 %vm1134_vm3, %v505_v37 }
 0x166   : > { %5770 = vmatprep.mubr.msk.f32.mxu0 %vm1134_vm3, %v505_v37 }
 0x168   : > { %1334 = vmatmul.mubr.f32.gmra.mrb[2].mxu1 %v504_v3 }
 0x169   : > { %1227 = vmatmul.mubr.f32.gmra.mrb[2].mxu0 %v504_v3  ;;  %5778 = vmatprep.mubr.msk.f32.mxu1 %vm1134_vm3, %v507_v23 }
 0x16a   : > { %5771 = vmatprep.mubr.msk.f32.mxu0 %vm1134_vm3, %v507_v23 }
 0x16c   : > { %1340 = vmatmul.mubr.f32.gmra.mrb[4].mxu1 %v506_v45 }
 0x16d   : > { %1233 = vmatmul.mubr.f32.gmra.mrb[4].mxu0 %v506_v45  ;;  %5779 = vmatprep.mubr.msk.f32.mxu1 %vm1134_vm3, %v509_v19 }
 0x16e   : > { %5772 = vmatprep.mubr.msk.f32.mxu0 %vm1134_vm3, %v509_v19  ;;  %v1117_v29 = vpop.permute.xlu1 %1116 }
 0x170   : > { %1346 = vmatmul.mubr.f32.gmra.mrb[6].mxu1 %v508_v15  ;;  %v1112_v14 = vpop.permute.xlu0 %1111 }
 0x171   : > { %1239 = vmatmul.mubr.f32.gmra.mrb[6].mxu0 %v508_v15  ;;  %5780 = vmatprep.mubr.msk.f32.mxu1 %vm1134_vm3, %v511_v28 }
 0x172   : > { %5773 = vmatprep.mubr.msk.f32.mxu0 %vm1134_vm3, %v511_v28  ;;  %v8085_v39 = vpop.permute.xlu1 %1121 }
 0x174   : > { %1352 = vmatmul.mubr.f32.gmra.mrb[8].mxu1 %v510_v52  ;;  %v8087_v41 = vpop.permute.xlu0 %1126 }
 0x175   : > { %1245 = vmatmul.mubr.f32.gmra.mrb[8].mxu0 %v510_v52  ;;  %5781 = vmatprep.mubr.msk.f32.mxu1 %vm1134_vm3, %v513_v25 }
 0x176   : > { %5774 = vmatprep.mubr.msk.f32.mxu0 %vm1134_vm3, %v513_v25  ;;  %v1102_v42 = vpop.permute.xlu1 %1101 }
 0x178   : > { %1358 = vmatmul.mubr.f32.gmra.mrb[10].mxu1 %v512_v30 }
 0x179   : > { %1251 = vmatmul.mubr.f32.gmra.mrb[10].mxu0 %v512_v30 }
 0x17a   : > { %v1107_v57 = vpop.permute.xlu0 %1106 }
 0x237   : > { %v1329_v46 = vpop.f32.mrb[0].mxu1 }
 0x238   : > { %v1222_v63 = vpop.f32.mrb[0].mxu0  ;;  %v1330_v38 = vadd.f32 %v1329_v46, %v1102_v42  ;;  %v1331_v13 = vpop.f32.mrb[1].mxu1 }
 0x239   : > { %v1223_v48 = vadd.f32 %v1222_v63, %v1102_v42  ;;  %v1224_v12 = vpop.f32.mrb[1].mxu0  ;;  %v1332_v20 = vadd.f32 %v1331_v13, %v1102_v42 }
 0x23a   : > { %v1225_v55 = vadd.f32 %v1224_v12, %v1102_v42  ;;  %6787 = vtanh.f32 %v1330_v38 }
 0x23b   : > { %v1335_v58 = vpop.f32.mrb[2].mxu1  ;;  %6789 = vtanh.f32 %v1223_v48 }
 0x23c   : > { %v1228_v4 = vpop.f32.mrb[2].mxu0  ;;  %v1336_v56 = vadd.f32 %v1335_v58, %v1107_v57  ;;  %v1337_v21 = vpop.f32.mrb[3].mxu1  ;;  %6791 = vtanh.f32 %v1225_v55 }
 0x23d   : > { %v1229_v6 = vadd.f32 %v1228_v4, %v1107_v57  ;;  %v1230_v47 = vpop.f32.mrb[3].mxu0  ;;  %6793 = vtanh.f32 %v1332_v20  ;;  %v1338_v37 = vadd.f32 %v1337_v21, %v1107_v57 }
 0x23e   : > { %v1231_v10 = vadd.f32 %v1230_v47, %v1107_v57  ;;  %6795 = vtanh.f32 %v1336_v56 }
 0x23f   : > { %v1341_v3 = vpop.f32.mrb[4].mxu1  ;;  %6797 = vtanh.f32 %v1229_v6 }
 0x240   : > { %v1342_v23 = vadd.f32 %v1341_v3, %v1112_v14  ;;  %v1234_v45 = vpop.f32.mrb[4].mxu0  ;;  %v1343_v19 = vpop.f32.mrb[5].mxu1  ;;  %6799 = vtanh.f32 %v1231_v10 }
 0x241   : > { %v1235_v15 = vadd.f32 %v1234_v45, %v1112_v14  ;;  %v1344_v28 = vadd.f32 %v1343_v19, %v1112_v14  ;;  %v1236_v52 = vpop.f32.mrb[5].mxu0  ;;  %6801 = vtanh.f32 %v1338_v37 }
 0x242   : > { %v5785_v25 = vmul.f32 -1.442695, %v1342_v23  ;;  %v1237_v30 = vadd.f32 %v1236_v52, %v1112_v14 }
 0x243   : > { %v5783_v42 = vmul.f32 -1.442695, %v1235_v15  ;;  %v5786_v46 = vmul.f32 -1.442695, %v1344_v28  ;;  %v1347_v63 = vpop.f32.mrb[6].mxu1 }
 0x244   : > { %6803 = vpow2.f32 %v5785_v25  ;;  %v5784_v38 = vmul.f32 -1.442695, %v1237_v30  ;;  %v1348_v13 = vadd.f32 %v1347_v63, %v1117_v29  ;;  %v1240_v48 = vpop.f32.mrb[6].mxu0  ;;  %v1349_v12 = vpop.f32.mrb[7].mxu1 }
 0x245   : > { %6805 = vpow2.f32 %v5783_v42  ;;  %v1241_v55 = vadd.f32 %v1240_v48, %v1117_v29  ;;  %v1350_v57 = vadd.f32 %v1349_v12, %v1117_v29  ;;  %v1242_v20 = vpop.f32.mrb[7].mxu0  ;;  %v8089_v58 = vpop.eup %6787 }
 0x246   : > { %6807 = vpow2.f32 %v5786_v46  ;;  %v5789_v4 = vmul.f32 -1.442695, %v1348_v13  ;;  %v1243_v56 = vadd.f32 %v1242_v20, %v1117_v29  ;;  %v8091_v21 = vpop.eup %6789 }
 0x247   : > { %6809 = vpow2.f32 %v5784_v38  ;;  %v5787_v14 = vmul.f32 -1.442695, %v1241_v55  ;;  %v5790_v6 = vmul.f32 -1.442695, %v1350_v57  ;;  %v1353_v47 = vpop.f32.mrb[8].mxu1  ;;  %v8093_v10 = vpop.eup %6791 }
 0x248   : > { %6811 = vpow2.f32 %v5789_v4  ;;  %v5788_v37 = vmul.f32 -1.442695, %v1243_v56  ;;  %v1354_v3 = vadd.f32 %v1353_v47, %v8085_v39  ;;  %v1246_v23 = vpop.f32.mrb[8].mxu0  ;;  %v1355_v45 = vpop.f32.mrb[9].mxu1 }
 0x249   : > { %v8096_v19 = vpop.eup %6793  ;;  %6813 = vpow2.f32 %v5787_v14  ;;  %v1247_v15 = vadd.f32 %v1246_v23, %v8085_v39  ;;  %v1356_v29 = vadd.f32 %v1355_v45, %v8085_v39  ;;  %v1248_v28 = vpop.f32.mrb[9].mxu0 }
 0x24a   : > { %v8100_v52 = vpop.eup %6795  ;;  %6815 = vpow2.f32 %v5790_v6  ;;  %v5793_v25 = vmul.f32 -1.442695, %v1354_v3  ;;  %v1249_v30 = vadd.f32 %v1248_v28, %v8085_v39 }
 0x24b   : > { %v8103_v42 = vpop.eup %6797  ;;  %6817 = vpow2.f32 %v5788_v37  ;;  %v5791_v46 = vmul.f32 -1.442695, %v1247_v15  ;;  %v5794_v63 = vmul.f32 -1.442695, %v1356_v29  ;;  %v1359_v38 = vpop.f32.mrb[10].mxu1 }
 0x24c   : > { %v8105_v13 = vpop.eup %6799  ;;  %6819 = vpow2.f32 %v5793_v25  ;;  %v5792_v48 = vmul.f32 -1.442695, %v1249_v30  ;;  %v1360_v12 = vadd.f32 %v1359_v38, %v8087_v41  ;;  %v1252_v55 = vpop.f32.mrb[10].mxu0 }
 0x24d   : > { %v1361_v57 = vpop.f32.mrb[11].mxu1  ;;  %v8108_v20 = vpop.eup %6801  ;;  %6821 = vpow2.f32 %v5791_v46 }
 0x24e   : > { %v1254_v4 = vpop.f32.mrb[11].mxu0  ;;  %v6804_v56 = vpop.eup %6803  ;;  %6823 = vpow2.f32 %v5794_v63  ;;  %v5797_v39 = vmul.f32 -1.442695, %v1360_v12  ;;  %v1253_v12 = vadd.f32 %v1252_v55, %v8087_v41 }
 0x24f   : > { %v6806_v14 = vpop.eup %6805  ;;  %v1428_v6 = vadd.f32 1.0, %v6804_v56  ;;  %6825 = vpow2.f32 %v5792_v48 }
 0x250   : > { %v6808_v47 = vpop.eup %6807  ;;  %v1426_v37 = vadd.f32 1.0, %v6806_v14  ;;  %6827 = vpow2.f32 %v5797_v39  ;;  %v1362_v14 = vadd.f32 %v1361_v57, %v8087_v41 }
 0x251   : > { %v6810_v3 = vpop.eup %6809  ;;  %6829 = vrcp.f32 %v1428_v6  ;;  %v1429_v23 = vadd.f32 1.0, %v6808_v47 }
 0x252   : > { %v6812_v45 = vpop.eup %6811  ;;  %6831 = vrcp.f32 %v1426_v37  ;;  %v1427_v15 = vadd.f32 1.0, %v6810_v3  ;;  %v1255_v37 = vadd.f32 %v1254_v4, %v8087_v41  ;;  %v535_v41 = vld [vmem:[#allocation3 + $0x10] sm:$0xff] }
 0x253   : > { %v6814_v29 = vpop.eup %6813  ;;  %6833 = vrcp.f32 %v1429_v23  ;;  %v1432_v28 = vadd.f32 1.0, %v6812_v45 }
 0x254   : > { %v6816_v25 = vpop.eup %6815  ;;  %6835 = vrcp.f32 %v1427_v15  ;;  %v1430_v30 = vadd.f32 1.0, %v6814_v29  ;;  %v5795_v29 = vmul.f32 -1.442695, %v1253_v12  ;;  %v5796_v57 = vmul.f32 -1.442695, %v1255_v37 }
 0x255   : > { %v6818_v46 = vpop.eup %6817  ;;  %6837 = vrcp.f32 %v1432_v28  ;;  %v1433_v63 = vadd.f32 1.0, %v6816_v25  ;;  %v5798_v25 = vmul.f32 -1.442695, %v1362_v14 }
 0x256   : > { %v6820_v38 = vpop.eup %6819  ;;  %6839 = vrcp.f32 %v1430_v30  ;;  %v1431_v48 = vadd.f32 1.0, %v6818_v46 }
 0x257   : > { %v6822_v56 = vpop.eup %6821  ;;  %6841 = vrcp.f32 %v1433_v63  ;;  %v1436_v39 = vadd.f32 1.0, %v6820_v38 }
 0x258   : > { %v6824_v6 = vpop.eup %6823  ;;  %6843 = vrcp.f32 %v1431_v48  ;;  %v1434_v47 = vadd.f32 1.0, %v6822_v56  ;;  %v533_v56 = vld [vmem:[#allocation3] sm:$0xff] }
 0x259   : > { %v6826_v3 = vpop.eup %6825  ;;  %6845 = vrcp.f32 %v1436_v39  ;;  %v1437_v23 = vadd.f32 1.0, %v6824_v6  ;;  %v536_v6 = vld [vmem:[#allocation3 + $0x18] sm:$0xff] }
 0x25a   : > { %v6828_v45 = vpop.eup %6827  ;;  %6847 = vrcp.f32 %v1434_v47  ;;  %v1435_v15 = vadd.f32 1.0, %v6826_v3 }
 0x25b   : > { %v6830_v28 = vpop.eup %6829  ;;  %6849 = vrcp.f32 %v1437_v23  ;;  %v1440_v55 = vadd.f32 1.0, %v6828_v45 }
 0x25c   : > { %v6832_v30 = vpop.eup %6831  ;;  %v1480_v46 = vmul.f32 %v6830_v28, %v8089_v58  ;;  %6851 = vrcp.f32 %v1435_v15  ;;  %v534_v58 = vld [vmem:[#allocation3 + $0x8] sm:$0xff] }
 0x25d   : > { %v6834_v63 = vpop.eup %6833  ;;  %v1478_v38 = vmul.f32 %v6832_v30, %v8091_v21  ;;  %6853 = vrcp.f32 %v1440_v55 }
 0x25e   : > { %v6836_v4 = vpop.eup %6835  ;;  %v1481_v48 = vmul.f32 %v6834_v63, %v8096_v19  ;;  %6855 = vpow2.f32 %v5795_v29 }
 0x25f   : > { %v6838_v12 = vpop.eup %6837  ;;  %v1479_v39 = vmul.f32 %v6836_v4, %v8093_v10  ;;  %6857 = vpow2.f32 %v5798_v25  ;;  %v7219_v4 = vld [vmem:[#allocation4 + $0x10] sm:$0xff] }
 0x260   : > { %v6840_v14 = vpop.eup %6839  ;;  %v1476_v47 = vmul.f32 %v6838_v12, %v535_v41  ;;  %6859 = vpow2.f32 %v5796_v57 }
 0x261   : > { %v6842_v37 = vpop.eup %6841  ;;  %v1474_v3 = vmul.f32 %v6840_v14, %v533_v56 }
 0x262   : > { %v6844_v23 = vpop.eup %6843  ;;  %v8117_v21 = vadd.f32 %v1480_v46, %v1476_v47  ;;  %v1477_v45 = vmul.f32 %v6842_v37, %v536_v6  ;;  %v7220_v47 = vld [vmem:[#allocation4] sm:$0xff] }
 0x263   : > { %v6846_v15 = vpop.eup %6845  ;;  %v8119_v28 = vadd.f32 %v1478_v38, %v1474_v3  ;;  %v1475_v19 = vmul.f32 %v6844_v23, %v534_v58  ;;  %v7221_v3 = vld [vmem:[#allocation4 + $0x18] sm:$0xff] }
 0x264   : > { %v6848_v29 = vpop.eup %6847  ;;  %1967 = vst [vmem:[#allocation3 + $0x10] sm:$0xff] %v8117_v21  ;;  %v8122_v10 = vadd.f32 %v1481_v48, %v1477_v45  ;;  %v1492_v55 = vmul.f32 %v6846_v15, %v8100_v52  ;;  %v7222_v15 = vld [vmem:[#allocation4 + $0x8] sm:$0xff] }
 0x265   : > { %v6850_v25 = vpop.eup %6849  ;;  %1965 = vst [vmem:[#allocation3] sm:$0xff] %v8119_v28  ;;  %v8126_v30 = vadd.f32 %v1479_v39, %v1475_v19  ;;  %v1490_v46 = vmul.f32 %v6848_v29, %v8103_v42  ;;  %1498 = vrot.lane.b32.xlu1 %v8119_v28, %s7260_s27 }
 0x266   : > { %v6852_v57 = vpop.eup %6851  ;;  %1968 = vst [vmem:[#allocation3 + $0x18] sm:$0xff] %v8122_v10  ;;  %v1493_v63 = vmul.f32 %v6850_v25, %v8108_v20 }
 0x267   : > { %v6854_v38 = vpop.eup %6853  ;;  %1966 = vst [vmem:[#allocation3 + $0x8] sm:$0xff] %v8126_v30  ;;  %v1491_v52 = vmul.f32 %v6852_v57, %v8105_v13 }
 0x268   : > { %v6856_v41 = vpop.eup %6855  ;;  %v1488_v48 = vmul.f32 %v7219_v4, %v6854_v38  ;;  %v514_v4 = vld [vmem:[%s12494_s2 + $0x60] sm:$0xff] }
 0x269   : > { %v6858_v56 = vpop.eup %6857  ;;  %v1438_v12 = vadd.f32 1.0, %v6856_v41  ;;  %1506 = vrot.lane.b32.xlu1 %v8117_v21, %s7260_s27  ;;  %v528_v41 = vld [vmem:[%s12498_s6 + $0x8] sm:$0xff] }
 0x26a   : > { %v6860_v42 = vpop.eup %6859  ;;  %v8137_v39 = vadd.f32 %v1492_v55, %v1488_v48  ;;  %v1441_v6 = vadd.f32 1.0, %v6858_v56  ;;  %v8287_v56 = vld [vmem:[#allocation2 + $0x20] sm:$0xff] }
 0x26b   : > { %6861 = vrcp.f32 %v1438_v12  ;;  %v1439_v14 = vadd.f32 1.0, %v6860_v42  ;;  %12876 = vst [vmem:[#allocation28_spill] sm:$0xff] %v8287_v56 }
 0x26c   : > { %12872 = vst [vmem:[#allocation24_spill] sm:$0xff] %v8137_v39  ;;  %6863 = vrcp.f32 %v1441_v6  ;;  %v524_v6 = vld [vmem:[%s12496_s4 + $0x8] sm:$0xff] }
 0x26d   : > { %6865 = vrcp.f32 %v1439_v14  ;;  %1530 = vrot.lane.b32.xlu1 %v8119_v28, %s7261_s11  ;;  %v8301_v14 = vld [vmem:[#allocation2 + $0x28] sm:$0xff] }
 0x26e   : > { %12877 = vst [vmem:[#allocation29_spill] sm:$0xff] %v8301_v14 }
 0x271   : > { %1538 = vrot.lane.b32.xlu1 %v8117_v21, %s7261_s11 }
 0x275   : > { %v6862_v13 = vpop.eup %6861  ;;  %1562 = vrot.lane.b32.xlu1 %v8119_v28, %s7262_s12 }
 0x276   : > { %v6864_v20 = vpop.eup %6863  ;;  %v1486_v58 = vmul.f32 %v7220_v47, %v6862_v13  ;;  %v8312_v47 = vld [vmem:[#allocation2 + $0x30] sm:$0xff] }
 0x277   : > { %v6866_v37 = vpop.eup %6865  ;;  %v1489_v23 = vmul.f32 %v7221_v3, %v6864_v20  ;;  %12878 = vst [vmem:[#allocation30_spill] sm:$0xff] %v8312_v47  ;;  %v8322_v3 = vld [vmem:[#allocation2 + $0x38] sm:$0xff] }
 0x278   : > { %v8145_v45 = vadd.f32 %v1490_v46, %v1486_v58  ;;  %v1487_v19 = vmul.f32 %v7222_v15, %v6866_v37 }
 0x279   : > { %v8147_v29 = vadd.f32 %v1493_v63, %v1489_v23  ;;  %1570 = vrot.lane.b32.xlu1 %v8117_v21, %s7262_s12  ;;  %v522_v63 = vld [vmem:[%s12497_s5 + $0x30] sm:$0xff]  ;;  %v527_v23 = vld [vmem:[%s12498_s6] sm:$0xff] }
 0x27a   : > { %12873 = vst [vmem:[#allocation25_spill] sm:$0xff] %v8145_v45  ;;  %v8151_v55 = vadd.f32 %v1491_v52, %v1487_v19  ;;  %1500 = vrot.lane.b32.xlu0 %v8145_v45, %s7260_s27  ;;  %v515_v52 = vld [vmem:[%s12494_s2 + $0x68] sm:$0xff] }
 0x27b   : > { %12874 = vst [vmem:[#allocation26_spill] sm:$0xff] %v8147_v29  ;;  %5775 = vmatprep.mubr.msk.f32.mxu0 %vm1134_vm3, %v515_v52  ;;  %5782 = vmatprep.mubr.msk.f32.mxu1 %vm1134_vm3, %v515_v52 }
 0x27c   : > { %12875 = vst [vmem:[#allocation27_spill] sm:$0xff] %v8151_v55  ;;  %1257 = vmatmul.mubr.f32.gmra.mrb[12].mxu0 %v514_v4  ;;  %1364 = vmatmul.mubr.f32.gmra.mrb[12].mxu1 %v514_v4 }
 0x27d   : > { %1594 = vrot.lane.b32.xlu1 %v8119_v28, %s7263_s13  ;;  %5799 = vmatprep.mubr.msk.f32.mxu0 %vm1764_vm9, %v524_v6 }
 0x27e   : > { %1508 = vrot.lane.b32.xlu0 %v8137_v39, %s7260_s27  ;;  %5801 = vmatprep.mubr.msk.f32.mxu1 %vm1764_vm9, %v524_v6 }
 0x281   : > { %1602 = vrot.lane.b32.xlu1 %v8117_v21, %s7263_s13 }
 0x282   : > { %1532 = vrot.lane.b32.xlu0 %v8145_v45, %s7261_s11 }
 0x285   : > { %1626 = vrot.lane.b32.xlu1 %v8119_v28, %s7264_s17 }
 0x286   : > { %1540 = vrot.lane.b32.xlu0 %v8137_v39, %s7261_s11 }
 0x289   : > { %1634 = vrot.lane.b32.xlu1 %v8117_v21, %s7264_s17 }
 0x28a   : > { %1564 = vrot.lane.b32.xlu0 %v8145_v45, %s7262_s12 }
 0x28d   : > { %1658 = vrot.lane.b32.xlu1 %v8119_v28, %s7265_s18 }
 0x28e   : > { %1572 = vrot.lane.b32.xlu0 %v8137_v39, %s7262_s12 }
 0x291   : > { %1666 = vrot.lane.b32.xlu1 %v8117_v21, %s7265_s18 }
 0x292   : > { %1596 = vrot.lane.b32.xlu0 %v8145_v45, %s7263_s13 }
 0x295   : > { %1690 = vrot.lane.b32.xlu1 %v8119_v28, %s7266_s24 }
 0x296   : > { %1604 = vrot.lane.b32.xlu0 %v8137_v39, %s7263_s13 }
 0x299   : > { %1698 = vrot.lane.b32.xlu1 %v8117_v21, %s7266_s24 }
 0x29a   : > { %1628 = vrot.lane.b32.xlu0 %v8145_v45, %s7264_s17 }
 0x29d   : > { %1722 = vrot.lane.b32.xlu1 %v8119_v28, %s7267_s28 }
 0x29e   : > { %1636 = vrot.lane.b32.xlu0 %v8137_v39, %s7264_s17 }
 0x2a1   : > { %1730 = vrot.lane.b32.xlu1 %v8117_v21, %s7267_s28 }
 0x2a2   : > { %1660 = vrot.lane.b32.xlu0 %v8145_v45, %s7265_s18 }
 0x2a5   : > { %1502 = vrot.lane.b32.xlu1 %v8126_v30, %s7260_s27 }
 0x2a6   : > { %1668 = vrot.lane.b32.xlu0 %v8137_v39, %s7265_s18 }
 0x2a9   : > { %1510 = vrot.lane.b32.xlu1 %v8122_v10, %s7260_s27 }
 0x2aa   : > { %1692 = vrot.lane.b32.xlu0 %v8145_v45, %s7266_s24 }
 0x2ad   : > { %1534 = vrot.lane.b32.xlu1 %v8126_v30, %s7261_s11 }
 0x2ae   : > { %1700 = vrot.lane.b32.xlu0 %v8137_v39, %s7266_s24 }
 0x2b1   : > { %1542 = vrot.lane.b32.xlu1 %v8122_v10, %s7261_s11 }
 0x2b2   : > { %1724 = vrot.lane.b32.xlu0 %v8145_v45, %s7267_s28 }
 0x2b5   : > { %1566 = vrot.lane.b32.xlu1 %v8126_v30, %s7262_s12 }
 0x2b6   : > { %1732 = vrot.lane.b32.xlu0 %v8137_v39, %s7267_s28 }
 0x2b9   : > { %1574 = vrot.lane.b32.xlu1 %v8122_v10, %s7262_s12 }
 0x2ba   : > { %1504 = vrot.lane.b32.xlu0 %v8151_v55, %s7260_s27 }
 0x2bd   : > { %1598 = vrot.lane.b32.xlu1 %v8126_v30, %s7263_s13 }
 0x2be   : > { %1512 = vrot.lane.b32.xlu0 %v8147_v29, %s7260_s27 }
 0x2c1   : > { %1606 = vrot.lane.b32.xlu1 %v8122_v10, %s7263_s13 }
 0x2c2   : > { %1536 = vrot.lane.b32.xlu0 %v8151_v55, %s7261_s11 }
 0x2c5   : > { %1630 = vrot.lane.b32.xlu1 %v8126_v30, %s7264_s17 }
 0x2c6   : > { %1544 = vrot.lane.b32.xlu0 %v8147_v29, %s7261_s11 }
 0x2c9   : > { %1638 = vrot.lane.b32.xlu1 %v8122_v10, %s7264_s17 }
 0x2ca   : > { %1568 = vrot.lane.b32.xlu0 %v8151_v55, %s7262_s12 }
 0x2cd   : > { %1662 = vrot.lane.b32.xlu1 %v8126_v30, %s7265_s18 }
 0x2ce   : > { %1576 = vrot.lane.b32.xlu0 %v8147_v29, %s7262_s12 }
 0x2d1   : > { %1670 = vrot.lane.b32.xlu1 %v8122_v10, %s7265_s18 }
 0x2d2   : > { %1600 = vrot.lane.b32.xlu0 %v8151_v55, %s7263_s13 }
 0x2d5   : > { %1694 = vrot.lane.b32.xlu1 %v8126_v30, %s7266_s24 }
 0x2d6   : > { %1608 = vrot.lane.b32.xlu0 %v8147_v29, %s7263_s13 }
 0x2d7   : > { %v8247_v25 = vpop.permute.xlu1 %1498 }
 0x2d9   : > { %1702 = vrot.lane.b32.xlu1 %v8122_v10, %s7266_s24 }
 0x2da   : > { %1632 = vrot.lane.b32.xlu0 %v8151_v55, %s7264_s17 }
 0x2db   : > { %v8253_v46 = vpop.permute.xlu1 %1506 }
 0x2dd   : > { %1726 = vrot.lane.b32.xlu1 %v8126_v30, %s7267_s28 }
 0x2de   : > { %1640 = vrot.lane.b32.xlu0 %v8147_v29, %s7264_s17 }
 0x2df   : > { %v8259_v57 = vpop.permute.xlu1 %1530 }
 0x2e1   : > { %1734 = vrot.lane.b32.xlu1 %v8122_v10, %s7267_s28 }
 0x2e2   : > { %1664 = vrot.lane.b32.xlu0 %v8151_v55, %s7265_s18 }
 0x2e3   : > { %v8268_v38 = vpop.permute.xlu1 %1538 }
 0x2e5   : > { %1131 = vperm.xlu1 %6786, %v522_v63  }
 0x2e6   : > { %1672 = vrot.lane.b32.xlu0 %v8147_v29, %s7265_s18 }
 0x2e7   : > { %v8282_v48 = vpop.permute.xlu1 %1562 }
 0x2e9   : > { %1761 = vperm.xlu1 %6786, %v528_v41  }
 0x2ea   : > { %1696 = vrot.lane.b32.xlu0 %v8151_v55, %s7266_s24 }
 0x2eb   : > { %v8289_v12 = vpop.permute.xlu1 %1570 }
 0x2ec   : > { %v8291_v42 = vpop.permute.xlu0 %1500 }
 0x2ed   : > { %2011 = vrot.lane.b32.xlu1 %v8287_v56, %s7260_s27 }
 0x2ee   : > { %1704 = vrot.lane.b32.xlu0 %v8147_v29, %s7266_s24 }
 0x2ef   : > { %v8304_v13 = vpop.permute.xlu1 %1594 }
 0x2f0   : > { %v8306_v20 = vpop.permute.xlu0 %1508 }
 0x2f1   : > { %2015 = vrot.lane.b32.xlu1 %v8301_v14, %s7260_s27 }
 0x2f2   : > { %1728 = vrot.lane.b32.xlu0 %v8151_v55, %s7267_s28 }
 0x2f3   : > { %v8314_v58 = vpop.permute.xlu1 %1602 }
 0x2f4   : > { %v8316_v37 = vpop.permute.xlu0 %1532 }
 0x2f5   : > { %2019 = vrot.lane.b32.xlu1 %v8312_v47, %s7260_s27 }
 0x2f6   : > { %1736 = vrot.lane.b32.xlu0 %v8147_v29, %s7267_s28 }
 0x2f7   : > { %v8327_v15 = vpop.permute.xlu1 %1626 }
 0x2f8   : > { %v8329_v19 = vpop.permute.xlu0 %1540 }
 0x2f9   : > { %2023 = vrot.lane.b32.xlu1 %v8322_v3, %s7260_s27 }
 0x2fa   : > { %1756 = vperm.xlu0 %6785, %v527_v23  }
 0x2fb   : > { %v8333_v63 = vpop.permute.xlu1 %1634 }
 0x2fc   : > { %v8335_v52 = vpop.permute.xlu0 %1564 }
 0x2fd   : > { %2047 = vrot.lane.b32.xlu1 %v8301_v14, %s7261_s11 }
 0x2fe   : > { %2043 = vrot.lane.b32.xlu0 %v8287_v56, %s7261_s11 }
 0x2ff   : > { %v8341_v41 = vpop.permute.xlu1 %1658 }
 0x300   : > { %12879 = vst [vmem:[#allocation31_spill] sm:$0xff] %v8341_v41  ;;  %v8343_v4 = vpop.permute.xlu0 %1572 }
 0x301   : > { %2055 = vrot.lane.b32.xlu1 %v8322_v3, %s7261_s11 }
 0x302   : > { %2051 = vrot.lane.b32.xlu0 %v8312_v47, %s7261_s11 }
 0x303   : > { %v8349_v6 = vpop.permute.xlu1 %1666 }
 0x304   : > { %12880 = vst [vmem:[#allocation32_spill] sm:$0xff] %v8349_v6  ;;  %v8351_v23 = vpop.permute.xlu0 %1596 }
 0x305   : > { %2075 = vrot.lane.b32.xlu1 %v8287_v56, %s7262_s12 }
 0x306   : > { %2107 = vrot.lane.b32.xlu0 %v8287_v56, %s7263_s13 }
 0x307   : > { %v8357_v35 = vpop.permute.xlu1 %1690 }
 0x308   : > { %12881 = vst [vmem:[#allocation33_spill] sm:$0xff] %v8357_v35  ;;  %v8359_v17 = vpop.permute.xlu0 %1604 }
 0x309   : > { %2079 = vrot.lane.b32.xlu1 %v8301_v14, %s7262_s12 }
 0x30a   : > { %2115 = vrot.lane.b32.xlu0 %v8312_v47, %s7263_s13 }
 0x30b   : > { %v8365_v49 = vpop.permute.xlu1 %1698 }
 0x30c   : > { %12882 = vst [vmem:[#allocation34_spill] sm:$0xff] %v8365_v49  ;;  %v8367_v1 = vpop.permute.xlu0 %1628 }
 0x30d   : > { %2083 = vrot.lane.b32.xlu1 %v8312_v47, %s7262_s12 }
 0x30e   : > { %2139 = vrot.lane.b32.xlu0 %v8287_v56, %s7264_s17 }
 0x30f   : > { %v8373_v27 = vpop.permute.xlu1 %1722 }
 0x310   : > { %12883 = vst [vmem:[#allocation35_spill] sm:$0xff] %v8373_v27  ;;  %v8375_v60 = vpop.permute.xlu0 %1636 }
 0x311   : > { %2087 = vrot.lane.b32.xlu1 %v8322_v3, %s7262_s12 }
 0x312   : > { %2147 = vrot.lane.b32.xlu0 %v8312_v47, %s7264_s17 }
 0x313   : > { %v8381_v22 = vpop.permute.xlu1 %1730 }
 0x314   : > { %12884 = vst [vmem:[#allocation36_spill] sm:$0xff] %v8381_v22  ;;  %v8383_v11 = vpop.permute.xlu0 %1660 }
 0x315   : > { %12885 = vst [vmem:[#allocation37_spill] sm:$0xff] %v8383_v11  ;;  %2111 = vrot.lane.b32.xlu1 %v8301_v14, %s7263_s13 }
 0x317   : > { %v1503_v35 = vpop.permute.xlu1 %1502 }
 0x318   : > { %v8387_v49 = vpop.permute.xlu0 %1668 }
 0x319   : > { %12886 = vst [vmem:[#allocation38_spill] sm:$0xff] %v8387_v49  ;;  %2119 = vrot.lane.b32.xlu1 %v8322_v3, %s7263_s13 }
 0x31b   : > { %v1511_v27 = vpop.permute.xlu1 %1510 }
 0x31c   : > { %v8391_v26 = vpop.permute.xlu0 %1692  ;;  %v1514_v41 = vsel %vm563_vm0, %v8253_v46, %v1511_v27  ;;  %v1520_v36 = vsel %vm563_vm0, %v1511_v27, %v8247_v25 }
 0x31d   : > { %12887 = vst [vmem:[#allocation39_spill] sm:$0xff] %v8391_v26  ;;  %2143 = vrot.lane.b32.xlu1 %v8301_v14, %s7264_s17  ;;  %v1518_v26 = vsel %vm563_vm0, %v8247_v25, %v1503_v35  ;;  %v1522_v25 = vmul.f32 %v1520_v36, %v7541_v53 }
 0x31f   : > { %v1535_v31 = vpop.permute.xlu1 %1534 }
 0x320   : > { %v8395_v16 = vpop.permute.xlu0 %1700 }
 0x321   : > { %12888 = vst [vmem:[#allocation40_spill] sm:$0xff] %v8395_v16  ;;  %2151 = vrot.lane.b32.xlu1 %v8322_v3, %s7264_s17 }
 0x323   : > { %v1543_v22 = vpop.permute.xlu1 %1542 }
 0x324   : > { %v8399_v11 = vpop.permute.xlu0 %1724 }
 0x325   : > { %12889 = vst [vmem:[#allocation41_spill] sm:$0xff] %v8399_v11  ;;  %2171 = vrot.lane.b32.xlu1 %v8287_v56, %s7265_s18  ;;  %v1523_v56 = vmul.f32 %v1518_v26, %v7522_v40  ;;  %v1516_v26 = vsel %vm563_vm0, %v1503_v35, %v8253_v46  ;;  %v1525_v35 = vmul.f32 %v1514_v41, %v7544_v54 }
 0x327   : > { %v8403_v49 = vpop.permute.xlu1 %1566 }
 0x328   : > { %v8405_v2 = vpop.permute.xlu0 %1732 }
 0x329   : > { %12890 = vst [vmem:[#allocation42_spill] sm:$0xff] %v8405_v2  ;;  %2175 = vrot.lane.b32.xlu1 %v8301_v14, %s7265_s18 }
 0x32b   : > { %v8412_v16 = vpop.permute.xlu1 %1574 }
 0x32c   : > { %v1505_v6 = vpop.permute.xlu0 %1504 }
 0x32d   : > { %v1519_v11 = vsel %vm563_vm0, %v8291_v42, %v1505_v6  ;;  %2179 = vrot.lane.b32.xlu1 %v8312_v47, %s7265_s18  ;;  %v1517_v14 = vsel %vm563_vm0, %v1505_v6, %v8306_v20 }
 0x32e   : > { %v8424_v2 = vmul.f32 %v1519_v11, %v7522_v40  ;;  %v8439_v11 = vmul.f32 %v1517_v14, %v7559_v61  ;;  %v1524_v14 = vmul.f32 %v1516_v26, %v7559_v61 }
 0x32f   : > { %v8432_v9 = vpop.permute.xlu1 %1598 }
 0x330   : > { %12891 = vst [vmem:[#allocation43_spill] sm:$0xff] %v8424_v2  ;;  %v1513_v47 = vpop.permute.xlu0 %1512  ;;  %v6102_v6 = vpack.c.bf16 %v8424_v2, %v1523_v56  ;;  %v6140_v41 = vpack.c.bf16 %v8439_v11, %v1524_v14  ;;  %v1548_v14 = vsel %vm633_vm1, %v1535_v31, %v8268_v38 }
 0x331   : > { %v1515_v40 = vsel %vm563_vm0, %v8306_v20, %v1513_v47  ;;  %v1521_v27 = vsel %vm563_vm0, %v1513_v47, %v8291_v42  ;;  %2183 = vrot.lane.b32.xlu1 %v8322_v3, %s7265_s18  ;;  %v1550_v42 = vsel %vm633_vm1, %v8259_v57, %v1535_v31 }
 0x332   : > { %v8452_v46 = vmul.f32 %v1521_v27, %v7541_v53  ;;  %v8455_v56 = vmul.f32 %v1515_v40, %v7544_v54  ;;  %6103 = vmatprep.subr.bf16.mxu0 %v6102_v6  ;;  %v1555_v6 = vmul.f32 %v1550_v42, %v7595_v24 }
 0x333   : > { %v8463_v2 = vpop.permute.xlu1 %1606 }
 0x334   : > { %v6104_v20 = vpack.c.bf16 %v8452_v46, %v1522_v25  ;;  %v1537_v47 = vpop.permute.xlu0 %1536  ;;  %v6138_v36 = vpack.c.bf16 %v8455_v56, %v1525_v35  ;;  %v1546_v25 = vsel %vm633_vm1, %v8268_v38, %v1543_v22  ;;  %v1552_v35 = vsel %vm633_vm1, %v1543_v22, %v8259_v57 }
 0x335   : > { %v1551_v40 = vsel %vm633_vm1, %v8316_v37, %v1537_v47  ;;  %v1549_v26 = vsel %vm633_vm1, %v1537_v47, %v8329_v19  ;;  %v1554_v22 = vmul.f32 %v1552_v35, %v7583_v18  ;;  %v1557_v57 = vmul.f32 %v1546_v25, %v7601_v33 }
 0x336   : > { %v8474_v27 = vmul.f32 %v1551_v40, %v7595_v24  ;;  %6105 = vmatpush1.bf16.msra.mxu0 %v6104_v20  ;;  %6139 = vmatprep.subr.bf16.mxu1 %v6138_v36  ;;  %v8487_v40 = vmul.f32 %v1549_v26, %v7598_v32 }
 0x337   : > { %6141 = vmatpush1.bf16.msra.mxu1 %v6140_v41  ;;  %v8503_v41 = vpop.permute.xlu1 %1630 }
 0x338   : > { %v1545_v42 = vpop.permute.xlu0 %1544  ;;  %v6106_v47 = vpack.c.bf16 %v8474_v27, %v1555_v6  ;;  %v1556_v6 = vmul.f32 %v1548_v14, %v7598_v32 }
 0x339   : > { %v1547_v20 = vsel %vm633_vm1, %v8329_v19, %v1545_v42  ;;  %v1553_v36 = vsel %vm633_vm1, %v1545_v42, %v8316_v37  ;;  %v1582_v37 = vsel %vm703_vm2, %v8282_v48, %v8403_v49 }
 0x33a   : > { %v8498_v31 = vmul.f32 %v1553_v36, %v7583_v18  ;;  %v8501_v38 = vmul.f32 %v1547_v20, %v7601_v33  ;;  %6107 = vmatprep.subr.bf16.mxu0 %v6106_v47  ;;  %v6144_v35 = vpack.c.bf16 %v8487_v40, %v1556_v6  ;;  %v1587_v47 = vmul.f32 %v1582_v37, %v7676_v44 }
 0x33b   : > { %v1578_v36 = vsel %vm703_vm2, %v8289_v12, %v8412_v16 }
 0x33c   : > { %v6108_v19 = vpack.c.bf16 %v8498_v31, %v1554_v22  ;;  %v1569_v26 = vpop.permute.xlu0 %1568  ;;  %v6142_v25 = vpack.c.bf16 %v8501_v38, %v1557_v57  ;;  %v1584_v22 = vsel %vm703_vm2, %v8412_v16, %v8282_v48  ;;  %v1580_v57 = vsel %vm703_vm2, %v8403_v49, %v8289_v12 }
 0x33d   : > { %v1583_v42 = vsel %vm703_vm2, %v8335_v52, %v1569_v26  ;;  %v1581_v14 = vsel %vm703_vm2, %v1569_v26, %v8343_v4  ;;  %v1586_v48 = vmul.f32 %v1584_v22, %v7701_v8 }
 0x33e   : > { %v8521_v20 = vmul.f32 %v1583_v42, %v7676_v44  ;;  %6109 = vmatpush1.bf16.msra.mxu0 %v6108_v19  ;;  %6143 = vmatprep.subr.bf16.mxu1 %v6142_v25  ;;  %v1639_v19 = vpop.permute.xlu1 %1638  ;;  %v8537_v26 = vmul.f32 %v1581_v14, %v7696_v5  ;;  %v1588_v42 = vmul.f32 %v1580_v57, %v7696_v5 }
 0x33f   : > { %6145 = vmatpush1.bf16.msra.mxu1 %v6144_v35  ;;  %v1589_v35 = vmul.f32 %v1578_v36, %v7693_v62 }
 0x340   : > { %12892 = vst [vmem:[#allocation44_spill] sm:$0xff] %v8521_v20  ;;  %v1577_v6 = vpop.permute.xlu0 %1576  ;;  %v6110_v37 = vpack.c.bf16 %v8521_v20, %v1587_v47  ;;  %12893 = vst [vmem:[#allocation45_spill] sm:$0xff] %v8537_v26  ;;  %v6148_v36 = vpack.c.bf16 %v8537_v26, %v1588_v42 }
 0x341   : > { %v1579_v25 = vsel %vm703_vm2, %v8343_v4, %v1577_v6  ;;  %v1585_v16 = vsel %vm703_vm2, %v1577_v6, %v8335_v52  ;;  %v1614_v4 = vsel %vm773_vm4, %v8304_v13, %v8432_v9 }
 0x342   : > { %v8548_v49 = vmul.f32 %v1585_v16, %v7701_v8  ;;  %v8551_v12 = vmul.f32 %v1579_v25, %v7693_v62  ;;  %6111 = vmatprep.subr.bf16.mxu0 %v6110_v37  ;;  %v1619_v6 = vmul.f32 %v1614_v4, %v7746_v51  ;;  %v1663_v25 = vpop.permute.xlu1 %1662  ;;  %v1610_v16 = vsel %vm773_vm4, %v8314_v58, %v8463_v2 }
 0x344   : > { %12894 = vst [vmem:[#allocation46_spill] sm:$0xff] %v8548_v49  ;;  %12895 = vst [vmem:[#allocation47_spill] sm:$0xff] %v8551_v12  ;;  %v6112_v52 = vpack.c.bf16 %v8548_v49, %v1586_v48  ;;  %v1601_v47 = vpop.permute.xlu0 %1600  ;;  %v6146_v14 = vpack.c.bf16 %v8551_v12, %v1589_v35  ;;  %v1616_v48 = vsel %vm773_vm4, %v8463_v2, %v8304_v13 }
 0x345   : > { %v1615_v22 = vsel %vm773_vm4, %v8351_v23, %v1601_v47  ;;  %v1613_v57 = vsel %vm773_vm4, %v1601_v47, %v8359_v17  ;;  %v1612_v35 = vsel %vm773_vm4, %v8432_v9, %v8314_v58  ;;  %v1618_v13 = vmul.f32 %v1616_v48, %v7743_v50 }
 0x346   : > { %v8569_v37 = vmul.f32 %v1615_v22, %v7746_v51  ;;  %6113 = vmatpush1.bf16.msra.mxu0 %v6112_v52  ;;  %6147 = vmatprep.subr.bf16.mxu1 %v6146_v14  ;;  %v8585_v52 = vmul.f32 %v1613_v57, %v7757_v59  ;;  %v1621_v14 = vmul.f32 %v1610_v16, %v7760_v0  ;;  %v1671_v48 = vpop.permute.xlu1 %1670 }
 0x347   : > { %6149 = vmatpush1.bf16.msra.mxu1 %v6148_v36  ;;  %v1620_v36 = vmul.f32 %v1612_v35, %v7757_v59  ;;  %v6118_v57 = vpack.c.bf16 %v8151_v55, %v8126_v30  ;;  %v6154_v16 = vpack.c.bf16 %v8147_v29, %v8122_v10  ;;  %v1646_v35 = vsel %vm843_vm5, %v8327_v15, %v8503_v41 }
 0x348   : > { %12896 = vst [vmem:[#allocation48_spill] sm:$0xff] %v8569_v37  ;;  %v1609_v42 = vpop.permute.xlu0 %1608  ;;  %v6114_v4 = vpack.c.bf16 %v8569_v37, %v1619_v6  ;;  %12897 = vst [vmem:[#allocation49_spill] sm:$0xff] %v8585_v52  ;;  %v1642_v10 = vsel %vm843_vm5, %v8333_v63, %v1639_v19 }
 0x349   : > { %v1611_v47 = vsel %vm773_vm4, %v8359_v17, %v1609_v42  ;;  %v1617_v2 = vsel %vm773_vm4, %v1609_v42, %v8351_v23  ;;  %v1644_v17 = vsel %vm843_vm5, %v8503_v41, %v8333_v63  ;;  %v6152_v42 = vpack.c.bf16 %v8585_v52, %v1620_v36  ;;  %v12963_v52 = vld [vmem:[#allocation6_spill] sm:$0xff] }
 0x34a   : > { %v8596_v9 = vmul.f32 %v1617_v2, %v7743_v50  ;;  %v8599_v58 = vmul.f32 %v1611_v47, %v7760_v0  ;;  %6115 = vmatprep.subr.bf16.mxu0 %v6114_v4  ;;  %v1651_v30 = vmul.f32 %v1644_v17, %v7839_v7  ;;  %v1648_v41 = vsel %vm843_vm5, %v1639_v19, %v8327_v15 }
 0x34b   : > { %v6120_v36 = vpack.c.bf16 %v8145_v45, %v8119_v28  ;;  %v6156_v17 = vpack.c.bf16 %v8137_v39, %v8117_v21  ;;  %v12904_v28 = vld [vmem:[#allocation31_spill] sm:$0xff]  ;;  %v12909_v39 = vld [vmem:[#allocation38_spill] sm:$0xff] }
 0x34c   : > { %12898 = vst [vmem:[#allocation50_spill] sm:$0xff] %v8596_v9  ;;  %12899 = vst [vmem:[#allocation51_spill] sm:$0xff] %v8599_v58  ;;  %v6116_v23 = vpack.c.bf16 %v8596_v9, %v1618_v13  ;;  %v1633_v22 = vpop.permute.xlu0 %1632  ;;  %v6150_v6 = vpack.c.bf16 %v8599_v58, %v1621_v14 }
 0x34d   : > { %v1645_v4 = vsel %vm843_vm5, %v1633_v22, %v8375_v60  ;;  %v1647_v47 = vsel %vm843_vm5, %v8367_v1, %v1633_v22  ;;  %v12902_v22 = vld [vmem:[#allocation11_spill] sm:$0xff] }
 0x34e   : > { %v8628_v2 = vmul.f32 %v1645_v4, %v7839_v7  ;;  %6117 = vmatpush1.bf16.msra.mxu0 %v6116_v23  ;;  %6151 = vmatprep.subr.bf16.mxu1 %v6150_v6  ;;  %v8634_v13 = vmul.f32 %v1647_v47, %v7830_v43  ;;  %v1650_v23 = vmul.f32 %v1646_v35, %v7830_v43  ;;  %v1695_v4 = vpop.permute.xlu1 %1694  ;;  %v12907_v47 = vld [vmem:[#allocation32_spill] sm:$0xff] }
 0x34f   : > { %6119 = vmatprep.subr.bf16.mxu0 %v6118_v57  ;;  %6153 = vmatpush1.bf16.msra.mxu1 %v6152_v42  ;;  %v1652_v6 = vmul.f32 %v1642_v10, %v12902_v22  ;;  %v12903_v57 = vld [vmem:[#allocation8_spill] sm:$0xff]  ;;  %v1678_v42 = vsel %vm913_vm6, %v12904_v28, %v1663_v25 }
 0x350   : > { %12900 = vst [vmem:[#allocation52_spill] sm:$0xff] %v8628_v2  ;;  %12901 = vst [vmem:[#allocation53_spill] sm:$0xff] %v8634_v13  ;;  %v1641_v14 = vpop.permute.xlu0 %1640  ;;  %6155 = vmatprep.subr.bf16.mxu1 %v6154_v16  ;;  %v6122_v63 = vpack.c.bf16 %v8628_v2, %v1651_v30  ;;  %v1653_v16 = vmul.f32 %v1648_v41, %v12903_v57 }
 0x351   : > { %v1643_v15 = vsel %vm843_vm5, %v8375_v60, %v1641_v14  ;;  %v1649_v19 = vsel %vm843_vm5, %v1641_v14, %v8367_v1  ;;  %v1676_v60 = vsel %vm913_vm6, %v1663_v25, %v12907_v47  ;;  %v6124_v1 = vpack.c.bf16 %v8634_v13, %v1650_v23  ;;  %v12908_v14 = vld [vmem:[#allocation13_spill] sm:$0xff]  ;;  %v12911_v25 = vld [vmem:[#allocation12_spill] sm:$0xff] }
 0x352   : > { %v8654_v21 = vmul.f32 %v1643_v15, %v12902_v22  ;;  %v8657_v35 = vmul.f32 %v1649_v19, %v12903_v57  ;;  %6121 = vmatpush1.bf16.msra.mxu0 %v6120_v36  ;;  %v1682_v15 = vmul.f32 %v1678_v42, %v12908_v14  ;;  %v12910_v19 = vld [vmem:[#allocation37_spill] sm:$0xff] }
 0x353   : > { %6123 = vmatprep.subr.bf16.mxu0 %v6122_v63  ;;  %6157 = vmatpush1.bf16.msra.mxu1 %v6156_v17  ;;  %v1683_v63 = vmul.f32 %v1676_v60, %v12911_v25  ;;  %v5807_v13 = vld [vmem:[%s12497_s5 + $0x38] sm:$0xff] }
 0x354   : > { %12905 = vst [vmem:[#allocation31_spill] sm:$0xff] %v8654_v21  ;;  %12906 = vst [vmem:[#allocation54_spill] sm:$0xff] %v8657_v35  ;;  %v6160_v30 = vpack.c.bf16 %v8654_v21, %v1652_v6  ;;  %v1665_v10 = vpop.permute.xlu0 %1664  ;;  %v6158_v41 = vpack.c.bf16 %v8657_v35, %v1653_v16  ;;  %v1674_v6 = vsel %vm913_vm6, %v12907_v47, %v1671_v48  ;;  %v12914_v47 = vld [vmem:[#allocation14_spill] sm:$0xff] }
 0x355   : > { %v1677_v36 = vsel %vm913_vm6, %v1665_v10, %v12909_v39  ;;  %v1679_v45 = vsel %vm913_vm6, %v12910_v19, %v1665_v10  ;;  %v1680_v16 = vsel %vm913_vm6, %v1671_v48, %v12904_v28  ;;  %v1703_v10 = vpop.permute.xlu1 %1702 }
 0x356   : > { %v8674_v17 = vmul.f32 %v1679_v45, %v12908_v14  ;;  %v8677_v23 = vmul.f32 %v1677_v36, %v12911_v25  ;;  %6125 = vmatpush1.bf16.msra.mxu0 %v6124_v1  ;;  %6159 = vmatprep.subr.bf16.mxu1 %v6158_v41  ;;  %v1684_v36 = vmul.f32 %v1674_v6, %v12914_v47  ;;  %v12915_v14 = vld [vmem:[#allocation15_spill] sm:$0xff] }
 0x357   : > { %6161 = vmatpush1.bf16.msra.mxu1 %v6160_v30  ;;  %v1685_v35 = vmul.f32 %v1680_v16, %v12915_v14  ;;  %v12918_v30 = vld [vmem:[#allocation34_spill] sm:$0xff] }
 0x358   : > { %12912 = vst [vmem:[#allocation32_spill] sm:$0xff] %v8674_v17  ;;  %12913 = vst [vmem:[#allocation38_spill] sm:$0xff] %v8677_v23  ;;  %v6128_v42 = vpack.c.bf16 %v8674_v17, %v1682_v15  ;;  %v1673_v60 = vpop.permute.xlu0 %1672  ;;  %v6126_v45 = vpack.c.bf16 %v8677_v23, %v1683_v63  ;;  %v1708_v15 = vsel %vm983_vm7, %v1695_v4, %v12918_v30  ;;  %v12922_v17 = vld [vmem:[#allocation17_spill] sm:$0xff] }
 0x359   : > { %v1675_v1 = vsel %vm913_vm6, %v12909_v39, %v1673_v60  ;;  %v1681_v41 = vsel %vm913_vm6, %v1673_v60, %v12910_v19  ;;  %v12919_v39 = vld [vmem:[#allocation33_spill] sm:$0xff]  ;;  %v12920_v60 = vld [vmem:[#allocation40_spill] sm:$0xff] }
 0x35a   : > { %v8696_v48 = vmul.f32 %v1675_v1, %v12914_v47  ;;  %v8699_v28 = vmul.f32 %v1681_v41, %v12915_v14  ;;  %6127 = vmatprep.subr.bf16.mxu0 %v6126_v45  ;;  %v1710_v63 = vsel %vm983_vm7, %v12919_v39, %v1695_v4  ;;  %v12921_v41 = vld [vmem:[#allocation39_spill] sm:$0xff]  ;;  %v12923_v14 = vld [vmem:[#allocation18_spill] sm:$0xff] }
 0x35b   : > { %6129 = vmatpush1.bf16.msra.mxu0 %v6128_v42  ;;  %v1714_v23 = vmul.f32 %v1710_v63, %v12922_v17  ;;  %v1715_v47 = vmul.f32 %v1708_v15, %v12923_v14 }
 0x35c   : > { %12916 = vst [vmem:[#allocation37_spill] sm:$0xff] %v8696_v48  ;;  %12917 = vst [vmem:[#allocation55_spill] sm:$0xff] %v8699_v28  ;;  %v6164_v19 = vpack.c.bf16 %v8696_v48, %v1684_v36  ;;  %v1697_v6 = vpop.permute.xlu0 %1696  ;;  %v6162_v16 = vpack.c.bf16 %v8699_v28, %v1685_v35  ;;  %v1727_v36 = vpop.permute.xlu1 %1726  ;;  %v1706_v35 = vsel %vm983_vm7, %v12918_v30, %v1703_v10  ;;  %v12926_v48 = vld [vmem:[#allocation19_spill] sm:$0xff]  ;;  %v12927_v28 = vld [vmem:[#allocation16_spill] sm:$0xff] }
 0x35d   : > { %v1709_v1 = vsel %vm983_vm7, %v1697_v6, %v12920_v60  ;;  %v1711_v45 = vsel %vm983_vm7, %v12921_v41, %v1697_v6  ;;  %v1712_v6 = vsel %vm983_vm7, %v1703_v10, %v12919_v39  ;;  %v1716_v30 = vmul.f32 %v1706_v35, %v12926_v48 }
 0x35e   : > { %v8718_v4 = vmul.f32 %v1711_v45, %v12922_v17  ;;  %v8721_v42 = vmul.f32 %v1709_v1, %v12923_v14  ;;  %6163 = vmatprep.subr.bf16.mxu1 %v6162_v16  ;;  %v1717_v17 = vmul.f32 %v1712_v6, %v12927_v28 }
 0x35f   : > { %6165 = vmatpush1.bf16.msra.mxu1 %v6164_v19  ;;  %v12931_v19 = vld [vmem:[#allocation35_spill] sm:$0xff] }
 0x360   : > { %12924 = vst [vmem:[#allocation34_spill] sm:$0xff] %v8718_v4  ;;  %12925 = vst [vmem:[#allocation33_spill] sm:$0xff] %v8721_v42  ;;  %v6132_v63 = vpack.c.bf16 %v8718_v4, %v1714_v23  ;;  %v1705_v15 = vpop.permute.xlu0 %1704  ;;  %v6130_v45 = vpack.c.bf16 %v8721_v42, %v1715_v47  ;;  %v12930_v47 = vld [vmem:[#allocation36_spill] sm:$0xff]  ;;  %v1735_v35 = vpop.permute.xlu1 %1734  ;;  %v12934_v42 = vld [vmem:[#allocation21_spill] sm:$0xff] }
 0x361   : > { %v1707_v1 = vsel %vm983_vm7, %v12920_v60, %v1705_v15  ;;  %v1713_v16 = vsel %vm983_vm7, %v1705_v15, %v12921_v41  ;;  %v1740_v39 = vsel %vm1053_vm8, %v1727_v36, %v12930_v47  ;;  %v1742_v60 = vsel %vm1053_vm8, %v12931_v19, %v1727_v36 }
 0x362   : > { %v8740_v10 = vmul.f32 %v1707_v1, %v12926_v48  ;;  %v8743_v23 = vmul.f32 %v1713_v16, %v12927_v28  ;;  %6131 = vmatprep.subr.bf16.mxu0 %v6130_v45  ;;  %v12932_v1 = vld [vmem:[#allocation42_spill] sm:$0xff]  ;;  %v12933_v45 = vld [vmem:[#allocation41_spill] sm:$0xff]  ;;  %v1746_v48 = vmul.f32 %v1742_v60, %v12934_v42  ;;  %v12935_v28 = vld [vmem:[#allocation20_spill] sm:$0xff] }
 0x363   : > { %6133 = vmatpush1.bf16.msra.mxu0 %v6132_v63  ;;  %v1747_v14 = vmul.f32 %v1740_v39, %v12935_v28 }
 0x364   : > { %12928 = vst [vmem:[#allocation40_spill] sm:$0xff] %v8740_v10  ;;  %12929 = vst [vmem:[#allocation39_spill] sm:$0xff] %v8743_v23  ;;  %v6168_v41 = vpack.c.bf16 %v8740_v10, %v1716_v30  ;;  %v1729_v6 = vpop.permute.xlu0 %1728  ;;  %v6166_v15 = vpack.c.bf16 %v8743_v23, %v1717_v17  ;;  %v1738_v17 = vsel %vm1053_vm8, %v12930_v47, %v1735_v35  ;;  %v12939_v10 = vld [vmem:[#allocation23_spill] sm:$0xff] }
 0x365   : > { %v1741_v16 = vsel %vm1053_vm8, %v1729_v6, %v12932_v1  ;;  %v1743_v4 = vsel %vm1053_vm8, %v12933_v45, %v1729_v6  ;;  %v1744_v30 = vsel %vm1053_vm8, %v1735_v35, %v12931_v19 }
 0x366   : > { %v8762_v36 = vmul.f32 %v1743_v4, %v12934_v42  ;;  %v8765_v63 = vmul.f32 %v1741_v16, %v12935_v28  ;;  %6167 = vmatprep.subr.bf16.mxu1 %v6166_v15  ;;  %v12938_v16 = vld [vmem:[#allocation22_spill] sm:$0xff]  ;;  %v1749_v42 = vmul.f32 %v1744_v30, %v12939_v10  ;;  %v5809_v28 = vld [vmem:[%s12497_s5 + $0x48] sm:$0xff] }
 0x367   : > { %6169 = vmatpush1.bf16.msra.mxu1 %v6168_v41  ;;  %v1748_v47 = vmul.f32 %v1738_v17, %v12938_v16 }
 0x368   : > { %12936 = vst [vmem:[#allocation36_spill] sm:$0xff] %v8762_v36  ;;  %12937 = vst [vmem:[#allocation35_spill] sm:$0xff] %v8765_v63  ;;  %v6136_v60 = vpack.c.bf16 %v8762_v36, %v1746_v48  ;;  %v1737_v6 = vpop.permute.xlu0 %1736  ;;  %v6134_v39 = vpack.c.bf16 %v8765_v63, %v1747_v14  ;;  %v523_v14 = vld [vmem:[%s12496_s4] sm:$0xff] }
 0x369   : > { %v1739_v4 = vsel %vm1053_vm8, %v12932_v1, %v1737_v6  ;;  %v1745_v15 = vsel %vm1053_vm8, %v1737_v6, %v12933_v45  ;;  %v526_v1 = vld [vmem:[%s12496_s4 + $0x18] sm:$0xff]  ;;  %v525_v45 = vld [vmem:[%s12496_s4 + $0x10] sm:$0xff] }
 0x36a   : > { %v8784_v19 = vmul.f32 %v1739_v4, %v12938_v16  ;;  %v8787_v48 = vmul.f32 %v1745_v15, %v12939_v10  ;;  %6135 = vmatprep.subr.bf16.mxu0 %v6134_v39 }
 0x36b   : > { %6137 = vmatpush1.bf16.msra.mxu0 %v6136_v60 }
 0x36c   : > { %12940 = vst [vmem:[#allocation42_spill] sm:$0xff] %v8784_v19  ;;  %12941 = vst [vmem:[#allocation41_spill] sm:$0xff] %v8787_v48  ;;  %v6172_v41 = vpack.c.bf16 %v8784_v19, %v1748_v47  ;;  %v6170_v35 = vpack.c.bf16 %v8787_v48, %v1749_v42  ;;  %v1132_v42 = vpop.permute.xlu1 %1131 }
 0x36e   : > { %1836 = vmatmul.mubr.f32.vlgmr.msra.gmra.mrb[12].mxu0 %v523_v14  ;;  %6171 = vmatprep.subr.bf16.mxu1 %v6170_v35 }
 0x36f   : > { %6173 = vmatpush1.bf16.msra.mxu1 %v6172_v41  ;;  %5800 = vmatprep.mubr.msk.f32.mxu0 %vm1764_vm9, %v526_v1 }
 0x372   : > { %1842 = vmatmul.mubr.f32.gmra.mrb[14].mxu0 %v525_v45  ;;  %1913 = vmatmul.mubr.f32.vlgmr.msra.gmra.mrb[12].mxu1 %v523_v14 }
 0x373   : > { %5802 = vmatprep.mubr.msk.f32.mxu1 %vm1764_vm9, %v526_v1 }
 0x376   : > { %1919 = vmatmul.mubr.f32.gmra.mrb[14].mxu1 %v525_v45 }
 0x379   : > { %v1757_v17 = vpop.permute.xlu0 %1756 }
 0x37a   : > { %v6702_v30 = vadd.f32 %v1757_v17, %v1132_v42  ;;  %v1762_v17 = vpop.permute.xlu1 %1761 }
 0x441   : > { %v1837_v60 = vpop.f32.mrb[12].mxu0 }
 0x442   : > { %v6703_v6 = vadd.f32 %v6702_v30, %v1837_v60  ;;  %v1839_v39 = vpop.f32.mrb[13].mxu0 }
 0x443   : > { %v6705_v4 = vadd.f32 %v6702_v30, %v1839_v39 }
 0x444   : > { %v5803_v15 = vmul.f32 -1.442695, %v6703_v6 }
 0x445   : > { %v5804_v47 = vmul.f32 -1.442695, %v6705_v4  ;;  %v1843_v41 = vpop.f32.mrb[14].mxu0  ;;  %v1914_v35 = vpop.f32.mrb[12].mxu1 }
 0x446   : > { %6867 = vpow2.f32 %v5803_v15  ;;  %v6707_v19 = vadd.f32 %v6702_v30, %v1914_v35  ;;  %v1845_v36 = vpop.f32.mrb[15].mxu0  ;;  %v1916_v48 = vpop.f32.mrb[13].mxu1  ;;  %v1844_v42 = vadd.f32 %v1843_v41, %v1762_v17 }
 0x447   : > { %6869 = vpow2.f32 %v5804_v47  ;;  %v6709_v14 = vadd.f32 %v6702_v30, %v1916_v48  ;;  %v1846_v60 = vadd.f32 %v1845_v36, %v1762_v17 }
 0x448   : > { %v5805_v63 = vmul.f32 -1.442695, %v6707_v19 }
 0x449   : > { %v5806_v1 = vmul.f32 -1.442695, %v6709_v14  ;;  %v1920_v45 = vpop.f32.mrb[14].mxu1 }
 0x44a   : > { %6871 = vpow2.f32 %v5805_v63  ;;  %v1922_v10 = vpop.f32.mrb[15].mxu1  ;;  %v1921_v16 = vadd.f32 %v1920_v45, %v1762_v17 }
 0x44b   : > { %6873 = vpow2.f32 %v5806_v1  ;;  %v1923_v35 = vadd.f32 %v1922_v10, %v1762_v17 }
 0x44c   : > { %6875 = vtanh.f32 %v1844_v42 }
 0x44d   : > { %6877 = vtanh.f32 %v1846_v60 }
 0x450   : > { %v6868_v39 = vpop.eup %6867 }
 0x451   : > { %v6870_v6 = vpop.eup %6869  ;;  %v1941_v4 = vadd.f32 1.0, %v6868_v39 }
 0x452   : > { %v1942_v15 = vadd.f32 1.0, %v6870_v6  ;;  %v12946_v6 = vld [vmem:[#allocation29_spill] sm:$0xff] }
 0x453   : > { %6879 = vrcp.f32 %v1941_v4  ;;  %v12947_v4 = vld [vmem:[#allocation28_spill] sm:$0xff] }
 0x454   : > { %v6872_v47 = vpop.eup %6871  ;;  %6881 = vrcp.f32 %v1942_v15  ;;  %v8842_v15 = vpop.permute.xlu1 %2011 }
 0x455   : > { %v6874_v19 = vpop.eup %6873  ;;  %v1943_v48 = vadd.f32 1.0, %v6872_v47  ;;  %6883 = vtanh.f32 %v1921_v16 }
 0x456   : > { %v1944_v63 = vadd.f32 1.0, %v6874_v19  ;;  %6885 = vtanh.f32 %v1923_v35  ;;  %v6876_v30 = vpop.eup %6875 }
 0x457   : > { %6887 = vrcp.f32 %v1943_v48  ;;  %v6878_v36 = vpop.eup %6877  ;;  %v12948_v48 = vld [vmem:[#allocation30_spill] sm:$0xff] }
 0x458   : > { %6889 = vrcp.f32 %v1944_v63  ;;  %v8850_v35 = vpop.permute.xlu1 %2015 }
 0x459   : > { %v2030_v9 = vsel %vm563_vm0, %v8842_v15, %v8850_v35 }
 0x45c   : > { %v8858_v47 = vpop.permute.xlu1 %2019 }
 0x45d   : > { %v6880_v41 = vpop.eup %6879 }
 0x45e   : > { %v6882_v14 = vpop.eup %6881  ;;  %v8802_v1 = vmul.f32 %v6880_v41, %v6876_v30  ;;  %v5810_v30 = vld [vmem:[%s12497_s5 + $0x50] sm:$0xff]  ;;  %v5812_v41 = vld [vmem:[%s12497_s5 + $0x60] sm:$0xff] }
 0x45f   : > { %v6884_v45 = vpop.eup %6883  ;;  %v8804_v42 = vmul.f32 %v6882_v14, %v6878_v36 }
 0x460   : > { %12942 = vst [vmem:[#allocation56_spill] sm:$0xff] %v8802_v1  ;;  %v6886_v10 = vpop.eup %6885  ;;  %1961 = vst [vmem:[#allocation2] sm:$0xff] %v8802_v1  ;;  %2009 = vrot.lane.b32.xlu0 %v8802_v1, %s7260_s27  ;;  %v8866_v19 = vpop.permute.xlu1 %2023 }
 0x461   : > { %12943 = vst [vmem:[#allocation57_spill] sm:$0xff] %v8804_v42  ;;  %v6888_v16 = vpop.eup %6887  ;;  %1962 = vst [vmem:[#allocation2 + $0x8] sm:$0xff] %v8804_v42  ;;  %2045 = vrot.lane.b32.xlu1 %v8804_v42, %s7261_s11 }
 0x462   : > { %v6890_v17 = vpop.eup %6889  ;;  %v8812_v60 = vmul.f32 %v6888_v16, %v6884_v45 }
 0x463   : > { %v8814_v39 = vmul.f32 %v6890_v17, %v6886_v10  ;;  %v2044_v17 = vpop.permute.xlu0 %2043 }
 0x464   : > { %12944 = vst [vmem:[#allocation58_spill] sm:$0xff] %v8812_v60  ;;  %1963 = vst [vmem:[#allocation2 + $0x10] sm:$0xff] %v8812_v60  ;;  %2017 = vrot.lane.b32.xlu0 %v8812_v60, %s7260_s27  ;;  %v8874_v63 = vpop.permute.xlu1 %2047 }
 0x465   : > { %12945 = vst [vmem:[#allocation59_spill] sm:$0xff] %v8814_v39  ;;  %1964 = vst [vmem:[#allocation2 + $0x18] sm:$0xff] %v8814_v39  ;;  %2053 = vrot.lane.b32.xlu1 %v8814_v39, %s7261_s11 }
 0x468   : > { %2041 = vrot.lane.b32.xlu0 %v8802_v1, %s7261_s11  ;;  %v8885_v36 = vpop.permute.xlu1 %2055 }
 0x469   : > { %2207 = vrot.lane.b32.xlu1 %v12946_v6, %s7266_s24 }
 0x46c   : > { %2049 = vrot.lane.b32.xlu0 %v8812_v60, %s7261_s11  ;;  %v8895_v14 = vpop.permute.xlu1 %2075 }
 0x46d   : > { %2215 = vrot.lane.b32.xlu1 %v8322_v3, %s7266_s24 }
 0x470   : > { %2073 = vrot.lane.b32.xlu0 %v8802_v1, %s7262_s12  ;;  %v8901_v45 = vpop.permute.xlu1 %2079 }
 0x471   : > { %2109 = vrot.lane.b32.xlu1 %v8804_v42, %s7263_s13 }
 0x474   : > { %2081 = vrot.lane.b32.xlu0 %v8812_v60, %s7262_s12  ;;  %v8905_v10 = vpop.permute.xlu1 %2083 }
 0x475   : > { %2117 = vrot.lane.b32.xlu1 %v8814_v39, %s7263_s13 }
 0x478   : > { %2105 = vrot.lane.b32.xlu0 %v8802_v1, %s7263_s13  ;;  %v8911_v16 = vpop.permute.xlu1 %2087 }
 0x479   : > { %2235 = vrot.lane.b32.xlu1 %v12947_v4, %s7267_s28 }
 0x47c   : > { %2113 = vrot.lane.b32.xlu0 %v8812_v60, %s7263_s13 }
 0x47d   : > { %2141 = vrot.lane.b32.xlu1 %v8804_v42, %s7264_s17 }
 0x480   : > { %2137 = vrot.lane.b32.xlu0 %v8802_v1, %s7264_s17 }
 0x481   : > { %2149 = vrot.lane.b32.xlu1 %v8814_v39, %s7264_s17 }
 0x484   : > { %2145 = vrot.lane.b32.xlu0 %v8812_v60, %s7264_s17 }
 0x485   : > { %2239 = vrot.lane.b32.xlu1 %v12946_v6, %s7267_s28  ;;  %v8915_v6 = vpop.permute.xlu1 %2111 }
 0x488   : > { %2169 = vrot.lane.b32.xlu0 %v8802_v1, %s7265_s18 }
 0x489   : > { %2205 = vrot.lane.b32.xlu1 %v8804_v42, %s7266_s24 }
 0x48c   : > { %2177 = vrot.lane.b32.xlu0 %v8812_v60, %s7265_s18 }
 0x48d   : > { %2213 = vrot.lane.b32.xlu1 %v8814_v39, %s7266_s24 }
 0x490   : > { %2013 = vrot.lane.b32.xlu0 %v8804_v42, %s7260_s27 }
 0x491   : > { %2243 = vrot.lane.b32.xlu1 %v12948_v48, %s7267_s28 }
 0x494   : > { %2021 = vrot.lane.b32.xlu0 %v8814_v39, %s7260_s27 }
 0x495   : > { %2247 = vrot.lane.b32.xlu1 %v8322_v3, %s7267_s28  ;;  %v5808_v3 = vld [vmem:[%s12497_s5 + $0x40] sm:$0xff] }
 0x498   : > { %2201 = vrot.lane.b32.xlu0 %v8802_v1, %s7266_s24 }
 0x499   : > { %2282 = vperm.xlu1 %6786, %v5810_v30   ;;  %v2052_v30 = vpop.permute.xlu0 %2051 }
 0x49a   : > { %v2060_v49 = vsel %vm633_vm1, %v8874_v63, %v2052_v30 }
 0x49c   : > { %2077 = vrot.lane.b32.xlu0 %v8804_v42, %s7262_s12 }
 0x49d   : > { %2292 = vperm.xlu1 %6786, %v5812_v41   ;;  %v1970_v41 = vld [vmem:[%s12495_s3 + $0x8] sm:$0xff] }
 0x49e   : > { %5820 = vmatprep.mubr.msk.f32.mxu0 %vm1134_vm3, %v1970_v41  ;;  %5827 = vmatprep.mubr.msk.f32.mxu1 %vm1134_vm3, %v1970_v41  ;;  %v5811_v41 = vld [vmem:[%s12497_s5 + $0x58] sm:$0xff] }
 0x4a0   : > { %2085 = vrot.lane.b32.xlu0 %v8814_v39, %s7262_s12 }
 0x4a1   : > { %2272 = vperm.xlu1 %6786, %v5808_v3  }
 0x4a4   : > { %2209 = vrot.lane.b32.xlu0 %v8812_v60, %s7266_s24 }
 0x4a8   : > { %2203 = vrot.lane.b32.xlu0 %v12947_v4, %s7266_s24  ;;  %v8919_v4 = vpop.permute.xlu0 %2107 }
 0x4ac   : > { %2211 = vrot.lane.b32.xlu0 %v12948_v48, %s7266_s24  ;;  %v8923_v48 = vpop.permute.xlu1 %2119  ;;  %v8932_v3 = vpop.permute.xlu0 %2115 }
 0x4b0   : > { %2233 = vrot.lane.b32.xlu0 %v8802_v1, %s7267_s28  ;;  %v8934_v23 = vpop.permute.xlu1 %2143  ;;  %v8941_v25 = vpop.permute.xlu0 %2139 }
 0x4b1   : > { %12949 = vst [vmem:[#allocation29_spill] sm:$0xff] %v8934_v23  ;;  %12950 = vst [vmem:[#allocation28_spill] sm:$0xff] %v8941_v25 }
 0x4b4   : > { %2173 = vrot.lane.b32.xlu0 %v8804_v42, %s7265_s18  ;;  %v8943_v21 = vpop.permute.xlu1 %2151  ;;  %v8953_v29 = vpop.permute.xlu0 %2147 }
 0x4b5   : > { %12951 = vst [vmem:[#allocation30_spill] sm:$0xff] %v8943_v21  ;;  %12953 = vst [vmem:[#allocation61_spill] sm:$0xff] %v8953_v29 }
 0x4b8   : > { %2181 = vrot.lane.b32.xlu0 %v8814_v39, %s7265_s18  ;;  %v8948_v2 = vpop.permute.xlu1 %2171 }
 0x4b9   : > { %12952 = vst [vmem:[#allocation60_spill] sm:$0xff] %v8948_v2 }
 0x4bc   : > { %2241 = vrot.lane.b32.xlu0 %v8812_v60, %s7267_s28  ;;  %v8955_v55 = vpop.permute.xlu1 %2175 }
 0x4bd   : > { %12954 = vst [vmem:[#allocation62_spill] sm:$0xff] %v8955_v55 }
 0x4c0   : > { %2237 = vrot.lane.b32.xlu0 %v8804_v42, %s7267_s28  ;;  %v8957_v1 = vpop.permute.xlu1 %2179 }
 0x4c1   : > { %12955 = vst [vmem:[#allocation63_spill] sm:$0xff] %v8957_v1 }
 0x4c4   : > { %2245 = vrot.lane.b32.xlu0 %v8814_v39, %s7267_s28  ;;  %v8959_v39 = vpop.permute.xlu1 %2183 }
 0x4c5   : > { %12956 = vst [vmem:[#allocation64_spill] sm:$0xff] %v8959_v39 }
 0x4c8   : > { %2277 = vperm.xlu0 %6785, %v5809_v28  }
 0x4cc   : > { %2287 = vperm.xlu0 %6785, %v5811_v41  }
 0x4d0   : > { %2267 = vperm.xlu0 %6785, %v5807_v13  }
 0x4d2   : > { %v2010_v60 = vpop.permute.xlu0 %2009 }
 0x4d3   : > { %v2046_v2 = vpop.permute.xlu1 %2045 }
 0x4d6   : > { %v2018_v28 = vpop.permute.xlu0 %2017 }
 0x4d7   : > { %v2054_v7 = vpop.permute.xlu1 %2053 }
 0x4da   : > { %v2042_v22 = vpop.permute.xlu0 %2041 }
 0x4db   : > { %v8969_v13 = vpop.permute.xlu1 %2207  ;;  %v2061_v37 = vsel %vm633_vm1, %v2042_v22, %v2046_v2 }
 0x4dc   : > { %12957 = vst [vmem:[#allocation65_spill] sm:$0xff] %v8969_v13  ;;  %v2032_v13 = vsel %vm563_vm0, %v8866_v19, %v8842_v15  ;;  %v2066_v12 = vmul.f32 %v2061_v37, %v7595_v24 }
 0x4dd   : > { %v2037_v15 = vmul.f32 %v2032_v13, %v7541_v53 }
 0x4de   : > { %v2050_v43 = vpop.permute.xlu0 %2049 }
 0x4df   : > { %v8975_v1 = vpop.permute.xlu1 %2215  ;;  %v2057_v13 = vsel %vm633_vm1, %v2050_v43, %v2054_v7 }
 0x4e0   : > { %12960 = vst [vmem:[#allocation68_spill] sm:$0xff] %v8975_v1  ;;  %v2026_v1 = vsel %vm563_vm0, %v8858_v47, %v8866_v19 }
 0x4e1   : > { %v2040_v26 = vmul.f32 %v2026_v1, %v7544_v54 }
 0x4e2   : > { %v8961_v41 = vpop.permute.xlu0 %2073 }
 0x4e3   : > { %v8979_v39 = vpop.permute.xlu1 %2109 }
 0x4e6   : > { %v8963_v57 = vpop.permute.xlu0 %2081 }
 0x4e7   : > { %v9000_v58 = vpop.permute.xlu1 %2117 }
 0x4ea   : > { %v8965_v42 = vpop.permute.xlu0 %2105 }
 0x4ee   : > { %v8967_v21 = vpop.permute.xlu0 %2113 }
 0x4f2   : > { %v8971_v55 = vpop.permute.xlu0 %2137 }
 0x4f3   : > { %12958 = vst [vmem:[#allocation66_spill] sm:$0xff] %v8971_v55  ;;  %v2038_v55 = vmul.f32 %v2030_v9, %v12963_v52 }
 0x4f6   : > { %v8973_v25 = vpop.permute.xlu0 %2145 }
 0x4f7   : > { %12959 = vst [vmem:[#allocation67_spill] sm:$0xff] %v8973_v25 }
 0x4fa   : > { %v8977_v23 = vpop.permute.xlu0 %2169 }
 0x4fb   : > { %12961 = vst [vmem:[#allocation69_spill] sm:$0xff] %v8977_v23 }
 0x4fe   : > { %v8981_v29 = vpop.permute.xlu0 %2177 }
 0x4ff   : > { %12962 = vst [vmem:[#allocation70_spill] sm:$0xff] %v8981_v29  ;;  %v2028_v29 = vsel %vm563_vm0, %v8850_v35, %v8858_v47  ;;  %v2062_v35 = vsel %vm633_vm1, %v2044_v17, %v8874_v63  ;;  %v2064_v47 = vsel %vm633_vm1, %v8885_v36, %v2044_v17  ;;  %v2059_v63 = vsel %vm633_vm1, %v2046_v2, %v2050_v43 }
 0x500   : > { %v2070_v37 = vmul.f32 %v2062_v35, %v7595_v24 }
 0x502   : > { %v2014_v23 = vpop.permute.xlu0 %2013 }
 0x503   : > { %v2029_v25 = vsel %vm563_vm0, %v2010_v60, %v2014_v23  ;;  %v2027_v19 = vsel %vm563_vm0, %v2014_v23, %v2018_v28  ;;  %v2063_v23 = vsel %vm633_vm1, %v2054_v7, %v2042_v22  ;;  %v2069_v22 = vmul.f32 %v2064_v47, %v7583_v18 }
 0x504   : > { %v2034_v9 = vmul.f32 %v2029_v25, %v12963_v52  ;;  %v2058_v25 = vsel %vm633_vm1, %v2052_v30, %v8885_v36  ;;  %v2035_v17 = vmul.f32 %v2027_v19, %v7559_v61  ;;  %v2068_v36 = vmul.f32 %v2057_v13, %v7601_v33 }
 0x505   : > { %v2065_v19 = vmul.f32 %v2063_v23, %v7583_v18  ;;  %v6184_v47 = vpack.c.bf16 %v8498_v31, %v2069_v22  ;;  %v2090_v23 = vsel %vm703_vm2, %v8905_v10, %v8911_v16 }
 0x506   : > { %v2022_v1 = vpop.permute.xlu0 %2021  ;;  %v6174_v52 = vpack.c.bf16 %v2038_v55, %v2034_v9  ;;  %v2039_v55 = vmul.f32 %v2028_v29, %v7559_v61  ;;  %v12964_v29 = vld [vmem:[#allocation43_spill] sm:$0xff]  ;;  %v6230_v35 = vpack.c.bf16 %v2068_v36, %v8455_v56  ;;  %v2104_v36 = vmul.f32 %v2090_v23, %v7693_v62  ;;  %v12968_v23 = vld [vmem:[#allocation46_spill] sm:$0xff] }
 0x507   : > { %v2025_v20 = vsel %vm563_vm0, %v2018_v28, %v2022_v1  ;;  %v2031_v59 = vsel %vm563_vm0, %v2022_v1, %v2010_v60  ;;  %v9041_v28 = vpop.permute.xlu1 %2235  ;;  %v2071_v60 = vmul.f32 %v2060_v49, %v7598_v32  ;;  %v6178_v13 = vpack.c.bf16 %v2066_v12, %v12964_v29 }
 0x508   : > { %v2033_v30 = vmul.f32 %v2031_v59, %v7541_v53  ;;  %v2036_v7 = vmul.f32 %v2025_v20, %v7544_v54  ;;  %6175 = vmatprep.subr.bf16.mxu0 %v6174_v52  ;;  %v2072_v59 = vmul.f32 %v2058_v25, %v7601_v33  ;;  %v2067_v20 = vmul.f32 %v2059_v63, %v7598_v32 }
 0x509   : > { %v6228_v52 = vpack.c.bf16 %v2039_v55, %v2035_v17  ;;  %v2094_v49 = vsel %vm703_vm2, %v8895_v14, %v8901_v45  ;;  %v2096_v12 = vsel %vm703_vm2, %v8911_v16, %v8895_v14  ;;  %v6180_v56 = vpack.c.bf16 %v2065_v19, %v8452_v46 }
 0x50a   : > { %v6176_v43 = vpack.c.bf16 %v2037_v15, %v2033_v30  ;;  %v9045_v2 = vpop.permute.xlu0 %2201  ;;  %v6226_v9 = vpack.c.bf16 %v2040_v26, %v2036_v7  ;;  %v6182_v26 = vpack.c.bf16 %v8474_v27, %v2070_v37  ;;  %v6236_v15 = vpack.c.bf16 %v8487_v40, %v2071_v60 }
 0x50b   : > { %v6232_v27 = vpack.c.bf16 %v2067_v20, %v8439_v11  ;;  %v9068_v1 = vpop.permute.xlu1 %2141  ;;  %v6234_v31 = vpack.c.bf16 %v8501_v38, %v2072_v59  ;;  %v2102_v14 = vmul.f32 %v2094_v49, %v7676_v44  ;;  %v2125_v46 = vsel %vm773_vm4, %v8965_v42, %v8979_v39 }
 0x50c   : > { %6177 = vmatpush1.bf16.msra.mxu0 %v6176_v43  ;;  %6227 = vmatprep.subr.bf16.mxu1 %v6226_v9  ;;  %v2092_v17 = vsel %vm703_vm2, %v8901_v45, %v8905_v10  ;;  %v2101_v38 = vmul.f32 %v2096_v12, %v7701_v8  ;;  %v2121_v63 = vsel %vm773_vm4, %v8967_v21, %v9000_v58 }
 0x50d   : > { %6179 = vmatprep.subr.bf16.mxu0 %v6178_v13  ;;  %6229 = vmatpush1.bf16.msra.mxu1 %v6228_v52  ;;  %v2126_v30 = vsel %vm773_vm4, %v8919_v4, %v8915_v6  ;;  %v2127_v45 = vsel %vm773_vm4, %v9000_v58, %v8965_v42  ;;  %v2130_v55 = vmul.f32 %v2125_v46, %v7746_v51  ;;  %v12965_v13 = vld [vmem:[#allocation7_spill] sm:$0xff] }
 0x50e   : > { %6231 = vmatprep.subr.bf16.mxu1 %v6230_v35  ;;  %v2078_v25 = vpop.permute.xlu0 %2077  ;;  %v2123_v58 = vsel %vm773_vm4, %v8979_v39, %v8967_v21  ;;  %v2132_v42 = vmul.f32 %v2121_v63, %v7760_v0  ;;  %v2103_v9 = vmul.f32 %v2092_v17, %v7696_v5  ;;  %v2134_v39 = vmul.f32 %v2126_v30, %v7746_v51  ;;  %v12972_v17 = vld [vmem:[#allocation51_spill] sm:$0xff]  ;;  %v12973_v63 = vld [vmem:[#allocation66_spill] sm:$0xff]  ;;  %v12974_v30 = vld [vmem:[#allocation49_spill] sm:$0xff] }
 0x50f   : > { %v2093_v40 = vsel %vm703_vm2, %v8961_v41, %v2078_v25  ;;  %v2091_v16 = vsel %vm703_vm2, %v2078_v25, %v8963_v57  ;;  %v2150_v21 = vpop.permute.xlu1 %2149  ;;  %v2129_v59 = vmul.f32 %v2127_v45, %v7743_v50  ;;  %v2131_v35 = vmul.f32 %v2123_v58, %v12965_v13 }
 0x510   : > { %v2098_v11 = vmul.f32 %v2093_v40, %v7676_v44  ;;  %6181 = vmatpush1.bf16.msra.mxu0 %v6180_v56  ;;  %v2099_v37 = vmul.f32 %v2091_v16, %v7696_v5  ;;  %v12971_v16 = vld [vmem:[#allocation67_spill] sm:$0xff] }
 0x511   : > { %6183 = vmatprep.subr.bf16.mxu0 %v6182_v26  ;;  %6233 = vmatpush1.bf16.msra.mxu1 %v6232_v27  ;;  %v6192_v27 = vpack.c.bf16 %v2129_v59, %v12968_v23  ;;  %v12981_v59 = vld [vmem:[#allocation57_spill] sm:$0xff] }
 0x512   : > { %6235 = vmatprep.subr.bf16.mxu1 %v6234_v31  ;;  %v2086_v10 = vpop.permute.xlu0 %2085  ;;  %v6186_v7 = vpack.c.bf16 %v2102_v14, %v2098_v11  ;;  %v6240_v49 = vpack.c.bf16 %v2103_v9, %v2099_v37  ;;  %v12970_v14 = vld [vmem:[#allocation48_spill] sm:$0xff]  ;;  %v2155_v11 = vsel %vm843_vm5, %v9068_v1, %v12971_v16  ;;  %v12977_v37 = vld [vmem:[#allocation29_spill] sm:$0xff]  ;;  %v2157_v9 = vsel %vm843_vm5, %v12973_v63, %v9068_v1 }
 0x513   : > { %v2089_v22 = vsel %vm703_vm2, %v8963_v57, %v2086_v10  ;;  %v2095_v60 = vsel %vm703_vm2, %v2086_v10, %v8961_v41  ;;  %v2124_v57 = vsel %vm773_vm4, %v8915_v6, %v8932_v3  ;;  %v2122_v41 = vsel %vm773_vm4, %v8932_v3, %v8923_v48  ;;  %v12966_v3 = vld [vmem:[#allocation44_spill] sm:$0xff]  ;;  %v9143_v31 = vpop.permute.xlu1 %2239  ;;  %v12975_v10 = vld [vmem:[#allocation50_spill] sm:$0xff] }
 0x514   : > { %v2097_v19 = vmul.f32 %v2095_v60, %v7701_v8  ;;  %v2100_v43 = vmul.f32 %v2089_v22, %v7693_v62  ;;  %6185 = vmatpush1.bf16.msra.mxu0 %v6184_v47  ;;  %v2128_v6 = vsel %vm773_vm4, %v8923_v48, %v8919_v4  ;;  %v6190_v26 = vpack.c.bf16 %v2130_v55, %v12966_v3  ;;  %v12967_v47 = vld [vmem:[#allocation47_spill] sm:$0xff]  ;;  %v12969_v48 = vld [vmem:[#allocation45_spill] sm:$0xff]  ;;  %v12978_v60 = vld [vmem:[#allocation28_spill] sm:$0xff] }
 0x515   : > { %6187 = vmatprep.subr.bf16.mxu0 %v6186_v7  ;;  %6237 = vmatpush1.bf16.msra.mxu1 %v6236_v15  ;;  %v2136_v15 = vmul.f32 %v2122_v41, %v7760_v0  ;;  %v6242_v12 = vpack.c.bf16 %v2132_v42, %v12967_v47  ;;  %v2135_v56 = vmul.f32 %v2124_v57, %v12965_v13  ;;  %v12976_v55 = vld [vmem:[#allocation61_spill] sm:$0xff]  ;;  %v12980_v57 = vld [vmem:[#allocation10_spill] sm:$0xff]  ;;  %v12983_v3 = vld [vmem:[#allocation59_spill] sm:$0xff] }
 0x516   : > { %v6188_v20 = vpack.c.bf16 %v2101_v38, %v2097_v19  ;;  %v9127_v52 = vpop.permute.xlu0 %2209  ;;  %v6238_v29 = vpack.c.bf16 %v2104_v36, %v2100_v43  ;;  %v2133_v25 = vmul.f32 %v2128_v6, %v7743_v50  ;;  %v6244_v40 = vpack.c.bf16 %v2131_v35, %v12969_v48  ;;  %v12979_v19 = vld [vmem:[#allocation30_spill] sm:$0xff] }
 0x517   : > { %v6194_v46 = vpack.c.bf16 %v12970_v14, %v2134_v39  ;;  %v6246_v38 = vpack.c.bf16 %v12972_v17, %v2136_v15  ;;  %v2159_v36 = vsel %vm843_vm5, %v2150_v21, %v12973_v63  ;;  %v6248_v45 = vpack.c.bf16 %v12974_v30, %v2135_v56  ;;  %v7223_v39 = vld [vmem:[#allocation2 + $0x28] sm:$0xff]  ;;  %v12984_v15 = vld [vmem:[#allocation9_spill] sm:$0xff]  ;;  %v2206_v56 = vpop.permute.xlu1 %2205  ;;  %v7225_v48 = vld [vmem:[#allocation2 + $0x20] sm:$0xff] }
 0x518   : > { %6189 = vmatpush1.bf16.msra.mxu0 %v6188_v20  ;;  %6239 = vmatprep.subr.bf16.mxu1 %v6238_v29  ;;  %v6196_v7 = vpack.c.bf16 %v12975_v10, %v2133_v25  ;;  %v2156_v22 = vsel %vm843_vm5, %v12977_v37, %v12976_v55  ;;  %v2158_v58 = vsel %vm843_vm5, %v12978_v60, %v12977_v37  ;;  %v12982_v29 = vld [vmem:[#allocation8_spill] sm:$0xff]  ;;  %v12985_v25 = vld [vmem:[#allocation11_spill] sm:$0xff]  ;;  %v12989_v30 = vld [vmem:[#allocation26_spill] sm:$0xff] }
 0x519   : > { %6191 = vmatprep.subr.bf16.mxu0 %v6190_v26  ;;  %6241 = vmatpush1.bf16.msra.mxu1 %v6240_v49  ;;  %v2154_v43 = vsel %vm843_vm5, %v12976_v55, %v12979_v19  ;;  %v2162_v41 = vmul.f32 %v2155_v11, %v12980_v57  ;;  %v6198_v20 = vpack.c.bf16 %v7223_v39, %v12981_v59  ;;  %v7224_v49 = vld [vmem:[#allocation2 + $0x38] sm:$0xff]  ;;  %v7226_v17 = vld [vmem:[#allocation2 + $0x30] sm:$0xff]  ;;  %v12991_v55 = vld [vmem:[#allocation63_spill] sm:$0xff] }
 0x51a   : > { %6243 = vmatprep.subr.bf16.mxu1 %v6242_v12  ;;  %v9140_v4 = vpop.permute.xlu0 %2203  ;;  %v2164_v6 = vmul.f32 %v2159_v36, %v12982_v29  ;;  %v2153_v35 = vsel %vm843_vm5, %v12971_v16, %v2150_v21  ;;  %v6250_v26 = vpack.c.bf16 %v7224_v49, %v12983_v3  ;;  %v2165_v47 = vmul.f32 %v2158_v58, %v12984_v15  ;;  %v12987_v16 = vld [vmem:[#allocation27_spill] sm:$0xff]  ;;  %v12990_v10 = vld [vmem:[#allocation53_spill] sm:$0xff]  ;;  %v12992_v37 = vld [vmem:[#allocation62_spill] sm:$0xff] }
 0x51b   : > { %v2166_v12 = vmul.f32 %v2156_v22, %v12980_v57  ;;  %v2160_v1 = vsel %vm843_vm5, %v12979_v19, %v12978_v60  ;;  %v2167_v23 = vmul.f32 %v2154_v43, %v12985_v25  ;;  %v2161_v21 = vmul.f32 %v2157_v9, %v12984_v15  ;;  %v12993_v60 = vld [vmem:[#allocation52_spill] sm:$0xff]  ;;  %v12994_v19 = vld [vmem:[#allocation31_spill] sm:$0xff] }
 0x51c   : > { %6193 = vmatpush1.bf16.msra.mxu0 %v6192_v27  ;;  %v6202_v11 = vpack.c.bf16 %v2162_v41, %v12987_v16  ;;  %v2168_v36 = vmul.f32 %v2160_v1, %v12982_v29  ;;  %v2188_v22 = vsel %vm913_vm6, %v12992_v37, %v12991_v55  ;;  %v12995_v9 = vld [vmem:[#allocation60_spill] sm:$0xff] }
 0x51d   : > { %6195 = vmatprep.subr.bf16.mxu0 %v6194_v46  ;;  %6245 = vmatpush1.bf16.msra.mxu1 %v6244_v40  ;;  %v12986_v40 = vld [vmem:[#allocation56_spill] sm:$0xff]  ;;  %v2163_v46 = vmul.f32 %v2153_v35, %v12985_v25  ;;  %v6206_v58 = vpack.c.bf16 %v12993_v60, %v2166_v12  ;;  %v6260_v43 = vpack.c.bf16 %v12994_v19, %v2167_v23  ;;  %v12999_v12 = vld [vmem:[#allocation70_spill] sm:$0xff]  ;;  %v13000_v23 = vld [vmem:[#allocation69_spill] sm:$0xff] }
 0x51e   : > { %6247 = vmatprep.subr.bf16.mxu1 %v6246_v38  ;;  %v9164_v42 = vpop.permute.xlu0 %2211  ;;  %v6200_v14 = vpack.c.bf16 %v7225_v48, %v12986_v40  ;;  %v12988_v38 = vld [vmem:[#allocation58_spill] sm:$0xff]  ;;  %v2190_v41 = vsel %vm913_vm6, %v12995_v9, %v12992_v37  ;;  %v12996_v39 = vld [vmem:[#allocation64_spill] sm:$0xff]  ;;  %v13005_v37 = vld [vmem:[#allocation15_spill] sm:$0xff]  ;;  %v2221_v60 = vsel %vm983_vm7, %v9045_v2, %v2206_v56 }
 0x51f   : > { %v6252_v63 = vpack.c.bf16 %v7226_v17, %v12988_v38  ;;  %v2186_v59 = vsel %vm913_vm6, %v12991_v55, %v12996_v39  ;;  %v2192_v49 = vsel %vm913_vm6, %v12996_v39, %v12995_v9  ;;  %v12998_v3 = vld [vmem:[#allocation24_spill] sm:$0xff]  ;;  %v13002_v17 = vld [vmem:[#allocation54_spill] sm:$0xff]  ;;  %v13003_v38 = vld [vmem:[#allocation13_spill] sm:$0xff] }
 0x520   : > { %6197 = vmatpush1.bf16.msra.mxu0 %v6196_v7  ;;  %v6208_v7 = vpack.c.bf16 %v12990_v10, %v2165_v47  ;;  %v2214_v47 = vpop.permute.xlu1 %2213  ;;  %v13001_v40 = vld [vmem:[#allocation12_spill] sm:$0xff] }
 0x521   : > { %6199 = vmatprep.subr.bf16.mxu0 %v6198_v20  ;;  %6249 = vmatpush1.bf16.msra.mxu1 %v6248_v45  ;;  %v6254_v45 = vpack.c.bf16 %v2164_v6, %v12989_v30  ;;  %v12997_v20 = vld [vmem:[#allocation25_spill] sm:$0xff]  ;;  %v2223_v55 = vsel %vm983_vm7, %v2214_v47, %v9045_v2  ;;  %v2217_v39 = vsel %vm983_vm7, %v9127_v52, %v2214_v47 }
 0x522   : > { %6251 = vmatprep.subr.bf16.mxu1 %v6250_v26  ;;  %v9189_v27 = vpop.permute.xlu0 %2233  ;;  %v6204_v6 = vpack.c.bf16 %v2161_v21, %v12997_v20  ;;  %v6256_v26 = vpack.c.bf16 %v2163_v46, %v12998_v3  ;;  %v2198_v21 = vmul.f32 %v2188_v22, %v13001_v40  ;;  %v6258_v46 = vpack.c.bf16 %v13002_v17, %v2168_v36  ;;  %v13009_v47 = vld [vmem:[#allocation17_spill] sm:$0xff] }
 0x523   : > { %v2200_v22 = vmul.f32 %v2192_v49, %v13005_v37  ;;  %v13008_v49 = vld [vmem:[#allocation65_spill] sm:$0xff] }
 0x524   : > { %6201 = vmatpush1.bf16.msra.mxu0 %v6200_v14  ;;  %v2219_v14 = vsel %vm983_vm7, %v2206_v56, %v9127_v52  ;;  %v13007_v56 = vld [vmem:[#allocation16_spill] sm:$0xff] }
 0x525   : > { %6203 = vmatprep.subr.bf16.mxu0 %v6202_v11  ;;  %6253 = vmatpush1.bf16.msra.mxu1 %v6252_v63  ;;  %v2197_v63 = vmul.f32 %v2190_v41, %v13003_v38  ;;  %v2244_v41 = vpop.permute.xlu1 %2243 }
 0x526   : > { %6255 = vmatprep.subr.bf16.mxu1 %v6254_v45  ;;  %v2174_v35 = vpop.permute.xlu0 %2173  ;;  %v13004_v45 = vld [vmem:[#allocation14_spill] sm:$0xff] }
 0x527   : > { %v2187_v1 = vsel %vm913_vm6, %v2174_v35, %v12999_v12  ;;  %v2189_v48 = vsel %vm913_vm6, %v13000_v23, %v2174_v35  ;;  %v2199_v10 = vmul.f32 %v2186_v59, %v13004_v45  ;;  %v13006_v59 = vld [vmem:[#allocation18_spill] sm:$0xff]  ;;  %v2228_v35 = vmul.f32 %v2223_v55, %v13007_v56 }
 0x528   : > { %v2194_v11 = vmul.f32 %v2187_v1, %v13001_v40  ;;  %6205 = vmatpush1.bf16.msra.mxu0 %v6204_v6  ;;  %v2193_v19 = vmul.f32 %v2189_v48, %v13003_v38  ;;  %v2226_v6 = vmul.f32 %v2219_v14, %v13006_v59  ;;  %v2225_v48 = vmul.f32 %v2221_v60, %v13009_v47 }
 0x529   : > { %6207 = vmatprep.subr.bf16.mxu0 %v6206_v58  ;;  %6257 = vmatpush1.bf16.msra.mxu1 %v6256_v26  ;;  %v2220_v26 = vsel %vm983_vm7, %v13008_v49, %v9164_v42 }
 0x52a   : > { %6259 = vmatprep.subr.bf16.mxu1 %v6258_v46  ;;  %v2182_v36 = vpop.permute.xlu0 %2181  ;;  %v6210_v9 = vpack.c.bf16 %v2198_v21, %v2194_v11  ;;  %v6212_v11 = vpack.c.bf16 %v2197_v63, %v2193_v19  ;;  %v2230_v60 = vmul.f32 %v2220_v26, %v13006_v59  ;;  %v13013_v63 = vld [vmem:[#allocation55_spill] sm:$0xff]  ;;  %v13014_v19 = vld [vmem:[#allocation32_spill] sm:$0xff] }
 0x52b   : > { %v2185_v58 = vsel %vm913_vm6, %v12999_v12, %v2182_v36  ;;  %v2191_v2 = vsel %vm913_vm6, %v2182_v36, %v13000_v23  ;;  %v13010_v12 = vld [vmem:[#allocation68_spill] sm:$0xff]  ;;  %v13011_v23 = vld [vmem:[#allocation19_spill] sm:$0xff]  ;;  %v13012_v36 = vld [vmem:[#allocation38_spill] sm:$0xff] }
 0x52c   : > { %v2195_v1 = vmul.f32 %v2185_v58, %v13004_v45  ;;  %v2196_v52 = vmul.f32 %v2191_v2, %v13005_v37  ;;  %6209 = vmatpush1.bf16.msra.mxu0 %v6208_v7  ;;  %v2224_v21 = vsel %vm983_vm7, %v13010_v12, %v9140_v4  ;;  %v2227_v14 = vmul.f32 %v2217_v39, %v13011_v23 }
 0x52d   : > { %6211 = vmatprep.subr.bf16.mxu0 %v6210_v9  ;;  %6261 = vmatpush1.bf16.msra.mxu1 %v6260_v43  ;;  %v2222_v7 = vsel %vm983_vm7, %v9140_v4, %v13008_v49  ;;  %v6214_v58 = vpack.c.bf16 %v2226_v6, %v13012_v36  ;;  %v2232_v2 = vmul.f32 %v2224_v21, %v13007_v56  ;;  %v2248_v4 = vpop.permute.xlu1 %2247  ;;  %v13015_v6 = vld [vmem:[#allocation37_spill] sm:$0xff]  ;;  %v13017_v21 = vld [vmem:[#allocation20_spill] sm:$0xff]  ;;  %v13019_v36 = vld [vmem:[#allocation22_spill] sm:$0xff] }
 0x52e   : > { %v6264_v17 = vpack.c.bf16 %v2199_v10, %v2195_v1  ;;  %v2242_v46 = vpop.permute.xlu0 %2241  ;;  %v6262_v55 = vpack.c.bf16 %v2200_v22, %v2196_v52  ;;  %v2218_v43 = vsel %vm983_vm7, %v9164_v42, %v13010_v12  ;;  %v6266_v10 = vpack.c.bf16 %v2228_v35, %v13013_v63  ;;  %v13016_v12 = vld [vmem:[#allocation33_spill] sm:$0xff] }
 0x52f   : > { %v2252_v22 = vsel %vm1053_vm8, %v9143_v31, %v2244_v41  ;;  %v6216_v9 = vpack.c.bf16 %v2225_v48, %v13014_v19  ;;  %v2250_v39 = vsel %vm1053_vm8, %v2244_v41, %v2248_v4  ;;  %v6268_v49 = vpack.c.bf16 %v2227_v14, %v13015_v6  ;;  %v13018_v14 = vld [vmem:[#allocation39_spill] sm:$0xff]  ;;  %v13021_v63 = vld [vmem:[#allocation21_spill] sm:$0xff]  ;;  %v13022_v19 = vld [vmem:[#allocation40_spill] sm:$0xff] }
 0x530   : > { %6213 = vmatpush1.bf16.msra.mxu0 %v6212_v11  ;;  %6263 = vmatprep.subr.bf16.mxu1 %v6262_v55  ;;  %v2229_v42 = vmul.f32 %v2222_v7, %v13009_v47  ;;  %v2231_v35 = vmul.f32 %v2218_v43, %v13011_v23  ;;  %v6218_v48 = vpack.c.bf16 %v13016_v12, %v2230_v60  ;;  %v13023_v6 = vld [vmem:[#allocation23_spill] sm:$0xff]  ;;  %v1972_v12 = vld [vmem:[%s12495_s3 + $0x18] sm:$0xff] }
 0x531   : > { %6215 = vmatprep.subr.bf16.mxu0 %v6214_v58  ;;  %6265 = vmatpush1.bf16.msra.mxu1 %v6264_v17  ;;  %v2262_v11 = vmul.f32 %v2252_v22, %v13017_v21  ;;  %v6270_v17 = vpack.c.bf16 %v13018_v14, %v2232_v2  ;;  %v2254_v55 = vsel %vm1053_vm8, %v9041_v28, %v9143_v31  ;;  %v13020_v58 = vld [vmem:[#allocation34_spill] sm:$0xff]  ;;  %v1974_v14 = vld [vmem:[%s12495_s3 + $0x28] sm:$0xff] }
 0x532   : > { %6267 = vmatprep.subr.bf16.mxu1 %v6266_v10  ;;  %v2238_v26 = vpop.permute.xlu0 %2237  ;;  %v2256_v7 = vsel %vm1053_vm8, %v2248_v4, %v9041_v28  ;;  %v2263_v60 = vmul.f32 %v2250_v39, %v13019_v36  ;;  %v6220_v43 = vpack.c.bf16 %v13020_v58, %v2229_v42  ;;  %v2261_v4 = vmul.f32 %v2254_v55, %v13021_v63  ;;  %v1976_v55 = vld [vmem:[%s12495_s3 + $0x38] sm:$0xff]  ;;  %v1977_v58 = vld [vmem:[%s12495_s3 + $0x40] sm:$0xff] }
 0x533   : > { %v2251_v1 = vsel %vm1053_vm8, %v2238_v26, %v2242_v46  ;;  %v2253_v52 = vsel %vm1053_vm8, %v9189_v27, %v2238_v26  ;;  %v2264_v39 = vmul.f32 %v2256_v7, %v13023_v6  ;;  %v1975_v7 = vld [vmem:[%s12495_s3 + $0x30] sm:$0xff] }
 0x534   : > { %v2258_v41 = vmul.f32 %v2251_v1, %v13017_v21  ;;  %6217 = vmatpush1.bf16.msra.mxu0 %v6216_v9  ;;  %v2257_v10 = vmul.f32 %v2253_v52, %v13021_v63  ;;  %v6272_v9 = vpack.c.bf16 %v13022_v19, %v2231_v35  ;;  %v1969_v52 = vld [vmem:[%s12495_s3] sm:$0xff] }
 0x535   : > { %6219 = vmatprep.subr.bf16.mxu0 %v6218_v48  ;;  %6269 = vmatpush1.bf16.msra.mxu1 %v6268_v49  ;;  %v13026_v48 = vld [vmem:[#allocation36_spill] sm:$0xff] }
 0x536   : > { %6271 = vmatprep.subr.bf16.mxu1 %v6270_v17  ;;  %v2246_v22 = vpop.permute.xlu0 %2245  ;;  %v6222_v2 = vpack.c.bf16 %v2262_v11, %v2258_v41  ;;  %v6224_v26 = vpack.c.bf16 %v2261_v4, %v2257_v10  ;;  %v13027_v11 = vld [vmem:[#allocation42_spill] sm:$0xff]  ;;  %v1971_v41 = vld [vmem:[%s12495_s3 + $0x10] sm:$0xff] }
 0x537   : > { %v2249_v31 = vsel %vm1053_vm8, %v2242_v46, %v2246_v22  ;;  %v2255_v28 = vsel %vm1053_vm8, %v2246_v22, %v9189_v27  ;;  %v13024_v46 = vld [vmem:[#allocation35_spill] sm:$0xff]  ;;  %v13025_v27 = vld [vmem:[#allocation41_spill] sm:$0xff]  ;;  %v1973_v17 = vld [vmem:[%s12495_s3 + $0x20] sm:$0xff] }
 0x538   : > { %v2259_v49 = vmul.f32 %v2249_v31, %v13019_v36  ;;  %v2260_v42 = vmul.f32 %v2255_v28, %v13023_v6  ;;  %6221 = vmatpush1.bf16.msra.mxu0 %v6220_v43  ;;  %v1980_v43 = vld [vmem:[%s12495_s3 + $0x58] sm:$0xff]  ;;  %v1979_v10 = vld [vmem:[%s12495_s3 + $0x50] sm:$0xff] }
 0x539   : > { %6223 = vmatprep.subr.bf16.mxu0 %v6222_v2  ;;  %6273 = vmatpush1.bf16.msra.mxu1 %v6272_v9  ;;  %v2283_v2 = vpop.permute.xlu1 %2282 }
 0x53a   : > { %v6276_v35 = vpack.c.bf16 %v2263_v60, %v2259_v49  ;;  %v6274_v1 = vpack.c.bf16 %v2264_v39, %v2260_v42  ;;  %v1978_v60 = vld [vmem:[%s12495_s3 + $0x48] sm:$0xff] }
 0x53c   : > { %6225 = vmatpush1.bf16.msra.mxu0 %v6224_v26  ;;  %6275 = vmatprep.subr.bf16.mxu1 %v6274_v1 }
 0x53d   : > { %2373 = vmatprep.subr.mxu0 %v13024_v46  ;;  %6277 = vmatpush1.bf16.msra.mxu1 %v6276_v35  ;;  %v9362_v9 = vpop.permute.xlu1 %2292 }
 0x53e   : > { %2480 = vmatprep.subr.mxu1 %v13025_v27 }
 0x540   : > { %2374 = vmatpush1.msra.mxu0 %v13026_v48 }
 0x541   : > { %2386 = vmatmul.mubr.f32.vlgmr.msra.gmra.mrb[16].mxu0 %v1969_v52  ;;  %2481 = vmatpush1.msra.mxu1 %v13027_v11  ;;  %v2273_v1 = vpop.permute.xlu1 %2272 }
 0x542   : > { %2493 = vmatmul.mubr.f32.vlgmr.msra.gmra.mrb[16].mxu1 %v1969_v52  ;;  %5821 = vmatprep.mubr.msk.f32.mxu0 %vm1134_vm3, %v1972_v12 }
 0x543   : > { %5828 = vmatprep.mubr.msk.f32.mxu1 %vm1134_vm3, %v1972_v12 }
 0x545   : > { %2392 = vmatmul.mubr.f32.gmra.mrb[18].mxu0 %v1971_v41 }
 0x546   : > { %2499 = vmatmul.mubr.f32.gmra.mrb[18].mxu1 %v1971_v41  ;;  %5822 = vmatprep.mubr.msk.f32.mxu0 %vm1134_vm3, %v1974_v14 }
 0x547   : > { %5829 = vmatprep.mubr.msk.f32.mxu1 %vm1134_vm3, %v1974_v14  ;;  %v2278_v22 = vpop.permute.xlu0 %2277 }
 0x549   : > { %2398 = vmatmul.mubr.f32.gmra.mrb[20].mxu0 %v1973_v17 }
 0x54a   : > { %2505 = vmatmul.mubr.f32.gmra.mrb[20].mxu1 %v1973_v17  ;;  %5823 = vmatprep.mubr.msk.f32.mxu0 %vm1134_vm3, %v1976_v55 }
 0x54b   : > { %5830 = vmatprep.mubr.msk.f32.mxu1 %vm1134_vm3, %v1976_v55  ;;  %v9360_v19 = vpop.permute.xlu0 %2287 }
 0x54d   : > { %2404 = vmatmul.mubr.f32.gmra.mrb[22].mxu0 %v1975_v7 }
 0x54e   : > { %2511 = vmatmul.mubr.f32.gmra.mrb[22].mxu1 %v1975_v7  ;;  %5824 = vmatprep.mubr.msk.f32.mxu0 %vm1134_vm3, %v1978_v60 }
 0x54f   : > { %5831 = vmatprep.mubr.msk.f32.mxu1 %vm1134_vm3, %v1978_v60  ;;  %v2268_v31 = vpop.permute.xlu0 %2267 }
 0x551   : > { %2410 = vmatmul.mubr.f32.gmra.mrb[24].mxu0 %v1977_v58 }
 0x552   : > { %2517 = vmatmul.mubr.f32.gmra.mrb[24].mxu1 %v1977_v58  ;;  %5825 = vmatprep.mubr.msk.f32.mxu0 %vm1134_vm3, %v1980_v43 }
 0x553   : > { %5832 = vmatprep.mubr.msk.f32.mxu1 %vm1134_vm3, %v1980_v43 }
 0x555   : > { %2416 = vmatmul.mubr.f32.gmra.mrb[26].mxu0 %v1979_v10 }
 0x556   : > { %2523 = vmatmul.mubr.f32.gmra.mrb[26].mxu1 %v1979_v10 }
 0x614   : > { %v2387_v28 = vpop.f32.mrb[16].mxu0 }
 0x615   : > { %v2388_v4 = vadd.f32 %v2387_v28, %v2268_v31  ;;  %v2389_v39 = vpop.f32.mrb[17].mxu0  ;;  %v2494_v49 = vpop.f32.mrb[16].mxu1 }
 0x616   : > { %v2390_v42 = vadd.f32 %v2389_v39, %v2268_v31  ;;  %v2496_v26 = vpop.f32.mrb[17].mxu1  ;;  %v2495_v35 = vadd.f32 %v2494_v49, %v2268_v31 }
 0x617   : > { %v2497_v46 = vadd.f32 %v2496_v26, %v2268_v31  ;;  %6891 = vtanh.f32 %v2388_v4 }
 0x618   : > { %v2393_v27 = vpop.f32.mrb[18].mxu0  ;;  %6893 = vtanh.f32 %v2390_v42 }
 0x619   : > { %v2394_v52 = vadd.f32 %v2393_v27, %v2273_v1  ;;  %v2395_v12 = vpop.f32.mrb[19].mxu0  ;;  %v2500_v48 = vpop.f32.mrb[18].mxu1  ;;  %6895 = vtanh.f32 %v2495_v35 }
 0x61a   : > { %v2396_v11 = vadd.f32 %v2395_v12, %v2273_v1  ;;  %v2502_v41 = vpop.f32.mrb[19].mxu1  ;;  %v2501_v14 = vadd.f32 %v2500_v48, %v2273_v1  ;;  %6897 = vtanh.f32 %v2497_v46 }
 0x61b   : > { %v2503_v17 = vadd.f32 %v2502_v41, %v2273_v1  ;;  %6899 = vtanh.f32 %v2394_v52 }
 0x61c   : > { %v2399_v55 = vpop.f32.mrb[20].mxu0  ;;  %6901 = vtanh.f32 %v2396_v11 }
 0x61d   : > { %v2400_v7 = vadd.f32 %v2399_v55, %v2278_v22  ;;  %v2401_v60 = vpop.f32.mrb[21].mxu0  ;;  %v2506_v58 = vpop.f32.mrb[20].mxu1  ;;  %6903 = vtanh.f32 %v2501_v14 }
 0x61e   : > { %v2402_v43 = vadd.f32 %v2401_v60, %v2278_v22  ;;  %v2507_v10 = vadd.f32 %v2506_v58, %v2278_v22  ;;  %v2508_v31 = vpop.f32.mrb[21].mxu1  ;;  %6905 = vtanh.f32 %v2503_v17 }
 0x61f   : > { %v5834_v28 = vmul.f32 -1.442695, %v2400_v7  ;;  %v2509_v4 = vadd.f32 %v2508_v31, %v2278_v22 }
 0x620   : > { %v5835_v39 = vmul.f32 -1.442695, %v2402_v43  ;;  %v5836_v49 = vmul.f32 -1.442695, %v2507_v10  ;;  %v2405_v42 = vpop.f32.mrb[22].mxu0 }
 0x621   : > { %6907 = vpow2.f32 %v5834_v28  ;;  %v5837_v26 = vmul.f32 -1.442695, %v2509_v4  ;;  %v2406_v35 = vadd.f32 %v2405_v42, %v2283_v2  ;;  %v2407_v1 = vpop.f32.mrb[23].mxu0  ;;  %v2512_v46 = vpop.f32.mrb[22].mxu1 }
 0x622   : > { %6909 = vpow2.f32 %v5835_v39  ;;  %v2408_v27 = vadd.f32 %v2407_v1, %v2283_v2  ;;  %v2513_v52 = vadd.f32 %v2512_v46, %v2283_v2  ;;  %v2514_v12 = vpop.f32.mrb[23].mxu1  ;;  %v9364_v48 = vpop.eup %6891 }
 0x623   : > { %6911 = vpow2.f32 %v5836_v49  ;;  %v5838_v11 = vmul.f32 -1.442695, %v2406_v35  ;;  %v2515_v41 = vadd.f32 %v2514_v12, %v2283_v2  ;;  %v9366_v14 = vpop.eup %6893 }
 0x624   : > { %6913 = vpow2.f32 %v5837_v26  ;;  %v5839_v22 = vmul.f32 -1.442695, %v2408_v27  ;;  %v5840_v17 = vmul.f32 -1.442695, %v2513_v52  ;;  %v2411_v55 = vpop.f32.mrb[24].mxu0  ;;  %v9368_v7 = vpop.eup %6895 }
 0x625   : > { %6915 = vpow2.f32 %v5838_v11  ;;  %v5841_v60 = vmul.f32 -1.442695, %v2515_v41  ;;  %v2412_v58 = vadd.f32 %v2411_v55, %v9360_v19  ;;  %v2413_v43 = vpop.f32.mrb[25].mxu0  ;;  %v2518_v10 = vpop.f32.mrb[24].mxu1 }
 0x626   : > { %v9371_v31 = vpop.eup %6897  ;;  %6917 = vpow2.f32 %v5839_v22  ;;  %v2414_v28 = vadd.f32 %v2413_v43, %v9360_v19  ;;  %v2519_v2 = vadd.f32 %v2518_v10, %v9360_v19  ;;  %v2520_v4 = vpop.f32.mrb[25].mxu1 }
 0x627   : > { %v9375_v39 = vpop.eup %6899  ;;  %6919 = vpow2.f32 %v5840_v17  ;;  %v5842_v49 = vmul.f32 -1.442695, %v2412_v58  ;;  %v2521_v42 = vadd.f32 %v2520_v4, %v9360_v19 }
 0x628   : > { %v9378_v26 = vpop.eup %6901  ;;  %6921 = vpow2.f32 %v5841_v60  ;;  %v5843_v35 = vmul.f32 -1.442695, %v2414_v28  ;;  %v5844_v1 = vmul.f32 -1.442695, %v2519_v2  ;;  %v2417_v46 = vpop.f32.mrb[26].mxu0 }
 0x629   : > { %v9380_v27 = vpop.eup %6903  ;;  %6923 = vpow2.f32 %v5842_v49  ;;  %v5845_v52 = vmul.f32 -1.442695, %v2521_v42  ;;  %v2418_v12 = vadd.f32 %v2417_v46, %v9362_v9  ;;  %v2419_v11 = vpop.f32.mrb[27].mxu0 }
 0x62a   : > { %v2524_v41 = vpop.f32.mrb[26].mxu1  ;;  %v9383_v22 = vpop.eup %6905  ;;  %6925 = vpow2.f32 %v5843_v35 }
 0x62b   : > { %v2526_v17 = vpop.f32.mrb[27].mxu1  ;;  %v6908_v55 = vpop.eup %6907  ;;  %6927 = vpow2.f32 %v5844_v1  ;;  %v5846_v19 = vmul.f32 -1.442695, %v2418_v12 }
 0x62c   : > { %v6910_v58 = vpop.eup %6909  ;;  %v2591_v60 = vadd.f32 1.0, %v6908_v55  ;;  %6929 = vpow2.f32 %v5845_v52 }
 0x62d   : > { %v6912_v43 = vpop.eup %6911  ;;  %v2592_v10 = vadd.f32 1.0, %v6910_v58  ;;  %6931 = vpow2.f32 %v5846_v19  ;;  %v2420_v19 = vadd.f32 %v2419_v11, %v9362_v9 }
 0x62e   : > { %v6914_v28 = vpop.eup %6913  ;;  %6933 = vrcp.f32 %v2591_v60  ;;  %v2593_v2 = vadd.f32 1.0, %v6912_v43  ;;  %v2525_v43 = vadd.f32 %v2524_v41, %v9362_v9 }
 0x62f   : > { %v6916_v4 = vpop.eup %6915  ;;  %6935 = vrcp.f32 %v2592_v10  ;;  %v2594_v49 = vadd.f32 1.0, %v6914_v28 }
 0x630   : > { %v6918_v42 = vpop.eup %6917  ;;  %6937 = vrcp.f32 %v2593_v2  ;;  %v2595_v46 = vadd.f32 1.0, %v6916_v4  ;;  %v2527_v2 = vadd.f32 %v2526_v17, %v9362_v9  ;;  %v2005_v9 = vld [vmem:[#allocation3 + $0x20] sm:$0xff] }
 0x631   : > { %v6920_v35 = vpop.eup %6919  ;;  %6939 = vrcp.f32 %v2594_v49  ;;  %v2596_v6 = vadd.f32 1.0, %v6918_v42 }
 0x632   : > { %v6922_v1 = vpop.eup %6921  ;;  %6941 = vrcp.f32 %v2595_v46  ;;  %v2597_v12 = vadd.f32 1.0, %v6920_v35  ;;  %v5849_v41 = vmul.f32 -1.442695, %v2527_v2 }
 0x633   : > { %v6924_v55 = vpop.eup %6923  ;;  %6943 = vrcp.f32 %v2596_v6  ;;  %v2598_v52 = vadd.f32 1.0, %v6922_v1  ;;  %v5847_v6 = vmul.f32 -1.442695, %v2420_v19  ;;  %v5848_v1 = vmul.f32 -1.442695, %v2525_v43 }
 0x634   : > { %v6926_v58 = vpop.eup %6925  ;;  %6945 = vrcp.f32 %v2597_v12  ;;  %v2599_v60 = vadd.f32 1.0, %v6924_v55 }
 0x635   : > { %v6928_v10 = vpop.eup %6927  ;;  %6947 = vrcp.f32 %v2598_v52  ;;  %v2600_v28 = vadd.f32 1.0, %v6926_v58 }
 0x636   : > { %v6930_v4 = vpop.eup %6929  ;;  %6949 = vrcp.f32 %v2599_v60  ;;  %v2601_v49 = vadd.f32 1.0, %v6928_v10  ;;  %v2006_v10 = vld [vmem:[#allocation3 + $0x28] sm:$0xff] }
 0x637   : > { %v6932_v42 = vpop.eup %6931  ;;  %6951 = vrcp.f32 %v2600_v28  ;;  %v2602_v46 = vadd.f32 1.0, %v6930_v4  ;;  %v2007_v4 = vld [vmem:[#allocation3 + $0x30] sm:$0xff] }
 0x638   : > { %v6934_v35 = vpop.eup %6933  ;;  %6953 = vrcp.f32 %v2601_v49  ;;  %v2603_v11 = vadd.f32 1.0, %v6932_v42 }
 0x639   : > { %v6936_v12 = vpop.eup %6935  ;;  %v2643_v55 = vmul.f32 %v6934_v35, %v9364_v48  ;;  %6955 = vrcp.f32 %v2602_v46  ;;  %v2008_v48 = vld [vmem:[#allocation3 + $0x38] sm:$0xff] }
 0x63a   : > { %v6938_v52 = vpop.eup %6937  ;;  %v2644_v58 = vmul.f32 %v6936_v12, %v9366_v14  ;;  %6957 = vrcp.f32 %v2603_v11 }
 0x63b   : > { %v6940_v17 = vpop.eup %6939  ;;  %v2645_v60 = vmul.f32 %v6938_v52, %v9368_v7  ;;  %6959 = vpow2.f32 %v5847_v6 }
 0x63c   : > { %v6942_v19 = vpop.eup %6941  ;;  %v2646_v28 = vmul.f32 %v6940_v17, %v9371_v31  ;;  %6961 = vpow2.f32 %v5848_v1 }
 0x63d   : > { %v6944_v43 = vpop.eup %6943  ;;  %v2639_v49 = vmul.f32 %v6942_v19, %v2005_v9  ;;  %6963 = vpow2.f32 %v5849_v41 }
 0x63e   : > { %v6946_v2 = vpop.eup %6945  ;;  %v2640_v42 = vmul.f32 %v6944_v43, %v2006_v10 }
 0x63f   : > { %v6948_v46 = vpop.eup %6947  ;;  %v9392_v14 = vadd.f32 %v2643_v55, %v2639_v49  ;;  %v2641_v35 = vmul.f32 %v6946_v2, %v2007_v4 }
 0x640   : > { %v6950_v11 = vpop.eup %6949  ;;  %v9394_v12 = vadd.f32 %v2644_v58, %v2640_v42  ;;  %v2642_v7 = vmul.f32 %v6948_v46, %v2008_v48 }
 0x641   : > { %v6952_v6 = vpop.eup %6951  ;;  %3129 = vst [vmem:[#allocation3 + $0x20] sm:$0xff] %v9392_v14  ;;  %v9397_v31 = vadd.f32 %v2645_v60, %v2641_v35  ;;  %v2655_v1 = vmul.f32 %v6950_v11, %v9375_v39  ;;  %2663 = vrot.lane.b32.xlu0 %v9392_v14, %s7260_s27 }
 0x642   : > { %v6954_v41 = vpop.eup %6953  ;;  %3130 = vst [vmem:[#allocation3 + $0x28] sm:$0xff] %v9394_v12  ;;  %v9403_v55 = vadd.f32 %v2646_v28, %v2642_v7  ;;  %v2656_v52 = vmul.f32 %v6952_v6, %v9378_v26  ;;  %v5813_v7 = vld [vmem:[%s12497_s5 + $0x68] sm:$0xff] }
 0x643   : > { %v6956_v58 = vpop.eup %6955  ;;  %3131 = vst [vmem:[#allocation3 + $0x30] sm:$0xff] %v9397_v31  ;;  %v2657_v9 = vmul.f32 %v6954_v41, %v9380_v27  ;;  %v5819_v41 = vld [vmem:[%s12498_s6 + $0x18] sm:$0xff] }
 0x644   : > { %v6958_v17 = vpop.eup %6957  ;;  %3132 = vst [vmem:[#allocation3 + $0x38] sm:$0xff] %v9403_v55  ;;  %v2658_v39 = vmul.f32 %v6956_v58, %v9383_v22 }
 0x645   : > { %v6960_v60 = vpop.eup %6959  ;;  %v2651_v10 = vmul.f32 %v6958_v17, %v12997_v20  ;;  %2671 = vrot.lane.b32.xlu0 %v9397_v31, %s7260_s27  ;;  %v9568_v17 = vld [vmem:[#allocation2 + $0x40] sm:$0xff] }
 0x646   : > { %v6962_v19 = vpop.eup %6961  ;;  %v2604_v28 = vadd.f32 1.0, %v6960_v60  ;;  %13032 = vst [vmem:[#allocation45_spill] sm:$0xff] %v9568_v17 }
 0x647   : > { %v6964_v4 = vpop.eup %6963  ;;  %v9413_v26 = vadd.f32 %v2655_v1, %v2651_v10  ;;  %v2605_v43 = vadd.f32 1.0, %v6962_v19  ;;  %v1982_v1 = vld [vmem:[%s12495_s3 + $0x68] sm:$0xff] }
 0x648   : > { %6965 = vrcp.f32 %v2604_v28  ;;  %v2606_v49 = vadd.f32 1.0, %v6964_v4  ;;  %5826 = vmatprep.mubr.msk.f32.mxu0 %vm1134_vm3, %v1982_v1  ;;  %5833 = vmatprep.mubr.msk.f32.mxu1 %vm1134_vm3, %v1982_v1  ;;  %v9583_v19 = vld [vmem:[#allocation2 + $0x48] sm:$0xff] }
 0x649   : > { %13028 = vst [vmem:[#allocation43_spill] sm:$0xff] %v9413_v26  ;;  %6967 = vrcp.f32 %v2605_v43  ;;  %2665 = vrot.lane.b32.xlu1 %v9413_v26, %s7260_s27  ;;  %2695 = vrot.lane.b32.xlu0 %v9392_v14, %s7261_s11  ;;  %13033 = vst [vmem:[#allocation48_spill] sm:$0xff] %v9583_v19  ;;  %v9593_v43 = vld [vmem:[#allocation2 + $0x50] sm:$0xff] }
 0x64a   : > { %6969 = vrcp.f32 %v2606_v49  ;;  %13034 = vst [vmem:[#allocation67_spill] sm:$0xff] %v9593_v43 }
 0x64d   : > { %2703 = vrot.lane.b32.xlu0 %v9397_v31, %s7261_s11 }
 0x651   : > { %2727 = vrot.lane.b32.xlu0 %v9392_v14, %s7262_s12 }
 0x652   : > { %v6966_v20 = vpop.eup %6965 }
 0x653   : > { %v6968_v27 = vpop.eup %6967  ;;  %v2652_v22 = vmul.f32 %v6966_v20, %v12987_v16  ;;  %v5818_v20 = vld [vmem:[%s12498_s6 + $0x10] sm:$0xff] }
 0x654   : > { %v6970_v48 = vpop.eup %6969  ;;  %v2653_v2 = vmul.f32 %v6968_v27, %v12998_v3 }
 0x655   : > { %v9425_v42 = vadd.f32 %v2656_v52, %v2652_v22  ;;  %v2654_v46 = vmul.f32 %v6970_v48, %v12989_v30  ;;  %2735 = vrot.lane.b32.xlu0 %v9397_v31, %s7262_s12  ;;  %v1981_v52 = vld [vmem:[%s12495_s3 + $0x60] sm:$0xff]  ;;  %v9606_v22 = vld [vmem:[#allocation2 + $0x58] sm:$0xff] }
 0x656   : > { %v9430_v35 = vadd.f32 %v2657_v9, %v2653_v2  ;;  %2422 = vmatmul.mubr.f32.gmra.mrb[28].mxu0 %v1981_v52  ;;  %2529 = vmatmul.mubr.f32.gmra.mrb[28].mxu1 %v1981_v52 }
 0x657   : > { %13029 = vst [vmem:[#allocation44_spill] sm:$0xff] %v9425_v42  ;;  %v9432_v11 = vadd.f32 %v2658_v39, %v2654_v46  ;;  %v5815_v39 = vld [vmem:[%s12496_s4 + $0x28] sm:$0xff] }
 0x658   : > { %13030 = vst [vmem:[#allocation47_spill] sm:$0xff] %v9430_v35  ;;  %2673 = vrot.lane.b32.xlu1 %v9430_v35, %s7260_s27  ;;  %5850 = vmatprep.mubr.msk.f32.mxu0 %vm1764_vm9, %v5815_v39 }
 0x659   : > { %13031 = vst [vmem:[#allocation46_spill] sm:$0xff] %v9432_v11  ;;  %2759 = vrot.lane.b32.xlu0 %v9392_v14, %s7263_s13  ;;  %5852 = vmatprep.mubr.msk.f32.mxu1 %vm1764_vm9, %v5815_v39 }
 0x65c   : > { %2697 = vrot.lane.b32.xlu1 %v9413_v26, %s7261_s11 }
 0x65d   : > { %2767 = vrot.lane.b32.xlu0 %v9397_v31, %s7263_s13 }
 0x660   : > { %2705 = vrot.lane.b32.xlu1 %v9430_v35, %s7261_s11 }
 0x661   : > { %2791 = vrot.lane.b32.xlu0 %v9392_v14, %s7264_s17 }
 0x664   : > { %2729 = vrot.lane.b32.xlu1 %v9413_v26, %s7262_s12 }
 0x665   : > { %2799 = vrot.lane.b32.xlu0 %v9397_v31, %s7264_s17 }
 0x668   : > { %2737 = vrot.lane.b32.xlu1 %v9430_v35, %s7262_s12 }
 0x669   : > { %2823 = vrot.lane.b32.xlu0 %v9392_v14, %s7265_s18 }
 0x66c   : > { %2761 = vrot.lane.b32.xlu1 %v9413_v26, %s7263_s13 }
 0x66d   : > { %2831 = vrot.lane.b32.xlu0 %v9397_v31, %s7265_s18 }
 0x670   : > { %2769 = vrot.lane.b32.xlu1 %v9430_v35, %s7263_s13 }
 0x671   : > { %2855 = vrot.lane.b32.xlu0 %v9392_v14, %s7266_s24 }
 0x674   : > { %2793 = vrot.lane.b32.xlu1 %v9413_v26, %s7264_s17 }
 0x675   : > { %2863 = vrot.lane.b32.xlu0 %v9397_v31, %s7266_s24 }
 0x678   : > { %2801 = vrot.lane.b32.xlu1 %v9430_v35, %s7264_s17 }
 0x679   : > { %2887 = vrot.lane.b32.xlu0 %v9392_v14, %s7267_s28 }
 0x67c   : > { %2825 = vrot.lane.b32.xlu1 %v9413_v26, %s7265_s18 }
 0x67d   : > { %2895 = vrot.lane.b32.xlu0 %v9397_v31, %s7267_s28 }
 0x680   : > { %2833 = vrot.lane.b32.xlu1 %v9430_v35, %s7265_s18 }
 0x681   : > { %2667 = vrot.lane.b32.xlu0 %v9394_v12, %s7260_s27 }
 0x684   : > { %2857 = vrot.lane.b32.xlu1 %v9413_v26, %s7266_s24 }
 0x685   : > { %2675 = vrot.lane.b32.xlu0 %v9403_v55, %s7260_s27 }
 0x688   : > { %2865 = vrot.lane.b32.xlu1 %v9430_v35, %s7266_s24 }
 0x689   : > { %2699 = vrot.lane.b32.xlu0 %v9394_v12, %s7261_s11 }
 0x68c   : > { %2889 = vrot.lane.b32.xlu1 %v9413_v26, %s7267_s28 }
 0x68d   : > { %2707 = vrot.lane.b32.xlu0 %v9403_v55, %s7261_s11 }
 0x690   : > { %2897 = vrot.lane.b32.xlu1 %v9430_v35, %s7267_s28 }
 0x691   : > { %2731 = vrot.lane.b32.xlu0 %v9394_v12, %s7262_s12 }
 0x694   : > { %2669 = vrot.lane.b32.xlu1 %v9425_v42, %s7260_s27 }
 0x695   : > { %2739 = vrot.lane.b32.xlu0 %v9403_v55, %s7262_s12 }
 0x698   : > { %2677 = vrot.lane.b32.xlu1 %v9432_v11, %s7260_s27 }
 0x699   : > { %2763 = vrot.lane.b32.xlu0 %v9394_v12, %s7263_s13 }
 0x69c   : > { %2701 = vrot.lane.b32.xlu1 %v9425_v42, %s7261_s11 }
 0x69d   : > { %2771 = vrot.lane.b32.xlu0 %v9403_v55, %s7263_s13 }
 0x6a0   : > { %2709 = vrot.lane.b32.xlu1 %v9432_v11, %s7261_s11 }
 0x6a1   : > { %2795 = vrot.lane.b32.xlu0 %v9394_v12, %s7264_s17 }
 0x6a4   : > { %2733 = vrot.lane.b32.xlu1 %v9425_v42, %s7262_s12 }
 0x6a5   : > { %2803 = vrot.lane.b32.xlu0 %v9403_v55, %s7264_s17 }
 0x6a8   : > { %2741 = vrot.lane.b32.xlu1 %v9432_v11, %s7262_s12 }
 0x6a9   : > { %2827 = vrot.lane.b32.xlu0 %v9394_v12, %s7265_s18 }
 0x6ac   : > { %2765 = vrot.lane.b32.xlu1 %v9425_v42, %s7263_s13 }
 0x6ad   : > { %2835 = vrot.lane.b32.xlu0 %v9403_v55, %s7265_s18 }
 0x6b0   : > { %2773 = vrot.lane.b32.xlu1 %v9432_v11, %s7263_s13 }
 0x6b1   : > { %2859 = vrot.lane.b32.xlu0 %v9394_v12, %s7266_s24 }
 0x6b3   : > { %v9526_v16 = vpop.permute.xlu0 %2663 }
 0x6b4   : > { %2797 = vrot.lane.b32.xlu1 %v9425_v42, %s7264_s17 }
 0x6b5   : > { %2867 = vrot.lane.b32.xlu0 %v9403_v55, %s7266_s24 }
 0x6b7   : > { %v9532_v30 = vpop.permute.xlu0 %2671 }
 0x6b8   : > { %2805 = vrot.lane.b32.xlu1 %v9432_v11, %s7264_s17 }
 0x6b9   : > { %2891 = vrot.lane.b32.xlu0 %v9394_v12, %s7267_s28 }
 0x6bb   : > { %v9538_v3 = vpop.permute.xlu0 %2695  ;;  %v9566_v9 = vpop.permute.xlu1 %2665 }
 0x6bc   : > { %2829 = vrot.lane.b32.xlu1 %v9425_v42, %s7265_s18 }
 0x6bd   : > { %2899 = vrot.lane.b32.xlu0 %v9403_v55, %s7267_s28 }
 0x6bf   : > { %v9547_v6 = vpop.permute.xlu0 %2703 }
 0x6c0   : > { %2837 = vrot.lane.b32.xlu1 %v9432_v11, %s7265_s18 }
 0x6c1   : > { %2297 = vperm.xlu0 %6785, %v5813_v7  }
 0x6c3   : > { %v9562_v58 = vpop.permute.xlu0 %2727 }
 0x6c4   : > { %2861 = vrot.lane.b32.xlu1 %v9425_v42, %s7266_s24 }
 0x6c5   : > { %2926 = vperm.xlu0 %6785, %v5819_v41  }
 0x6c7   : > { %v9573_v60 = vpop.permute.xlu0 %2735 }
 0x6c8   : > { %2869 = vrot.lane.b32.xlu1 %v9432_v11, %s7266_s24 }
 0x6c9   : > { %3176 = vrot.lane.b32.xlu0 %v9568_v17, %s7260_s27 }
 0x6ca   : > { %v9581_v10 = vpop.permute.xlu1 %2673 }
 0x6cb   : > { %v9585_v28 = vpop.permute.xlu0 %2759 }
 0x6cc   : > { %2893 = vrot.lane.b32.xlu1 %v9425_v42, %s7267_s28 }
 0x6cd   : > { %3180 = vrot.lane.b32.xlu0 %v9583_v19, %s7260_s27 }
 0x6ce   : > { %v9591_v4 = vpop.permute.xlu1 %2697 }
 0x6cf   : > { %v9595_v49 = vpop.permute.xlu0 %2767 }
 0x6d0   : > { %2901 = vrot.lane.b32.xlu1 %v9432_v11, %s7267_s28 }
 0x6d1   : > { %3184 = vrot.lane.b32.xlu0 %v9593_v43, %s7260_s27 }
 0x6d2   : > { %v9604_v27 = vpop.permute.xlu1 %2705 }
 0x6d3   : > { %v9608_v48 = vpop.permute.xlu0 %2791 }
 0x6d4   : > { %2921 = vperm.xlu1 %6786, %v5818_v20  }
 0x6d5   : > { %3188 = vrot.lane.b32.xlu0 %v9606_v22, %s7260_s27 }
 0x6d6   : > { %v9612_v2 = vpop.permute.xlu1 %2729 }
 0x6d7   : > { %v9614_v46 = vpop.permute.xlu0 %2799 }
 0x6d8   : > { %3208 = vrot.lane.b32.xlu1 %v9568_v17, %s7261_s11 }
 0x6d9   : > { %3212 = vrot.lane.b32.xlu0 %v9583_v19, %s7261_s11 }
 0x6da   : > { %v9620_v7 = vpop.permute.xlu1 %2737 }
 0x6db   : > { %v9622_v1 = vpop.permute.xlu0 %2823 }
 0x6dc   : > { %13035 = vst [vmem:[#allocation51_spill] sm:$0xff] %v9622_v1  ;;  %3216 = vrot.lane.b32.xlu1 %v9593_v43, %s7261_s11 }
 0x6dd   : > { %3220 = vrot.lane.b32.xlu0 %v9606_v22, %s7261_s11 }
 0x6de   : > { %v9628_v41 = vpop.permute.xlu1 %2761 }
 0x6df   : > { %v9630_v52 = vpop.permute.xlu0 %2831 }
 0x6e0   : > { %13036 = vst [vmem:[#allocation66_spill] sm:$0xff] %v9630_v52  ;;  %3272 = vrot.lane.b32.xlu1 %v9568_v17, %s7263_s13  ;;  %v13047_v52 = vld [vmem:[#allocation6_spill] sm:$0xff] }
 0x6e1   : > { %3240 = vrot.lane.b32.xlu0 %v9568_v17, %s7262_s12 }
 0x6e2   : > { %v9636_v39 = vpop.permute.xlu1 %2769 }
 0x6e3   : > { %v9638_v20 = vpop.permute.xlu0 %2855 }
 0x6e4   : > { %13037 = vst [vmem:[#allocation49_spill] sm:$0xff] %v9638_v20  ;;  %3280 = vrot.lane.b32.xlu1 %v9593_v43, %s7263_s13 }
 0x6e5   : > { %3244 = vrot.lane.b32.xlu0 %v9583_v19, %s7262_s12 }
 0x6e6   : > { %v9644_v36 = vpop.permute.xlu1 %2793 }
 0x6e7   : > { %v9646_v21 = vpop.permute.xlu0 %2863 }
 0x6e8   : > { %13038 = vst [vmem:[#allocation50_spill] sm:$0xff] %v9646_v21  ;;  %3304 = vrot.lane.b32.xlu1 %v9568_v17, %s7264_s17 }
 0x6e9   : > { %3248 = vrot.lane.b32.xlu0 %v9593_v43, %s7262_s12 }
 0x6ea   : > { %v9652_v63 = vpop.permute.xlu1 %2801 }
 0x6eb   : > { %v9654_v56 = vpop.permute.xlu0 %2887 }
 0x6ec   : > { %13039 = vst [vmem:[#allocation61_spill] sm:$0xff] %v9654_v56  ;;  %3312 = vrot.lane.b32.xlu1 %v9593_v43, %s7264_s17 }
 0x6ed   : > { %3252 = vrot.lane.b32.xlu0 %v9606_v22, %s7262_s12 }
 0x6ee   : > { %v9660_v23 = vpop.permute.xlu1 %2825 }
 0x6ef   : > { %13040 = vst [vmem:[#allocation29_spill] sm:$0xff] %v9660_v23  ;;  %v9662_v59 = vpop.permute.xlu0 %2895 }
 0x6f0   : > { %13041 = vst [vmem:[#allocation28_spill] sm:$0xff] %v9662_v59 }
 0x6f1   : > { %3276 = vrot.lane.b32.xlu0 %v9583_v19, %s7263_s13 }
 0x6f2   : > { %v9666_v47 = vpop.permute.xlu1 %2833 }
 0x6f3   : > { %13042 = vst [vmem:[#allocation30_spill] sm:$0xff] %v9666_v47  ;;  %v2668_v20 = vpop.permute.xlu0 %2667 }
 0x6f5   : > { %3284 = vrot.lane.b32.xlu0 %v9606_v22, %s7263_s13 }
 0x6f6   : > { %v9670_v56 = vpop.permute.xlu1 %2857 }
 0x6f7   : > { %13043 = vst [vmem:[#allocation57_spill] sm:$0xff] %v9670_v56  ;;  %v2676_v21 = vpop.permute.xlu0 %2675  ;;  %v2683_v56 = vsel %vm563_vm0, %v9526_v16, %v2668_v20 }
 0x6f8   : > { %v2688_v1 = vmul.f32 %v2683_v56, %v13047_v52  ;;  %v2679_v29 = vsel %vm563_vm0, %v9532_v30, %v2676_v21  ;;  %v2681_v56 = vsel %vm563_vm0, %v2668_v20, %v9532_v30 }
 0x6f9   : > { %3308 = vrot.lane.b32.xlu0 %v9583_v19, %s7264_s17  ;;  %v2690_v30 = vmul.f32 %v2679_v29, %v7544_v54 }
 0x6fa   : > { %v9674_v37 = vpop.permute.xlu1 %2865 }
 0x6fb   : > { %13044 = vst [vmem:[#allocation59_spill] sm:$0xff] %v9674_v37  ;;  %v2700_v45 = vpop.permute.xlu0 %2699 }
 0x6fd   : > { %3316 = vrot.lane.b32.xlu0 %v9606_v22, %s7264_s17 }
 0x6fe   : > { %v9678_v59 = vpop.permute.xlu1 %2889 }
 0x6ff   : > { %13045 = vst [vmem:[#allocation56_spill] sm:$0xff] %v9678_v59  ;;  %v2708_v40 = vpop.permute.xlu0 %2707 }
 0x701   : > { %3336 = vrot.lane.b32.xlu0 %v9568_v17, %s7265_s18 }
 0x702   : > { %v9682_v23 = vpop.permute.xlu1 %2897 }
 0x703   : > { %13046 = vst [vmem:[#allocation27_spill] sm:$0xff] %v9682_v23  ;;  %v9684_v47 = vpop.permute.xlu0 %2731 }
 0x705   : > { %3340 = vrot.lane.b32.xlu0 %v9583_v19, %s7265_s18  ;;  %v2685_v19 = vsel %vm563_vm0, %v2676_v21, %v9526_v16 }
 0x706   : > { %v2670_v37 = vpop.permute.xlu1 %2669 }
 0x707   : > { %v2684_v59 = vsel %vm563_vm0, %v9566_v9, %v2670_v37  ;;  %v2740_v38 = vpop.permute.xlu0 %2739  ;;  %v2682_v17 = vsel %vm563_vm0, %v2670_v37, %v9581_v10 }
 0x708   : > { %v9699_v23 = vmul.f32 %v2684_v59, %v13047_v52  ;;  %v9714_v59 = vmul.f32 %v2682_v17, %v7559_v61 }
 0x709   : > { %3344 = vrot.lane.b32.xlu0 %v9593_v43, %s7265_s18  ;;  %v2687_v43 = vmul.f32 %v2685_v19, %v7541_v53 }
 0x70a   : > { %13048 = vst [vmem:[#allocation58_spill] sm:$0xff] %v9699_v23  ;;  %v2678_v25 = vpop.permute.xlu1 %2677  ;;  %v6278_v37 = vpack.c.bf16 %v9699_v23, %v2688_v1  ;;  %v2689_v1 = vmul.f32 %v2681_v56, %v7559_v61 }
 0x70b   : > { %v2680_v52 = vsel %vm563_vm0, %v9581_v10, %v2678_v25  ;;  %v2686_v21 = vsel %vm563_vm0, %v2678_v25, %v9566_v9  ;;  %v9722_v16 = vpop.permute.xlu0 %2763  ;;  %v2715_v10 = vsel %vm633_vm1, %v9538_v3, %v2700_v45 }
 0x70c   : > { %v9727_v20 = vmul.f32 %v2686_v21, %v7541_v53  ;;  %v9730_v17 = vmul.f32 %v2680_v52, %v7544_v54  ;;  %6279 = vmatprep.subr.bf16.mxu0 %v6278_v37  ;;  %v6316_v19 = vpack.c.bf16 %v9714_v59, %v2689_v1  ;;  %v2720_v56 = vmul.f32 %v2715_v10, %v7595_v24 }
 0x70d   : > { %3348 = vrot.lane.b32.xlu0 %v9606_v22, %s7265_s18  ;;  %v2713_v1 = vsel %vm633_vm1, %v2700_v45, %v9547_v6 }
 0x70e   : > { %v6280_v25 = vpack.c.bf16 %v9727_v20, %v2687_v43  ;;  %v2702_v9 = vpop.permute.xlu1 %2701  ;;  %v6314_v29 = vpack.c.bf16 %v9730_v17, %v2690_v30  ;;  %v2711_v43 = vsel %vm633_vm1, %v9547_v6, %v2708_v40  ;;  %v2717_v30 = vsel %vm633_vm1, %v2708_v40, %v9538_v3 }
 0x70f   : > { %v2716_v52 = vsel %vm633_vm1, %v9591_v4, %v2702_v9  ;;  %v9744_v37 = vpop.permute.xlu0 %2771  ;;  %v2714_v21 = vsel %vm633_vm1, %v2702_v9, %v9604_v27  ;;  %v2719_v40 = vmul.f32 %v2717_v30, %v7583_v18  ;;  %v2722_v3 = vmul.f32 %v2711_v43, %v7601_v33 }
 0x710   : > { %v9751_v23 = vmul.f32 %v2716_v52, %v7595_v24  ;;  %6281 = vmatpush1.bf16.msra.mxu0 %v6280_v25  ;;  %6315 = vmatprep.subr.bf16.mxu1 %v6314_v29  ;;  %v9764_v52 = vmul.f32 %v2714_v21, %v7598_v32 }
 0x711   : > { %6317 = vmatpush1.bf16.msra.mxu1 %v6316_v19 }
 0x712   : > { %v2710_v10 = vpop.permute.xlu1 %2709  ;;  %v6282_v9 = vpack.c.bf16 %v9751_v23, %v2720_v56  ;;  %v2721_v56 = vmul.f32 %v2713_v1, %v7598_v32 }
 0x713   : > { %v2712_v25 = vsel %vm633_vm1, %v9604_v27, %v2710_v10  ;;  %v2718_v29 = vsel %vm633_vm1, %v2710_v10, %v9591_v4  ;;  %v9780_v19 = vpop.permute.xlu0 %2795  ;;  %v2747_v4 = vsel %vm703_vm2, %v9562_v58, %v9684_v47 }
 0x714   : > { %v9775_v45 = vmul.f32 %v2718_v29, %v7583_v18  ;;  %v9778_v6 = vmul.f32 %v2712_v25, %v7601_v33  ;;  %6283 = vmatprep.subr.bf16.mxu0 %v6282_v9  ;;  %v6320_v30 = vpack.c.bf16 %v9764_v52, %v2721_v56  ;;  %v2752_v9 = vmul.f32 %v2747_v4, %v7676_v44 }
 0x715   : > { %v2743_v29 = vsel %vm703_vm2, %v9573_v60, %v2740_v38 }
 0x716   : > { %v6284_v27 = vpack.c.bf16 %v9775_v45, %v2719_v40  ;;  %v2734_v21 = vpop.permute.xlu1 %2733  ;;  %v6318_v43 = vpack.c.bf16 %v9778_v6, %v2722_v3  ;;  %v2749_v40 = vsel %vm703_vm2, %v2740_v38, %v9562_v58  ;;  %v2745_v3 = vsel %vm703_vm2, %v9684_v47, %v9573_v60 }
 0x717   : > { %v2748_v10 = vsel %vm703_vm2, %v9612_v2, %v2734_v21  ;;  %v2746_v1 = vsel %vm703_vm2, %v2734_v21, %v9620_v7  ;;  %v2804_v21 = vpop.permute.xlu0 %2803  ;;  %v2751_v58 = vmul.f32 %v2749_v40, %v7701_v8 }
 0x718   : > { %v9798_v25 = vmul.f32 %v2748_v10, %v7676_v44  ;;  %6285 = vmatpush1.bf16.msra.mxu0 %v6284_v27  ;;  %6319 = vmatprep.subr.bf16.mxu1 %v6318_v43  ;;  %v9812_v27 = vmul.f32 %v2746_v1, %v7696_v5  ;;  %v2753_v10 = vmul.f32 %v2745_v3, %v7696_v5 }
 0x719   : > { %6321 = vmatpush1.bf16.msra.mxu1 %v6320_v30  ;;  %v2754_v30 = vmul.f32 %v2743_v29, %v7693_v62 }
 0x71a   : > { %13049 = vst [vmem:[#allocation26_spill] sm:$0xff] %v9798_v25  ;;  %v2742_v56 = vpop.permute.xlu1 %2741  ;;  %v6286_v4 = vpack.c.bf16 %v9798_v25, %v2752_v9  ;;  %13050 = vst [vmem:[#allocation53_spill] sm:$0xff] %v9812_v27  ;;  %v6324_v29 = vpack.c.bf16 %v9812_v27, %v2753_v10 }
 0x71b   : > { %v2744_v43 = vsel %vm703_vm2, %v9620_v7, %v2742_v56  ;;  %v2750_v38 = vsel %vm703_vm2, %v2742_v56, %v9612_v2  ;;  %v2779_v7 = vsel %vm773_vm4, %v9585_v28, %v9722_v16 }
 0x71c   : > { %v9823_v47 = vmul.f32 %v2750_v38, %v7701_v8  ;;  %v9826_v60 = vmul.f32 %v2744_v43, %v7693_v62  ;;  %6287 = vmatprep.subr.bf16.mxu0 %v6286_v4  ;;  %v2784_v56 = vmul.f32 %v2779_v7, %v7746_v51  ;;  %v2828_v43 = vpop.permute.xlu0 %2827  ;;  %v2775_v38 = vsel %vm773_vm4, %v9595_v49, %v9744_v37 }
 0x71e   : > { %13051 = vst [vmem:[#allocation63_spill] sm:$0xff] %v9823_v47  ;;  %13052 = vst [vmem:[#allocation62_spill] sm:$0xff] %v9826_v60  ;;  %v6288_v2 = vpack.c.bf16 %v9823_v47, %v2751_v58  ;;  %v2766_v9 = vpop.permute.xlu1 %2765  ;;  %v6322_v1 = vpack.c.bf16 %v9826_v60, %v2754_v30  ;;  %v2781_v58 = vsel %vm773_vm4, %v9744_v37, %v9585_v28 }
 0x71f   : > { %v2780_v40 = vsel %vm773_vm4, %v9628_v41, %v2766_v9  ;;  %v2778_v3 = vsel %vm773_vm4, %v2766_v9, %v9636_v39  ;;  %v2777_v30 = vsel %vm773_vm4, %v9722_v16, %v9595_v49  ;;  %v2783_v37 = vmul.f32 %v2781_v58, %v7743_v50 }
 0x720   : > { %v9844_v4 = vmul.f32 %v2780_v40, %v7746_v51  ;;  %6289 = vmatpush1.bf16.msra.mxu0 %v6288_v2  ;;  %6323 = vmatprep.subr.bf16.mxu1 %v6322_v1  ;;  %v9860_v2 = vmul.f32 %v2778_v3, %v12965_v13  ;;  %v2786_v1 = vmul.f32 %v2775_v38, %v7760_v0  ;;  %v2836_v58 = vpop.permute.xlu0 %2835 }
 0x721   : > { %6325 = vmatpush1.bf16.msra.mxu1 %v6324_v29  ;;  %v2785_v29 = vmul.f32 %v2777_v30, %v12965_v13  ;;  %v6294_v3 = vpack.c.bf16 %v9425_v42, %v9394_v12  ;;  %v6330_v38 = vpack.c.bf16 %v9432_v11, %v9403_v55  ;;  %v2811_v30 = vsel %vm843_vm5, %v9608_v48, %v9780_v19 }
 0x722   : > { %13053 = vst [vmem:[#allocation52_spill] sm:$0xff] %v9844_v4  ;;  %v2774_v10 = vpop.permute.xlu1 %2773  ;;  %v6290_v7 = vpack.c.bf16 %v9844_v4, %v2784_v56  ;;  %13054 = vst [vmem:[#allocation31_spill] sm:$0xff] %v9860_v2  ;;  %v2807_v55 = vsel %vm843_vm5, %v9614_v46, %v2804_v21 }
 0x723   : > { %v2776_v9 = vsel %vm773_vm4, %v9636_v39, %v2774_v10  ;;  %v2782_v28 = vsel %vm773_vm4, %v2774_v10, %v9628_v41  ;;  %v2809_v39 = vsel %vm843_vm5, %v9780_v19, %v9614_v46  ;;  %v6328_v10 = vpack.c.bf16 %v9860_v2, %v2785_v29  ;;  %v13120_v2 = vld [vmem:[#allocation6_spill] sm:$0xff] }
 0x724   : > { %v9871_v49 = vmul.f32 %v2782_v28, %v7743_v50  ;;  %v9874_v16 = vmul.f32 %v2776_v9, %v7760_v0  ;;  %6291 = vmatprep.subr.bf16.mxu0 %v6290_v7  ;;  %v2816_v12 = vmul.f32 %v2809_v39, %v12980_v57  ;;  %v2813_v19 = vsel %vm843_vm5, %v2804_v21, %v9608_v48 }
 0x725   : > { %v6296_v29 = vpack.c.bf16 %v9413_v26, %v9392_v14  ;;  %v6332_v39 = vpack.c.bf16 %v9430_v35, %v9397_v31  ;;  %v13061_v14 = vld [vmem:[#allocation51_spill] sm:$0xff]  ;;  %v13066_v35 = vld [vmem:[#allocation30_spill] sm:$0xff] }
 0x726   : > { %13055 = vst [vmem:[#allocation60_spill] sm:$0xff] %v9871_v49  ;;  %13056 = vst [vmem:[#allocation64_spill] sm:$0xff] %v9874_v16  ;;  %v6292_v41 = vpack.c.bf16 %v9871_v49, %v2783_v37  ;;  %v2798_v40 = vpop.permute.xlu1 %2797  ;;  %v6326_v56 = vpack.c.bf16 %v9874_v16, %v2786_v1 }
 0x727   : > { %v2810_v7 = vsel %vm843_vm5, %v2798_v40, %v9652_v63  ;;  %v2812_v9 = vsel %vm843_vm5, %v9644_v36, %v2798_v40  ;;  %v13059_v40 = vld [vmem:[#allocation11_spill] sm:$0xff] }
 0x728   : > { %v9903_v28 = vmul.f32 %v2810_v7, %v12980_v57  ;;  %6293 = vmatpush1.bf16.msra.mxu0 %v6292_v41  ;;  %6327 = vmatprep.subr.bf16.mxu1 %v6326_v56  ;;  %v9909_v37 = vmul.f32 %v2812_v9, %v12984_v15  ;;  %v2815_v41 = vmul.f32 %v2811_v30, %v12984_v15  ;;  %v2860_v7 = vpop.permute.xlu0 %2859  ;;  %v13064_v9 = vld [vmem:[#allocation66_spill] sm:$0xff] }
 0x729   : > { %6295 = vmatprep.subr.bf16.mxu0 %v6294_v3  ;;  %6329 = vmatpush1.bf16.msra.mxu1 %v6328_v10  ;;  %v2817_v56 = vmul.f32 %v2807_v55, %v13059_v40  ;;  %v13060_v3 = vld [vmem:[#allocation8_spill] sm:$0xff]  ;;  %v2843_v10 = vsel %vm913_vm6, %v13061_v14, %v2828_v43 }
 0x72a   : > { %13057 = vst [vmem:[#allocation25_spill] sm:$0xff] %v9903_v28  ;;  %13058 = vst [vmem:[#allocation24_spill] sm:$0xff] %v9909_v37  ;;  %v2806_v1 = vpop.permute.xlu1 %2805  ;;  %6331 = vmatprep.subr.bf16.mxu1 %v6330_v38  ;;  %v6298_v46 = vpack.c.bf16 %v9903_v28, %v2816_v12  ;;  %v2818_v38 = vmul.f32 %v2813_v19, %v13060_v3 }
 0x72b   : > { %v2808_v48 = vsel %vm843_vm5, %v9652_v63, %v2806_v1  ;;  %v2814_v21 = vsel %vm843_vm5, %v2806_v1, %v9644_v36  ;;  %v2841_v63 = vsel %vm913_vm6, %v2828_v43, %v13064_v9  ;;  %v6300_v36 = vpack.c.bf16 %v9909_v37, %v2815_v41  ;;  %v13065_v1 = vld [vmem:[#allocation13_spill] sm:$0xff]  ;;  %v13068_v43 = vld [vmem:[#allocation12_spill] sm:$0xff] }
 0x72c   : > { %v9929_v31 = vmul.f32 %v2808_v48, %v13059_v40  ;;  %v9932_v30 = vmul.f32 %v2814_v21, %v13060_v3  ;;  %6297 = vmatpush1.bf16.msra.mxu0 %v6296_v29  ;;  %v2847_v48 = vmul.f32 %v2843_v10, %v13065_v1  ;;  %v13067_v21 = vld [vmem:[#allocation29_spill] sm:$0xff]  ;;  %v5872_v37 = vld [vmem:[%s12497_s5 + $0x70] sm:$0xff] }
 0x72d   : > { %6299 = vmatprep.subr.bf16.mxu0 %v6298_v46  ;;  %6333 = vmatpush1.bf16.msra.mxu1 %v6332_v39  ;;  %v2848_v46 = vmul.f32 %v2841_v63, %v13068_v43 }
 0x72e   : > { %13062 = vst [vmem:[#allocation70_spill] sm:$0xff] %v9929_v31  ;;  %13063 = vst [vmem:[#allocation69_spill] sm:$0xff] %v9932_v30  ;;  %v6336_v12 = vpack.c.bf16 %v9929_v31, %v2817_v56  ;;  %v2830_v55 = vpop.permute.xlu1 %2829  ;;  %v6334_v19 = vpack.c.bf16 %v9932_v30, %v2818_v38  ;;  %v2839_v56 = vsel %vm913_vm6, %v13064_v9, %v2836_v58  ;;  %v13071_v9 = vld [vmem:[#allocation14_spill] sm:$0xff] }
 0x72f   : > { %v2842_v29 = vsel %vm913_vm6, %v2830_v55, %v13066_v35  ;;  %v2844_v26 = vsel %vm913_vm6, %v13067_v21, %v2830_v55  ;;  %v2845_v38 = vsel %vm913_vm6, %v2836_v58, %v13061_v14  ;;  %v2868_v55 = vpop.permute.xlu0 %2867 }
 0x730   : > { %v9949_v39 = vmul.f32 %v2844_v26, %v13065_v1  ;;  %v9952_v41 = vmul.f32 %v2842_v29, %v13068_v43  ;;  %6301 = vmatpush1.bf16.msra.mxu0 %v6300_v36  ;;  %6335 = vmatprep.subr.bf16.mxu1 %v6334_v19  ;;  %v2849_v29 = vmul.f32 %v2839_v56, %v13071_v9  ;;  %v13072_v1 = vld [vmem:[#allocation15_spill] sm:$0xff] }
 0x731   : > { %6337 = vmatpush1.bf16.msra.mxu1 %v6336_v12  ;;  %v2850_v30 = vmul.f32 %v2845_v38, %v13072_v1  ;;  %v13075_v12 = vld [vmem:[#allocation50_spill] sm:$0xff] }
 0x732   : > { %13069 = vst [vmem:[#allocation54_spill] sm:$0xff] %v9949_v39  ;;  %13070 = vst [vmem:[#allocation65_spill] sm:$0xff] %v9952_v41  ;;  %v6304_v10 = vpack.c.bf16 %v9949_v39, %v2847_v48  ;;  %v2838_v63 = vpop.permute.xlu1 %2837  ;;  %v6302_v26 = vpack.c.bf16 %v9952_v41, %v2848_v46  ;;  %v2873_v48 = vsel %vm983_vm7, %v2860_v7, %v13075_v12  ;;  %v13079_v39 = vld [vmem:[#allocation17_spill] sm:$0xff] }
 0x733   : > { %v2840_v36 = vsel %vm913_vm6, %v13066_v35, %v2838_v63  ;;  %v2846_v19 = vsel %vm913_vm6, %v2838_v63, %v13067_v21  ;;  %v13076_v35 = vld [vmem:[#allocation49_spill] sm:$0xff]  ;;  %v13077_v63 = vld [vmem:[#allocation59_spill] sm:$0xff] }
 0x734   : > { %v9971_v58 = vmul.f32 %v2840_v36, %v13071_v9  ;;  %v9974_v14 = vmul.f32 %v2846_v19, %v13072_v1  ;;  %6303 = vmatprep.subr.bf16.mxu0 %v6302_v26  ;;  %v2875_v46 = vsel %vm983_vm7, %v13076_v35, %v2860_v7  ;;  %v13078_v19 = vld [vmem:[#allocation57_spill] sm:$0xff]  ;;  %v13080_v1 = vld [vmem:[#allocation18_spill] sm:$0xff] }
 0x735   : > { %6305 = vmatpush1.bf16.msra.mxu0 %v6304_v10  ;;  %v2879_v41 = vmul.f32 %v2875_v46, %v13079_v39  ;;  %v2880_v9 = vmul.f32 %v2873_v48, %v13080_v1 }
 0x736   : > { %13073 = vst [vmem:[#allocation68_spill] sm:$0xff] %v9971_v58  ;;  %13074 = vst [vmem:[#allocation38_spill] sm:$0xff] %v9974_v14  ;;  %v6340_v21 = vpack.c.bf16 %v9971_v58, %v2849_v29  ;;  %v2862_v56 = vpop.permute.xlu1 %2861  ;;  %v6338_v38 = vpack.c.bf16 %v9974_v14, %v2850_v30  ;;  %v2892_v29 = vpop.permute.xlu0 %2891  ;;  %v2871_v30 = vsel %vm983_vm7, %v13075_v12, %v2868_v55  ;;  %v13083_v58 = vld [vmem:[#allocation19_spill] sm:$0xff]  ;;  %v13084_v14 = vld [vmem:[#allocation16_spill] sm:$0xff] }
 0x737   : > { %v2874_v36 = vsel %vm983_vm7, %v2862_v56, %v13077_v63  ;;  %v2876_v26 = vsel %vm983_vm7, %v13078_v19, %v2862_v56  ;;  %v2877_v56 = vsel %vm983_vm7, %v2868_v55, %v13076_v35  ;;  %v2881_v12 = vmul.f32 %v2871_v30, %v13083_v58 }
 0x738   : > { %v9993_v7 = vmul.f32 %v2876_v26, %v13079_v39  ;;  %v9996_v10 = vmul.f32 %v2874_v36, %v13080_v1  ;;  %6339 = vmatprep.subr.bf16.mxu1 %v6338_v38  ;;  %v2882_v39 = vmul.f32 %v2877_v56, %v13084_v14 }
 0x739   : > { %6341 = vmatpush1.bf16.msra.mxu1 %v6340_v21  ;;  %v13088_v21 = vld [vmem:[#allocation61_spill] sm:$0xff] }
 0x73a   : > { %13081 = vst [vmem:[#allocation55_spill] sm:$0xff] %v9993_v7  ;;  %13082 = vst [vmem:[#allocation32_spill] sm:$0xff] %v9996_v10  ;;  %v6308_v46 = vpack.c.bf16 %v9993_v7, %v2879_v41  ;;  %v2870_v48 = vpop.permute.xlu1 %2869  ;;  %v6306_v26 = vpack.c.bf16 %v9996_v10, %v2880_v9  ;;  %v13087_v9 = vld [vmem:[#allocation28_spill] sm:$0xff]  ;;  %v2900_v30 = vpop.permute.xlu0 %2899  ;;  %v13091_v10 = vld [vmem:[#allocation21_spill] sm:$0xff] }
 0x73b   : > { %v2872_v36 = vsel %vm983_vm7, %v13077_v63, %v2870_v48  ;;  %v2878_v38 = vsel %vm983_vm7, %v2870_v48, %v13078_v19  ;;  %v2905_v35 = vsel %vm1053_vm8, %v2892_v29, %v13087_v9  ;;  %v2907_v63 = vsel %vm1053_vm8, %v13088_v21, %v2892_v29 }
 0x73c   : > { %v10015_v55 = vmul.f32 %v2872_v36, %v13083_v58  ;;  %v10018_v41 = vmul.f32 %v2878_v38, %v13084_v14  ;;  %6307 = vmatprep.subr.bf16.mxu0 %v6306_v26  ;;  %v13089_v36 = vld [vmem:[#allocation27_spill] sm:$0xff]  ;;  %v13090_v26 = vld [vmem:[#allocation56_spill] sm:$0xff]  ;;  %v2911_v58 = vmul.f32 %v2907_v63, %v13091_v10 }
 0x73d   : > { %6309 = vmatpush1.bf16.msra.mxu0 %v6308_v46  ;;  %v13092_v14 = vld [vmem:[#allocation20_spill] sm:$0xff] }
 0x73e   : > { %13085 = vst [vmem:[#allocation37_spill] sm:$0xff] %v10015_v55  ;;  %13086 = vst [vmem:[#allocation33_spill] sm:$0xff] %v10018_v41  ;;  %v6344_v19 = vpack.c.bf16 %v10015_v55, %v2881_v12  ;;  %v2894_v56 = vpop.permute.xlu1 %2893  ;;  %v6342_v48 = vpack.c.bf16 %v10018_v41, %v2882_v39  ;;  %v2912_v1 = vmul.f32 %v2905_v35, %v13092_v14  ;;  %v13096_v55 = vld [vmem:[#allocation23_spill] sm:$0xff] }
 0x73f   : > { %v2906_v38 = vsel %vm1053_vm8, %v2894_v56, %v13089_v36  ;;  %v2908_v7 = vsel %vm1053_vm8, %v13090_v26, %v2894_v56  ;;  %v2903_v39 = vsel %vm1053_vm8, %v13087_v9, %v2900_v30  ;;  %v2909_v12 = vsel %vm1053_vm8, %v2900_v30, %v13088_v21 }
 0x740   : > { %v10037_v29 = vmul.f32 %v2908_v7, %v13091_v10  ;;  %v10040_v46 = vmul.f32 %v2906_v38, %v13092_v14  ;;  %6343 = vmatprep.subr.bf16.mxu1 %v6342_v48  ;;  %v13095_v38 = vld [vmem:[#allocation22_spill] sm:$0xff]  ;;  %v2914_v10 = vmul.f32 %v2909_v12, %v13096_v55 }
 0x741   : > { %6345 = vmatpush1.bf16.msra.mxu1 %v6344_v19  ;;  %v2913_v9 = vmul.f32 %v2903_v39, %v13095_v38  ;;  %v5874_v14 = vld [vmem:[%s12497_s5 + $0x80] sm:$0xff] }
 0x742   : > { %13093 = vst [vmem:[#allocation39_spill] sm:$0xff] %v10037_v29  ;;  %13094 = vst [vmem:[#allocation34_spill] sm:$0xff] %v10040_v46  ;;  %v6312_v63 = vpack.c.bf16 %v10037_v29, %v2911_v58  ;;  %v2902_v56 = vpop.permute.xlu1 %2901  ;;  %v6310_v35 = vpack.c.bf16 %v10040_v46, %v2912_v1  ;;  %v5814_v1 = vld [vmem:[%s12496_s4 + $0x20] sm:$0xff] }
 0x743   : > { %v2904_v7 = vsel %vm1053_vm8, %v13089_v36, %v2902_v56  ;;  %v2910_v48 = vsel %vm1053_vm8, %v2902_v56, %v13090_v26  ;;  %v5817_v36 = vld [vmem:[%s12496_s4 + $0x38] sm:$0xff]  ;;  %v5816_v26 = vld [vmem:[%s12496_s4 + $0x30] sm:$0xff] }
 0x744   : > { %v10059_v21 = vmul.f32 %v2904_v7, %v13095_v38  ;;  %v10062_v58 = vmul.f32 %v2910_v48, %v13096_v55  ;;  %6311 = vmatprep.subr.bf16.mxu0 %v6310_v35 }
 0x745   : > { %6313 = vmatpush1.bf16.msra.mxu0 %v6312_v63 }
 0x746   : > { %13097 = vst [vmem:[#allocation40_spill] sm:$0xff] %v10059_v21  ;;  %13098 = vst [vmem:[#allocation35_spill] sm:$0xff] %v10062_v58  ;;  %v6348_v19 = vpack.c.bf16 %v10059_v21, %v2913_v9  ;;  %v6346_v30 = vpack.c.bf16 %v10062_v58, %v2914_v10  ;;  %v2298_v10 = vpop.permute.xlu0 %2297 }
 0x748   : > { %3000 = vmatmul.mubr.f32.vlgmr.msra.gmra.mrb[28].mxu0 %v5814_v1  ;;  %6347 = vmatprep.subr.bf16.mxu1 %v6346_v30 }
 0x749   : > { %6349 = vmatpush1.bf16.msra.mxu1 %v6348_v19  ;;  %5851 = vmatprep.mubr.msk.f32.mxu0 %vm1764_vm9, %v5817_v36 }
 0x74c   : > { %3006 = vmatmul.mubr.f32.gmra.mrb[30].mxu0 %v5816_v26  ;;  %3077 = vmatmul.mubr.f32.vlgmr.msra.gmra.mrb[28].mxu1 %v5814_v1 }
 0x74d   : > { %5853 = vmatprep.mubr.msk.f32.mxu1 %vm1764_vm9, %v5817_v36 }
 0x750   : > { %3083 = vmatmul.mubr.f32.gmra.mrb[30].mxu1 %v5816_v26 }
 0x753   : > { %v2922_v39 = vpop.permute.xlu1 %2921 }
 0x754   : > { %v6710_v12 = vadd.f32 %v2922_v39, %v2298_v10  ;;  %v2927_v39 = vpop.permute.xlu0 %2926 }
 0x81b   : > { %v3001_v63 = vpop.f32.mrb[28].mxu0 }
 0x81c   : > { %v6711_v56 = vadd.f32 %v6710_v12, %v3001_v63  ;;  %v3003_v35 = vpop.f32.mrb[29].mxu0 }
 0x81d   : > { %v6713_v7 = vadd.f32 %v6710_v12, %v3003_v35 }
 0x81e   : > { %v5854_v48 = vmul.f32 -1.442695, %v6711_v56 }
 0x81f   : > { %v5855_v9 = vmul.f32 -1.442695, %v6713_v7  ;;  %v3007_v19 = vpop.f32.mrb[30].mxu0  ;;  %v3078_v30 = vpop.f32.mrb[28].mxu1 }
 0x820   : > { %6971 = vpow2.f32 %v5854_v48  ;;  %v6715_v21 = vadd.f32 %v6710_v12, %v3078_v30  ;;  %v3009_v29 = vpop.f32.mrb[31].mxu0  ;;  %v3080_v58 = vpop.f32.mrb[29].mxu1  ;;  %v3008_v10 = vadd.f32 %v3007_v19, %v2927_v39 }
 0x821   : > { %6973 = vpow2.f32 %v5855_v9  ;;  %v6717_v1 = vadd.f32 %v6710_v12, %v3080_v58  ;;  %v3010_v63 = vadd.f32 %v3009_v29, %v2927_v39 }
 0x822   : > { %v5856_v46 = vmul.f32 -1.442695, %v6715_v21 }
 0x823   : > { %v5857_v36 = vmul.f32 -1.442695, %v6717_v1  ;;  %v3084_v26 = vpop.f32.mrb[30].mxu1 }
 0x824   : > { %6975 = vpow2.f32 %v5856_v46  ;;  %v3086_v55 = vpop.f32.mrb[31].mxu1  ;;  %v3085_v38 = vadd.f32 %v3084_v26, %v2927_v39 }
 0x825   : > { %6977 = vpow2.f32 %v5857_v36  ;;  %v3087_v30 = vadd.f32 %v3086_v55, %v2927_v39 }
 0x826   : > { %6979 = vtanh.f32 %v3008_v10 }
 0x827   : > { %6981 = vtanh.f32 %v3010_v63 }
 0x82a   : > { %v6972_v35 = vpop.eup %6971 }
 0x82b   : > { %v6974_v56 = vpop.eup %6973  ;;  %v3105_v7 = vadd.f32 1.0, %v6972_v35 }
 0x82c   : > { %v3106_v48 = vadd.f32 1.0, %v6974_v56  ;;  %v13103_v56 = vld [vmem:[#allocation48_spill] sm:$0xff] }
 0x82d   : > { %6983 = vrcp.f32 %v3105_v7  ;;  %v13104_v7 = vld [vmem:[#allocation45_spill] sm:$0xff] }
 0x82e   : > { %v6976_v9 = vpop.eup %6975  ;;  %6985 = vrcp.f32 %v3106_v48  ;;  %v10117_v48 = vpop.permute.xlu0 %3176 }
 0x82f   : > { %v6978_v21 = vpop.eup %6977  ;;  %v3107_v58 = vadd.f32 1.0, %v6976_v9  ;;  %6987 = vtanh.f32 %v3085_v38 }
 0x830   : > { %v3108_v46 = vadd.f32 1.0, %v6978_v21  ;;  %6989 = vtanh.f32 %v3087_v30  ;;  %v6980_v12 = vpop.eup %6979 }
 0x831   : > { %6991 = vrcp.f32 %v3107_v58  ;;  %v6982_v29 = vpop.eup %6981  ;;  %v13105_v58 = vld [vmem:[#allocation67_spill] sm:$0xff] }
 0x832   : > { %6993 = vrcp.f32 %v3108_v46  ;;  %v10125_v30 = vpop.permute.xlu0 %3180 }
 0x833   : > { %v3195_v49 = vsel %vm563_vm0, %v10117_v48, %v10125_v30 }
 0x836   : > { %v10133_v9 = vpop.permute.xlu0 %3184 }
 0x837   : > { %v6984_v19 = vpop.eup %6983 }
 0x838   : > { %v6986_v1 = vpop.eup %6985  ;;  %v10077_v36 = vmul.f32 %v6984_v19, %v6980_v12  ;;  %v5875_v12 = vld [vmem:[%s12497_s5 + $0x88] sm:$0xff]  ;;  %v5877_v19 = vld [vmem:[%s12497_s5 + $0x98] sm:$0xff] }
 0x839   : > { %v6988_v26 = vpop.eup %6987  ;;  %v10079_v10 = vmul.f32 %v6986_v1, %v6982_v29 }
 0x83a   : > { %13099 = vst [vmem:[#allocation41_spill] sm:$0xff] %v10077_v36  ;;  %v6990_v55 = vpop.eup %6989  ;;  %3125 = vst [vmem:[#allocation2 + $0x20] sm:$0xff] %v10077_v36  ;;  %3174 = vrot.lane.b32.xlu1 %v10077_v36, %s7260_s27  ;;  %v10141_v21 = vpop.permute.xlu0 %3188 }
 0x83b   : > { %13100 = vst [vmem:[#allocation36_spill] sm:$0xff] %v10079_v10  ;;  %v6992_v38 = vpop.eup %6991  ;;  %3126 = vst [vmem:[#allocation2 + $0x28] sm:$0xff] %v10079_v10  ;;  %3210 = vrot.lane.b32.xlu0 %v10079_v10, %s7261_s11 }
 0x83c   : > { %v6994_v39 = vpop.eup %6993  ;;  %v10087_v63 = vmul.f32 %v6992_v38, %v6988_v26 }
 0x83d   : > { %v10089_v35 = vmul.f32 %v6994_v39, %v6990_v55  ;;  %v10188_v39 = vpop.permute.xlu1 %3208 }
 0x83e   : > { %13101 = vst [vmem:[#allocation42_spill] sm:$0xff] %v10087_v63  ;;  %3127 = vst [vmem:[#allocation2 + $0x30] sm:$0xff] %v10087_v63  ;;  %3182 = vrot.lane.b32.xlu1 %v10087_v63, %s7260_s27  ;;  %v10149_v46 = vpop.permute.xlu0 %3212 }
 0x83f   : > { %13102 = vst [vmem:[#allocation51_spill] sm:$0xff] %v10089_v35  ;;  %3128 = vst [vmem:[#allocation2 + $0x38] sm:$0xff] %v10089_v35  ;;  %3218 = vrot.lane.b32.xlu0 %v10089_v35, %s7261_s11 }
 0x842   : > { %3206 = vrot.lane.b32.xlu1 %v10077_v36, %s7261_s11  ;;  %v10160_v29 = vpop.permute.xlu0 %3220 }
 0x843   : > { %3372 = vrot.lane.b32.xlu0 %v13103_v56, %s7266_s24 }
 0x846   : > { %3214 = vrot.lane.b32.xlu1 %v10087_v63, %s7261_s11  ;;  %v10170_v1 = vpop.permute.xlu0 %3240 }
 0x847   : > { %3380 = vrot.lane.b32.xlu0 %v9606_v22, %s7266_s24 }
 0x84a   : > { %3238 = vrot.lane.b32.xlu1 %v10077_v36, %s7262_s12  ;;  %v10176_v26 = vpop.permute.xlu0 %3244 }
 0x84b   : > { %3274 = vrot.lane.b32.xlu0 %v10079_v10, %s7263_s13 }
 0x84e   : > { %3246 = vrot.lane.b32.xlu1 %v10087_v63, %s7262_s12  ;;  %v10180_v55 = vpop.permute.xlu0 %3248 }
 0x84f   : > { %3282 = vrot.lane.b32.xlu0 %v10089_v35, %s7263_s13 }
 0x852   : > { %3270 = vrot.lane.b32.xlu1 %v10077_v36, %s7263_s13  ;;  %v10186_v38 = vpop.permute.xlu0 %3252 }
 0x853   : > { %3400 = vrot.lane.b32.xlu0 %v13104_v7, %s7267_s28 }
 0x856   : > { %3278 = vrot.lane.b32.xlu1 %v10087_v63, %s7263_s13 }
 0x857   : > { %3306 = vrot.lane.b32.xlu0 %v10079_v10, %s7264_s17 }
 0x85a   : > { %3302 = vrot.lane.b32.xlu1 %v10077_v36, %s7264_s17 }
 0x85b   : > { %3314 = vrot.lane.b32.xlu0 %v10089_v35, %s7264_s17 }
 0x85e   : > { %3310 = vrot.lane.b32.xlu1 %v10087_v63, %s7264_s17 }
 0x85f   : > { %3404 = vrot.lane.b32.xlu0 %v13103_v56, %s7267_s28  ;;  %v10192_v56 = vpop.permute.xlu0 %3276 }
 0x862   : > { %3334 = vrot.lane.b32.xlu1 %v10077_v36, %s7265_s18 }
 0x863   : > { %3370 = vrot.lane.b32.xlu0 %v10079_v10, %s7266_s24 }
 0x866   : > { %3342 = vrot.lane.b32.xlu1 %v10087_v63, %s7265_s18 }
 0x867   : > { %3378 = vrot.lane.b32.xlu0 %v10089_v35, %s7266_s24 }
 0x86a   : > { %3178 = vrot.lane.b32.xlu1 %v10079_v10, %s7260_s27 }
 0x86b   : > { %3408 = vrot.lane.b32.xlu0 %v13105_v58, %s7267_s28 }
 0x86e   : > { %3186 = vrot.lane.b32.xlu1 %v10089_v35, %s7260_s27 }
 0x86f   : > { %3412 = vrot.lane.b32.xlu0 %v9606_v22, %s7267_s28  ;;  %v5873_v22 = vld [vmem:[%s12497_s5 + $0x78] sm:$0xff] }
 0x872   : > { %3366 = vrot.lane.b32.xlu1 %v10077_v36, %s7266_s24 }
 0x873   : > { %3447 = vperm.xlu0 %6785, %v5875_v12   ;;  %v3217_v12 = vpop.permute.xlu1 %3216 }
 0x876   : > { %3242 = vrot.lane.b32.xlu1 %v10079_v10, %s7262_s12 }
 0x877   : > { %3457 = vperm.xlu0 %6785, %v5877_v19   ;;  %v5859_v19 = vld [vmem:[%s12495_s3 + $0x78] sm:$0xff] }
 0x878   : > { %5885 = vmatprep.mubr.msk.f32.mxu0 %vm1134_vm3, %v5859_v19  ;;  %5892 = vmatprep.mubr.msk.f32.mxu1 %vm1134_vm3, %v5859_v19  ;;  %v5876_v19 = vld [vmem:[%s12497_s5 + $0x90] sm:$0xff] }
 0x87a   : > { %3250 = vrot.lane.b32.xlu1 %v10089_v35, %s7262_s12 }
 0x87b   : > { %3437 = vperm.xlu0 %6785, %v5873_v22  }
 0x87e   : > { %3374 = vrot.lane.b32.xlu1 %v10087_v63, %s7266_s24 }
 0x882   : > { %3368 = vrot.lane.b32.xlu1 %v13104_v7, %s7266_s24  ;;  %v10196_v7 = vpop.permute.xlu1 %3272 }
 0x886   : > { %3376 = vrot.lane.b32.xlu1 %v13105_v58, %s7266_s24  ;;  %v10200_v58 = vpop.permute.xlu0 %3284  ;;  %v10209_v22 = vpop.permute.xlu1 %3280 }
 0x88a   : > { %3398 = vrot.lane.b32.xlu1 %v10077_v36, %s7267_s28  ;;  %v10211_v41 = vpop.permute.xlu0 %3308  ;;  %v10218_v43 = vpop.permute.xlu1 %3304 }
 0x88b   : > { %13106 = vst [vmem:[#allocation66_spill] sm:$0xff] %v10211_v41  ;;  %13107 = vst [vmem:[#allocation30_spill] sm:$0xff] %v10218_v43 }
 0x88e   : > { %3338 = vrot.lane.b32.xlu1 %v10079_v10, %s7265_s18  ;;  %v10220_v31 = vpop.permute.xlu0 %3316  ;;  %v10230_v11 = vpop.permute.xlu1 %3312 }
 0x88f   : > { %13108 = vst [vmem:[#allocation29_spill] sm:$0xff] %v10220_v31  ;;  %13110 = vst [vmem:[#allocation49_spill] sm:$0xff] %v10230_v11 }
 0x892   : > { %3346 = vrot.lane.b32.xlu1 %v10089_v35, %s7265_s18  ;;  %v10225_v28 = vpop.permute.xlu0 %3336 }
 0x893   : > { %13109 = vst [vmem:[#allocation50_spill] sm:$0xff] %v10225_v28 }
 0x896   : > { %3406 = vrot.lane.b32.xlu1 %v10087_v63, %s7267_s28  ;;  %v10232_v42 = vpop.permute.xlu0 %3340 }
 0x897   : > { %13111 = vst [vmem:[#allocation59_spill] sm:$0xff] %v10232_v42 }
 0x89a   : > { %3402 = vrot.lane.b32.xlu1 %v10079_v10, %s7267_s28  ;;  %v10234_v36 = vpop.permute.xlu0 %3344 }
 0x89b   : > { %13112 = vst [vmem:[#allocation57_spill] sm:$0xff] %v10234_v36 }
 0x89e   : > { %3410 = vrot.lane.b32.xlu1 %v10089_v35, %s7267_s28  ;;  %v10236_v35 = vpop.permute.xlu0 %3348 }
 0x89f   : > { %13113 = vst [vmem:[#allocation28_spill] sm:$0xff] %v10236_v35 }
 0x8a2   : > { %3442 = vperm.xlu1 %6786, %v5874_v14  }
 0x8a6   : > { %3452 = vperm.xlu1 %6786, %v5876_v19  }
 0x8aa   : > { %3432 = vperm.xlu1 %6786, %v5872_v37  }
 0x8ac   : > { %v3175_v63 = vpop.permute.xlu1 %3174 }
 0x8ad   : > { %v3211_v28 = vpop.permute.xlu0 %3210 }
 0x8b0   : > { %v3183_v14 = vpop.permute.xlu1 %3182 }
 0x8b1   : > { %v3219_v57 = vpop.permute.xlu0 %3218 }
 0x8b4   : > { %v3207_v40 = vpop.permute.xlu1 %3206 }
 0x8b5   : > { %v10246_v37 = vpop.permute.xlu0 %3372  ;;  %v3226_v4 = vsel %vm633_vm1, %v3207_v40, %v3211_v28 }
 0x8b6   : > { %13114 = vst [vmem:[#allocation61_spill] sm:$0xff] %v10246_v37  ;;  %v3197_v37 = vsel %vm563_vm0, %v10141_v21, %v10117_v48  ;;  %v3231_v60 = vmul.f32 %v3226_v4, %v7595_v24 }
 0x8b7   : > { %v3202_v48 = vmul.f32 %v3197_v37, %v7541_v53 }
 0x8b8   : > { %v3215_v15 = vpop.permute.xlu1 %3214 }
 0x8b9   : > { %v10252_v36 = vpop.permute.xlu0 %3380  ;;  %v3222_v37 = vsel %vm633_vm1, %v3215_v15, %v3219_v57  ;;  %v3224_v13 = vsel %vm633_vm1, %v3211_v28, %v3215_v15 }
 0x8ba   : > { %13117 = vst [vmem:[#allocation48_spill] sm:$0xff] %v10252_v36  ;;  %v3191_v36 = vsel %vm563_vm0, %v10133_v9, %v10141_v21 }
 0x8bb   : > { %v3205_v27 = vmul.f32 %v3191_v36, %v7544_v54  ;;  %v3228_v36 = vsel %vm633_vm1, %v3219_v57, %v3207_v40 }
 0x8bc   : > { %v10238_v19 = vpop.permute.xlu1 %3238 }
 0x8bd   : > { %v10256_v35 = vpop.permute.xlu0 %3274 }
 0x8c0   : > { %v10240_v3 = vpop.permute.xlu1 %3246 }
 0x8c1   : > { %v10277_v16 = vpop.permute.xlu0 %3282 }
 0x8c4   : > { %v10242_v10 = vpop.permute.xlu1 %3270 }
 0x8c8   : > { %v10244_v31 = vpop.permute.xlu1 %3278 }
 0x8cc   : > { %v10248_v42 = vpop.permute.xlu1 %3302 }
 0x8cd   : > { %13115 = vst [vmem:[#allocation27_spill] sm:$0xff] %v10248_v42  ;;  %v3203_v42 = vmul.f32 %v3195_v49, %v13120_v2 }
 0x8d0   : > { %v10250_v43 = vpop.permute.xlu1 %3310 }
 0x8d1   : > { %13116 = vst [vmem:[#allocation56_spill] sm:$0xff] %v10250_v43 }
 0x8d4   : > { %v10254_v41 = vpop.permute.xlu1 %3334 }
 0x8d5   : > { %13118 = vst [vmem:[#allocation45_spill] sm:$0xff] %v10254_v41 }
 0x8d8   : > { %v10258_v11 = vpop.permute.xlu1 %3342 }
 0x8d9   : > { %13119 = vst [vmem:[#allocation67_spill] sm:$0xff] %v10258_v11  ;;  %v3193_v11 = vsel %vm563_vm0, %v10125_v30, %v10133_v9  ;;  %v3225_v30 = vsel %vm633_vm1, %v10149_v46, %v3217_v12  ;;  %v3227_v9 = vsel %vm633_vm1, %v10188_v39, %v10149_v46 }
 0x8da   : > { %v3235_v4 = vmul.f32 %v3227_v9, %v7595_v24  ;;  %v3236_v40 = vmul.f32 %v3225_v30, %v7598_v32  ;;  %v3259_v9 = vsel %vm703_vm2, %v10170_v1, %v10176_v26 }
 0x8dc   : > { %v3179_v41 = vpop.permute.xlu1 %3178 }
 0x8dd   : > { %v3194_v43 = vsel %vm563_vm0, %v3175_v63, %v3179_v41  ;;  %v3192_v21 = vsel %vm563_vm0, %v3179_v41, %v3183_v14  ;;  %v3223_v41 = vsel %vm633_vm1, %v3217_v12, %v10160_v29 }
 0x8de   : > { %v3199_v49 = vmul.f32 %v3194_v43, %v13120_v2  ;;  %v3229_v43 = vsel %vm633_vm1, %v10160_v29, %v10188_v39  ;;  %v3200_v46 = vmul.f32 %v3192_v21, %v7559_v61  ;;  %v3233_v29 = vmul.f32 %v3222_v37, %v7601_v33 }
 0x8e0   : > { %v3187_v2 = vpop.permute.xlu1 %3186  ;;  %v6350_v47 = vpack.c.bf16 %v3203_v42, %v3199_v49  ;;  %v3204_v42 = vmul.f32 %v3193_v11, %v7559_v61  ;;  %v3237_v49 = vmul.f32 %v3223_v41, %v7601_v33  ;;  %v13121_v11 = vld [vmem:[#allocation58_spill] sm:$0xff]  ;;  %v6406_v30 = vpack.c.bf16 %v3233_v29, %v9730_v17 }
 0x8e1   : > { %v3190_v25 = vsel %vm563_vm0, %v3183_v14, %v3187_v2  ;;  %v3196_v12 = vsel %vm563_vm0, %v3187_v2, %v3175_v63  ;;  %v10320_v14 = vpop.permute.xlu0 %3400  ;;  %v3234_v2 = vmul.f32 %v3229_v43, %v7583_v18  ;;  %v3230_v63 = vmul.f32 %v3228_v36, %v7583_v18 }
 0x8e2   : > { %v3198_v39 = vmul.f32 %v3196_v12, %v7541_v53  ;;  %v3201_v57 = vmul.f32 %v3190_v25, %v7544_v54  ;;  %6351 = vmatprep.subr.bf16.mxu0 %v6350_v47  ;;  %v3232_v25 = vmul.f32 %v3224_v13, %v7598_v32  ;;  %v6404_v47 = vpack.c.bf16 %v3204_v42, %v3200_v46 }
 0x8e3   : > { %v6354_v37 = vpack.c.bf16 %v3231_v60, %v13121_v11  ;;  %v6360_v13 = vpack.c.bf16 %v9775_v45, %v3234_v2  ;;  %v3261_v60 = vsel %vm703_vm2, %v10186_v38, %v10170_v1  ;;  %v6356_v17 = vpack.c.bf16 %v3230_v63, %v9727_v20 }
 0x8e4   : > { %v6352_v15 = vpack.c.bf16 %v3202_v48, %v3198_v39  ;;  %v10324_v28 = vpop.permute.xlu1 %3366  ;;  %v6402_v21 = vpack.c.bf16 %v3205_v27, %v3201_v57  ;;  %v6358_v27 = vpack.c.bf16 %v9751_v23, %v3235_v4  ;;  %v6412_v48 = vpack.c.bf16 %v9764_v52, %v3236_v40 }
 0x8e5   : > { %v3255_v43 = vsel %vm703_vm2, %v10180_v55, %v10186_v38  ;;  %v6408_v23 = vpack.c.bf16 %v3232_v25, %v9714_v59  ;;  %v10347_v36 = vpop.permute.xlu0 %3306  ;;  %v6410_v45 = vpack.c.bf16 %v9778_v6, %v3237_v49  ;;  %v3267_v1 = vmul.f32 %v3259_v9, %v7676_v44 }
 0x8e6   : > { %6353 = vmatpush1.bf16.msra.mxu0 %v6352_v15  ;;  %6403 = vmatprep.subr.bf16.mxu1 %v6402_v21  ;;  %v3290_v20 = vsel %vm773_vm4, %v10242_v10, %v10256_v35  ;;  %v3257_v46 = vsel %vm703_vm2, %v10176_v26, %v10180_v55  ;;  %v3266_v6 = vmul.f32 %v3261_v60, %v7701_v8 }
 0x8e7   : > { %6355 = vmatprep.subr.bf16.mxu0 %v6354_v37  ;;  %6405 = vmatpush1.bf16.msra.mxu1 %v6404_v47  ;;  %v3286_v12 = vsel %vm773_vm4, %v10244_v31, %v10277_v16  ;;  %v3269_v29 = vmul.f32 %v3255_v43, %v7693_v62  ;;  %v3291_v39 = vsel %vm773_vm4, %v10196_v7, %v10192_v56  ;;  %v13122_v37 = vld [vmem:[#allocation7_spill] sm:$0xff] }
 0x8e8   : > { %6407 = vmatprep.subr.bf16.mxu1 %v6406_v30  ;;  %v3243_v41 = vpop.permute.xlu1 %3242  ;;  %v3292_v26 = vsel %vm773_vm4, %v10277_v16, %v10242_v10  ;;  %v3295_v42 = vmul.f32 %v3290_v20, %v7746_v51  ;;  %v3288_v16 = vsel %vm773_vm4, %v10256_v35, %v10244_v31  ;;  %v3297_v10 = vmul.f32 %v3286_v12, %v7760_v0  ;;  %v13125_v43 = vld [vmem:[#allocation63_spill] sm:$0xff] }
 0x8e9   : > { %v3258_v52 = vsel %vm703_vm2, %v10238_v19, %v3243_v41  ;;  %v3256_v38 = vsel %vm703_vm2, %v3243_v41, %v10240_v3  ;;  %v3268_v21 = vmul.f32 %v3257_v46, %v7696_v5  ;;  %v3315_v31 = vpop.permute.xlu0 %3314  ;;  %v3299_v35 = vmul.f32 %v3291_v39, %v7746_v51  ;;  %v13129_v46 = vld [vmem:[#allocation64_spill] sm:$0xff]  ;;  %v13130_v12 = vld [vmem:[#allocation27_spill] sm:$0xff] }
 0x8ea   : > { %v3263_v59 = vmul.f32 %v3258_v52, %v7676_v44  ;;  %6357 = vmatpush1.bf16.msra.mxu0 %v6356_v17  ;;  %v3264_v4 = vmul.f32 %v3256_v38, %v7696_v5  ;;  %v3294_v49 = vmul.f32 %v3292_v26, %v7743_v50  ;;  %v3296_v30 = vmul.f32 %v3288_v16, %v13122_v37  ;;  %v13128_v38 = vld [vmem:[#allocation56_spill] sm:$0xff]  ;;  %v13131_v39 = vld [vmem:[#allocation31_spill] sm:$0xff] }
 0x8eb   : > { %6359 = vmatprep.subr.bf16.mxu0 %v6358_v27  ;;  %6409 = vmatpush1.bf16.msra.mxu1 %v6408_v23 }
 0x8ec   : > { %6411 = vmatprep.subr.bf16.mxu1 %v6410_v45  ;;  %v3251_v55 = vpop.permute.xlu1 %3250  ;;  %v6362_v57 = vpack.c.bf16 %v3267_v1, %v3263_v59  ;;  %v6416_v9 = vpack.c.bf16 %v3268_v21, %v3264_v4  ;;  %v6368_v23 = vpack.c.bf16 %v3294_v49, %v13125_v43  ;;  %v13127_v1 = vld [vmem:[#allocation52_spill] sm:$0xff]  ;;  %v3320_v59 = vsel %vm843_vm5, %v10347_v36, %v13128_v38  ;;  %v13134_v4 = vld [vmem:[#allocation66_spill] sm:$0xff] }
 0x8ed   : > { %v3254_v40 = vsel %vm703_vm2, %v10240_v3, %v3251_v55  ;;  %v3260_v2 = vsel %vm703_vm2, %v3251_v55, %v10238_v19  ;;  %v3289_v3 = vsel %vm773_vm4, %v10192_v56, %v10209_v22  ;;  %v3287_v19 = vsel %vm773_vm4, %v10209_v22, %v10200_v58  ;;  %v13123_v22 = vld [vmem:[#allocation26_spill] sm:$0xff]  ;;  %v10422_v45 = vpop.permute.xlu0 %3404  ;;  %v13132_v55 = vld [vmem:[#allocation60_spill] sm:$0xff] }
 0x8ee   : > { %v3262_v63 = vmul.f32 %v3260_v2, %v7701_v8  ;;  %v3265_v15 = vmul.f32 %v3254_v40, %v7693_v62  ;;  %6361 = vmatpush1.bf16.msra.mxu0 %v6360_v13  ;;  %v3293_v56 = vsel %vm773_vm4, %v10200_v58, %v10196_v7  ;;  %v6366_v27 = vpack.c.bf16 %v3295_v42, %v13123_v22  ;;  %v13124_v13 = vld [vmem:[#allocation62_spill] sm:$0xff]  ;;  %v13126_v58 = vld [vmem:[#allocation53_spill] sm:$0xff]  ;;  %v13138_v49 = vld [vmem:[#allocation36_spill] sm:$0xff] }
 0x8ef   : > { %6363 = vmatprep.subr.bf16.mxu0 %v6362_v57  ;;  %6413 = vmatpush1.bf16.msra.mxu1 %v6412_v48  ;;  %v3301_v48 = vmul.f32 %v3287_v19, %v7760_v0  ;;  %v6418_v60 = vpack.c.bf16 %v3297_v10, %v13124_v13  ;;  %v3300_v17 = vmul.f32 %v3289_v3, %v13122_v37  ;;  %v13133_v42 = vld [vmem:[#allocation49_spill] sm:$0xff]  ;;  %v13135_v2 = vld [vmem:[#allocation30_spill] sm:$0xff]  ;;  %v13140_v22 = vld [vmem:[#allocation51_spill] sm:$0xff] }
 0x8f0   : > { %v6364_v25 = vpack.c.bf16 %v3266_v6, %v3262_v63  ;;  %v10406_v47 = vpop.permute.xlu1 %3374  ;;  %v6414_v11 = vpack.c.bf16 %v3269_v29, %v3265_v15  ;;  %v3298_v41 = vmul.f32 %v3293_v56, %v7743_v50  ;;  %v6420_v52 = vpack.c.bf16 %v3296_v30, %v13126_v58  ;;  %v13136_v63 = vld [vmem:[#allocation29_spill] sm:$0xff]  ;;  %v13137_v3 = vld [vmem:[#allocation10_spill] sm:$0xff] }
 0x8f1   : > { %v6370_v20 = vpack.c.bf16 %v13127_v1, %v3299_v35  ;;  %v6422_v6 = vpack.c.bf16 %v13129_v46, %v3301_v48  ;;  %v3324_v29 = vsel %vm843_vm5, %v3315_v31, %v13130_v12  ;;  %v6424_v26 = vpack.c.bf16 %v13131_v39, %v3300_v17  ;;  %v7227_v35 = vld [vmem:[#allocation2 + $0x48] sm:$0xff]  ;;  %v13141_v48 = vld [vmem:[#allocation9_spill] sm:$0xff]  ;;  %v3371_v17 = vpop.permute.xlu0 %3370  ;;  %v7229_v58 = vld [vmem:[#allocation2 + $0x40] sm:$0xff] }
 0x8f2   : > { %6365 = vmatpush1.bf16.msra.mxu0 %v6364_v25  ;;  %6415 = vmatprep.subr.bf16.mxu1 %v6414_v11  ;;  %v6372_v57 = vpack.c.bf16 %v13132_v55, %v3298_v41  ;;  %v3321_v40 = vsel %vm843_vm5, %v13134_v4, %v13133_v42  ;;  %v3323_v16 = vsel %vm843_vm5, %v13135_v2, %v13134_v4  ;;  %v13139_v11 = vld [vmem:[#allocation8_spill] sm:$0xff]  ;;  %v13142_v41 = vld [vmem:[#allocation11_spill] sm:$0xff]  ;;  %v13146_v39 = vld [vmem:[#allocation46_spill] sm:$0xff] }
 0x8f3   : > { %6367 = vmatprep.subr.bf16.mxu0 %v6366_v27  ;;  %6417 = vmatpush1.bf16.msra.mxu1 %v6416_v9  ;;  %v3319_v15 = vsel %vm843_vm5, %v13133_v42, %v13136_v63  ;;  %v3322_v21 = vsel %vm843_vm5, %v13130_v12, %v10347_v36  ;;  %v3327_v19 = vmul.f32 %v3320_v59, %v13137_v3  ;;  %v7228_v9 = vld [vmem:[#allocation2 + $0x58] sm:$0xff]  ;;  %v7230_v46 = vld [vmem:[#allocation2 + $0x50] sm:$0xff]  ;;  %v13149_v4 = vld [vmem:[#allocation59_spill] sm:$0xff] }
 0x8f4   : > { %6419 = vmatprep.subr.bf16.mxu1 %v6418_v60  ;;  %v10419_v7 = vpop.permute.xlu1 %3368  ;;  %v6374_v25 = vpack.c.bf16 %v7227_v35, %v13138_v49  ;;  %v3329_v56 = vmul.f32 %v3324_v29, %v13139_v11  ;;  %v3318_v30 = vsel %vm843_vm5, %v13128_v38, %v3315_v31  ;;  %v6426_v27 = vpack.c.bf16 %v7228_v9, %v13140_v22  ;;  %v13144_v38 = vld [vmem:[#allocation44_spill] sm:$0xff]  ;;  %v13148_v42 = vld [vmem:[#allocation57_spill] sm:$0xff]  ;;  %v13155_v22 = vld [vmem:[#allocation47_spill] sm:$0xff] }
 0x8f5   : > { %v3330_v13 = vmul.f32 %v3323_v16, %v13141_v48  ;;  %v3331_v60 = vmul.f32 %v3321_v40, %v13137_v3  ;;  %v3325_v36 = vsel %vm843_vm5, %v13136_v63, %v13135_v2  ;;  %v3332_v43 = vmul.f32 %v3319_v15, %v13142_v41  ;;  %v13147_v55 = vld [vmem:[#allocation24_spill] sm:$0xff]  ;;  %v13150_v2 = vld [vmem:[#allocation25_spill] sm:$0xff]  ;;  %v13151_v63 = vld [vmem:[#allocation70_spill] sm:$0xff] }
 0x8f6   : > { %6369 = vmatpush1.bf16.msra.mxu0 %v6368_v23  ;;  %v3326_v31 = vmul.f32 %v3322_v21, %v13141_v48  ;;  %v6378_v59 = vpack.c.bf16 %v3327_v19, %v13144_v38  ;;  %v3333_v29 = vmul.f32 %v3325_v36, %v13139_v11  ;;  %v3353_v40 = vsel %vm913_vm6, %v13149_v4, %v13148_v42  ;;  %v13152_v21 = vld [vmem:[#allocation50_spill] sm:$0xff]  ;;  %v13153_v35 = vld [vmem:[#allocation28_spill] sm:$0xff] }
 0x8f7   : > { %6371 = vmatprep.subr.bf16.mxu0 %v6370_v20  ;;  %6421 = vmatpush1.bf16.msra.mxu1 %v6420_v52  ;;  %v13143_v52 = vld [vmem:[#allocation41_spill] sm:$0xff]  ;;  %v3328_v20 = vmul.f32 %v3318_v30, %v13142_v41  ;;  %v6382_v16 = vpack.c.bf16 %v13150_v2, %v3331_v60  ;;  %v6436_v15 = vpack.c.bf16 %v13151_v63, %v3332_v43  ;;  %v13156_v60 = vld [vmem:[#allocation67_spill] sm:$0xff] }
 0x8f8   : > { %6423 = vmatprep.subr.bf16.mxu1 %v6422_v6  ;;  %v10443_v10 = vpop.permute.xlu1 %3376  ;;  %v6376_v1 = vpack.c.bf16 %v7229_v58, %v13143_v52  ;;  %v13145_v6 = vld [vmem:[#allocation42_spill] sm:$0xff]  ;;  %v3355_v19 = vsel %vm913_vm6, %v13152_v21, %v13149_v4  ;;  %v3351_v49 = vsel %vm913_vm6, %v13148_v42, %v13153_v35  ;;  %v3357_v9 = vsel %vm913_vm6, %v13153_v35, %v13152_v21  ;;  %v13157_v43 = vld [vmem:[#allocation45_spill] sm:$0xff]  ;;  %v13158_v52 = vld [vmem:[#allocation12_spill] sm:$0xff] }
 0x8f9   : > { %v6428_v12 = vpack.c.bf16 %v7230_v46, %v13145_v6  ;;  %v13159_v46 = vld [vmem:[#allocation69_spill] sm:$0xff]  ;;  %v13162_v4 = vld [vmem:[#allocation15_spill] sm:$0xff]  ;;  %v3386_v2 = vsel %vm983_vm7, %v10324_v28, %v3371_v17 }
 0x8fa   : > { %6373 = vmatpush1.bf16.msra.mxu0 %v6372_v57  ;;  %v6384_v57 = vpack.c.bf16 %v13147_v55, %v3330_v13  ;;  %v3379_v13 = vpop.permute.xlu0 %3378  ;;  %v13160_v6 = vld [vmem:[#allocation13_spill] sm:$0xff] }
 0x8fb   : > { %6375 = vmatprep.subr.bf16.mxu0 %v6374_v25  ;;  %6425 = vmatpush1.bf16.msra.mxu1 %v6424_v26  ;;  %v6430_v26 = vpack.c.bf16 %v3329_v56, %v13146_v39  ;;  %v13154_v25 = vld [vmem:[#allocation43_spill] sm:$0xff]  ;;  %v3388_v42 = vsel %vm983_vm7, %v3379_v13, %v10324_v28  ;;  %v3382_v35 = vsel %vm983_vm7, %v10406_v47, %v3379_v13  ;;  %v13166_v13 = vld [vmem:[#allocation17_spill] sm:$0xff] }
 0x8fc   : > { %6427 = vmatprep.subr.bf16.mxu1 %v6426_v27  ;;  %v10468_v23 = vpop.permute.xlu1 %3398  ;;  %v6380_v56 = vpack.c.bf16 %v3326_v31, %v13154_v25  ;;  %v6432_v27 = vpack.c.bf16 %v3328_v20, %v13155_v22  ;;  %v3363_v31 = vmul.f32 %v3353_v40, %v13158_v52  ;;  %v6434_v20 = vpack.c.bf16 %v13159_v46, %v3333_v29 }
 0x8fd   : > { %v3365_v40 = vmul.f32 %v3357_v9, %v13162_v4  ;;  %v13165_v9 = vld [vmem:[#allocation61_spill] sm:$0xff] }
 0x8fe   : > { %6377 = vmatpush1.bf16.msra.mxu0 %v6376_v1  ;;  %v3384_v1 = vsel %vm983_vm7, %v3371_v17, %v10406_v47  ;;  %v13164_v17 = vld [vmem:[#allocation16_spill] sm:$0xff] }
 0x8ff   : > { %6379 = vmatprep.subr.bf16.mxu0 %v6378_v59  ;;  %6429 = vmatpush1.bf16.msra.mxu1 %v6428_v12  ;;  %v3362_v12 = vmul.f32 %v3355_v19, %v13160_v6  ;;  %v3409_v19 = vpop.permute.xlu0 %3408 }
 0x900   : > { %6431 = vmatprep.subr.bf16.mxu1 %v6430_v26  ;;  %v3339_v30 = vpop.permute.xlu1 %3338  ;;  %v13161_v26 = vld [vmem:[#allocation14_spill] sm:$0xff] }
 0x901   : > { %v3352_v36 = vsel %vm913_vm6, %v3339_v30, %v13156_v60  ;;  %v3354_v58 = vsel %vm913_vm6, %v13157_v43, %v3339_v30  ;;  %v3364_v55 = vmul.f32 %v3351_v49, %v13161_v26  ;;  %v13163_v49 = vld [vmem:[#allocation18_spill] sm:$0xff]  ;;  %v3393_v30 = vmul.f32 %v3388_v42, %v13164_v17 }
 0x902   : > { %v3359_v59 = vmul.f32 %v3352_v36, %v13158_v52  ;;  %6381 = vmatpush1.bf16.msra.mxu0 %v6380_v56  ;;  %v3358_v63 = vmul.f32 %v3354_v58, %v13160_v6  ;;  %v3391_v56 = vmul.f32 %v3384_v1, %v13163_v49  ;;  %v3390_v58 = vmul.f32 %v3386_v2, %v13166_v13 }
 0x903   : > { %6383 = vmatprep.subr.bf16.mxu0 %v6382_v16  ;;  %6433 = vmatpush1.bf16.msra.mxu1 %v6432_v27  ;;  %v3385_v27 = vsel %vm983_vm7, %v13165_v9, %v10443_v10 }
 0x904   : > { %6435 = vmatprep.subr.bf16.mxu1 %v6434_v20  ;;  %v3347_v29 = vpop.permute.xlu1 %3346  ;;  %v6386_v21 = vpack.c.bf16 %v3363_v31, %v3359_v59  ;;  %v6388_v59 = vpack.c.bf16 %v3362_v12, %v3358_v63  ;;  %v3395_v2 = vmul.f32 %v3385_v27, %v13163_v49  ;;  %v13170_v12 = vld [vmem:[#allocation38_spill] sm:$0xff] }
 0x905   : > { %v3350_v16 = vsel %vm913_vm6, %v13156_v60, %v3347_v29  ;;  %v3356_v28 = vsel %vm913_vm6, %v3347_v29, %v13157_v43  ;;  %v13167_v60 = vld [vmem:[#allocation48_spill] sm:$0xff]  ;;  %v13168_v43 = vld [vmem:[#allocation19_spill] sm:$0xff]  ;;  %v13169_v29 = vld [vmem:[#allocation65_spill] sm:$0xff] }
 0x906   : > { %v3360_v36 = vmul.f32 %v3350_v16, %v13161_v26  ;;  %v3361_v47 = vmul.f32 %v3356_v28, %v13162_v4  ;;  %6385 = vmatpush1.bf16.msra.mxu0 %v6384_v57  ;;  %v3389_v31 = vsel %vm983_vm7, %v13167_v60, %v10419_v7  ;;  %v3392_v1 = vmul.f32 %v3382_v35, %v13168_v43  ;;  %v13171_v63 = vld [vmem:[#allocation54_spill] sm:$0xff] }
 0x907   : > { %6387 = vmatprep.subr.bf16.mxu0 %v6386_v21  ;;  %6437 = vmatpush1.bf16.msra.mxu1 %v6436_v15  ;;  %v3387_v57 = vsel %vm983_vm7, %v10419_v7, %v13165_v9  ;;  %v6390_v16 = vpack.c.bf16 %v3391_v56, %v13169_v29  ;;  %v3397_v28 = vmul.f32 %v3389_v31, %v13164_v17  ;;  %v3413_v7 = vpop.permute.xlu0 %3412  ;;  %v13172_v56 = vld [vmem:[#allocation68_spill] sm:$0xff]  ;;  %v13176_v29 = vld [vmem:[#allocation22_spill] sm:$0xff] }
 0x908   : > { %v6440_v46 = vpack.c.bf16 %v3364_v55, %v3360_v36  ;;  %v3407_v20 = vpop.permute.xlu1 %3406  ;;  %v6438_v42 = vpack.c.bf16 %v3365_v40, %v3361_v47  ;;  %v3383_v15 = vsel %vm983_vm7, %v10443_v10, %v13167_v60  ;;  %v6442_v55 = vpack.c.bf16 %v3393_v30, %v13170_v12  ;;  %v13173_v60 = vld [vmem:[#allocation32_spill] sm:$0xff]  ;;  %v13178_v12 = vld [vmem:[#allocation21_spill] sm:$0xff] }
 0x909   : > { %v3417_v40 = vsel %vm1053_vm8, %v10422_v45, %v3409_v19  ;;  %v6392_v21 = vpack.c.bf16 %v3390_v58, %v13171_v63  ;;  %v3415_v35 = vsel %vm1053_vm8, %v3409_v19, %v3413_v7  ;;  %v6444_v9 = vpack.c.bf16 %v3392_v1, %v13172_v56  ;;  %v13174_v31 = vld [vmem:[#allocation20_spill] sm:$0xff]  ;;  %v13175_v1 = vld [vmem:[#allocation33_spill] sm:$0xff]  ;;  %v13180_v56 = vld [vmem:[#allocation23_spill] sm:$0xff] }
 0x90a   : > { %6389 = vmatpush1.bf16.msra.mxu0 %v6388_v59  ;;  %6439 = vmatprep.subr.bf16.mxu1 %v6438_v42  ;;  %v3394_v10 = vmul.f32 %v3387_v57, %v13166_v13  ;;  %v3396_v30 = vmul.f32 %v3383_v15, %v13168_v43  ;;  %v6394_v58 = vpack.c.bf16 %v13173_v60, %v3395_v2  ;;  %v13179_v63 = vld [vmem:[#allocation37_spill] sm:$0xff]  ;;  %v5861_v60 = vld [vmem:[%s12495_s3 + $0x88] sm:$0xff] }
 0x90b   : > { %6391 = vmatprep.subr.bf16.mxu0 %v6390_v16  ;;  %6441 = vmatpush1.bf16.msra.mxu1 %v6440_v46  ;;  %v3427_v59 = vmul.f32 %v3417_v40, %v13174_v31  ;;  %v6446_v46 = vpack.c.bf16 %v13175_v1, %v3397_v28  ;;  %v3419_v42 = vsel %vm1053_vm8, %v10320_v14, %v10422_v45  ;;  %v13177_v16 = vld [vmem:[#allocation55_spill] sm:$0xff]  ;;  %v5863_v1 = vld [vmem:[%s12495_s3 + $0x98] sm:$0xff] }
 0x90c   : > { %6443 = vmatprep.subr.bf16.mxu1 %v6442_v55  ;;  %v3403_v27 = vpop.permute.xlu1 %3402  ;;  %v3421_v57 = vsel %vm1053_vm8, %v3413_v7, %v10320_v14  ;;  %v3428_v2 = vmul.f32 %v3415_v35, %v13176_v29  ;;  %v6396_v15 = vpack.c.bf16 %v13177_v16, %v3394_v10  ;;  %v3426_v7 = vmul.f32 %v3419_v42, %v13178_v12  ;;  %v5865_v42 = vld [vmem:[%s12495_s3 + $0xa8] sm:$0xff]  ;;  %v5866_v16 = vld [vmem:[%s12495_s3 + $0xb0] sm:$0xff] }
 0x90d   : > { %v3416_v36 = vsel %vm1053_vm8, %v3403_v27, %v3407_v20  ;;  %v3418_v47 = vsel %vm1053_vm8, %v10468_v23, %v3403_v27  ;;  %v3429_v35 = vmul.f32 %v3421_v57, %v13180_v56  ;;  %v5864_v57 = vld [vmem:[%s12495_s3 + $0xa0] sm:$0xff] }
 0x90e   : > { %v3423_v19 = vmul.f32 %v3416_v36, %v13174_v31  ;;  %6393 = vmatpush1.bf16.msra.mxu0 %v6392_v21  ;;  %v3422_v55 = vmul.f32 %v3418_v47, %v13178_v12  ;;  %v6448_v21 = vpack.c.bf16 %v13179_v63, %v3396_v30  ;;  %v5858_v47 = vld [vmem:[%s12495_s3 + $0x70] sm:$0xff] }
 0x90f   : > { %6395 = vmatprep.subr.bf16.mxu0 %v6394_v58  ;;  %6445 = vmatpush1.bf16.msra.mxu1 %v6444_v9  ;;  %v13183_v58 = vld [vmem:[#allocation39_spill] sm:$0xff] }
 0x910   : > { %6447 = vmatprep.subr.bf16.mxu1 %v6446_v46  ;;  %v3411_v40 = vpop.permute.xlu1 %3410  ;;  %v6398_v28 = vpack.c.bf16 %v3427_v59, %v3423_v19  ;;  %v6400_v27 = vpack.c.bf16 %v3426_v7, %v3422_v55  ;;  %v13184_v59 = vld [vmem:[#allocation40_spill] sm:$0xff]  ;;  %v5860_v19 = vld [vmem:[%s12495_s3 + $0x80] sm:$0xff] }
 0x911   : > { %v3414_v45 = vsel %vm1053_vm8, %v3407_v20, %v3411_v40  ;;  %v3420_v14 = vsel %vm1053_vm8, %v3411_v40, %v10468_v23  ;;  %v13181_v20 = vld [vmem:[#allocation34_spill] sm:$0xff]  ;;  %v13182_v23 = vld [vmem:[#allocation35_spill] sm:$0xff]  ;;  %v5862_v46 = vld [vmem:[%s12495_s3 + $0x90] sm:$0xff] }
 0x912   : > { %v3424_v9 = vmul.f32 %v3414_v45, %v13176_v29  ;;  %v3425_v10 = vmul.f32 %v3420_v14, %v13180_v56  ;;  %6397 = vmatpush1.bf16.msra.mxu0 %v6396_v15  ;;  %v5869_v15 = vld [vmem:[%s12495_s3 + $0xc8] sm:$0xff]  ;;  %v5868_v55 = vld [vmem:[%s12495_s3 + $0xc0] sm:$0xff] }
 0x913   : > { %6399 = vmatprep.subr.bf16.mxu0 %v6398_v28  ;;  %6449 = vmatpush1.bf16.msra.mxu1 %v6448_v21  ;;  %v3448_v28 = vpop.permute.xlu0 %3447 }
 0x914   : > { %v6452_v30 = vpack.c.bf16 %v3428_v2, %v3424_v9  ;;  %v6450_v36 = vpack.c.bf16 %v3429_v35, %v3425_v10  ;;  %v5867_v2 = vld [vmem:[%s12495_s3 + $0xb8] sm:$0xff] }
 0x916   : > { %6401 = vmatpush1.bf16.msra.mxu0 %v6400_v27  ;;  %6451 = vmatprep.subr.bf16.mxu1 %v6450_v36 }
 0x917   : > { %3538 = vmatprep.subr.mxu0 %v13181_v20  ;;  %6453 = vmatpush1.bf16.msra.mxu1 %v6452_v30  ;;  %v10641_v21 = vpop.permute.xlu0 %3457 }
 0x918   : > { %3645 = vmatprep.subr.mxu1 %v13182_v23 }
 0x91a   : > { %3539 = vmatpush1.msra.mxu0 %v13183_v58 }
 0x91b   : > { %3551 = vmatmul.mubr.f32.vlgmr.msra.gmra.mrb[32].mxu0 %v5858_v47  ;;  %3646 = vmatpush1.msra.mxu1 %v13184_v59  ;;  %v3438_v36 = vpop.permute.xlu0 %3437 }
 0x91c   : > { %3658 = vmatmul.mubr.f32.vlgmr.msra.gmra.mrb[32].mxu1 %v5858_v47  ;;  %5886 = vmatprep.mubr.msk.f32.mxu0 %vm1134_vm3, %v5861_v60 }
 0x91d   : > { %5893 = vmatprep.mubr.msk.f32.mxu1 %vm1134_vm3, %v5861_v60 }
 0x91f   : > { %3557 = vmatmul.mubr.f32.gmra.mrb[34].mxu0 %v5860_v19 }
 0x920   : > { %3664 = vmatmul.mubr.f32.gmra.mrb[34].mxu1 %v5860_v19  ;;  %5887 = vmatprep.mubr.msk.f32.mxu0 %vm1134_vm3, %v5863_v1 }
 0x921   : > { %5894 = vmatprep.mubr.msk.f32.mxu1 %vm1134_vm3, %v5863_v1  ;;  %v3443_v40 = vpop.permute.xlu1 %3442 }
 0x923   : > { %3563 = vmatmul.mubr.f32.gmra.mrb[36].mxu0 %v5862_v46 }
 0x924   : > { %3670 = vmatmul.mubr.f32.gmra.mrb[36].mxu1 %v5862_v46  ;;  %5888 = vmatprep.mubr.msk.f32.mxu0 %vm1134_vm3, %v5865_v42 }
 0x925   : > { %5895 = vmatprep.mubr.msk.f32.mxu1 %vm1134_vm3, %v5865_v42  ;;  %v10639_v63 = vpop.permute.xlu1 %3452 }
 0x927   : > { %3569 = vmatmul.mubr.f32.gmra.mrb[38].mxu0 %v5864_v57 }
 0x928   : > { %3676 = vmatmul.mubr.f32.gmra.mrb[38].mxu1 %v5864_v57  ;;  %5889 = vmatprep.mubr.msk.f32.mxu0 %vm1134_vm3, %v5867_v2 }
 0x929   : > { %5896 = vmatprep.mubr.msk.f32.mxu1 %vm1134_vm3, %v5867_v2  ;;  %v3433_v45 = vpop.permute.xlu1 %3432 }
 0x92b   : > { %3575 = vmatmul.mubr.f32.gmra.mrb[40].mxu0 %v5866_v16 }
 0x92c   : > { %3682 = vmatmul.mubr.f32.gmra.mrb[40].mxu1 %v5866_v16  ;;  %5890 = vmatprep.mubr.msk.f32.mxu0 %vm1134_vm3, %v5869_v15 }
 0x92d   : > { %5897 = vmatprep.mubr.msk.f32.mxu1 %vm1134_vm3, %v5869_v15 }
 0x92f   : > { %3581 = vmatmul.mubr.f32.gmra.mrb[42].mxu0 %v5868_v55 }
 0x930   : > { %3688 = vmatmul.mubr.f32.gmra.mrb[42].mxu1 %v5868_v55 }
 0x9ee   : > { %v3552_v14 = vpop.f32.mrb[32].mxu0 }
 0x9ef   : > { %v3553_v7 = vadd.f32 %v3552_v14, %v3433_v45  ;;  %v3554_v35 = vpop.f32.mrb[33].mxu0  ;;  %v3659_v9 = vpop.f32.mrb[32].mxu1 }
 0x9f0   : > { %v3555_v10 = vadd.f32 %v3554_v35, %v3433_v45  ;;  %v3661_v27 = vpop.f32.mrb[33].mxu1  ;;  %v3660_v30 = vadd.f32 %v3659_v9, %v3433_v45 }
 0x9f1   : > { %v3662_v20 = vadd.f32 %v3661_v27, %v3433_v45  ;;  %6995 = vtanh.f32 %v3553_v7 }
 0x9f2   : > { %v3558_v23 = vpop.f32.mrb[34].mxu0  ;;  %6997 = vtanh.f32 %v3555_v10 }
 0x9f3   : > { %v3559_v47 = vadd.f32 %v3558_v23, %v3438_v36  ;;  %v3560_v60 = vpop.f32.mrb[35].mxu0  ;;  %v3665_v58 = vpop.f32.mrb[34].mxu1  ;;  %6999 = vtanh.f32 %v3660_v30 }
 0x9f4   : > { %v3561_v59 = vadd.f32 %v3560_v60, %v3438_v36  ;;  %v3667_v19 = vpop.f32.mrb[35].mxu1  ;;  %v3666_v1 = vadd.f32 %v3665_v58, %v3438_v36  ;;  %7001 = vtanh.f32 %v3662_v20 }
 0x9f5   : > { %v3668_v46 = vadd.f32 %v3667_v19, %v3438_v36  ;;  %7003 = vtanh.f32 %v3559_v47 }
 0x9f6   : > { %v3564_v42 = vpop.f32.mrb[36].mxu0  ;;  %7005 = vtanh.f32 %v3561_v59 }
 0x9f7   : > { %v3565_v57 = vadd.f32 %v3564_v42, %v3443_v40  ;;  %v3566_v2 = vpop.f32.mrb[37].mxu0  ;;  %v3671_v16 = vpop.f32.mrb[36].mxu1  ;;  %7007 = vtanh.f32 %v3666_v1 }
 0x9f8   : > { %v3567_v15 = vadd.f32 %v3566_v2, %v3443_v40  ;;  %v3672_v55 = vadd.f32 %v3671_v16, %v3443_v40  ;;  %v3673_v45 = vpop.f32.mrb[37].mxu1  ;;  %7009 = vtanh.f32 %v3668_v46 }
 0x9f9   : > { %v5899_v14 = vmul.f32 -1.442695, %v3565_v57  ;;  %v3674_v7 = vadd.f32 %v3673_v45, %v3443_v40 }
 0x9fa   : > { %v5900_v35 = vmul.f32 -1.442695, %v3567_v15  ;;  %v5901_v9 = vmul.f32 -1.442695, %v3672_v55  ;;  %v3570_v10 = vpop.f32.mrb[38].mxu0 }
 0x9fb   : > { %7011 = vpow2.f32 %v5899_v14  ;;  %v5902_v27 = vmul.f32 -1.442695, %v3674_v7  ;;  %v3571_v30 = vadd.f32 %v3570_v10, %v3448_v28  ;;  %v3572_v36 = vpop.f32.mrb[39].mxu0  ;;  %v3677_v20 = vpop.f32.mrb[38].mxu1 }
 0x9fc   : > { %7013 = vpow2.f32 %v5900_v35  ;;  %v3573_v23 = vadd.f32 %v3572_v36, %v3448_v28  ;;  %v3678_v47 = vadd.f32 %v3677_v20, %v3448_v28  ;;  %v3679_v60 = vpop.f32.mrb[39].mxu1  ;;  %v10643_v58 = vpop.eup %6995 }
 0x9fd   : > { %7015 = vpow2.f32 %v5901_v9  ;;  %v5903_v59 = vmul.f32 -1.442695, %v3571_v30  ;;  %v3680_v19 = vadd.f32 %v3679_v60, %v3448_v28  ;;  %v10645_v1 = vpop.eup %6997 }
 0x9fe   : > { %7017 = vpow2.f32 %v5902_v27  ;;  %v5904_v40 = vmul.f32 -1.442695, %v3573_v23  ;;  %v5905_v46 = vmul.f32 -1.442695, %v3678_v47  ;;  %v3576_v42 = vpop.f32.mrb[40].mxu0  ;;  %v10647_v57 = vpop.eup %6999 }
 0x9ff   : > { %7019 = vpow2.f32 %v5903_v59  ;;  %v5906_v2 = vmul.f32 -1.442695, %v3680_v19  ;;  %v3577_v16 = vadd.f32 %v3576_v42, %v10639_v63  ;;  %v3578_v15 = vpop.f32.mrb[41].mxu0  ;;  %v3683_v55 = vpop.f32.mrb[40].mxu1 }
 0xa00   : > { %v10650_v45 = vpop.eup %7001  ;;  %7021 = vpow2.f32 %v5904_v40  ;;  %v3579_v14 = vadd.f32 %v3578_v15, %v10639_v63  ;;  %v3684_v28 = vadd.f32 %v3683_v55, %v10639_v63  ;;  %v3685_v7 = vpop.f32.mrb[41].mxu1 }
 0xa01   : > { %v10654_v35 = vpop.eup %7003  ;;  %7023 = vpow2.f32 %v5905_v46  ;;  %v5907_v9 = vmul.f32 -1.442695, %v3577_v16  ;;  %v3686_v10 = vadd.f32 %v3685_v7, %v10639_v63 }
 0xa02   : > { %v10657_v27 = vpop.eup %7005  ;;  %7025 = vpow2.f32 %v5906_v2  ;;  %v5908_v30 = vmul.f32 -1.442695, %v3579_v14  ;;  %v5909_v36 = vmul.f32 -1.442695, %v3684_v28  ;;  %v3582_v20 = vpop.f32.mrb[42].mxu0 }
 0xa03   : > { %v10659_v23 = vpop.eup %7007  ;;  %7027 = vpow2.f32 %v5907_v9  ;;  %v5910_v47 = vmul.f32 -1.442695, %v3686_v10  ;;  %v3583_v60 = vadd.f32 %v3582_v20, %v10641_v21  ;;  %v3584_v59 = vpop.f32.mrb[43].mxu0 }
 0xa04   : > { %v3689_v19 = vpop.f32.mrb[42].mxu1  ;;  %v10662_v40 = vpop.eup %7009  ;;  %7029 = vpow2.f32 %v5908_v30 }
 0xa05   : > { %v3691_v46 = vpop.f32.mrb[43].mxu1  ;;  %v7012_v42 = vpop.eup %7011  ;;  %7031 = vpow2.f32 %v5909_v36  ;;  %v5911_v63 = vmul.f32 -1.442695, %v3583_v60 }
 0xa06   : > { %v7014_v16 = vpop.eup %7013  ;;  %v3756_v2 = vadd.f32 1.0, %v7012_v42  ;;  %7033 = vpow2.f32 %v5910_v47 }
 0xa07   : > { %v7016_v15 = vpop.eup %7015  ;;  %v3757_v55 = vadd.f32 1.0, %v7014_v16  ;;  %7035 = vpow2.f32 %v5911_v63  ;;  %v3585_v63 = vadd.f32 %v3584_v59, %v10641_v21 }
 0xa08   : > { %v7018_v14 = vpop.eup %7017  ;;  %7037 = vrcp.f32 %v3756_v2  ;;  %v3758_v28 = vadd.f32 1.0, %v7016_v15  ;;  %v3690_v15 = vadd.f32 %v3689_v19, %v10641_v21 }
 0xa09   : > { %v7020_v7 = vpop.eup %7019  ;;  %7039 = vrcp.f32 %v3757_v55  ;;  %v3759_v9 = vadd.f32 1.0, %v7018_v14 }
 0xa0a   : > { %v7022_v10 = vpop.eup %7021  ;;  %7041 = vrcp.f32 %v3758_v28  ;;  %v3760_v20 = vadd.f32 1.0, %v7020_v7  ;;  %v3692_v28 = vadd.f32 %v3691_v46, %v10641_v21  ;;  %v3170_v21 = vld [vmem:[#allocation3 + $0x40] sm:$0xff] }
 0xa0b   : > { %v7024_v30 = vpop.eup %7023  ;;  %7043 = vrcp.f32 %v3759_v9  ;;  %v3761_v56 = vadd.f32 1.0, %v7022_v10 }
 0xa0c   : > { %v7026_v36 = vpop.eup %7025  ;;  %7045 = vrcp.f32 %v3760_v20  ;;  %v3762_v60 = vadd.f32 1.0, %v7024_v30  ;;  %v5914_v19 = vmul.f32 -1.442695, %v3692_v28 }
 0xa0d   : > { %v7028_v42 = vpop.eup %7027  ;;  %7047 = vrcp.f32 %v3761_v56  ;;  %v3763_v47 = vadd.f32 1.0, %v7026_v36  ;;  %v5912_v56 = vmul.f32 -1.442695, %v3585_v63  ;;  %v5913_v36 = vmul.f32 -1.442695, %v3690_v15 }
 0xa0e   : > { %v7030_v16 = vpop.eup %7029  ;;  %7049 = vrcp.f32 %v3762_v60  ;;  %v3764_v2 = vadd.f32 1.0, %v7028_v42 }
 0xa0f   : > { %v7032_v55 = vpop.eup %7031  ;;  %7051 = vrcp.f32 %v3763_v47  ;;  %v3765_v14 = vadd.f32 1.0, %v7030_v16 }
 0xa10   : > { %v7034_v7 = vpop.eup %7033  ;;  %7053 = vrcp.f32 %v3764_v2  ;;  %v3766_v9 = vadd.f32 1.0, %v7032_v55  ;;  %v3171_v55 = vld [vmem:[#allocation3 + $0x48] sm:$0xff] }
 0xa11   : > { %v7036_v10 = vpop.eup %7035  ;;  %7055 = vrcp.f32 %v3765_v14  ;;  %v3767_v20 = vadd.f32 1.0, %v7034_v7  ;;  %v3172_v7 = vld [vmem:[#allocation3 + $0x50] sm:$0xff] }
 0xa12   : > { %v7038_v30 = vpop.eup %7037  ;;  %7057 = vrcp.f32 %v3766_v9  ;;  %v3768_v59 = vadd.f32 1.0, %v7036_v10 }
 0xa13   : > { %v7040_v60 = vpop.eup %7039  ;;  %v3808_v42 = vmul.f32 %v7038_v30, %v10643_v58  ;;  %7059 = vrcp.f32 %v3767_v20  ;;  %v3173_v58 = vld [vmem:[#allocation3 + $0x58] sm:$0xff] }
 0xa14   : > { %v7042_v47 = vpop.eup %7041  ;;  %v3809_v16 = vmul.f32 %v7040_v60, %v10645_v1  ;;  %7061 = vrcp.f32 %v3768_v59 }
 0xa15   : > { %v7044_v46 = vpop.eup %7043  ;;  %v3810_v2 = vmul.f32 %v7042_v47, %v10647_v57  ;;  %7063 = vpow2.f32 %v5912_v56 }
 0xa16   : > { %v7046_v63 = vpop.eup %7045  ;;  %v3811_v14 = vmul.f32 %v7044_v46, %v10650_v45  ;;  %7065 = vpow2.f32 %v5913_v36 }
 0xa17   : > { %v7048_v15 = vpop.eup %7047  ;;  %v3804_v9 = vmul.f32 %v7046_v63, %v3170_v21  ;;  %7067 = vpow2.f32 %v5914_v19 }
 0xa18   : > { %v7050_v28 = vpop.eup %7049  ;;  %v3805_v10 = vmul.f32 %v7048_v15, %v3171_v55 }
 0xa19   : > { %v7052_v20 = vpop.eup %7051  ;;  %v10671_v1 = vadd.f32 %v3808_v42, %v3804_v9  ;;  %v3806_v30 = vmul.f32 %v7050_v28, %v3172_v7 }
 0xa1a   : > { %v7054_v59 = vpop.eup %7053  ;;  %v10673_v60 = vadd.f32 %v3809_v16, %v3805_v10  ;;  %v3807_v57 = vmul.f32 %v7052_v20, %v3173_v58 }
 0xa1b   : > { %v7056_v56 = vpop.eup %7055  ;;  %4294 = vst [vmem:[#allocation3 + $0x40] sm:$0xff] %v10671_v1  ;;  %v10676_v45 = vadd.f32 %v3810_v2, %v3806_v30  ;;  %v3820_v36 = vmul.f32 %v7054_v59, %v10654_v35  ;;  %3828 = vrot.lane.b32.xlu1 %v10671_v1, %s7260_s27 }
 0xa1c   : > { %v7058_v19 = vpop.eup %7057  ;;  %4295 = vst [vmem:[#allocation3 + $0x48] sm:$0xff] %v10673_v60  ;;  %v10682_v42 = vadd.f32 %v3811_v14, %v3807_v57  ;;  %v3821_v47 = vmul.f32 %v7056_v56, %v10657_v27  ;;  %v5878_v57 = vld [vmem:[%s12497_s5 + $0xa0] sm:$0xff] }
 0xa1d   : > { %v7060_v16 = vpop.eup %7059  ;;  %4296 = vst [vmem:[#allocation3 + $0x50] sm:$0xff] %v10676_v45  ;;  %v3822_v21 = vmul.f32 %v7058_v19, %v10659_v23  ;;  %v5884_v19 = vld [vmem:[%s12498_s6 + $0x28] sm:$0xff] }
 0xa1e   : > { %v7062_v46 = vpop.eup %7061  ;;  %4297 = vst [vmem:[#allocation3 + $0x58] sm:$0xff] %v10682_v42  ;;  %v3823_v35 = vmul.f32 %v7060_v16, %v10662_v40 }
 0xa1f   : > { %v7064_v2 = vpop.eup %7063  ;;  %v3816_v55 = vmul.f32 %v7062_v46, %v13154_v25  ;;  %3836 = vrot.lane.b32.xlu1 %v10676_v45, %s7260_s27  ;;  %v10847_v46 = vld [vmem:[#allocation2 + $0x60] sm:$0xff] }
 0xa20   : > { %v7066_v63 = vpop.eup %7065  ;;  %v3769_v14 = vadd.f32 1.0, %v7064_v2  ;;  %13189 = vst [vmem:[#allocation53_spill] sm:$0xff] %v10847_v46 }
 0xa21   : > { %v7068_v7 = vpop.eup %7067  ;;  %v10692_v27 = vadd.f32 %v3820_v36, %v3816_v55  ;;  %v3770_v15 = vadd.f32 1.0, %v7066_v63  ;;  %v5871_v36 = vld [vmem:[%s12495_s3 + $0xd8] sm:$0xff]  ;;  %v10862_v63 = vld [vmem:[#allocation2 + $0x68] sm:$0xff] }
 0xa22   : > { %7069 = vrcp.f32 %v3769_v14  ;;  %v3771_v9 = vadd.f32 1.0, %v7068_v7  ;;  %5891 = vmatprep.mubr.msk.f32.mxu0 %vm1134_vm3, %v5871_v36  ;;  %5898 = vmatprep.mubr.msk.f32.mxu1 %vm1134_vm3, %v5871_v36  ;;  %13190 = vst [vmem:[#allocation52_spill] sm:$0xff] %v10862_v63 }
 0xa23   : > { %13185 = vst [vmem:[#allocation58_spill] sm:$0xff] %v10692_v27  ;;  %7071 = vrcp.f32 %v3770_v15  ;;  %3830 = vrot.lane.b32.xlu0 %v10692_v27, %s7260_s27  ;;  %3860 = vrot.lane.b32.xlu1 %v10671_v1, %s7261_s11  ;;  %v10872_v15 = vld [vmem:[#allocation2 + $0x70] sm:$0xff] }
 0xa24   : > { %7073 = vrcp.f32 %v3771_v9  ;;  %13191 = vst [vmem:[#allocation56_spill] sm:$0xff] %v10872_v15 }
 0xa27   : > { %3868 = vrot.lane.b32.xlu1 %v10676_v45, %s7261_s11 }
 0xa2b   : > { %3892 = vrot.lane.b32.xlu1 %v10671_v1, %s7262_s12 }
 0xa2c   : > { %v7070_v25 = vpop.eup %7069 }
 0xa2d   : > { %v7072_v23 = vpop.eup %7071  ;;  %v3817_v40 = vmul.f32 %v7070_v25, %v13144_v38  ;;  %v5883_v25 = vld [vmem:[%s12498_s6 + $0x20] sm:$0xff] }
 0xa2e   : > { %v7074_v58 = vpop.eup %7073  ;;  %v3818_v28 = vmul.f32 %v7072_v23, %v13155_v22 }
 0xa2f   : > { %v10704_v10 = vadd.f32 %v3821_v47, %v3817_v40  ;;  %v3819_v20 = vmul.f32 %v7074_v58, %v13146_v39  ;;  %3900 = vrot.lane.b32.xlu1 %v10676_v45, %s7262_s12  ;;  %v5870_v47 = vld [vmem:[%s12495_s3 + $0xd0] sm:$0xff]  ;;  %v10885_v40 = vld [vmem:[#allocation2 + $0x78] sm:$0xff] }
 0xa30   : > { %v10709_v30 = vadd.f32 %v3822_v21, %v3818_v28  ;;  %3587 = vmatmul.mubr.f32.gmra.mrb[44].mxu0 %v5870_v47  ;;  %3694 = vmatmul.mubr.f32.gmra.mrb[44].mxu1 %v5870_v47 }
 0xa31   : > { %13186 = vst [vmem:[#allocation26_spill] sm:$0xff] %v10704_v10  ;;  %v10711_v59 = vadd.f32 %v3823_v35, %v3819_v20  ;;  %v5880_v35 = vld [vmem:[%s12496_s4 + $0x48] sm:$0xff] }
 0xa32   : > { %13187 = vst [vmem:[#allocation62_spill] sm:$0xff] %v10709_v30  ;;  %3838 = vrot.lane.b32.xlu0 %v10709_v30, %s7260_s27  ;;  %5915 = vmatprep.mubr.msk.f32.mxu0 %vm1764_vm9, %v5880_v35 }
 0xa33   : > { %13188 = vst [vmem:[#allocation63_spill] sm:$0xff] %v10711_v59  ;;  %3924 = vrot.lane.b32.xlu1 %v10671_v1, %s7263_s13  ;;  %5917 = vmatprep.mubr.msk.f32.mxu1 %vm1764_vm9, %v5880_v35 }
 0xa36   : > { %3862 = vrot.lane.b32.xlu0 %v10692_v27, %s7261_s11 }
 0xa37   : > { %3932 = vrot.lane.b32.xlu1 %v10676_v45, %s7263_s13 }
 0xa3a   : > { %3870 = vrot.lane.b32.xlu0 %v10709_v30, %s7261_s11 }
 0xa3b   : > { %3956 = vrot.lane.b32.xlu1 %v10671_v1, %s7264_s17 }
 0xa3e   : > { %3894 = vrot.lane.b32.xlu0 %v10692_v27, %s7262_s12 }
 0xa3f   : > { %3964 = vrot.lane.b32.xlu1 %v10676_v45, %s7264_s17 }
 0xa42   : > { %3902 = vrot.lane.b32.xlu0 %v10709_v30, %s7262_s12 }
 0xa43   : > { %3988 = vrot.lane.b32.xlu1 %v10671_v1, %s7265_s18 }
 0xa46   : > { %3926 = vrot.lane.b32.xlu0 %v10692_v27, %s7263_s13 }
 0xa47   : > { %3996 = vrot.lane.b32.xlu1 %v10676_v45, %s7265_s18 }
 0xa4a   : > { %3934 = vrot.lane.b32.xlu0 %v10709_v30, %s7263_s13 }
 0xa4b   : > { %4020 = vrot.lane.b32.xlu1 %v10671_v1, %s7266_s24 }
 0xa4e   : > { %3958 = vrot.lane.b32.xlu0 %v10692_v27, %s7264_s17 }
 0xa4f   : > { %4028 = vrot.lane.b32.xlu1 %v10676_v45, %s7266_s24 }
 0xa52   : > { %3966 = vrot.lane.b32.xlu0 %v10709_v30, %s7264_s17 }
 0xa53   : > { %4052 = vrot.lane.b32.xlu1 %v10671_v1, %s7267_s28 }
 0xa56   : > { %3990 = vrot.lane.b32.xlu0 %v10692_v27, %s7265_s18 }
 0xa57   : > { %4060 = vrot.lane.b32.xlu1 %v10676_v45, %s7267_s28 }
 0xa5a   : > { %3998 = vrot.lane.b32.xlu0 %v10709_v30, %s7265_s18 }
 0xa5b   : > { %3832 = vrot.lane.b32.xlu1 %v10673_v60, %s7260_s27 }
 0xa5e   : > { %4022 = vrot.lane.b32.xlu0 %v10692_v27, %s7266_s24 }
 0xa5f   : > { %3840 = vrot.lane.b32.xlu1 %v10682_v42, %s7260_s27 }
 0xa62   : > { %4030 = vrot.lane.b32.xlu0 %v10709_v30, %s7266_s24 }
 0xa63   : > { %3864 = vrot.lane.b32.xlu1 %v10673_v60, %s7261_s11 }
 0xa66   : > { %4054 = vrot.lane.b32.xlu0 %v10692_v27, %s7267_s28 }
 0xa67   : > { %3872 = vrot.lane.b32.xlu1 %v10682_v42, %s7261_s11 }
 0xa6a   : > { %4062 = vrot.lane.b32.xlu0 %v10709_v30, %s7267_s28 }
 0xa6b   : > { %3896 = vrot.lane.b32.xlu1 %v10673_v60, %s7262_s12 }
 0xa6e   : > { %3834 = vrot.lane.b32.xlu0 %v10704_v10, %s7260_s27 }
 0xa6f   : > { %3904 = vrot.lane.b32.xlu1 %v10682_v42, %s7262_s12 }
 0xa72   : > { %3842 = vrot.lane.b32.xlu0 %v10711_v59, %s7260_s27 }
 0xa73   : > { %3928 = vrot.lane.b32.xlu1 %v10673_v60, %s7263_s13 }
 0xa76   : > { %3866 = vrot.lane.b32.xlu0 %v10704_v10, %s7261_s11 }
 0xa77   : > { %3936 = vrot.lane.b32.xlu1 %v10682_v42, %s7263_s13 }
 0xa7a   : > { %3874 = vrot.lane.b32.xlu0 %v10711_v59, %s7261_s11 }
 0xa7b   : > { %3960 = vrot.lane.b32.xlu1 %v10673_v60, %s7264_s17 }
 0xa7e   : > { %3898 = vrot.lane.b32.xlu0 %v10704_v10, %s7262_s12 }
 0xa7f   : > { %3968 = vrot.lane.b32.xlu1 %v10682_v42, %s7264_s17 }
 0xa82   : > { %3906 = vrot.lane.b32.xlu0 %v10711_v59, %s7262_s12 }
 0xa83   : > { %3992 = vrot.lane.b32.xlu1 %v10673_v60, %s7265_s18 }
 0xa86   : > { %3930 = vrot.lane.b32.xlu0 %v10704_v10, %s7263_s13 }
 0xa87   : > { %4000 = vrot.lane.b32.xlu1 %v10682_v42, %s7265_s18 }
 0xa8a   : > { %3938 = vrot.lane.b32.xlu0 %v10711_v59, %s7263_s13 }
 0xa8b   : > { %4024 = vrot.lane.b32.xlu1 %v10673_v60, %s7266_s24 }
 0xa8d   : > { %v10805_v38 = vpop.permute.xlu1 %3828 }
 0xa8e   : > { %3962 = vrot.lane.b32.xlu0 %v10704_v10, %s7264_s17 }
 0xa8f   : > { %4032 = vrot.lane.b32.xlu1 %v10682_v42, %s7266_s24 }
 0xa91   : > { %v10811_v39 = vpop.permute.xlu1 %3836 }
 0xa92   : > { %3970 = vrot.lane.b32.xlu0 %v10711_v59, %s7264_s17 }
 0xa93   : > { %4056 = vrot.lane.b32.xlu1 %v10673_v60, %s7267_s28 }
 0xa95   : > { %v10817_v22 = vpop.permute.xlu1 %3860  ;;  %v10845_v21 = vpop.permute.xlu0 %3830 }
 0xa96   : > { %3994 = vrot.lane.b32.xlu0 %v10704_v10, %s7265_s18 }
 0xa97   : > { %4064 = vrot.lane.b32.xlu1 %v10682_v42, %s7267_s28 }
 0xa99   : > { %v10826_v56 = vpop.permute.xlu1 %3868 }
 0xa9a   : > { %4002 = vrot.lane.b32.xlu0 %v10711_v59, %s7265_s18 }
 0xa9b   : > { %3462 = vperm.xlu1 %6786, %v5878_v57  }
 0xa9d   : > { %v10841_v16 = vpop.permute.xlu1 %3892 }
 0xa9e   : > { %4026 = vrot.lane.b32.xlu0 %v10704_v10, %s7266_s24 }
 0xa9f   : > { %4091 = vperm.xlu1 %6786, %v5884_v19  }
 0xaa1   : > { %v10852_v2 = vpop.permute.xlu1 %3900 }
 0xaa2   : > { %4034 = vrot.lane.b32.xlu0 %v10711_v59, %s7266_s24 }
 0xaa3   : > { %4341 = vrot.lane.b32.xlu1 %v10847_v46, %s7260_s27 }
 0xaa4   : > { %v10860_v55 = vpop.permute.xlu0 %3838 }
 0xaa5   : > { %v10864_v14 = vpop.permute.xlu1 %3924 }
 0xaa6   : > { %4058 = vrot.lane.b32.xlu0 %v10704_v10, %s7267_s28 }
 0xaa7   : > { %4345 = vrot.lane.b32.xlu1 %v10862_v63, %s7260_s27 }
 0xaa8   : > { %v10870_v7 = vpop.permute.xlu0 %3862 }
 0xaa9   : > { %v10874_v9 = vpop.permute.xlu1 %3932 }
 0xaaa   : > { %4066 = vrot.lane.b32.xlu0 %v10711_v59, %s7267_s28 }
 0xaab   : > { %4349 = vrot.lane.b32.xlu1 %v10872_v15, %s7260_s27 }
 0xaac   : > { %v10883_v23 = vpop.permute.xlu0 %3870 }
 0xaad   : > { %v10887_v58 = vpop.permute.xlu1 %3956 }
 0xaae   : > { %4086 = vperm.xlu0 %6785, %v5883_v25  }
 0xaaf   : > { %4353 = vrot.lane.b32.xlu1 %v10885_v40, %s7260_s27 }
 0xab0   : > { %v10891_v28 = vpop.permute.xlu0 %3894 }
 0xab1   : > { %v10893_v20 = vpop.permute.xlu1 %3964 }
 0xab2   : > { %4373 = vrot.lane.b32.xlu0 %v10847_v46, %s7261_s11 }
 0xab3   : > { %4377 = vrot.lane.b32.xlu1 %v10862_v63, %s7261_s11 }
 0xab4   : > { %v10899_v57 = vpop.permute.xlu0 %3902 }
 0xab5   : > { %v10901_v36 = vpop.permute.xlu1 %3988 }
 0xab6   : > { %13192 = vst [vmem:[#allocation64_spill] sm:$0xff] %v10901_v36  ;;  %4381 = vrot.lane.b32.xlu0 %v10872_v15, %s7261_s11 }
 0xab7   : > { %4385 = vrot.lane.b32.xlu1 %v10885_v40, %s7261_s11 }
 0xab8   : > { %v10907_v19 = vpop.permute.xlu0 %3926 }
 0xab9   : > { %v10909_v47 = vpop.permute.xlu1 %3996 }
 0xaba   : > { %13193 = vst [vmem:[#allocation27_spill] sm:$0xff] %v10909_v47  ;;  %4437 = vrot.lane.b32.xlu0 %v10847_v46, %s7263_s13  ;;  %v13204_v47 = vld [vmem:[#allocation6_spill] sm:$0xff] }
 0xabb   : > { %4405 = vrot.lane.b32.xlu1 %v10847_v46, %s7262_s12 }
 0xabc   : > { %v10915_v35 = vpop.permute.xlu0 %3934 }
 0xabd   : > { %v10917_v25 = vpop.permute.xlu1 %4020 }
 0xabe   : > { %13194 = vst [vmem:[#allocation31_spill] sm:$0xff] %v10917_v25  ;;  %4445 = vrot.lane.b32.xlu0 %v10872_v15, %s7263_s13 }
 0xabf   : > { %4409 = vrot.lane.b32.xlu1 %v10862_v63, %s7262_s12 }
 0xac0   : > { %v10923_v29 = vpop.permute.xlu0 %3958 }
 0xac1   : > { %v10925_v31 = vpop.permute.xlu1 %4028 }
 0xac2   : > { %13195 = vst [vmem:[#allocation60_spill] sm:$0xff] %v10925_v31  ;;  %4469 = vrot.lane.b32.xlu0 %v10847_v46, %s7264_s17 }
 0xac3   : > { %4413 = vrot.lane.b32.xlu1 %v10872_v15, %s7262_s12 }
 0xac4   : > { %v10931_v12 = vpop.permute.xlu0 %3966 }
 0xac5   : > { %v10933_v17 = vpop.permute.xlu1 %4052 }
 0xac6   : > { %13196 = vst [vmem:[#allocation49_spill] sm:$0xff] %v10933_v17  ;;  %4477 = vrot.lane.b32.xlu0 %v10872_v15, %s7264_s17 }
 0xac7   : > { %4417 = vrot.lane.b32.xlu1 %v10885_v40, %s7262_s12 }
 0xac8   : > { %v10939_v43 = vpop.permute.xlu0 %3990 }
 0xac9   : > { %13197 = vst [vmem:[#allocation66_spill] sm:$0xff] %v10939_v43  ;;  %v10941_v49 = vpop.permute.xlu1 %4060 }
 0xaca   : > { %13198 = vst [vmem:[#allocation30_spill] sm:$0xff] %v10941_v49 }
 0xacb   : > { %4441 = vrot.lane.b32.xlu1 %v10862_v63, %s7263_s13 }
 0xacc   : > { %v10945_v13 = vpop.permute.xlu0 %3998 }
 0xacd   : > { %13199 = vst [vmem:[#allocation29_spill] sm:$0xff] %v10945_v13  ;;  %v3833_v25 = vpop.permute.xlu1 %3832 }
 0xacf   : > { %4449 = vrot.lane.b32.xlu1 %v10885_v40, %s7263_s13 }
 0xad0   : > { %v10949_v17 = vpop.permute.xlu0 %4022 }
 0xad1   : > { %13200 = vst [vmem:[#allocation36_spill] sm:$0xff] %v10949_v17  ;;  %v3841_v31 = vpop.permute.xlu1 %3840  ;;  %v3848_v17 = vsel %vm563_vm0, %v10805_v38, %v3833_v25 }
 0xad2   : > { %v3853_v36 = vmul.f32 %v3848_v17, %v13204_v47  ;;  %v3844_v11 = vsel %vm563_vm0, %v10811_v39, %v3841_v31  ;;  %v3846_v17 = vsel %vm563_vm0, %v3833_v25, %v10811_v39 }
 0xad3   : > { %4473 = vrot.lane.b32.xlu1 %v10862_v63, %s7264_s17  ;;  %v3855_v39 = vmul.f32 %v3844_v11, %v7544_v54 }
 0xad4   : > { %v10953_v4 = vpop.permute.xlu0 %4030 }
 0xad5   : > { %13201 = vst [vmem:[#allocation51_spill] sm:$0xff] %v10953_v4  ;;  %v3865_v26 = vpop.permute.xlu1 %3864 }
 0xad7   : > { %4481 = vrot.lane.b32.xlu1 %v10885_v40, %s7264_s17 }
 0xad8   : > { %v10957_v49 = vpop.permute.xlu0 %4054 }
 0xad9   : > { %13202 = vst [vmem:[#allocation41_spill] sm:$0xff] %v10957_v49  ;;  %v3873_v52 = vpop.permute.xlu1 %3872 }
 0xadb   : > { %4501 = vrot.lane.b32.xlu1 %v10847_v46, %s7265_s18 }
 0xadc   : > { %v10961_v43 = vpop.permute.xlu0 %4062 }
 0xadd   : > { %13203 = vst [vmem:[#allocation44_spill] sm:$0xff] %v10961_v43  ;;  %v10963_v13 = vpop.permute.xlu1 %3896 }
 0xadf   : > { %4505 = vrot.lane.b32.xlu1 %v10862_v63, %s7265_s18  ;;  %v3850_v63 = vsel %vm563_vm0, %v3841_v31, %v10805_v38 }
 0xae0   : > { %v3835_v4 = vpop.permute.xlu0 %3834 }
 0xae1   : > { %v3849_v49 = vsel %vm563_vm0, %v10845_v21, %v3835_v4  ;;  %v3905_v6 = vpop.permute.xlu1 %3904  ;;  %v3847_v46 = vsel %vm563_vm0, %v3835_v4, %v10860_v55 }
 0xae2   : > { %v10978_v43 = vmul.f32 %v3849_v49, %v13204_v47  ;;  %v10993_v49 = vmul.f32 %v3847_v46, %v7559_v61 }
 0xae3   : > { %4509 = vrot.lane.b32.xlu1 %v10872_v15, %s7265_s18  ;;  %v3852_v15 = vmul.f32 %v3850_v63, %v7541_v53 }
 0xae4   : > { %13205 = vst [vmem:[#allocation42_spill] sm:$0xff] %v10978_v43  ;;  %v3843_v41 = vpop.permute.xlu0 %3842  ;;  %v6454_v4 = vpack.c.bf16 %v10978_v43, %v3853_v36  ;;  %v3854_v36 = vmul.f32 %v3846_v17, %v7559_v61 }
 0xae5   : > { %v3845_v47 = vsel %vm563_vm0, %v10860_v55, %v3843_v41  ;;  %v3851_v31 = vsel %vm563_vm0, %v3843_v41, %v10845_v21  ;;  %v11001_v38 = vpop.permute.xlu1 %3928  ;;  %v3880_v55 = vsel %vm633_vm1, %v10817_v22, %v3865_v26 }
 0xae6   : > { %v11006_v25 = vmul.f32 %v3851_v31, %v7541_v53  ;;  %v11009_v46 = vmul.f32 %v3845_v47, %v7544_v54  ;;  %6455 = vmatprep.subr.bf16.mxu0 %v6454_v4  ;;  %v6492_v63 = vpack.c.bf16 %v10993_v49, %v3854_v36  ;;  %v3885_v17 = vmul.f32 %v3880_v55, %v7595_v24 }
 0xae7   : > { %4513 = vrot.lane.b32.xlu1 %v10885_v40, %s7265_s18  ;;  %v3878_v36 = vsel %vm633_vm1, %v3865_v26, %v10826_v56 }
 0xae8   : > { %v6456_v41 = vpack.c.bf16 %v11006_v25, %v3852_v15  ;;  %v3867_v21 = vpop.permute.xlu0 %3866  ;;  %v6490_v11 = vpack.c.bf16 %v11009_v46, %v3855_v39  ;;  %v3876_v15 = vsel %vm633_vm1, %v10826_v56, %v3873_v52  ;;  %v3882_v39 = vsel %vm633_vm1, %v3873_v52, %v10817_v22 }
 0xae9   : > { %v3881_v47 = vsel %vm633_vm1, %v10870_v7, %v3867_v21  ;;  %v11023_v4 = vpop.permute.xlu1 %3936  ;;  %v3879_v31 = vsel %vm633_vm1, %v3867_v21, %v10883_v23  ;;  %v3884_v52 = vmul.f32 %v3882_v39, %v7583_v18  ;;  %v3887_v22 = vmul.f32 %v3876_v15, %v7601_v33 }
 0xaea   : > { %v11030_v43 = vmul.f32 %v3881_v47, %v7595_v24  ;;  %6457 = vmatpush1.bf16.msra.mxu0 %v6456_v41  ;;  %6491 = vmatprep.subr.bf16.mxu1 %v6490_v11  ;;  %v11043_v47 = vmul.f32 %v3879_v31, %v7598_v32 }
 0xaeb   : > { %6493 = vmatpush1.bf16.msra.mxu1 %v6492_v63 }
 0xaec   : > { %v3875_v55 = vpop.permute.xlu0 %3874  ;;  %v6458_v21 = vpack.c.bf16 %v11030_v43, %v3885_v17  ;;  %v3886_v17 = vmul.f32 %v3878_v36, %v7598_v32 }
 0xaed   : > { %v3877_v41 = vsel %vm633_vm1, %v10883_v23, %v3875_v55  ;;  %v3883_v11 = vsel %vm633_vm1, %v3875_v55, %v10870_v7  ;;  %v11059_v63 = vpop.permute.xlu1 %3960  ;;  %v3912_v7 = vsel %vm703_vm2, %v10841_v16, %v10963_v13 }
 0xaee   : > { %v11054_v26 = vmul.f32 %v3883_v11, %v7583_v18  ;;  %v11057_v56 = vmul.f32 %v3877_v41, %v7601_v33  ;;  %6459 = vmatprep.subr.bf16.mxu0 %v6458_v21  ;;  %v6496_v39 = vpack.c.bf16 %v11043_v47, %v3886_v17  ;;  %v3917_v21 = vmul.f32 %v3912_v7, %v7676_v44 }
 0xaef   : > { %v3908_v11 = vsel %vm703_vm2, %v10852_v2, %v3905_v6 }
 0xaf0   : > { %v6460_v23 = vpack.c.bf16 %v11054_v26, %v3884_v52  ;;  %v3899_v31 = vpop.permute.xlu0 %3898  ;;  %v6494_v15 = vpack.c.bf16 %v11057_v56, %v3887_v22  ;;  %v3914_v52 = vsel %vm703_vm2, %v3905_v6, %v10841_v16  ;;  %v3910_v22 = vsel %vm703_vm2, %v10963_v13, %v10852_v2 }
 0xaf1   : > { %v3913_v55 = vsel %vm703_vm2, %v10891_v28, %v3899_v31  ;;  %v3911_v36 = vsel %vm703_vm2, %v3899_v31, %v10899_v57  ;;  %v3969_v31 = vpop.permute.xlu1 %3968  ;;  %v3916_v16 = vmul.f32 %v3914_v52, %v7701_v8 }
 0xaf2   : > { %v11077_v41 = vmul.f32 %v3913_v55, %v7676_v44  ;;  %6461 = vmatpush1.bf16.msra.mxu0 %v6460_v23  ;;  %6495 = vmatprep.subr.bf16.mxu1 %v6494_v15  ;;  %v11091_v23 = vmul.f32 %v3911_v36, %v7696_v5  ;;  %v3918_v55 = vmul.f32 %v3910_v22, %v7696_v5 }
 0xaf3   : > { %6497 = vmatpush1.bf16.msra.mxu1 %v6496_v39  ;;  %v3919_v39 = vmul.f32 %v3908_v11, %v7693_v62 }
 0xaf4   : > { %13206 = vst [vmem:[#allocation46_spill] sm:$0xff] %v11077_v41  ;;  %v3907_v17 = vpop.permute.xlu0 %3906  ;;  %v6462_v7 = vpack.c.bf16 %v11077_v41, %v3917_v21  ;;  %13207 = vst [vmem:[#allocation24_spill] sm:$0xff] %v11091_v23  ;;  %v6500_v11 = vpack.c.bf16 %v11091_v23, %v3918_v55 }
 0xaf5   : > { %v3909_v15 = vsel %vm703_vm2, %v10899_v57, %v3907_v17  ;;  %v3915_v6 = vsel %vm703_vm2, %v3907_v17, %v10891_v28  ;;  %v3944_v57 = vsel %vm773_vm4, %v10864_v14, %v11001_v38 }
 0xaf6   : > { %v11102_v13 = vmul.f32 %v3915_v6, %v7701_v8  ;;  %v11105_v2 = vmul.f32 %v3909_v15, %v7693_v62  ;;  %6463 = vmatprep.subr.bf16.mxu0 %v6462_v7  ;;  %v3949_v17 = vmul.f32 %v3944_v57, %v7746_v51  ;;  %v3993_v15 = vpop.permute.xlu1 %3992  ;;  %v3940_v6 = vsel %vm773_vm4, %v10874_v9, %v11023_v4 }
 0xaf8   : > { %13208 = vst [vmem:[#allocation57_spill] sm:$0xff] %v11102_v13  ;;  %13209 = vst [vmem:[#allocation59_spill] sm:$0xff] %v11105_v2  ;;  %v6464_v28 = vpack.c.bf16 %v11102_v13, %v3916_v16  ;;  %v3931_v21 = vpop.permute.xlu0 %3930  ;;  %v6498_v36 = vpack.c.bf16 %v11105_v2, %v3919_v39  ;;  %v3946_v16 = vsel %vm773_vm4, %v11023_v4, %v10864_v14 }
 0xaf9   : > { %v3945_v52 = vsel %vm773_vm4, %v10907_v19, %v3931_v21  ;;  %v3943_v22 = vsel %vm773_vm4, %v3931_v21, %v10915_v35  ;;  %v3942_v39 = vsel %vm773_vm4, %v11001_v38, %v10874_v9  ;;  %v3948_v4 = vmul.f32 %v3946_v16, %v7743_v50 }
 0xafa   : > { %v11123_v7 = vmul.f32 %v3945_v52, %v7746_v51  ;;  %6465 = vmatpush1.bf16.msra.mxu0 %v6464_v28  ;;  %6499 = vmatprep.subr.bf16.mxu1 %v6498_v36  ;;  %v11139_v28 = vmul.f32 %v3943_v22, %v13122_v37  ;;  %v3951_v36 = vmul.f32 %v3940_v6, %v7760_v0  ;;  %v4001_v16 = vpop.permute.xlu1 %4000 }
 0xafb   : > { %6501 = vmatpush1.bf16.msra.mxu1 %v6500_v11  ;;  %v3950_v11 = vmul.f32 %v3942_v39, %v13122_v37  ;;  %v6470_v22 = vpack.c.bf16 %v10704_v10, %v10673_v60  ;;  %v6506_v6 = vpack.c.bf16 %v10711_v59, %v10682_v42  ;;  %v3976_v39 = vsel %vm843_vm5, %v10887_v58, %v11059_v63 }
 0xafc   : > { %13210 = vst [vmem:[#allocation25_spill] sm:$0xff] %v11123_v7  ;;  %v3939_v55 = vpop.permute.xlu0 %3938  ;;  %v6466_v57 = vpack.c.bf16 %v11123_v7, %v3949_v17  ;;  %13211 = vst [vmem:[#allocation70_spill] sm:$0xff] %v11139_v28  ;;  %v3972_v42 = vsel %vm843_vm5, %v10893_v20, %v3969_v31 }
 0xafd   : > { %v3941_v21 = vsel %vm773_vm4, %v10915_v35, %v3939_v55  ;;  %v3947_v14 = vsel %vm773_vm4, %v3939_v55, %v10907_v19  ;;  %v3974_v35 = vsel %vm843_vm5, %v11059_v63, %v10893_v20  ;;  %v6504_v55 = vpack.c.bf16 %v11139_v28, %v3950_v11  ;;  %v13277_v28 = vld [vmem:[#allocation6_spill] sm:$0xff] }
 0xafe   : > { %v11150_v9 = vmul.f32 %v3947_v14, %v7743_v50  ;;  %v11153_v38 = vmul.f32 %v3941_v21, %v7760_v0  ;;  %6467 = vmatprep.subr.bf16.mxu0 %v6466_v57  ;;  %v3981_v60 = vmul.f32 %v3974_v35, %v13137_v3  ;;  %v3978_v63 = vsel %vm843_vm5, %v3969_v31, %v10887_v58 }
 0xaff   : > { %v6472_v11 = vpack.c.bf16 %v10692_v27, %v10671_v1  ;;  %v6508_v35 = vpack.c.bf16 %v10709_v30, %v10676_v45  ;;  %v13218_v1 = vld [vmem:[#allocation64_spill] sm:$0xff]  ;;  %v13223_v30 = vld [vmem:[#allocation29_spill] sm:$0xff] }
 0xb00   : > { %13212 = vst [vmem:[#allocation50_spill] sm:$0xff] %v11150_v9  ;;  %13213 = vst [vmem:[#allocation28_spill] sm:$0xff] %v11153_v38  ;;  %v6468_v19 = vpack.c.bf16 %v11150_v9, %v3948_v4  ;;  %v3963_v52 = vpop.permute.xlu0 %3962  ;;  %v6502_v17 = vpack.c.bf16 %v11153_v38, %v3951_v36 }
 0xb01   : > { %v3975_v57 = vsel %vm843_vm5, %v3963_v52, %v10931_v12  ;;  %v3977_v21 = vsel %vm843_vm5, %v10923_v29, %v3963_v52  ;;  %v13216_v52 = vld [vmem:[#allocation11_spill] sm:$0xff] }
 0xb02   : > { %v11182_v14 = vmul.f32 %v3975_v57, %v13137_v3  ;;  %6469 = vmatpush1.bf16.msra.mxu0 %v6468_v19  ;;  %6503 = vmatprep.subr.bf16.mxu1 %v6502_v17  ;;  %v11188_v4 = vmul.f32 %v3977_v21, %v13141_v48  ;;  %v3980_v19 = vmul.f32 %v3976_v39, %v13141_v48  ;;  %v4025_v57 = vpop.permute.xlu1 %4024  ;;  %v13221_v21 = vld [vmem:[#allocation27_spill] sm:$0xff] }
 0xb03   : > { %6471 = vmatprep.subr.bf16.mxu0 %v6470_v22  ;;  %6505 = vmatpush1.bf16.msra.mxu1 %v6504_v55  ;;  %v3982_v17 = vmul.f32 %v3972_v42, %v13216_v52  ;;  %v13217_v22 = vld [vmem:[#allocation8_spill] sm:$0xff]  ;;  %v4008_v55 = vsel %vm913_vm6, %v13218_v1, %v3993_v15 }
 0xb04   : > { %13214 = vst [vmem:[#allocation43_spill] sm:$0xff] %v11182_v14  ;;  %13215 = vst [vmem:[#allocation47_spill] sm:$0xff] %v11188_v4  ;;  %v3971_v36 = vpop.permute.xlu0 %3970  ;;  %6507 = vmatprep.subr.bf16.mxu1 %v6506_v6  ;;  %v6474_v20 = vpack.c.bf16 %v11182_v14, %v3981_v60  ;;  %v3983_v6 = vmul.f32 %v3978_v63, %v13217_v22 }
 0xb05   : > { %v3973_v58 = vsel %vm843_vm5, %v10931_v12, %v3971_v36  ;;  %v3979_v31 = vsel %vm843_vm5, %v3971_v36, %v10923_v29  ;;  %v4006_v12 = vsel %vm913_vm6, %v3993_v15, %v13221_v21  ;;  %v6476_v29 = vpack.c.bf16 %v11188_v4, %v3980_v19  ;;  %v13222_v36 = vld [vmem:[#allocation13_spill] sm:$0xff]  ;;  %v13225_v15 = vld [vmem:[#allocation12_spill] sm:$0xff]  ;;  %v5937_v4 = vld [vmem:[%s12497_s5 + $0xa8] sm:$0xff] }
 0xb06   : > { %v11208_v45 = vmul.f32 %v3973_v58, %v13216_v52  ;;  %v11211_v39 = vmul.f32 %v3979_v31, %v13217_v22  ;;  %6473 = vmatpush1.bf16.msra.mxu0 %v6472_v11  ;;  %v4012_v58 = vmul.f32 %v4008_v55, %v13222_v36  ;;  %v13224_v31 = vld [vmem:[#allocation66_spill] sm:$0xff] }
 0xb07   : > { %6475 = vmatprep.subr.bf16.mxu0 %v6474_v20  ;;  %6509 = vmatpush1.bf16.msra.mxu1 %v6508_v35  ;;  %v4013_v20 = vmul.f32 %v4006_v12, %v13225_v15 }
 0xb08   : > { %13219 = vst [vmem:[#allocation67_spill] sm:$0xff] %v11208_v45  ;;  %13220 = vst [vmem:[#allocation45_spill] sm:$0xff] %v11211_v39  ;;  %v6512_v60 = vpack.c.bf16 %v11208_v45, %v3982_v17  ;;  %v3995_v42 = vpop.permute.xlu0 %3994  ;;  %v6510_v63 = vpack.c.bf16 %v11211_v39, %v3983_v6  ;;  %v4004_v17 = vsel %vm913_vm6, %v13221_v21, %v4001_v16  ;;  %v13228_v21 = vld [vmem:[#allocation14_spill] sm:$0xff] }
 0xb09   : > { %v4007_v11 = vsel %vm913_vm6, %v3995_v42, %v13223_v30  ;;  %v4009_v27 = vsel %vm913_vm6, %v13224_v31, %v3995_v42  ;;  %v4010_v6 = vsel %vm913_vm6, %v4001_v16, %v13218_v1  ;;  %v4033_v42 = vpop.permute.xlu1 %4032 }
 0xb0a   : > { %v11228_v35 = vmul.f32 %v4009_v27, %v13222_v36  ;;  %v11231_v19 = vmul.f32 %v4007_v11, %v13225_v15  ;;  %6477 = vmatpush1.bf16.msra.mxu0 %v6476_v29  ;;  %6511 = vmatprep.subr.bf16.mxu1 %v6510_v63  ;;  %v4014_v11 = vmul.f32 %v4004_v17, %v13228_v21  ;;  %v13229_v36 = vld [vmem:[#allocation15_spill] sm:$0xff] }
 0xb0b   : > { %6513 = vmatpush1.bf16.msra.mxu1 %v6512_v60  ;;  %v4015_v39 = vmul.f32 %v4010_v6, %v13229_v36  ;;  %v13232_v60 = vld [vmem:[#allocation60_spill] sm:$0xff] }
 0xb0c   : > { %13226 = vst [vmem:[#allocation69_spill] sm:$0xff] %v11228_v35  ;;  %13227 = vst [vmem:[#allocation61_spill] sm:$0xff] %v11231_v19  ;;  %v6480_v55 = vpack.c.bf16 %v11228_v35, %v4012_v58  ;;  %v4003_v12 = vpop.permute.xlu0 %4002  ;;  %v6478_v27 = vpack.c.bf16 %v11231_v19, %v4013_v20  ;;  %v4038_v58 = vsel %vm983_vm7, %v4025_v57, %v13232_v60  ;;  %v13236_v35 = vld [vmem:[#allocation17_spill] sm:$0xff] }
 0xb0d   : > { %v4005_v29 = vsel %vm913_vm6, %v13223_v30, %v4003_v12  ;;  %v4011_v63 = vsel %vm913_vm6, %v4003_v12, %v13224_v31  ;;  %v13233_v30 = vld [vmem:[#allocation31_spill] sm:$0xff] }
 0xb0e   : > { %v11250_v16 = vmul.f32 %v4005_v29, %v13228_v21  ;;  %v11253_v1 = vmul.f32 %v4011_v63, %v13229_v36  ;;  %6479 = vmatprep.subr.bf16.mxu0 %v6478_v27  ;;  %v4040_v20 = vsel %vm983_vm7, %v13233_v30, %v4025_v57  ;;  %v13234_v12 = vld [vmem:[#allocation51_spill] sm:$0xff]  ;;  %v13235_v63 = vld [vmem:[#allocation36_spill] sm:$0xff]  ;;  %v13237_v36 = vld [vmem:[#allocation18_spill] sm:$0xff] }
 0xb0f   : > { %6481 = vmatpush1.bf16.msra.mxu0 %v6480_v55  ;;  %v4044_v19 = vmul.f32 %v4040_v20, %v13236_v35  ;;  %v4045_v21 = vmul.f32 %v4038_v58, %v13237_v36 }
 0xb10   : > { %13230 = vst [vmem:[#allocation48_spill] sm:$0xff] %v11250_v16  ;;  %13231 = vst [vmem:[#allocation65_spill] sm:$0xff] %v11253_v1  ;;  %v6516_v31 = vpack.c.bf16 %v11250_v16, %v4014_v11  ;;  %v4027_v17 = vpop.permute.xlu0 %4026  ;;  %v6514_v6 = vpack.c.bf16 %v11253_v1, %v4015_v39  ;;  %v4057_v11 = vpop.permute.xlu1 %4056  ;;  %v4036_v39 = vsel %vm983_vm7, %v13232_v60, %v4033_v42  ;;  %v13240_v16 = vld [vmem:[#allocation19_spill] sm:$0xff]  ;;  %v13241_v1 = vld [vmem:[#allocation16_spill] sm:$0xff] }
 0xb11   : > { %v4039_v29 = vsel %vm983_vm7, %v4027_v17, %v13234_v12  ;;  %v4041_v27 = vsel %vm983_vm7, %v13235_v63, %v4027_v17  ;;  %v4042_v17 = vsel %vm983_vm7, %v4033_v42, %v13233_v30  ;;  %v4046_v60 = vmul.f32 %v4036_v39, %v13240_v16 }
 0xb12   : > { %v11272_v57 = vmul.f32 %v4041_v27, %v13236_v35  ;;  %v11275_v55 = vmul.f32 %v4039_v29, %v13237_v36  ;;  %6515 = vmatprep.subr.bf16.mxu1 %v6514_v6  ;;  %v4047_v35 = vmul.f32 %v4042_v17, %v13241_v1 }
 0xb13   : > { %6517 = vmatpush1.bf16.msra.mxu1 %v6516_v31  ;;  %v13245_v31 = vld [vmem:[#allocation49_spill] sm:$0xff] }
 0xb14   : > { %13238 = vst [vmem:[#allocation38_spill] sm:$0xff] %v11272_v57  ;;  %13239 = vst [vmem:[#allocation54_spill] sm:$0xff] %v11275_v55  ;;  %v6484_v20 = vpack.c.bf16 %v11272_v57, %v4044_v19  ;;  %v4035_v58 = vpop.permute.xlu0 %4034  ;;  %v6482_v27 = vpack.c.bf16 %v11275_v55, %v4045_v21  ;;  %v13244_v21 = vld [vmem:[#allocation30_spill] sm:$0xff]  ;;  %v4065_v39 = vpop.permute.xlu1 %4064  ;;  %v13248_v55 = vld [vmem:[#allocation21_spill] sm:$0xff] }
 0xb15   : > { %v4037_v29 = vsel %vm983_vm7, %v13234_v12, %v4035_v58  ;;  %v4043_v6 = vsel %vm983_vm7, %v4035_v58, %v13235_v63  ;;  %v4070_v30 = vsel %vm1053_vm8, %v4057_v11, %v13244_v21  ;;  %v4072_v12 = vsel %vm1053_vm8, %v13245_v31, %v4057_v11 }
 0xb16   : > { %v11294_v42 = vmul.f32 %v4037_v29, %v13240_v16  ;;  %v11297_v19 = vmul.f32 %v4043_v6, %v13241_v1  ;;  %6483 = vmatprep.subr.bf16.mxu0 %v6482_v27  ;;  %v13246_v29 = vld [vmem:[#allocation44_spill] sm:$0xff]  ;;  %v13247_v27 = vld [vmem:[#allocation41_spill] sm:$0xff]  ;;  %v4076_v16 = vmul.f32 %v4072_v12, %v13248_v55 }
 0xb17   : > { %6485 = vmatpush1.bf16.msra.mxu0 %v6484_v20  ;;  %v13249_v1 = vld [vmem:[#allocation20_spill] sm:$0xff] }
 0xb18   : > { %13242 = vst [vmem:[#allocation68_spill] sm:$0xff] %v11294_v42  ;;  %13243 = vst [vmem:[#allocation32_spill] sm:$0xff] %v11297_v19  ;;  %v6520_v63 = vpack.c.bf16 %v11294_v42, %v4046_v60  ;;  %v4059_v17 = vpop.permute.xlu0 %4058  ;;  %v6518_v58 = vpack.c.bf16 %v11297_v19, %v4047_v35  ;;  %v4077_v36 = vmul.f32 %v4070_v30, %v13249_v1  ;;  %v13253_v42 = vld [vmem:[#allocation23_spill] sm:$0xff] }
 0xb19   : > { %v4071_v6 = vsel %vm1053_vm8, %v4059_v17, %v13246_v29  ;;  %v4073_v57 = vsel %vm1053_vm8, %v13247_v27, %v4059_v17  ;;  %v4068_v35 = vsel %vm1053_vm8, %v13244_v21, %v4065_v39  ;;  %v4074_v60 = vsel %vm1053_vm8, %v4065_v39, %v13245_v31 }
 0xb1a   : > { %v11316_v11 = vmul.f32 %v4073_v57, %v13248_v55  ;;  %v11319_v20 = vmul.f32 %v4071_v6, %v13249_v1  ;;  %6519 = vmatprep.subr.bf16.mxu1 %v6518_v58  ;;  %v13252_v6 = vld [vmem:[#allocation22_spill] sm:$0xff]  ;;  %v4079_v55 = vmul.f32 %v4074_v60, %v13253_v42  ;;  %v5939_v1 = vld [vmem:[%s12497_s5 + $0xb8] sm:$0xff] }
 0xb1b   : > { %6521 = vmatpush1.bf16.msra.mxu1 %v6520_v63  ;;  %v4078_v21 = vmul.f32 %v4068_v35, %v13252_v6 }
 0xb1c   : > { %13250 = vst [vmem:[#allocation33_spill] sm:$0xff] %v11316_v11  ;;  %13251 = vst [vmem:[#allocation55_spill] sm:$0xff] %v11319_v20  ;;  %v6488_v12 = vpack.c.bf16 %v11316_v11, %v4076_v16  ;;  %v4067_v17 = vpop.permute.xlu0 %4066  ;;  %v6486_v30 = vpack.c.bf16 %v11319_v20, %v4077_v36  ;;  %v5879_v36 = vld [vmem:[%s12496_s4 + $0x40] sm:$0xff] }
 0xb1d   : > { %v4069_v57 = vsel %vm1053_vm8, %v13246_v29, %v4067_v17  ;;  %v4075_v58 = vsel %vm1053_vm8, %v4067_v17, %v13247_v27  ;;  %v5882_v29 = vld [vmem:[%s12496_s4 + $0x58] sm:$0xff]  ;;  %v5881_v27 = vld [vmem:[%s12496_s4 + $0x50] sm:$0xff] }
 0xb1e   : > { %v11338_v31 = vmul.f32 %v4069_v57, %v13252_v6  ;;  %v11341_v16 = vmul.f32 %v4075_v58, %v13253_v42  ;;  %6487 = vmatprep.subr.bf16.mxu0 %v6486_v30 }
 0xb1f   : > { %6489 = vmatpush1.bf16.msra.mxu0 %v6488_v12 }
 0xb20   : > { %13254 = vst [vmem:[#allocation37_spill] sm:$0xff] %v11338_v31  ;;  %13255 = vst [vmem:[#allocation34_spill] sm:$0xff] %v11341_v16  ;;  %v6524_v63 = vpack.c.bf16 %v11338_v31, %v4078_v21  ;;  %v6522_v39 = vpack.c.bf16 %v11341_v16, %v4079_v55  ;;  %v3463_v55 = vpop.permute.xlu1 %3462 }
 0xb22   : > { %4165 = vmatmul.mubr.f32.vlgmr.msra.gmra.mrb[44].mxu0 %v5879_v36  ;;  %6523 = vmatprep.subr.bf16.mxu1 %v6522_v39 }
 0xb23   : > { %6525 = vmatpush1.bf16.msra.mxu1 %v6524_v63  ;;  %5916 = vmatprep.mubr.msk.f32.mxu0 %vm1764_vm9, %v5882_v29 }
 0xb26   : > { %4171 = vmatmul.mubr.f32.gmra.mrb[46].mxu0 %v5881_v27  ;;  %4242 = vmatmul.mubr.f32.vlgmr.msra.gmra.mrb[44].mxu1 %v5879_v36 }
 0xb27   : > { %5918 = vmatprep.mubr.msk.f32.mxu1 %vm1764_vm9, %v5882_v29 }
 0xb2a   : > { %4248 = vmatmul.mubr.f32.gmra.mrb[46].mxu1 %v5881_v27 }
 0xb2d   : > { %v4087_v35 = vpop.permute.xlu0 %4086 }
 0xb2e   : > { %v6718_v60 = vadd.f32 %v4087_v35, %v3463_v55  ;;  %v4092_v35 = vpop.permute.xlu1 %4091 }
 0xbf5   : > { %v4166_v12 = vpop.f32.mrb[44].mxu0 }
 0xbf6   : > { %v6719_v17 = vadd.f32 %v6718_v60, %v4166_v12  ;;  %v4168_v30 = vpop.f32.mrb[45].mxu0 }
 0xbf7   : > { %v6721_v57 = vadd.f32 %v6718_v60, %v4168_v30 }
 0xbf8   : > { %v5919_v58 = vmul.f32 -1.442695, %v6719_v17 }
 0xbf9   : > { %v5920_v21 = vmul.f32 -1.442695, %v6721_v57  ;;  %v4172_v63 = vpop.f32.mrb[46].mxu0  ;;  %v4243_v39 = vpop.f32.mrb[44].mxu1 }
 0xbfa   : > { %7075 = vpow2.f32 %v5919_v58  ;;  %v6723_v31 = vadd.f32 %v6718_v60, %v4243_v39  ;;  %v4174_v11 = vpop.f32.mrb[47].mxu0  ;;  %v4245_v16 = vpop.f32.mrb[45].mxu1  ;;  %v4173_v55 = vadd.f32 %v4172_v63, %v4092_v35 }
 0xbfb   : > { %7077 = vpow2.f32 %v5920_v21  ;;  %v6725_v36 = vadd.f32 %v6718_v60, %v4245_v16  ;;  %v4175_v12 = vadd.f32 %v4174_v11, %v4092_v35 }
 0xbfc   : > { %v5921_v20 = vmul.f32 -1.442695, %v6723_v31 }
 0xbfd   : > { %v5922_v29 = vmul.f32 -1.442695, %v6725_v36  ;;  %v4249_v27 = vpop.f32.mrb[46].mxu1 }
 0xbfe   : > { %7079 = vpow2.f32 %v5921_v20  ;;  %v4251_v42 = vpop.f32.mrb[47].mxu1  ;;  %v4250_v6 = vadd.f32 %v4249_v27, %v4092_v35 }
 0xbff   : > { %7081 = vpow2.f32 %v5922_v29  ;;  %v4252_v39 = vadd.f32 %v4251_v42, %v4092_v35 }
 0xc00   : > { %7083 = vtanh.f32 %v4173_v55 }
 0xc01   : > { %7085 = vtanh.f32 %v4175_v12 }
 0xc04   : > { %v7076_v30 = vpop.eup %7075 }
 0xc05   : > { %v7078_v17 = vpop.eup %7077  ;;  %v4270_v57 = vadd.f32 1.0, %v7076_v30 }
 0xc06   : > { %v4271_v58 = vadd.f32 1.0, %v7078_v17  ;;  %v13260_v17 = vld [vmem:[#allocation52_spill] sm:$0xff] }
 0xc07   : > { %7087 = vrcp.f32 %v4270_v57  ;;  %v13261_v57 = vld [vmem:[#allocation53_spill] sm:$0xff] }
 0xc08   : > { %v7080_v21 = vpop.eup %7079  ;;  %7089 = vrcp.f32 %v4271_v58  ;;  %v11396_v58 = vpop.permute.xlu1 %4341 }
 0xc09   : > { %v7082_v31 = vpop.eup %7081  ;;  %v4272_v16 = vadd.f32 1.0, %v7080_v21  ;;  %7091 = vtanh.f32 %v4250_v6 }
 0xc0a   : > { %v4273_v20 = vadd.f32 1.0, %v7082_v31  ;;  %7093 = vtanh.f32 %v4252_v39  ;;  %v7084_v60 = vpop.eup %7083 }
 0xc0b   : > { %7095 = vrcp.f32 %v4272_v16  ;;  %v7086_v11 = vpop.eup %7085  ;;  %v13262_v16 = vld [vmem:[#allocation56_spill] sm:$0xff] }
 0xc0c   : > { %7097 = vrcp.f32 %v4273_v20  ;;  %v11404_v39 = vpop.permute.xlu1 %4345 }
 0xc0d   : > { %v4360_v9 = vsel %vm563_vm0, %v11396_v58, %v11404_v39 }
 0xc10   : > { %v11412_v21 = vpop.permute.xlu1 %4349 }
 0xc11   : > { %v7088_v63 = vpop.eup %7087 }
 0xc12   : > { %v7090_v36 = vpop.eup %7089  ;;  %v11356_v29 = vmul.f32 %v7088_v63, %v7084_v60  ;;  %v5940_v60 = vld [vmem:[%s12497_s5 + $0xc0] sm:$0xff]  ;;  %v5942_v63 = vld [vmem:[%s12497_s5 + $0xd0] sm:$0xff] }
 0xc13   : > { %v7092_v27 = vpop.eup %7091  ;;  %v11358_v55 = vmul.f32 %v7090_v36, %v7086_v11 }
 0xc14   : > { %13256 = vst [vmem:[#allocation35_spill] sm:$0xff] %v11356_v29  ;;  %v7094_v42 = vpop.eup %7093  ;;  %4290 = vst [vmem:[#allocation2 + $0x40] sm:$0xff] %v11356_v29  ;;  %4339 = vrot.lane.b32.xlu0 %v11356_v29, %s7260_s27  ;;  %v11420_v31 = vpop.permute.xlu1 %4353 }
 0xc15   : > { %13257 = vst [vmem:[#allocation39_spill] sm:$0xff] %v11358_v55  ;;  %v7096_v6 = vpop.eup %7095  ;;  %4291 = vst [vmem:[#allocation2 + $0x48] sm:$0xff] %v11358_v55  ;;  %4375 = vrot.lane.b32.xlu1 %v11358_v55, %s7261_s11 }
 0xc16   : > { %v7098_v35 = vpop.eup %7097  ;;  %v11366_v12 = vmul.f32 %v7096_v6, %v7092_v27 }
 0xc17   : > { %v11368_v30 = vmul.f32 %v7098_v35, %v7094_v42  ;;  %v11467_v35 = vpop.permute.xlu0 %4373 }
 0xc18   : > { %13258 = vst [vmem:[#allocation40_spill] sm:$0xff] %v11366_v12  ;;  %4292 = vst [vmem:[#allocation2 + $0x50] sm:$0xff] %v11366_v12  ;;  %4347 = vrot.lane.b32.xlu0 %v11366_v12, %s7260_s27  ;;  %v11428_v20 = vpop.permute.xlu1 %4377 }
 0xc19   : > { %13259 = vst [vmem:[#allocation64_spill] sm:$0xff] %v11368_v30  ;;  %4293 = vst [vmem:[#allocation2 + $0x58] sm:$0xff] %v11368_v30  ;;  %4383 = vrot.lane.b32.xlu1 %v11368_v30, %s7261_s11 }
 0xc1c   : > { %4371 = vrot.lane.b32.xlu0 %v11356_v29, %s7261_s11  ;;  %v11439_v11 = vpop.permute.xlu1 %4385 }
 0xc1d   : > { %4537 = vrot.lane.b32.xlu1 %v13260_v17, %s7266_s24 }
 0xc20   : > { %4379 = vrot.lane.b32.xlu0 %v11366_v12, %s7261_s11  ;;  %v11449_v36 = vpop.permute.xlu1 %4405 }
 0xc21   : > { %4545 = vrot.lane.b32.xlu1 %v10885_v40, %s7266_s24 }
 0xc24   : > { %4403 = vrot.lane.b32.xlu0 %v11356_v29, %s7262_s12  ;;  %v11455_v27 = vpop.permute.xlu1 %4409 }
 0xc25   : > { %4439 = vrot.lane.b32.xlu1 %v11358_v55, %s7263_s13 }
 0xc28   : > { %4411 = vrot.lane.b32.xlu0 %v11366_v12, %s7262_s12  ;;  %v11459_v42 = vpop.permute.xlu1 %4413 }
 0xc29   : > { %4447 = vrot.lane.b32.xlu1 %v11368_v30, %s7263_s13 }
 0xc2c   : > { %4435 = vrot.lane.b32.xlu0 %v11356_v29, %s7263_s13  ;;  %v11465_v6 = vpop.permute.xlu1 %4417 }
 0xc2d   : > { %4565 = vrot.lane.b32.xlu1 %v13261_v57, %s7267_s28 }
 0xc30   : > { %4443 = vrot.lane.b32.xlu0 %v11366_v12, %s7263_s13 }
 0xc31   : > { %4471 = vrot.lane.b32.xlu1 %v11358_v55, %s7264_s17 }
 0xc34   : > { %4467 = vrot.lane.b32.xlu0 %v11356_v29, %s7264_s17 }
 0xc35   : > { %4479 = vrot.lane.b32.xlu1 %v11368_v30, %s7264_s17 }
 0xc38   : > { %4475 = vrot.lane.b32.xlu0 %v11366_v12, %s7264_s17 }
 0xc39   : > { %4569 = vrot.lane.b32.xlu1 %v13260_v17, %s7267_s28  ;;  %v11471_v17 = vpop.permute.xlu1 %4441 }
 0xc3c   : > { %4499 = vrot.lane.b32.xlu0 %v11356_v29, %s7265_s18 }
 0xc3d   : > { %4535 = vrot.lane.b32.xlu1 %v11358_v55, %s7266_s24 }
 0xc40   : > { %4507 = vrot.lane.b32.xlu0 %v11366_v12, %s7265_s18 }
 0xc41   : > { %4543 = vrot.lane.b32.xlu1 %v11368_v30, %s7266_s24 }
 0xc44   : > { %4343 = vrot.lane.b32.xlu0 %v11358_v55, %s7260_s27 }
 0xc45   : > { %4573 = vrot.lane.b32.xlu1 %v13262_v16, %s7267_s28 }
 0xc48   : > { %4351 = vrot.lane.b32.xlu0 %v11368_v30, %s7260_s27 }
 0xc49   : > { %4577 = vrot.lane.b32.xlu1 %v10885_v40, %s7267_s28  ;;  %v5938_v40 = vld [vmem:[%s12497_s5 + $0xb0] sm:$0xff] }
 0xc4c   : > { %4531 = vrot.lane.b32.xlu0 %v11356_v29, %s7266_s24 }
 0xc4d   : > { %4612 = vperm.xlu1 %6786, %v5940_v60   ;;  %v4382_v60 = vpop.permute.xlu0 %4381 }
 0xc50   : > { %4407 = vrot.lane.b32.xlu0 %v11358_v55, %s7262_s12 }
 0xc51   : > { %4622 = vperm.xlu1 %6786, %v5942_v63   ;;  %v5924_v63 = vld [vmem:[%s12495_s3 + $0xe8] sm:$0xff] }
 0xc52   : > { %5950 = vmatprep.mubr.msk.f32.mxu0 %vm1134_vm3, %v5924_v63  ;;  %5957 = vmatprep.mubr.msk.f32.mxu1 %vm1134_vm3, %v5924_v63  ;;  %v5941_v63 = vld [vmem:[%s12497_s5 + $0xc8] sm:$0xff] }
 0xc54   : > { %4415 = vrot.lane.b32.xlu0 %v11368_v30, %s7262_s12 }
 0xc55   : > { %4602 = vperm.xlu1 %6786, %v5938_v40  }
 0xc58   : > { %4539 = vrot.lane.b32.xlu0 %v11366_v12, %s7266_s24 }
 0xc5c   : > { %4533 = vrot.lane.b32.xlu0 %v13261_v57, %s7266_s24  ;;  %v11475_v57 = vpop.permute.xlu0 %4437 }
 0xc60   : > { %4541 = vrot.lane.b32.xlu0 %v13262_v16, %s7266_s24  ;;  %v11479_v16 = vpop.permute.xlu1 %4449  ;;  %v11488_v40 = vpop.permute.xlu0 %4445 }
 0xc64   : > { %4563 = vrot.lane.b32.xlu0 %v11356_v29, %s7267_s28  ;;  %v11490_v19 = vpop.permute.xlu1 %4473  ;;  %v11497_v15 = vpop.permute.xlu0 %4469 }
 0xc65   : > { %13263 = vst [vmem:[#allocation27_spill] sm:$0xff] %v11490_v19  ;;  %13264 = vst [vmem:[#allocation29_spill] sm:$0xff] %v11497_v15 }
 0xc68   : > { %4503 = vrot.lane.b32.xlu0 %v11358_v55, %s7265_s18  ;;  %v11499_v45 = vpop.permute.xlu1 %4481  ;;  %v11509_v59 = vpop.permute.xlu0 %4477 }
 0xc69   : > { %13265 = vst [vmem:[#allocation66_spill] sm:$0xff] %v11499_v45  ;;  %13267 = vst [vmem:[#allocation31_spill] sm:$0xff] %v11509_v59 }
 0xc6c   : > { %4511 = vrot.lane.b32.xlu0 %v11368_v30, %s7265_s18  ;;  %v11504_v14 = vpop.permute.xlu1 %4501 }
 0xc6d   : > { %13266 = vst [vmem:[#allocation60_spill] sm:$0xff] %v11504_v14 }
 0xc70   : > { %4571 = vrot.lane.b32.xlu0 %v11366_v12, %s7267_s28  ;;  %v11511_v10 = vpop.permute.xlu1 %4505 }
 0xc71   : > { %13268 = vst [vmem:[#allocation51_spill] sm:$0xff] %v11511_v10 }
 0xc74   : > { %4567 = vrot.lane.b32.xlu0 %v11358_v55, %s7267_s28  ;;  %v11513_v29 = vpop.permute.xlu1 %4509 }
 0xc75   : > { %13269 = vst [vmem:[#allocation36_spill] sm:$0xff] %v11513_v29 }
 0xc78   : > { %4575 = vrot.lane.b32.xlu0 %v11368_v30, %s7267_s28  ;;  %v11515_v30 = vpop.permute.xlu1 %4513 }
 0xc79   : > { %13270 = vst [vmem:[#allocation30_spill] sm:$0xff] %v11515_v30 }
 0xc7c   : > { %4607 = vperm.xlu0 %6785, %v5939_v1  }
 0xc80   : > { %4617 = vperm.xlu0 %6785, %v5941_v63  }
 0xc84   : > { %4597 = vperm.xlu0 %6785, %v5937_v4  }
 0xc86   : > { %v4340_v12 = vpop.permute.xlu0 %4339 }
 0xc87   : > { %v4376_v14 = vpop.permute.xlu1 %4375 }
 0xc8a   : > { %v4348_v1 = vpop.permute.xlu0 %4347 }
 0xc8b   : > { %v4384_v3 = vpop.permute.xlu1 %4383 }
 0xc8e   : > { %v4372_v52 = vpop.permute.xlu0 %4371 }
 0xc8f   : > { %v11525_v4 = vpop.permute.xlu1 %4537  ;;  %v4391_v7 = vsel %vm633_vm1, %v4372_v52, %v4376_v14 }
 0xc90   : > { %13271 = vst [vmem:[#allocation49_spill] sm:$0xff] %v11525_v4  ;;  %v4362_v4 = vsel %vm563_vm0, %v11420_v31, %v11396_v58  ;;  %v4396_v2 = vmul.f32 %v4391_v7, %v7595_v24 }
 0xc91   : > { %v4367_v58 = vmul.f32 %v4362_v4, %v7541_v53 }
 0xc92   : > { %v4380_v48 = vpop.permute.xlu0 %4379 }
 0xc93   : > { %v11531_v29 = vpop.permute.xlu1 %4545  ;;  %v4387_v4 = vsel %vm633_vm1, %v4380_v48, %v4384_v3  ;;  %v4389_v37 = vsel %vm633_vm1, %v4376_v14, %v4380_v48 }
 0xc94   : > { %13274 = vst [vmem:[#allocation52_spill] sm:$0xff] %v11531_v29  ;;  %v4356_v29 = vsel %vm563_vm0, %v11412_v21, %v11420_v31 }
 0xc95   : > { %v4370_v23 = vmul.f32 %v4356_v29, %v7544_v54  ;;  %v4393_v29 = vsel %vm633_vm1, %v4384_v3, %v4372_v52 }
 0xc96   : > { %v11517_v63 = vpop.permute.xlu0 %4403 }
 0xc97   : > { %v11535_v30 = vpop.permute.xlu1 %4439 }
 0xc9a   : > { %v11519_v22 = vpop.permute.xlu0 %4411 }
 0xc9b   : > { %v11556_v38 = vpop.permute.xlu1 %4447 }
 0xc9e   : > { %v11521_v55 = vpop.permute.xlu0 %4435 }
 0xca2   : > { %v11523_v45 = vpop.permute.xlu0 %4443 }
 0xca6   : > { %v11527_v10 = vpop.permute.xlu0 %4467 }
 0xca7   : > { %13272 = vst [vmem:[#allocation44_spill] sm:$0xff] %v11527_v10  ;;  %v4368_v10 = vmul.f32 %v4360_v9, %v13277_v28 }
 0xcaa   : > { %v11529_v15 = vpop.permute.xlu0 %4475 }
 0xcab   : > { %13273 = vst [vmem:[#allocation41_spill] sm:$0xff] %v11529_v15 }
 0xcae   : > { %v11533_v19 = vpop.permute.xlu0 %4499 }
 0xcaf   : > { %13275 = vst [vmem:[#allocation53_spill] sm:$0xff] %v11533_v19 }
 0xcb2   : > { %v11537_v59 = vpop.permute.xlu0 %4507 }
 0xcb3   : > { %13276 = vst [vmem:[#allocation56_spill] sm:$0xff] %v11537_v59  ;;  %v4358_v59 = vsel %vm563_vm0, %v11404_v39, %v11412_v21  ;;  %v4390_v39 = vsel %vm633_vm1, %v11428_v20, %v4382_v60  ;;  %v4392_v21 = vsel %vm633_vm1, %v11467_v35, %v11428_v20 }
 0xcb4   : > { %v4400_v7 = vmul.f32 %v4392_v21, %v7595_v24  ;;  %v4401_v52 = vmul.f32 %v4390_v39, %v7598_v32  ;;  %v4424_v21 = vsel %vm703_vm2, %v11449_v36, %v11455_v27 }
 0xcb6   : > { %v4344_v19 = vpop.permute.xlu0 %4343 }
 0xcb7   : > { %v4359_v15 = vsel %vm563_vm0, %v4340_v12, %v4344_v19  ;;  %v4357_v31 = vsel %vm563_vm0, %v4344_v19, %v4348_v1  ;;  %v4388_v19 = vsel %vm633_vm1, %v4382_v60, %v11439_v11 }
 0xcb8   : > { %v4364_v9 = vmul.f32 %v4359_v15, %v13277_v28  ;;  %v4394_v15 = vsel %vm633_vm1, %v11439_v11, %v11467_v35  ;;  %v4365_v20 = vmul.f32 %v4357_v31, %v7559_v61  ;;  %v4398_v11 = vmul.f32 %v4387_v4, %v7601_v33 }
 0xcba   : > { %v4352_v28 = vpop.permute.xlu0 %4351  ;;  %v6526_v13 = vpack.c.bf16 %v4368_v10, %v4364_v9  ;;  %v4369_v10 = vmul.f32 %v4358_v59, %v7559_v61  ;;  %v4402_v9 = vmul.f32 %v4388_v19, %v7601_v33  ;;  %v13278_v59 = vld [vmem:[#allocation42_spill] sm:$0xff]  ;;  %v6582_v39 = vpack.c.bf16 %v4398_v11, %v11009_v46 }
 0xcbb   : > { %v4355_v41 = vsel %vm563_vm0, %v4348_v1, %v4352_v28  ;;  %v4361_v60 = vsel %vm563_vm0, %v4352_v28, %v4340_v12  ;;  %v11599_v1 = vpop.permute.xlu1 %4565  ;;  %v4399_v28 = vmul.f32 %v4394_v15, %v7583_v18  ;;  %v4395_v12 = vmul.f32 %v4393_v29, %v7583_v18 }
 0xcbc   : > { %v4363_v35 = vmul.f32 %v4361_v60, %v7541_v53  ;;  %v4366_v3 = vmul.f32 %v4355_v41, %v7544_v54  ;;  %6527 = vmatprep.subr.bf16.mxu0 %v6526_v13  ;;  %v4397_v41 = vmul.f32 %v4389_v37, %v7598_v32  ;;  %v6580_v13 = vpack.c.bf16 %v4369_v10, %v4365_v20 }
 0xcbd   : > { %v6530_v4 = vpack.c.bf16 %v4396_v2, %v13278_v59  ;;  %v6536_v37 = vpack.c.bf16 %v11054_v26, %v4399_v28  ;;  %v4426_v2 = vsel %vm703_vm2, %v11465_v6, %v11449_v36  ;;  %v6532_v46 = vpack.c.bf16 %v4395_v12, %v11006_v25 }
 0xcbe   : > { %v6528_v48 = vpack.c.bf16 %v4367_v58, %v4363_v35  ;;  %v11603_v14 = vpop.permute.xlu0 %4531  ;;  %v6578_v31 = vpack.c.bf16 %v4370_v23, %v4366_v3  ;;  %v6534_v23 = vpack.c.bf16 %v11030_v43, %v4400_v7  ;;  %v6588_v58 = vpack.c.bf16 %v11043_v47, %v4401_v52 }
 0xcbf   : > { %v4420_v15 = vsel %vm703_vm2, %v11459_v42, %v11465_v6  ;;  %v6584_v43 = vpack.c.bf16 %v4397_v41, %v10993_v49  ;;  %v11626_v29 = vpop.permute.xlu1 %4471  ;;  %v6586_v26 = vpack.c.bf16 %v11057_v56, %v4402_v9  ;;  %v4432_v36 = vmul.f32 %v4424_v21, %v7676_v44 }
 0xcc0   : > { %6529 = vmatpush1.bf16.msra.mxu0 %v6528_v48  ;;  %6579 = vmatprep.subr.bf16.mxu1 %v6578_v31  ;;  %v4455_v25 = vsel %vm773_vm4, %v11521_v55, %v11535_v30  ;;  %v4422_v20 = vsel %vm703_vm2, %v11455_v27, %v11459_v42  ;;  %v4431_v56 = vmul.f32 %v4426_v2, %v7701_v8 }
 0xcc1   : > { %6531 = vmatprep.subr.bf16.mxu0 %v6530_v4  ;;  %6581 = vmatpush1.bf16.msra.mxu1 %v6580_v13  ;;  %v4451_v60 = vsel %vm773_vm4, %v11523_v45, %v11556_v38  ;;  %v4434_v11 = vmul.f32 %v4420_v15, %v7693_v62  ;;  %v4456_v35 = vsel %vm773_vm4, %v11475_v57, %v11471_v17  ;;  %v13279_v4 = vld [vmem:[#allocation7_spill] sm:$0xff]  ;;  %v13282_v15 = vld [vmem:[#allocation57_spill] sm:$0xff] }
 0xcc2   : > { %6583 = vmatprep.subr.bf16.mxu1 %v6582_v39  ;;  %v4408_v19 = vpop.permute.xlu0 %4407  ;;  %v4457_v27 = vsel %vm773_vm4, %v11556_v38, %v11521_v55  ;;  %v4460_v10 = vmul.f32 %v4455_v25, %v7746_v51  ;;  %v4453_v38 = vsel %vm773_vm4, %v11535_v30, %v11523_v45  ;;  %v4462_v55 = vmul.f32 %v4451_v60, %v7760_v0  ;;  %v13287_v60 = vld [vmem:[#allocation44_spill] sm:$0xff] }
 0xcc3   : > { %v4423_v47 = vsel %vm703_vm2, %v11517_v63, %v4408_v19  ;;  %v4421_v6 = vsel %vm703_vm2, %v4408_v19, %v11519_v22  ;;  %v4433_v31 = vmul.f32 %v4422_v20, %v7696_v5  ;;  %v4480_v45 = vpop.permute.xlu1 %4479  ;;  %v4464_v30 = vmul.f32 %v4456_v35, %v7746_v51  ;;  %v13286_v20 = vld [vmem:[#allocation28_spill] sm:$0xff]  ;;  %v13288_v35 = vld [vmem:[#allocation70_spill] sm:$0xff] }
 0xcc4   : > { %v4428_v49 = vmul.f32 %v4423_v47, %v7676_v44  ;;  %6533 = vmatpush1.bf16.msra.mxu0 %v6532_v46  ;;  %v4429_v7 = vmul.f32 %v4421_v6, %v7696_v5  ;;  %v4459_v9 = vmul.f32 %v4457_v27, %v7743_v50  ;;  %v4461_v39 = vmul.f32 %v4453_v38, %v13279_v4  ;;  %v13285_v6 = vld [vmem:[#allocation41_spill] sm:$0xff] }
 0xcc5   : > { %6535 = vmatprep.subr.bf16.mxu0 %v6534_v23  ;;  %6585 = vmatpush1.bf16.msra.mxu1 %v6584_v43 }
 0xcc6   : > { %6587 = vmatprep.subr.bf16.mxu1 %v6586_v26  ;;  %v4416_v42 = vpop.permute.xlu0 %4415  ;;  %v6538_v3 = vpack.c.bf16 %v4432_v36, %v4428_v49  ;;  %v6592_v21 = vpack.c.bf16 %v4433_v31, %v4429_v7  ;;  %v6544_v43 = vpack.c.bf16 %v4459_v9, %v13282_v15  ;;  %v13284_v36 = vld [vmem:[#allocation25_spill] sm:$0xff]  ;;  %v4485_v49 = vsel %vm843_vm5, %v11626_v29, %v13285_v6  ;;  %v13291_v7 = vld [vmem:[#allocation27_spill] sm:$0xff] }
 0xcc7   : > { %v4419_v52 = vsel %vm703_vm2, %v11519_v22, %v4416_v42  ;;  %v4425_v28 = vsel %vm703_vm2, %v4416_v42, %v11517_v63  ;;  %v4454_v22 = vsel %vm773_vm4, %v11471_v17, %v11488_v40  ;;  %v4452_v63 = vsel %vm773_vm4, %v11488_v40, %v11479_v16  ;;  %v13280_v40 = vld [vmem:[#allocation46_spill] sm:$0xff]  ;;  %v11701_v26 = vpop.permute.xlu1 %4569  ;;  %v13295_v9 = vld [vmem:[#allocation39_spill] sm:$0xff] }
 0xcc8   : > { %v4427_v12 = vmul.f32 %v4425_v28, %v7701_v8  ;;  %v4430_v48 = vmul.f32 %v4419_v52, %v7693_v62  ;;  %6537 = vmatpush1.bf16.msra.mxu0 %v6536_v37  ;;  %v4458_v17 = vsel %vm773_vm4, %v11479_v16, %v11475_v57  ;;  %v6542_v23 = vpack.c.bf16 %v4460_v10, %v13280_v40  ;;  %v13281_v37 = vld [vmem:[#allocation59_spill] sm:$0xff]  ;;  %v13283_v16 = vld [vmem:[#allocation24_spill] sm:$0xff]  ;;  %v13289_v42 = vld [vmem:[#allocation50_spill] sm:$0xff] }
 0xcc9   : > { %6539 = vmatprep.subr.bf16.mxu0 %v6538_v3  ;;  %6589 = vmatpush1.bf16.msra.mxu1 %v6588_v58  ;;  %v4466_v58 = vmul.f32 %v4452_v63, %v7760_v0  ;;  %v6594_v2 = vpack.c.bf16 %v4462_v55, %v13281_v37  ;;  %v4465_v46 = vmul.f32 %v4454_v22, %v13279_v4  ;;  %v13290_v10 = vld [vmem:[#allocation31_spill] sm:$0xff]  ;;  %v13292_v28 = vld [vmem:[#allocation29_spill] sm:$0xff]  ;;  %v13294_v22 = vld [vmem:[#allocation10_spill] sm:$0xff] }
 0xcca   : > { %v6540_v41 = vpack.c.bf16 %v4431_v56, %v4427_v12  ;;  %v11685_v13 = vpop.permute.xlu0 %4539  ;;  %v6590_v59 = vpack.c.bf16 %v4434_v11, %v4430_v48  ;;  %v4463_v19 = vmul.f32 %v4458_v17, %v7743_v50  ;;  %v6596_v47 = vpack.c.bf16 %v4461_v39, %v13283_v16  ;;  %v13293_v12 = vld [vmem:[#allocation66_spill] sm:$0xff]  ;;  %v13297_v40 = vld [vmem:[#allocation64_spill] sm:$0xff] }
 0xccb   : > { %v6546_v25 = vpack.c.bf16 %v13284_v36, %v4464_v30  ;;  %v6598_v56 = vpack.c.bf16 %v13286_v20, %v4466_v58  ;;  %v4489_v11 = vsel %vm843_vm5, %v4480_v45, %v13287_v60  ;;  %v6600_v27 = vpack.c.bf16 %v13288_v35, %v4465_v46  ;;  %v7231_v30 = vld [vmem:[#allocation2 + $0x68] sm:$0xff]  ;;  %v13298_v58 = vld [vmem:[#allocation9_spill] sm:$0xff]  ;;  %v4536_v46 = vpop.permute.xlu1 %4535  ;;  %v7233_v16 = vld [vmem:[#allocation2 + $0x60] sm:$0xff] }
 0xccc   : > { %6541 = vmatpush1.bf16.msra.mxu0 %v6540_v41  ;;  %6591 = vmatprep.subr.bf16.mxu1 %v6590_v59  ;;  %v6548_v3 = vpack.c.bf16 %v13289_v42, %v4463_v19  ;;  %v4486_v52 = vsel %vm843_vm5, %v13291_v7, %v13290_v10  ;;  %v4488_v38 = vsel %vm843_vm5, %v13292_v28, %v13291_v7  ;;  %v13296_v59 = vld [vmem:[#allocation8_spill] sm:$0xff]  ;;  %v13299_v19 = vld [vmem:[#allocation11_spill] sm:$0xff] }
 0xccd   : > { %6543 = vmatprep.subr.bf16.mxu0 %v6542_v23  ;;  %6593 = vmatpush1.bf16.msra.mxu1 %v6592_v21  ;;  %v4484_v48 = vsel %vm843_vm5, %v13290_v10, %v13293_v12  ;;  %v4487_v31 = vsel %vm843_vm5, %v13287_v60, %v11626_v29  ;;  %v4492_v63 = vmul.f32 %v4485_v49, %v13294_v22  ;;  %v7232_v21 = vld [vmem:[#allocation2 + $0x78] sm:$0xff]  ;;  %v7234_v20 = vld [vmem:[#allocation2 + $0x70] sm:$0xff]  ;;  %v13303_v35 = vld [vmem:[#allocation63_spill] sm:$0xff] }
 0xcce   : > { %6595 = vmatprep.subr.bf16.mxu1 %v6594_v2  ;;  %v11698_v57 = vpop.permute.xlu0 %4533  ;;  %v6550_v41 = vpack.c.bf16 %v7231_v30, %v13295_v9  ;;  %v4494_v17 = vmul.f32 %v4489_v11, %v13296_v59  ;;  %v4483_v39 = vsel %vm843_vm5, %v13285_v6, %v4480_v45  ;;  %v6602_v23 = vpack.c.bf16 %v7232_v21, %v13297_v40  ;;  %v13301_v6 = vld [vmem:[#allocation26_spill] sm:$0xff]  ;;  %v13304_v42 = vld [vmem:[#allocation47_spill] sm:$0xff]  ;;  %v13305_v10 = vld [vmem:[#allocation36_spill] sm:$0xff] }
 0xccf   : > { %v4495_v37 = vmul.f32 %v4488_v38, %v13298_v58  ;;  %v4496_v2 = vmul.f32 %v4486_v52, %v13294_v22  ;;  %v4490_v29 = vsel %vm843_vm5, %v13293_v12, %v13292_v28  ;;  %v4497_v15 = vmul.f32 %v4484_v48, %v13299_v19  ;;  %v13306_v7 = vld [vmem:[#allocation51_spill] sm:$0xff]  ;;  %v13310_v30 = vld [vmem:[#allocation30_spill] sm:$0xff] }
 0xcd0   : > { %6545 = vmatpush1.bf16.msra.mxu0 %v6544_v43  ;;  %v4491_v45 = vmul.f32 %v4487_v31, %v13298_v58  ;;  %v6554_v49 = vpack.c.bf16 %v4492_v63, %v13301_v6  ;;  %v4498_v11 = vmul.f32 %v4490_v29, %v13296_v59  ;;  %v4518_v52 = vsel %vm913_vm6, %v13306_v7, %v13305_v10  ;;  %v13307_v28 = vld [vmem:[#allocation43_spill] sm:$0xff]  ;;  %v13309_v31 = vld [vmem:[#allocation60_spill] sm:$0xff]  ;;  %v13312_v40 = vld [vmem:[#allocation62_spill] sm:$0xff] }
 0xcd1   : > { %6547 = vmatprep.subr.bf16.mxu0 %v6546_v25  ;;  %6597 = vmatpush1.bf16.msra.mxu1 %v6596_v47  ;;  %v13300_v47 = vld [vmem:[#allocation35_spill] sm:$0xff]  ;;  %v4493_v25 = vmul.f32 %v4483_v39, %v13299_v19  ;;  %v6558_v38 = vpack.c.bf16 %v13307_v28, %v4496_v2  ;;  %v4520_v63 = vsel %vm913_vm6, %v13309_v31, %v13306_v7  ;;  %v13313_v2 = vld [vmem:[#allocation56_spill] sm:$0xff] }
 0xcd2   : > { %6599 = vmatprep.subr.bf16.mxu1 %v6598_v56  ;;  %v11722_v55 = vpop.permute.xlu0 %4541  ;;  %v6552_v36 = vpack.c.bf16 %v7233_v16, %v13300_v47  ;;  %v13302_v56 = vld [vmem:[#allocation40_spill] sm:$0xff]  ;;  %v13308_v12 = vld [vmem:[#allocation67_spill] sm:$0xff]  ;;  %v4516_v9 = vsel %vm913_vm6, %v13305_v10, %v13310_v30  ;;  %v4522_v21 = vsel %vm913_vm6, %v13310_v30, %v13309_v31  ;;  %v4551_v28 = vsel %vm983_vm7, %v11603_v14, %v4536_v46 }
 0xcd3   : > { %v6604_v60 = vpack.c.bf16 %v7234_v20, %v13302_v56  ;;  %v6612_v48 = vpack.c.bf16 %v13308_v12, %v4497_v15  ;;  %v13314_v15 = vld [vmem:[#allocation53_spill] sm:$0xff]  ;;  %v13315_v47 = vld [vmem:[#allocation12_spill] sm:$0xff]  ;;  %v13319_v7 = vld [vmem:[#allocation15_spill] sm:$0xff] }
 0xcd4   : > { %6549 = vmatpush1.bf16.msra.mxu0 %v6548_v3  ;;  %v6560_v3 = vpack.c.bf16 %v13304_v42, %v4495_v37  ;;  %v4544_v37 = vpop.permute.xlu1 %4543  ;;  %v13316_v20 = vld [vmem:[#allocation45_spill] sm:$0xff] }
 0xcd5   : > { %6551 = vmatprep.subr.bf16.mxu0 %v6550_v41  ;;  %6601 = vmatpush1.bf16.msra.mxu1 %v6600_v27  ;;  %v6606_v27 = vpack.c.bf16 %v4494_v17, %v13303_v35  ;;  %v13311_v41 = vld [vmem:[#allocation58_spill] sm:$0xff]  ;;  %v13317_v56 = vld [vmem:[#allocation13_spill] sm:$0xff]  ;;  %v4553_v10 = vsel %vm983_vm7, %v4544_v37, %v11603_v14  ;;  %v4547_v30 = vsel %vm983_vm7, %v11685_v13, %v4544_v37 }
 0xcd6   : > { %6603 = vmatprep.subr.bf16.mxu1 %v6602_v23  ;;  %v11747_v43 = vpop.permute.xlu0 %4563  ;;  %v6556_v17 = vpack.c.bf16 %v4491_v45, %v13311_v41  ;;  %v6608_v23 = vpack.c.bf16 %v4493_v25, %v13312_v40  ;;  %v4528_v45 = vmul.f32 %v4518_v52, %v13315_v47  ;;  %v6610_v25 = vpack.c.bf16 %v13316_v20, %v4498_v11  ;;  %v13323_v37 = vld [vmem:[#allocation17_spill] sm:$0xff] }
 0xcd7   : > { %v4530_v52 = vmul.f32 %v4522_v21, %v13319_v7  ;;  %v13322_v21 = vld [vmem:[#allocation49_spill] sm:$0xff] }
 0xcd8   : > { %6553 = vmatpush1.bf16.msra.mxu0 %v6552_v36  ;;  %v4549_v36 = vsel %vm983_vm7, %v4536_v46, %v11685_v13  ;;  %v13321_v46 = vld [vmem:[#allocation16_spill] sm:$0xff] }
 0xcd9   : > { %6555 = vmatprep.subr.bf16.mxu0 %v6554_v49  ;;  %6605 = vmatpush1.bf16.msra.mxu1 %v6604_v60  ;;  %v4527_v60 = vmul.f32 %v4520_v63, %v13317_v56  ;;  %v4574_v63 = vpop.permute.xlu1 %4573 }
 0xcda   : > { %6607 = vmatprep.subr.bf16.mxu1 %v6606_v27  ;;  %v4504_v39 = vpop.permute.xlu0 %4503  ;;  %v13318_v27 = vld [vmem:[#allocation14_spill] sm:$0xff] }
 0xcdb   : > { %v4517_v29 = vsel %vm913_vm6, %v4504_v39, %v13313_v2  ;;  %v4519_v16 = vsel %vm913_vm6, %v13314_v15, %v4504_v39  ;;  %v4529_v42 = vmul.f32 %v4516_v9, %v13318_v27  ;;  %v13320_v9 = vld [vmem:[#allocation18_spill] sm:$0xff]  ;;  %v4558_v39 = vmul.f32 %v4553_v10, %v13321_v46 }
 0xcdc   : > { %v4524_v49 = vmul.f32 %v4517_v29, %v13315_v47  ;;  %6557 = vmatpush1.bf16.msra.mxu0 %v6556_v17  ;;  %v4523_v12 = vmul.f32 %v4519_v16, %v13317_v56  ;;  %v4556_v17 = vmul.f32 %v4549_v36, %v13320_v9  ;;  %v4555_v16 = vmul.f32 %v4551_v28, %v13323_v37 }
 0xcdd   : > { %6559 = vmatprep.subr.bf16.mxu0 %v6558_v38  ;;  %6609 = vmatpush1.bf16.msra.mxu1 %v6608_v23  ;;  %v4550_v23 = vsel %vm983_vm7, %v13322_v21, %v11722_v55 }
 0xcde   : > { %6611 = vmatprep.subr.bf16.mxu1 %v6610_v25  ;;  %v4512_v11 = vpop.permute.xlu0 %4511  ;;  %v6562_v31 = vpack.c.bf16 %v4528_v45, %v4524_v49  ;;  %v6564_v49 = vpack.c.bf16 %v4527_v60, %v4523_v12  ;;  %v4560_v28 = vmul.f32 %v4550_v23, %v13320_v9  ;;  %v13327_v60 = vld [vmem:[#allocation65_spill] sm:$0xff] }
 0xcdf   : > { %v4515_v38 = vsel %vm913_vm6, %v13313_v2, %v4512_v11  ;;  %v4521_v14 = vsel %vm913_vm6, %v4512_v11, %v13314_v15  ;;  %v13324_v2 = vld [vmem:[#allocation52_spill] sm:$0xff]  ;;  %v13325_v15 = vld [vmem:[#allocation19_spill] sm:$0xff]  ;;  %v13326_v11 = vld [vmem:[#allocation61_spill] sm:$0xff] }
 0xce0   : > { %v4525_v29 = vmul.f32 %v4515_v38, %v13318_v27  ;;  %v4526_v13 = vmul.f32 %v4521_v14, %v13319_v7  ;;  %6561 = vmatpush1.bf16.msra.mxu0 %v6560_v3  ;;  %v4554_v45 = vsel %vm983_vm7, %v13324_v2, %v11698_v57  ;;  %v4557_v36 = vmul.f32 %v4547_v30, %v13325_v15  ;;  %v13328_v12 = vld [vmem:[#allocation69_spill] sm:$0xff] }
 0xce1   : > { %6563 = vmatprep.subr.bf16.mxu0 %v6562_v31  ;;  %6613 = vmatpush1.bf16.msra.mxu1 %v6612_v48  ;;  %v4552_v3 = vsel %vm983_vm7, %v11698_v57, %v13322_v21  ;;  %v6566_v38 = vpack.c.bf16 %v4556_v17, %v13326_v11  ;;  %v4562_v14 = vmul.f32 %v4554_v45, %v13321_v46  ;;  %v4578_v57 = vpop.permute.xlu1 %4577  ;;  %v13329_v17 = vld [vmem:[#allocation48_spill] sm:$0xff]  ;;  %v13333_v11 = vld [vmem:[#allocation22_spill] sm:$0xff] }
 0xce2   : > { %v6616_v20 = vpack.c.bf16 %v4529_v42, %v4525_v29  ;;  %v4572_v25 = vpop.permute.xlu0 %4571  ;;  %v6614_v10 = vpack.c.bf16 %v4530_v52, %v4526_v13  ;;  %v4548_v48 = vsel %vm983_vm7, %v11722_v55, %v13324_v2  ;;  %v6618_v42 = vpack.c.bf16 %v4558_v39, %v13327_v60  ;;  %v13330_v2 = vld [vmem:[#allocation54_spill] sm:$0xff]  ;;  %v13331_v45 = vld [vmem:[#allocation20_spill] sm:$0xff]  ;;  %v13335_v60 = vld [vmem:[#allocation21_spill] sm:$0xff] }
 0xce3   : > { %v4582_v52 = vsel %vm1053_vm8, %v11701_v26, %v4574_v63  ;;  %v6568_v31 = vpack.c.bf16 %v4555_v16, %v13328_v12  ;;  %v4580_v30 = vsel %vm1053_vm8, %v4574_v63, %v4578_v57  ;;  %v6620_v21 = vpack.c.bf16 %v4557_v36, %v13329_v17  ;;  %v13332_v36 = vld [vmem:[#allocation32_spill] sm:$0xff]  ;;  %v13337_v17 = vld [vmem:[#allocation23_spill] sm:$0xff] }
 0xce4   : > { %6565 = vmatpush1.bf16.msra.mxu0 %v6564_v49  ;;  %6615 = vmatprep.subr.bf16.mxu1 %v6614_v10  ;;  %v4559_v55 = vmul.f32 %v4552_v3, %v13323_v37  ;;  %v4561_v39 = vmul.f32 %v4548_v48, %v13325_v15  ;;  %v6570_v16 = vpack.c.bf16 %v13330_v2, %v4560_v28  ;;  %v13336_v12 = vld [vmem:[#allocation68_spill] sm:$0xff]  ;;  %v5926_v2 = vld [vmem:[%s12495_s3 + $0xf8] sm:$0xff] }
 0xce5   : > { %6567 = vmatprep.subr.bf16.mxu0 %v6566_v38  ;;  %6617 = vmatpush1.bf16.msra.mxu1 %v6616_v20  ;;  %v4592_v49 = vmul.f32 %v4582_v52, %v13331_v45  ;;  %v6622_v20 = vpack.c.bf16 %v13332_v36, %v4562_v14  ;;  %v4584_v10 = vsel %vm1053_vm8, %v11599_v1, %v11701_v26  ;;  %v13334_v38 = vld [vmem:[#allocation38_spill] sm:$0xff]  ;;  %v5928_v36 = vld [vmem:[%s12495_s3 + $0x108] sm:$0xff] }
 0xce6   : > { %6619 = vmatprep.subr.bf16.mxu1 %v6618_v42  ;;  %v4568_v23 = vpop.permute.xlu0 %4567  ;;  %v4586_v3 = vsel %vm1053_vm8, %v4578_v57, %v11599_v1  ;;  %v4593_v28 = vmul.f32 %v4580_v30, %v13333_v11  ;;  %v6572_v48 = vpack.c.bf16 %v13334_v38, %v4559_v55  ;;  %v4591_v57 = vmul.f32 %v4584_v10, %v13335_v60  ;;  %v5930_v10 = vld [vmem:[%s12495_s3 + $0x118] sm:$0xff]  ;;  %v5931_v38 = vld [vmem:[%s12495_s3 + $0x120] sm:$0xff] }
 0xce7   : > { %v4581_v29 = vsel %vm1053_vm8, %v4568_v23, %v4572_v25  ;;  %v4583_v13 = vsel %vm1053_vm8, %v11747_v43, %v4568_v23  ;;  %v4594_v30 = vmul.f32 %v4586_v3, %v13337_v17  ;;  %v5929_v3 = vld [vmem:[%s12495_s3 + $0x110] sm:$0xff] }
 0xce8   : > { %v4588_v63 = vmul.f32 %v4581_v29, %v13331_v45  ;;  %6569 = vmatpush1.bf16.msra.mxu0 %v6568_v31  ;;  %v4587_v42 = vmul.f32 %v4583_v13, %v13335_v60  ;;  %v6624_v31 = vpack.c.bf16 %v13336_v12, %v4561_v39  ;;  %v5923_v13 = vld [vmem:[%s12495_s3 + $0xe0] sm:$0xff] }
 0xce9   : > { %6571 = vmatprep.subr.bf16.mxu0 %v6570_v16  ;;  %6621 = vmatpush1.bf16.msra.mxu1 %v6620_v21  ;;  %v13340_v16 = vld [vmem:[#allocation33_spill] sm:$0xff] }
 0xcea   : > { %6623 = vmatprep.subr.bf16.mxu1 %v6622_v20  ;;  %v4576_v52 = vpop.permute.xlu0 %4575  ;;  %v6574_v14 = vpack.c.bf16 %v4592_v49, %v4588_v63  ;;  %v6576_v23 = vpack.c.bf16 %v4591_v57, %v4587_v42  ;;  %v13341_v49 = vld [vmem:[#allocation37_spill] sm:$0xff]  ;;  %v5925_v63 = vld [vmem:[%s12495_s3 + $0xf0] sm:$0xff]  ;;  %v5927_v20 = vld [vmem:[%s12495_s3 + $0x100] sm:$0xff] }
 0xceb   : > { %v4579_v26 = vsel %vm1053_vm8, %v4572_v25, %v4576_v52  ;;  %v4585_v1 = vsel %vm1053_vm8, %v4576_v52, %v11747_v43  ;;  %v13338_v25 = vld [vmem:[#allocation55_spill] sm:$0xff]  ;;  %v13339_v43 = vld [vmem:[#allocation34_spill] sm:$0xff]  ;;  %v5933_v42 = vld [vmem:[%s12495_s3 + $0x130] sm:$0xff] }
 0xcec   : > { %v4589_v21 = vmul.f32 %v4579_v26, %v13333_v11  ;;  %v4590_v55 = vmul.f32 %v4585_v1, %v13337_v17  ;;  %6573 = vmatpush1.bf16.msra.mxu0 %v6572_v48  ;;  %v5934_v48 = vld [vmem:[%s12495_s3 + $0x138] sm:$0xff] }
 0xced   : > { %6575 = vmatprep.subr.bf16.mxu0 %v6574_v14  ;;  %6625 = vmatpush1.bf16.msra.mxu1 %v6624_v31  ;;  %v4613_v14 = vpop.permute.xlu1 %4612 }
 0xcee   : > { %v6628_v39 = vpack.c.bf16 %v4593_v28, %v4589_v21  ;;  %v6626_v29 = vpack.c.bf16 %v4594_v30, %v4590_v55  ;;  %v5932_v28 = vld [vmem:[%s12495_s3 + $0x128] sm:$0xff] }
 0xcf0   : > { %6577 = vmatpush1.bf16.msra.mxu0 %v6576_v23  ;;  %6627 = vmatprep.subr.bf16.mxu1 %v6626_v29 }
 0xcf1   : > { %4703 = vmatprep.subr.mxu0 %v13338_v25  ;;  %6629 = vmatpush1.bf16.msra.mxu1 %v6628_v39  ;;  %v11920_v31 = vpop.permute.xlu1 %4622 }
 0xcf2   : > { %4810 = vmatprep.subr.mxu1 %v13339_v43 }
 0xcf4   : > { %4704 = vmatpush1.msra.mxu0 %v13340_v16 }
 0xcf5   : > { %4716 = vmatmul.mubr.f32.vlgmr.msra.gmra.mrb[48].mxu0 %v5923_v13  ;;  %4811 = vmatpush1.msra.mxu1 %v13341_v49  ;;  %v4603_v29 = vpop.permute.xlu1 %4602 }
 0xcf6   : > { %4823 = vmatmul.mubr.f32.vlgmr.msra.gmra.mrb[48].mxu1 %v5923_v13  ;;  %5951 = vmatprep.mubr.msk.f32.mxu0 %vm1134_vm3, %v5926_v2 }
 0xcf7   : > { %5958 = vmatprep.mubr.msk.f32.mxu1 %vm1134_vm3, %v5926_v2 }
 0xcf9   : > { %4722 = vmatmul.mubr.f32.gmra.mrb[50].mxu0 %v5925_v63 }
 0xcfa   : > { %4829 = vmatmul.mubr.f32.gmra.mrb[50].mxu1 %v5925_v63  ;;  %5952 = vmatprep.mubr.msk.f32.mxu0 %vm1134_vm3, %v5928_v36 }
 0xcfb   : > { %5959 = vmatprep.mubr.msk.f32.mxu1 %vm1134_vm3, %v5928_v36  ;;  %v4608_v52 = vpop.permute.xlu0 %4607 }
 0xcfd   : > { %4728 = vmatmul.mubr.f32.gmra.mrb[52].mxu0 %v5927_v20 }
 0xcfe   : > { %4835 = vmatmul.mubr.f32.gmra.mrb[52].mxu1 %v5927_v20  ;;  %5953 = vmatprep.mubr.msk.f32.mxu0 %vm1134_vm3, %v5930_v10 }
 0xcff   : > { %5960 = vmatprep.mubr.msk.f32.mxu1 %vm1134_vm3, %v5930_v10  ;;  %v11918_v12 = vpop.permute.xlu0 %4617 }
 0xd01   : > { %4734 = vmatmul.mubr.f32.gmra.mrb[54].mxu0 %v5929_v3 }
 0xd02   : > { %4841 = vmatmul.mubr.f32.gmra.mrb[54].mxu1 %v5929_v3  ;;  %5954 = vmatprep.mubr.msk.f32.mxu0 %vm1134_vm3, %v5932_v28 }
 0xd03   : > { %5961 = vmatprep.mubr.msk.f32.mxu1 %vm1134_vm3, %v5932_v28  ;;  %v4598_v26 = vpop.permute.xlu0 %4597 }
 0xd05   : > { %4740 = vmatmul.mubr.f32.gmra.mrb[56].mxu0 %v5931_v38 }
 0xd06   : > { %4847 = vmatmul.mubr.f32.gmra.mrb[56].mxu1 %v5931_v38  ;;  %5955 = vmatprep.mubr.msk.f32.mxu0 %vm1134_vm3, %v5934_v48 }
 0xd07   : > { %5962 = vmatprep.mubr.msk.f32.mxu1 %vm1134_vm3, %v5934_v48 }
 0xd09   : > { %4746 = vmatmul.mubr.f32.gmra.mrb[58].mxu0 %v5933_v42 }
 0xd0a   : > { %4853 = vmatmul.mubr.f32.gmra.mrb[58].mxu1 %v5933_v42 }
 0xdc8   : > { %v4717_v1 = vpop.f32.mrb[48].mxu0 }
 0xdc9   : > { %v4718_v57 = vadd.f32 %v4717_v1, %v4598_v26  ;;  %v4719_v30 = vpop.f32.mrb[49].mxu0  ;;  %v4824_v21 = vpop.f32.mrb[48].mxu1 }
 0xdca   : > { %v4720_v55 = vadd.f32 %v4719_v30, %v4598_v26  ;;  %v4826_v23 = vpop.f32.mrb[49].mxu1  ;;  %v4825_v39 = vadd.f32 %v4824_v21, %v4598_v26 }
 0xdcb   : > { %v4827_v25 = vadd.f32 %v4826_v23, %v4598_v26  ;;  %7099 = vtanh.f32 %v4718_v57 }
 0xdcc   : > { %v4723_v43 = vpop.f32.mrb[50].mxu0  ;;  %7101 = vtanh.f32 %v4720_v55 }
 0xdcd   : > { %v4724_v13 = vadd.f32 %v4723_v43, %v4603_v29  ;;  %v4725_v2 = vpop.f32.mrb[51].mxu0  ;;  %v4830_v16 = vpop.f32.mrb[50].mxu1  ;;  %7103 = vtanh.f32 %v4825_v39 }
 0xdce   : > { %v4726_v49 = vadd.f32 %v4725_v2, %v4603_v29  ;;  %v4832_v63 = vpop.f32.mrb[51].mxu1  ;;  %v4831_v36 = vadd.f32 %v4830_v16, %v4603_v29  ;;  %7105 = vtanh.f32 %v4827_v25 }
 0xdcf   : > { %v4833_v20 = vadd.f32 %v4832_v63, %v4603_v29  ;;  %7107 = vtanh.f32 %v4724_v13 }
 0xdd0   : > { %v4729_v10 = vpop.f32.mrb[52].mxu0  ;;  %7109 = vtanh.f32 %v4726_v49 }
 0xdd1   : > { %v4730_v3 = vadd.f32 %v4729_v10, %v4608_v52  ;;  %v4731_v28 = vpop.f32.mrb[53].mxu0  ;;  %v4836_v38 = vpop.f32.mrb[52].mxu1  ;;  %7111 = vtanh.f32 %v4831_v36 }
 0xdd2   : > { %v4732_v48 = vadd.f32 %v4731_v28, %v4608_v52  ;;  %v4837_v42 = vadd.f32 %v4836_v38, %v4608_v52  ;;  %v4838_v26 = vpop.f32.mrb[53].mxu1  ;;  %7113 = vtanh.f32 %v4833_v20 }
 0xdd3   : > { %v5964_v1 = vmul.f32 -1.442695, %v4730_v3  ;;  %v4839_v57 = vadd.f32 %v4838_v26, %v4608_v52 }
 0xdd4   : > { %v5965_v30 = vmul.f32 -1.442695, %v4732_v48  ;;  %v5966_v21 = vmul.f32 -1.442695, %v4837_v42  ;;  %v4735_v55 = vpop.f32.mrb[54].mxu0 }
 0xdd5   : > { %7115 = vpow2.f32 %v5964_v1  ;;  %v5967_v23 = vmul.f32 -1.442695, %v4839_v57  ;;  %v4736_v39 = vadd.f32 %v4735_v55, %v4613_v14  ;;  %v4737_v29 = vpop.f32.mrb[55].mxu0  ;;  %v4842_v25 = vpop.f32.mrb[54].mxu1 }
 0xdd6   : > { %7117 = vpow2.f32 %v5965_v30  ;;  %v4738_v43 = vadd.f32 %v4737_v29, %v4613_v14  ;;  %v4843_v13 = vadd.f32 %v4842_v25, %v4613_v14  ;;  %v4844_v2 = vpop.f32.mrb[55].mxu1  ;;  %v11922_v16 = vpop.eup %7099 }
 0xdd7   : > { %7119 = vpow2.f32 %v5966_v21  ;;  %v5968_v49 = vmul.f32 -1.442695, %v4736_v39  ;;  %v4845_v63 = vadd.f32 %v4844_v2, %v4613_v14  ;;  %v11924_v36 = vpop.eup %7101 }
 0xdd8   : > { %7121 = vpow2.f32 %v5967_v23  ;;  %v5969_v52 = vmul.f32 -1.442695, %v4738_v43  ;;  %v5970_v20 = vmul.f32 -1.442695, %v4843_v13  ;;  %v4741_v10 = vpop.f32.mrb[56].mxu0  ;;  %v11926_v3 = vpop.eup %7103 }
 0xdd9   : > { %7123 = vpow2.f32 %v5968_v49  ;;  %v5971_v28 = vmul.f32 -1.442695, %v4845_v63  ;;  %v4742_v38 = vadd.f32 %v4741_v10, %v11918_v12  ;;  %v4743_v48 = vpop.f32.mrb[57].mxu0  ;;  %v4848_v42 = vpop.f32.mrb[56].mxu1 }
 0xdda   : > { %v11929_v26 = vpop.eup %7105  ;;  %7125 = vpow2.f32 %v5969_v52  ;;  %v4744_v1 = vadd.f32 %v4743_v48, %v11918_v12  ;;  %v4849_v14 = vadd.f32 %v4848_v42, %v11918_v12  ;;  %v4850_v57 = vpop.f32.mrb[57].mxu1 }
 0xddb   : > { %v11933_v30 = vpop.eup %7107  ;;  %7127 = vpow2.f32 %v5970_v20  ;;  %v5972_v21 = vmul.f32 -1.442695, %v4742_v38  ;;  %v4851_v55 = vadd.f32 %v4850_v57, %v11918_v12 }
 0xddc   : > { %v11936_v23 = vpop.eup %7109  ;;  %7129 = vpow2.f32 %v5971_v28  ;;  %v5973_v39 = vmul.f32 -1.442695, %v4744_v1  ;;  %v5974_v29 = vmul.f32 -1.442695, %v4849_v14  ;;  %v4747_v25 = vpop.f32.mrb[58].mxu0 }
 0xddd   : > { %v11938_v43 = vpop.eup %7111  ;;  %7131 = vpow2.f32 %v5972_v21  ;;  %v5975_v13 = vmul.f32 -1.442695, %v4851_v55  ;;  %v4748_v2 = vadd.f32 %v4747_v25, %v11920_v31  ;;  %v4749_v49 = vpop.f32.mrb[59].mxu0 }
 0xdde   : > { %v4854_v63 = vpop.f32.mrb[58].mxu1  ;;  %v11941_v52 = vpop.eup %7113  ;;  %7133 = vpow2.f32 %v5973_v39 }
 0xddf   : > { %v4856_v20 = vpop.f32.mrb[59].mxu1  ;;  %v7116_v10 = vpop.eup %7115  ;;  %7135 = vpow2.f32 %v5974_v29  ;;  %v5976_v12 = vmul.f32 -1.442695, %v4748_v2 }
 0xde0   : > { %v7118_v38 = vpop.eup %7117  ;;  %v4921_v28 = vadd.f32 1.0, %v7116_v10  ;;  %7137 = vpow2.f32 %v5975_v13 }
 0xde1   : > { %v7120_v48 = vpop.eup %7119  ;;  %v4922_v42 = vadd.f32 1.0, %v7118_v38  ;;  %7139 = vpow2.f32 %v5976_v12  ;;  %v4750_v12 = vadd.f32 %v4749_v49, %v11920_v31 }
 0xde2   : > { %v7122_v1 = vpop.eup %7121  ;;  %7141 = vrcp.f32 %v4921_v28  ;;  %v4923_v14 = vadd.f32 1.0, %v7120_v48  ;;  %v4855_v48 = vadd.f32 %v4854_v63, %v11920_v31 }
 0xde3   : > { %v7124_v57 = vpop.eup %7123  ;;  %7143 = vrcp.f32 %v4922_v42  ;;  %v4924_v21 = vadd.f32 1.0, %v7122_v1 }
 0xde4   : > { %v7126_v55 = vpop.eup %7125  ;;  %7145 = vrcp.f32 %v4923_v14  ;;  %v4925_v25 = vadd.f32 1.0, %v7124_v57  ;;  %v4857_v14 = vadd.f32 %v4856_v20, %v11920_v31  ;;  %v4335_v31 = vld [vmem:[#allocation3 + $0x60] sm:$0xff] }
 0xde5   : > { %v7128_v39 = vpop.eup %7127  ;;  %7147 = vrcp.f32 %v4924_v21  ;;  %v4926_v17 = vadd.f32 1.0, %v7126_v55 }
 0xde6   : > { %v7130_v29 = vpop.eup %7129  ;;  %7149 = vrcp.f32 %v4925_v25  ;;  %v4927_v2 = vadd.f32 1.0, %v7128_v39  ;;  %v5979_v63 = vmul.f32 -1.442695, %v4857_v14 }
 0xde7   : > { %v7132_v10 = vpop.eup %7131  ;;  %7151 = vrcp.f32 %v4926_v17  ;;  %v4928_v13 = vadd.f32 1.0, %v7130_v29  ;;  %v5977_v17 = vmul.f32 -1.442695, %v4750_v12  ;;  %v5978_v29 = vmul.f32 -1.442695, %v4855_v48 }
 0xde8   : > { %v7134_v38 = vpop.eup %7133  ;;  %7153 = vrcp.f32 %v4927_v2  ;;  %v4929_v28 = vadd.f32 1.0, %v7132_v10 }
 0xde9   : > { %v7136_v42 = vpop.eup %7135  ;;  %7155 = vrcp.f32 %v4928_v13  ;;  %v4930_v1 = vadd.f32 1.0, %v7134_v38 }
 0xdea   : > { %v7138_v57 = vpop.eup %7137  ;;  %7157 = vrcp.f32 %v4929_v28  ;;  %v4931_v21 = vadd.f32 1.0, %v7136_v42  ;;  %v4336_v42 = vld [vmem:[#allocation3 + $0x68] sm:$0xff] }
 0xdeb   : > { %v7140_v55 = vpop.eup %7139  ;;  %7159 = vrcp.f32 %v4930_v1  ;;  %v4932_v25 = vadd.f32 1.0, %v7138_v57  ;;  %v4337_v57 = vld [vmem:[#allocation3 + $0x70] sm:$0xff] }
 0xdec   : > { %v7142_v39 = vpop.eup %7141  ;;  %7161 = vrcp.f32 %v4931_v21  ;;  %v4933_v49 = vadd.f32 1.0, %v7140_v55 }
 0xded   : > { %v7144_v2 = vpop.eup %7143  ;;  %v4973_v10 = vmul.f32 %v7142_v39, %v11922_v16  ;;  %7163 = vrcp.f32 %v4932_v25  ;;  %v4338_v16 = vld [vmem:[#allocation3 + $0x78] sm:$0xff] }
 0xdee   : > { %v7146_v13 = vpop.eup %7145  ;;  %v4974_v38 = vmul.f32 %v7144_v2, %v11924_v36  ;;  %7165 = vrcp.f32 %v4933_v49 }
 0xdef   : > { %v7148_v20 = vpop.eup %7147  ;;  %v4975_v28 = vmul.f32 %v7146_v13, %v11926_v3  ;;  %7167 = vpow2.f32 %v5977_v17 }
 0xdf0   : > { %v7150_v12 = vpop.eup %7149  ;;  %v4976_v1 = vmul.f32 %v7148_v20, %v11929_v26  ;;  %7169 = vpow2.f32 %v5978_v29 }
 0xdf1   : > { %v7152_v48 = vpop.eup %7151  ;;  %v4969_v21 = vmul.f32 %v7150_v12, %v4335_v31  ;;  %7171 = vpow2.f32 %v5979_v63 }
 0xdf2   : > { %v7154_v14 = vpop.eup %7153  ;;  %v4970_v55 = vmul.f32 %v7152_v48, %v4336_v42 }
 0xdf3   : > { %v7156_v25 = vpop.eup %7155  ;;  %v11950_v36 = vadd.f32 %v4973_v10, %v4969_v21  ;;  %v4971_v39 = vmul.f32 %v7154_v14, %v4337_v57 }
 0xdf4   : > { %v7158_v49 = vpop.eup %7157  ;;  %v11952_v2 = vadd.f32 %v4974_v38, %v4970_v55  ;;  %v4972_v3 = vmul.f32 %v7156_v25, %v4338_v16 }
 0xdf5   : > { %v7160_v17 = vpop.eup %7159  ;;  %5459 = vst [vmem:[#allocation3 + $0x60] sm:$0xff] %v11950_v36  ;;  %v11955_v26 = vadd.f32 %v4975_v28, %v4971_v39  ;;  %v4985_v29 = vmul.f32 %v7158_v49, %v11933_v30  ;;  %4993 = vrot.lane.b32.xlu0 %v11950_v36, %s7260_s27 }
 0xdf6   : > { %v7162_v63 = vpop.eup %7161  ;;  %5460 = vst [vmem:[#allocation3 + $0x68] sm:$0xff] %v11952_v2  ;;  %v11961_v10 = vadd.f32 %v4976_v1, %v4972_v3  ;;  %v4986_v13 = vmul.f32 %v7160_v17, %v11936_v23  ;;  %v5943_v17 = vld [vmem:[%s12497_s5 + $0xd8] sm:$0xff] }
 0xdf7   : > { %13342 = vst [vmem:[#allocation42_spill] sm:$0xff] %v11955_v26  ;;  %v7164_v38 = vpop.eup %7163  ;;  %5461 = vst [vmem:[#allocation3 + $0x70] sm:$0xff] %v11955_v26  ;;  %v4987_v31 = vmul.f32 %v7162_v63, %v11938_v43  ;;  %v5936_v63 = vld [vmem:[%s12495_s3 + $0x148] sm:$0xff] }
 0xdf8   : > { %v7166_v20 = vpop.eup %7165  ;;  %5462 = vst [vmem:[#allocation3 + $0x78] sm:$0xff] %v11961_v10  ;;  %v4988_v30 = vmul.f32 %v7164_v38, %v11941_v52  ;;  %5956 = vmatprep.mubr.msk.f32.mxu0 %vm1134_vm3, %v5936_v63  ;;  %v5935_v38 = vld [vmem:[%s12495_s3 + $0x140] sm:$0xff]  ;;  %5963 = vmatprep.mubr.msk.f32.mxu1 %vm1134_vm3, %v5936_v63 }
 0xdf9   : > { %v7168_v28 = vpop.eup %7167  ;;  %v4981_v42 = vmul.f32 %v7166_v20, %v13311_v41  ;;  %5001 = vrot.lane.b32.xlu0 %v11955_v26, %s7260_s27  ;;  %4752 = vmatmul.mubr.f32.gmra.mrb[60].mxu0 %v5935_v38 }
 0xdfa   : > { %v7170_v12 = vpop.eup %7169  ;;  %v4934_v1 = vadd.f32 1.0, %v7168_v28  ;;  %4859 = vmatmul.mubr.f32.gmra.mrb[60].mxu1 %v5935_v38  ;;  %v5945_v28 = vld [vmem:[%s12496_s4 + $0x68] sm:$0xff] }
 0xdfb   : > { %v7172_v57 = vpop.eup %7171  ;;  %v11971_v23 = vadd.f32 %v4985_v29, %v4981_v42  ;;  %v4935_v48 = vadd.f32 1.0, %v7170_v12  ;;  %5980 = vmatprep.mubr.msk.f32.mxu0 %vm1764_vm9, %v5945_v28  ;;  %5982 = vmatprep.mubr.msk.f32.mxu1 %vm1764_vm9, %v5945_v28 }
 0xdfc   : > { %7173 = vrcp.f32 %v4934_v1  ;;  %v4936_v21 = vadd.f32 1.0, %v7172_v57 }
 0xdfd   : > { %5463 = vst [vmem:[#allocation4] sm:$0xff] %v11971_v23  ;;  %7175 = vrcp.f32 %v4935_v48  ;;  %4995 = vrot.lane.b32.xlu1 %v11971_v23, %s7260_s27  ;;  %5025 = vrot.lane.b32.xlu0 %v11950_v36, %s7261_s11 }
 0xdfe   : > { %7177 = vrcp.f32 %v4936_v21  ;;  %v5948_v21 = vld [vmem:[%s12498_s6 + $0x30] sm:$0xff] }
 0xe01   : > { %5033 = vrot.lane.b32.xlu0 %v11955_v26, %s7261_s11 }
 0xe05   : > { %5057 = vrot.lane.b32.xlu0 %v11950_v36, %s7262_s12 }
 0xe06   : > { %v7174_v41 = vpop.eup %7173 }
 0xe07   : > { %v7176_v43 = vpop.eup %7175  ;;  %v4982_v52 = vmul.f32 %v7174_v41, %v13301_v6 }
 0xe08   : > { %v7178_v16 = vpop.eup %7177  ;;  %v4983_v14 = vmul.f32 %v7176_v43, %v13312_v40 }
 0xe09   : > { %v11984_v55 = vadd.f32 %v4986_v13, %v4982_v52  ;;  %v4984_v25 = vmul.f32 %v7178_v16, %v13303_v35  ;;  %5065 = vrot.lane.b32.xlu0 %v11955_v26, %s7262_s12  ;;  %v5949_v13 = vld [vmem:[%s12498_s6 + $0x38] sm:$0xff]  ;;  %v5468_v52 = vld [vmem:[%s12500_s8] sm:$0xff] }
 0xe0a   : > { %v11989_v39 = vadd.f32 %v4987_v31, %v4983_v14 }
 0xe0b   : > { %5464 = vst [vmem:[#allocation4 + $0x8] sm:$0xff] %v11984_v55  ;;  %v11992_v49 = vadd.f32 %v4988_v30, %v4984_v25  ;;  %v5620_v30 = vld [vmem:[%s12501_s9] sm:$0xff] }
 0xe0c   : > { %13343 = vst [vmem:[#allocation7_spill] sm:$0xff] %v11989_v39  ;;  %5465 = vst [vmem:[#allocation4 + $0x10] sm:$0xff] %v11989_v39  ;;  %5003 = vrot.lane.b32.xlu1 %v11989_v39, %s7260_s27 }
 0xe0d   : > { %5466 = vst [vmem:[#allocation4 + $0x18] sm:$0xff] %v11992_v49  ;;  %5089 = vrot.lane.b32.xlu0 %v11950_v36, %s7263_s13 }
 0xe10   : > { %5027 = vrot.lane.b32.xlu1 %v11971_v23, %s7261_s11 }
 0xe11   : > { %5097 = vrot.lane.b32.xlu0 %v11955_v26, %s7263_s13 }
 0xe14   : > { %5035 = vrot.lane.b32.xlu1 %v11989_v39, %s7261_s11 }
 0xe15   : > { %5121 = vrot.lane.b32.xlu0 %v11950_v36, %s7264_s17 }
 0xe18   : > { %5059 = vrot.lane.b32.xlu1 %v11971_v23, %s7262_s12 }
 0xe19   : > { %5129 = vrot.lane.b32.xlu0 %v11955_v26, %s7264_s17 }
 0xe1c   : > { %5067 = vrot.lane.b32.xlu1 %v11989_v39, %s7262_s12 }
 0xe1d   : > { %5153 = vrot.lane.b32.xlu0 %v11950_v36, %s7265_s18 }
 0xe20   : > { %5091 = vrot.lane.b32.xlu1 %v11971_v23, %s7263_s13 }
 0xe21   : > { %5161 = vrot.lane.b32.xlu0 %v11955_v26, %s7265_s18 }
 0xe24   : > { %5099 = vrot.lane.b32.xlu1 %v11989_v39, %s7263_s13 }
 0xe25   : > { %5185 = vrot.lane.b32.xlu0 %v11950_v36, %s7266_s24 }
 0xe28   : > { %5123 = vrot.lane.b32.xlu1 %v11971_v23, %s7264_s17 }
 0xe29   : > { %5193 = vrot.lane.b32.xlu0 %v11955_v26, %s7266_s24 }
 0xe2c   : > { %5131 = vrot.lane.b32.xlu1 %v11989_v39, %s7264_s17 }
 0xe2d   : > { %5217 = vrot.lane.b32.xlu0 %v11950_v36, %s7267_s28 }
 0xe30   : > { %5155 = vrot.lane.b32.xlu1 %v11971_v23, %s7265_s18 }
 0xe31   : > { %5225 = vrot.lane.b32.xlu0 %v11955_v26, %s7267_s28 }
 0xe34   : > { %5163 = vrot.lane.b32.xlu1 %v11989_v39, %s7265_s18 }
 0xe35   : > { %4997 = vrot.lane.b32.xlu0 %v11952_v2, %s7260_s27 }
 0xe38   : > { %5187 = vrot.lane.b32.xlu1 %v11971_v23, %s7266_s24 }
 0xe39   : > { %5005 = vrot.lane.b32.xlu0 %v11961_v10, %s7260_s27 }
 0xe3c   : > { %5195 = vrot.lane.b32.xlu1 %v11989_v39, %s7266_s24 }
 0xe3d   : > { %5029 = vrot.lane.b32.xlu0 %v11952_v2, %s7261_s11 }
 0xe40   : > { %5219 = vrot.lane.b32.xlu1 %v11971_v23, %s7267_s28 }
 0xe41   : > { %5037 = vrot.lane.b32.xlu0 %v11961_v10, %s7261_s11 }
 0xe44   : > { %5227 = vrot.lane.b32.xlu1 %v11989_v39, %s7267_s28 }
 0xe45   : > { %5061 = vrot.lane.b32.xlu0 %v11952_v2, %s7262_s12 }
 0xe48   : > { %4999 = vrot.lane.b32.xlu1 %v11984_v55, %s7260_s27 }
 0xe49   : > { %5069 = vrot.lane.b32.xlu0 %v11961_v10, %s7262_s12 }
 0xe4c   : > { %5007 = vrot.lane.b32.xlu1 %v11992_v49, %s7260_s27 }
 0xe4d   : > { %5093 = vrot.lane.b32.xlu0 %v11952_v2, %s7263_s13 }
 0xe50   : > { %5031 = vrot.lane.b32.xlu1 %v11984_v55, %s7261_s11 }
 0xe51   : > { %5101 = vrot.lane.b32.xlu0 %v11961_v10, %s7263_s13 }
 0xe54   : > { %5039 = vrot.lane.b32.xlu1 %v11992_v49, %s7261_s11 }
 0xe55   : > { %5125 = vrot.lane.b32.xlu0 %v11952_v2, %s7264_s17 }
 0xe58   : > { %5063 = vrot.lane.b32.xlu1 %v11984_v55, %s7262_s12 }
 0xe59   : > { %5133 = vrot.lane.b32.xlu0 %v11961_v10, %s7264_s17 }
 0xe5c   : > { %5071 = vrot.lane.b32.xlu1 %v11992_v49, %s7262_s12 }
 0xe5d   : > { %5157 = vrot.lane.b32.xlu0 %v11952_v2, %s7265_s18 }
 0xe60   : > { %5095 = vrot.lane.b32.xlu1 %v11984_v55, %s7263_s13 }
 0xe61   : > { %5165 = vrot.lane.b32.xlu0 %v11961_v10, %s7265_s18 }
 0xe64   : > { %5103 = vrot.lane.b32.xlu1 %v11992_v49, %s7263_s13 }
 0xe65   : > { %5189 = vrot.lane.b32.xlu0 %v11952_v2, %s7266_s24 }
 0xe67   : > { %v12090_v35 = vpop.permute.xlu0 %4993 }
 0xe68   : > { %5127 = vrot.lane.b32.xlu1 %v11984_v55, %s7264_s17 }
 0xe69   : > { %5197 = vrot.lane.b32.xlu0 %v11961_v10, %s7266_s24 }
 0xe6b   : > { %v12096_v40 = vpop.permute.xlu0 %5001 }
 0xe6c   : > { %5135 = vrot.lane.b32.xlu1 %v11992_v49, %s7264_s17 }
 0xe6d   : > { %5221 = vrot.lane.b32.xlu0 %v11952_v2, %s7267_s28 }
 0xe6f   : > { %v12102_v3 = vpop.permute.xlu0 %5025  ;;  %v12130_v20 = vpop.permute.xlu1 %4995 }
 0xe70   : > { %5159 = vrot.lane.b32.xlu1 %v11984_v55, %s7265_s18 }
 0xe71   : > { %5229 = vrot.lane.b32.xlu0 %v11961_v10, %s7267_s28 }
 0xe73   : > { %v12111_v29 = vpop.permute.xlu0 %5033 }
 0xe74   : > { %5167 = vrot.lane.b32.xlu1 %v11992_v49, %s7265_s18 }
 0xe75   : > { %4627 = vperm.xlu0 %6785, %v5943_v17  }
 0xe77   : > { %v12126_v31 = vpop.permute.xlu0 %5057 }
 0xe78   : > { %5191 = vrot.lane.b32.xlu1 %v11984_v55, %s7266_s24 }
 0xe79   : > { %5256 = vperm.xlu0 %6785, %v5949_v13  }
 0xe7b   : > { %v12138_v42 = vpop.permute.xlu0 %5065 }
 0xe7c   : > { %5199 = vrot.lane.b32.xlu1 %v11992_v49, %s7266_s24 }
 0xe7d   : > { %5647 = vperm.xlu0 %6785, %v5620_v30  }
 0xe7e   : > { %v5004_v12 = vpop.permute.xlu1 %5003 }
 0xe7f   : > { %v12144_v1 = vpop.permute.xlu0 %5089 }
 0xe80   : > { %5223 = vrot.lane.b32.xlu1 %v11984_v55, %s7267_s28 }
 0xe82   : > { %v12148_v57 = vpop.permute.xlu1 %5027 }
 0xe83   : > { %v12150_v48 = vpop.permute.xlu0 %5097 }
 0xe84   : > { %5231 = vrot.lane.b32.xlu1 %v11992_v49, %s7267_s28 }
 0xe86   : > { %v12157_v41 = vpop.permute.xlu1 %5035 }
 0xe87   : > { %v12159_v43 = vpop.permute.xlu0 %5121 }
 0xe88   : > { %5251 = vperm.xlu1 %6786, %v5948_v21  }
 0xe8a   : > { %v12164_v16 = vpop.permute.xlu1 %5059 }
 0xe8b   : > { %v12166_v14 = vpop.permute.xlu0 %5129 }
 0xe8c   : > { %5471 = vperm.xlu1 %6786, %v5468_v52  }
 0xe8e   : > { %v12168_v25 = vpop.permute.xlu1 %5067 }
 0xe8f   : > { %v12170_v17 = vpop.permute.xlu0 %5153 }
 0xe90   : > { %13344 = vst [vmem:[#allocation46_spill] sm:$0xff] %v12170_v17 }
 0xe92   : > { %v12172_v63 = vpop.permute.xlu1 %5091 }
 0xe93   : > { %v12174_v13 = vpop.permute.xlu0 %5161 }
 0xe94   : > { %13345 = vst [vmem:[#allocation59_spill] sm:$0xff] %v12174_v13 }
 0xe96   : > { %v12176_v38 = vpop.permute.xlu1 %5099 }
 0xe97   : > { %v12178_v30 = vpop.permute.xlu0 %5185 }
 0xe98   : > { %13346 = vst [vmem:[#allocation57_spill] sm:$0xff] %v12178_v30 }
 0xe9a   : > { %v12180_v28 = vpop.permute.xlu1 %5123 }
 0xe9b   : > { %v12182_v21 = vpop.permute.xlu0 %5193 }
 0xe9c   : > { %13347 = vst [vmem:[#allocation24_spill] sm:$0xff] %v12182_v21 }
 0xe9e   : > { %v12184_v6 = vpop.permute.xlu1 %5131 }
 0xe9f   : > { %v12186_v11 = vpop.permute.xlu0 %5217 }
 0xea0   : > { %13348 = vst [vmem:[#allocation25_spill] sm:$0xff] %v12186_v11 }
 0xea2   : > { %v12188_v52 = vpop.permute.xlu1 %5155 }
 0xea3   : > { %13349 = vst [vmem:[#allocation41_spill] sm:$0xff] %v12188_v52  ;;  %v12190_v45 = vpop.permute.xlu0 %5225 }
 0xea4   : > { %13350 = vst [vmem:[#allocation28_spill] sm:$0xff] %v12190_v45 }
 0xea6   : > { %v12192_v60 = vpop.permute.xlu1 %5163 }
 0xea7   : > { %13351 = vst [vmem:[#allocation44_spill] sm:$0xff] %v12192_v60  ;;  %v4998_v46 = vpop.permute.xlu0 %4997 }
 0xea8   : > { %v5013_v11 = vsel %vm563_vm0, %v12090_v35, %v4998_v46  ;;  %v5011_v45 = vsel %vm563_vm0, %v4998_v46, %v12096_v40 }
 0xea9   : > { %v5019_v56 = vmul.f32 %v5011_v45, %v7559_v61 }
 0xeaa   : > { %v12194_v15 = vpop.permute.xlu1 %5187 }
 0xeab   : > { %13352 = vst [vmem:[#allocation70_spill] sm:$0xff] %v12194_v15  ;;  %v5006_v9 = vpop.permute.xlu0 %5005  ;;  %v13356_v15 = vld [vmem:[#allocation6_spill] sm:$0xff] }
 0xeac   : > { %v5018_v60 = vmul.f32 %v5013_v11, %v13356_v15  ;;  %v5015_v26 = vsel %vm563_vm0, %v5006_v9, %v12090_v35  ;;  %v5009_v11 = vsel %vm563_vm0, %v12096_v40, %v5006_v9 }
 0xeae   : > { %v12196_v37 = vpop.permute.xlu1 %5195 }
 0xeaf   : > { %13353 = vst [vmem:[#allocation50_spill] sm:$0xff] %v12196_v37  ;;  %v5030_v30 = vpop.permute.xlu0 %5029 }
 0xeb0   : > { %v5045_v45 = vsel %vm633_vm1, %v12102_v3, %v5030_v30 }
 0xeb2   : > { %v12198_v7 = vpop.permute.xlu1 %5219 }
 0xeb3   : > { %13354 = vst [vmem:[#allocation31_spill] sm:$0xff] %v12198_v7  ;;  %v5038_v21 = vpop.permute.xlu0 %5037 }
 0xeb6   : > { %v12200_v27 = vpop.permute.xlu1 %5227 }
 0xeb7   : > { %13355 = vst [vmem:[#allocation27_spill] sm:$0xff] %v12200_v27  ;;  %v5062_v47 = vpop.permute.xlu0 %5061 }
 0xeba   : > { %v5000_v52 = vpop.permute.xlu1 %4999 }
 0xebb   : > { %v5012_v37 = vsel %vm563_vm0, %v5000_v52, %v5004_v12  ;;  %v5014_v7 = vsel %vm563_vm0, %v12130_v20, %v5000_v52  ;;  %v5070_v27 = vpop.permute.xlu0 %5069  ;;  %v5017_v52 = vmul.f32 %v5015_v26, %v7541_v53 }
 0xebc   : > { %v5022_v39 = vmul.f32 %v5014_v7, %v13356_v15  ;;  %v5023_v46 = vmul.f32 %v5012_v37, %v7559_v61  ;;  %v5020_v37 = vmul.f32 %v5009_v11, %v7544_v54 }
 0xebe   : > { %v6668_v13 = vpack.c.bf16 %v5023_v46, %v5019_v56  ;;  %v5008_v17 = vpop.permute.xlu1 %5007  ;;  %v6630_v59 = vpack.c.bf16 %v5022_v39, %v5018_v60  ;;  %v5043_v56 = vsel %vm633_vm1, %v5030_v30, %v12111_v29  ;;  %v5050_v60 = vmul.f32 %v5045_v45, %v7595_v24 }
 0xebf   : > { %v5010_v35 = vsel %vm563_vm0, %v5004_v12, %v5008_v17  ;;  %v5016_v61 = vsel %vm563_vm0, %v5008_v17, %v12130_v20  ;;  %v5094_v7 = vpop.permute.xlu0 %5093  ;;  %v5051_v12 = vmul.f32 %v5043_v56, %v7598_v32  ;;  %v5041_v20 = vsel %vm633_vm1, %v12111_v29, %v5038_v21 }
 0xec0   : > { %v5021_v9 = vmul.f32 %v5016_v61, %v7541_v53  ;;  %v5024_v15 = vmul.f32 %v5010_v35, %v7544_v54  ;;  %6631 = vmatprep.subr.bf16.mxu0 %v6630_v59  ;;  %v5047_v59 = vsel %vm633_vm1, %v5038_v21, %v12102_v3  ;;  %v5052_v35 = vmul.f32 %v5041_v20, %v7601_v33 }
 0xec1   : > { %v5049_v45 = vmul.f32 %v5047_v59, %v7583_v18  ;;  %v5077_v3 = vsel %vm703_vm2, %v12126_v31, %v5062_v47 }
 0xec2   : > { %v6632_v26 = vpack.c.bf16 %v5021_v9, %v5017_v52  ;;  %v5032_v39 = vpop.permute.xlu1 %5031  ;;  %v6666_v40 = vpack.c.bf16 %v5024_v15, %v5020_v37  ;;  %v5082_v15 = vmul.f32 %v5077_v3, %v7676_v44 }
 0xec3   : > { %v5044_v17 = vsel %vm633_vm1, %v5032_v39, %v12157_v41  ;;  %v5046_v53 = vsel %vm633_vm1, %v12148_v57, %v5032_v39  ;;  %v5102_v54 = vpop.permute.xlu0 %5101  ;;  %v5073_v39 = vsel %vm703_vm2, %v12138_v42, %v5070_v27 }
 0xec4   : > { %v5054_v30 = vmul.f32 %v5046_v53, %v7595_v24  ;;  %v5055_v46 = vmul.f32 %v5044_v17, %v7598_v32  ;;  %6633 = vmatpush1.bf16.msra.mxu0 %v6632_v26  ;;  %6667 = vmatprep.subr.bf16.mxu1 %v6666_v40  ;;  %v5075_v32 = vsel %vm703_vm2, %v5062_v47, %v12138_v42 }
 0xec5   : > { %6669 = vmatpush1.bf16.msra.mxu1 %v6668_v13 }
 0xec6   : > { %v6672_v29 = vpack.c.bf16 %v5055_v46, %v5051_v12  ;;  %v5040_v11 = vpop.permute.xlu1 %5039  ;;  %v6634_v52 = vpack.c.bf16 %v5054_v30, %v5050_v60  ;;  %v5107_v30 = vsel %vm773_vm4, %v5094_v7, %v12150_v48 }
 0xec7   : > { %v5042_v61 = vsel %vm633_vm1, %v12157_v41, %v5040_v11  ;;  %v5048_v24 = vsel %vm633_vm1, %v5040_v11, %v12148_v57  ;;  %v5126_v37 = vpop.permute.xlu0 %5125  ;;  %v5083_v57 = vmul.f32 %v5075_v32, %v7696_v5 }
 0xec8   : > { %v5053_v13 = vmul.f32 %v5048_v24, %v7583_v18  ;;  %v5056_v21 = vmul.f32 %v5042_v61, %v7601_v33  ;;  %6635 = vmatprep.subr.bf16.mxu0 %v6634_v52  ;;  %v5079_v18 = vsel %vm703_vm2, %v5070_v27, %v12126_v31  ;;  %v5109_v27 = vsel %vm773_vm4, %v12144_v1, %v5094_v7 }
 0xec9   : > { %v5081_v53 = vmul.f32 %v5079_v18, %v7701_v8  ;;  %v5111_v61 = vsel %vm773_vm4, %v5102_v54, %v12144_v1 }
 0xeca   : > { %v6636_v56 = vpack.c.bf16 %v5053_v13, %v5049_v45  ;;  %v5064_v41 = vpop.permute.xlu1 %5063  ;;  %v6670_v9 = vpack.c.bf16 %v5056_v21, %v5052_v35  ;;  %v5105_v35 = vsel %vm773_vm4, %v12150_v48, %v5102_v54  ;;  %v5113_v13 = vmul.f32 %v5111_v61, %v7743_v50 }
 0xecb   : > { %v5076_v60 = vsel %vm703_vm2, %v5064_v41, %v12168_v25  ;;  %v5078_v47 = vsel %vm703_vm2, %v12164_v16, %v5064_v41  ;;  %v5134_v17 = vpop.permute.xlu0 %5133  ;;  %v5116_v48 = vmul.f32 %v5105_v35, %v7760_v0  ;;  %v5139_v54 = vsel %vm843_vm5, %v5126_v37, %v12166_v14 }
 0xecc   : > { %v5086_v33 = vmul.f32 %v5078_v47, %v7676_v44  ;;  %v5087_v26 = vmul.f32 %v5076_v60, %v7696_v5  ;;  %6637 = vmatpush1.bf16.msra.mxu0 %v6636_v56  ;;  %6671 = vmatprep.subr.bf16.mxu1 %v6670_v9  ;;  %v5084_v5 = vmul.f32 %v5073_v39, %v7693_v62 }
 0xecd   : > { %6673 = vmatpush1.bf16.msra.mxu1 %v6672_v29  ;;  %v6646_v9 = vpack.c.bf16 %v11984_v55, %v11952_v2  ;;  %v5146_v60 = vmul.f32 %v5139_v54, %v13294_v22  ;;  %v5137_v2 = vsel %vm843_vm5, %v12166_v14, %v5134_v17 }
 0xece   : > { %v6676_v40 = vpack.c.bf16 %v5087_v26, %v5083_v57  ;;  %v5072_v12 = vpop.permute.xlu1 %5071  ;;  %v6638_v20 = vpack.c.bf16 %v5086_v33, %v5082_v15  ;;  %v5141_v15 = vsel %vm843_vm5, %v12159_v43, %v5126_v37  ;;  %v6682_v57 = vpack.c.bf16 %v11992_v49, %v11961_v10  ;;  %v13357_v26 = vld [vmem:[#allocation8_spill] sm:$0xff] }
 0xecf   : > { %v5074_v31 = vsel %vm703_vm2, %v12168_v25, %v5072_v12  ;;  %v5080_v44 = vsel %vm703_vm2, %v5072_v12, %v12164_v16  ;;  %v5114_v16 = vmul.f32 %v5109_v27, %v7746_v51  ;;  %v5158_v7 = vpop.permute.xlu0 %5157  ;;  %v5143_v37 = vsel %vm843_vm5, %v5134_v17, %v12159_v43  ;;  %v13360_v17 = vld [vmem:[#allocation7_spill] sm:$0xff] }
 0xed0   : > { %v5085_v42 = vmul.f32 %v5080_v44, %v7701_v8  ;;  %v5088_v59 = vmul.f32 %v5074_v31, %v7693_v62  ;;  %6639 = vmatprep.subr.bf16.mxu0 %v6638_v20  ;;  %v5115_v62 = vmul.f32 %v5107_v30, %v13279_v4  ;;  %v6648_v10 = vpack.c.bf16 %v11971_v23, %v11950_v36  ;;  %v13359_v20 = vld [vmem:[#allocation59_spill] sm:$0xff] }
 0xed1   : > { %v5145_v14 = vmul.f32 %v5141_v15, %v13298_v58  ;;  %v5148_v39 = vmul.f32 %v5143_v37, %v13357_v26  ;;  %v13371_v15 = vld [vmem:[#allocation50_spill] sm:$0xff] }
 0xed2   : > { %v6640_v25 = vpack.c.bf16 %v5085_v42, %v5081_v53  ;;  %v5096_v46 = vpop.permute.xlu1 %5095  ;;  %v6674_v29 = vpack.c.bf16 %v5088_v59, %v5084_v5  ;;  %v13361_v53 = vld [vmem:[#allocation42_spill] sm:$0xff]  ;;  %v13363_v42 = vld [vmem:[#allocation13_spill] sm:$0xff] }
 0xed3   : > { %v5108_v11 = vsel %vm773_vm4, %v5096_v46, %v12176_v38  ;;  %v5110_v8 = vsel %vm773_vm4, %v12172_v63, %v5096_v46 }
 0xed4   : > { %v5118_v52 = vmul.f32 %v5110_v8, %v7746_v51  ;;  %v5119_v45 = vmul.f32 %v5108_v11, %v13279_v4  ;;  %6641 = vmatpush1.bf16.msra.mxu0 %v6640_v25  ;;  %6675 = vmatprep.subr.bf16.mxu1 %v6674_v29  ;;  %v13365_v25 = vld [vmem:[#allocation41_spill] sm:$0xff]  ;;  %v13366_v29 = vld [vmem:[#allocation12_spill] sm:$0xff] }
 0xed5   : > { %6677 = vmatpush1.bf16.msra.mxu1 %v6676_v40  ;;  %v13358_v40 = vld [vmem:[#allocation46_spill] sm:$0xff] }
 0xed6   : > { %v6680_v24 = vpack.c.bf16 %v5119_v45, %v5115_v62  ;;  %v5104_v32 = vpop.permute.xlu1 %5103  ;;  %v6642_v3 = vpack.c.bf16 %v5118_v52, %v5114_v16  ;;  %v5173_v12 = vsel %vm913_vm6, %v13358_v40, %v5158_v7 }
 0xed7   : > { %v5106_v51 = vsel %vm773_vm4, %v12176_v38, %v5104_v32  ;;  %v5112_v4 = vsel %vm773_vm4, %v5104_v32, %v12172_v63  ;;  %v5166_v63 = vpop.permute.xlu0 %5165  ;;  %v5177_v59 = vmul.f32 %v5173_v12, %v13363_v42 }
 0xed8   : > { %v5117_v21 = vmul.f32 %v5112_v4, %v7743_v50  ;;  %v5120_v1 = vmul.f32 %v5106_v51, %v7760_v0  ;;  %6643 = vmatprep.subr.bf16.mxu0 %v6642_v3  ;;  %v5169_v62 = vsel %vm913_vm6, %v13359_v20, %v5166_v63  ;;  %v5175_v52 = vsel %vm913_vm6, %v5166_v63, %v13358_v40  ;;  %v13367_v3 = vld [vmem:[#allocation14_spill] sm:$0xff]  ;;  %v13368_v4 = vld [vmem:[#allocation15_spill] sm:$0xff] }
 0xed9   : > { %v5179_v51 = vmul.f32 %v5169_v62, %v13367_v3  ;;  %v13375_v40 = vld [vmem:[#allocation19_spill] sm:$0xff] }
 0xeda   : > { %v6644_v56 = vpack.c.bf16 %v5117_v21, %v5113_v13  ;;  %v5128_v41 = vpop.permute.xlu1 %5127  ;;  %v6678_v38 = vpack.c.bf16 %v5120_v1, %v5116_v48  ;;  %v5180_v13 = vmul.f32 %v5175_v52, %v13368_v4  ;;  %v13369_v1 = vld [vmem:[#allocation24_spill] sm:$0xff] }
 0xedb   : > { %v5140_v50 = vsel %vm843_vm5, %v5128_v41, %v12184_v6  ;;  %v5142_v0 = vsel %vm843_vm5, %v12180_v28, %v5128_v41  ;;  %v5190_v23 = vpop.permute.xlu0 %5189 }
 0xedc   : > { %v5150_v55 = vmul.f32 %v5140_v50, %v13294_v22  ;;  %6645 = vmatpush1.bf16.msra.mxu0 %v6644_v56  ;;  %6679 = vmatprep.subr.bf16.mxu1 %v6678_v38  ;;  %v5149_v47 = vmul.f32 %v5142_v0, %v13298_v58  ;;  %v5147_v22 = vmul.f32 %v5137_v2, %v13299_v19  ;;  %v13370_v56 = vld [vmem:[#allocation57_spill] sm:$0xff]  ;;  %v13372_v0 = vld [vmem:[#allocation70_spill] sm:$0xff] }
 0xedd   : > { %6647 = vmatprep.subr.bf16.mxu0 %v6646_v9  ;;  %6681 = vmatpush1.bf16.msra.mxu1 %v6680_v24  ;;  %v5203_v54 = vsel %vm983_vm7, %v5190_v23, %v13369_v1  ;;  %v5205_v41 = vsel %vm983_vm7, %v13370_v56, %v5190_v23 }
 0xede   : > { %v5136_v18 = vpop.permute.xlu1 %5135  ;;  %6683 = vmatprep.subr.bf16.mxu1 %v6682_v57  ;;  %v6650_v49 = vpack.c.bf16 %v5150_v55, %v5146_v60  ;;  %v6652_v31 = vpack.c.bf16 %v5149_v47, %v5145_v14  ;;  %v13373_v60 = vld [vmem:[#allocation17_spill] sm:$0xff]  ;;  %v13374_v55 = vld [vmem:[#allocation18_spill] sm:$0xff] }
 0xedf   : > { %v5138_v33 = vsel %vm843_vm5, %v12184_v6, %v5136_v18  ;;  %v5144_v43 = vsel %vm843_vm5, %v5136_v18, %v12180_v28  ;;  %v5171_v6 = vsel %vm913_vm6, %v5158_v7, %v13359_v20  ;;  %v13362_v28 = vpack.c.bf16 %v13360_v17, %v13361_v53  ;;  %v5198_v35 = vpop.permute.xlu0 %5197  ;;  %v13378_v53 = vld [vmem:[#allocation25_spill] sm:$0xff] }
 0xee0   : > { %v5151_v36 = vmul.f32 %v5138_v33, %v13299_v19  ;;  %v5152_v58 = vmul.f32 %v5144_v43, %v13357_v26  ;;  %6649 = vmatpush1.bf16.msra.mxu0 %v6648_v10  ;;  %v13364_v19 = vld [vmem:[#allocation44_spill] sm:$0xff]  ;;  %v5178_v16 = vmul.f32 %v5171_v6, %v13366_v29  ;;  %v5209_v2 = vmul.f32 %v5205_v41, %v13373_v60 }
 0xee1   : > { %6651 = vmatprep.subr.bf16.mxu0 %v6650_v49  ;;  %6685 = vmatpush1.bf16.msra.mxu1 %v13362_v28  ;;  %v5210_v37 = vmul.f32 %v5203_v54, %v13374_v55  ;;  %v5201_v49 = vsel %vm983_vm7, %v13369_v1, %v5198_v35  ;;  %v5207_v14 = vsel %vm983_vm7, %v5198_v35, %v13370_v56  ;;  %v13377_v6 = vld [vmem:[#allocation28_spill] sm:$0xff]  ;;  %v7269_v41 = vmov 0.0  }
 0xee2   : > { %v6688_v44 = vpack.c.bf16 %v5151_v36, %v5147_v22  ;;  %v5160_v5 = vpop.permute.xlu1 %5159  ;;  %v6686_v27 = vpack.c.bf16 %v5152_v58, %v5148_v39  ;;  %v5211_v12 = vmul.f32 %v5201_v49, %v13375_v40  ;;  %v13376_v36 = vld [vmem:[#allocation16_spill] sm:$0xff] }
 0xee3   : > { %v5172_v30 = vsel %vm913_vm6, %v5160_v5, %v13364_v19  ;;  %v5174_v46 = vsel %vm913_vm6, %v13365_v25, %v5160_v5  ;;  %v5222_v10 = vpop.permute.xlu0 %5221  ;;  %v5212_v58 = vmul.f32 %v5207_v14, %v13376_v36  ;;  %v5946_v56 = vld [vmem:[%s12496_s4 + $0x70] sm:$0xff] }
 0xee4   : > { %v5181_v11 = vmul.f32 %v5174_v46, %v13363_v42  ;;  %v5182_v8 = vmul.f32 %v5172_v30, %v13366_v29  ;;  %6653 = vmatpush1.bf16.msra.mxu0 %v6652_v31  ;;  %6687 = vmatprep.subr.bf16.mxu1 %v6686_v27  ;;  %v5235_v17 = vsel %vm1053_vm8, %v5222_v10, %v13377_v6  ;;  %v13379_v42 = vld [vmem:[#allocation27_spill] sm:$0xff]  ;;  %v13382_v29 = vld [vmem:[#allocation20_spill] sm:$0xff] }
 0xee5   : > { %6689 = vmatpush1.bf16.msra.mxu1 %v6688_v44  ;;  %v5237_v28 = vsel %vm1053_vm8, %v13378_v53, %v5222_v10 }
 0xee6   : > { %v6656_v45 = vpack.c.bf16 %v5181_v11, %v5177_v59  ;;  %v5168_v7 = vpop.permute.xlu1 %5167  ;;  %v6654_v61 = vpack.c.bf16 %v5182_v8, %v5178_v16  ;;  %v5242_v16 = vmul.f32 %v5235_v17, %v13382_v29 }
 0xee7   : > { %v5170_v24 = vsel %vm913_vm6, %v13364_v19, %v5168_v7  ;;  %v5176_v32 = vsel %vm913_vm6, %v5168_v7, %v13365_v25  ;;  %v5230_v44 = vpop.permute.xlu0 %5229  ;;  %v13380_v19 = vld [vmem:[#allocation31_spill] sm:$0xff]  ;;  %v13381_v25 = vld [vmem:[#allocation21_spill] sm:$0xff] }
 0xee8   : > { %v5183_v48 = vmul.f32 %v5170_v24, %v13367_v3  ;;  %v5184_v21 = vmul.f32 %v5176_v32, %v13368_v4  ;;  %6655 = vmatprep.subr.bf16.mxu0 %v6654_v61  ;;  %v5241_v46 = vmul.f32 %v5237_v28, %v13381_v25  ;;  %v5233_v62 = vsel %vm1053_vm8, %v13377_v6, %v5230_v44  ;;  %v13383_v32 = vld [vmem:[#allocation22_spill] sm:$0xff] }
 0xee9   : > { %6657 = vmatpush1.bf16.msra.mxu0 %v6656_v45  ;;  %v5239_v52 = vsel %vm1053_vm8, %v5230_v44, %v13378_v53  ;;  %v5243_v3 = vmul.f32 %v5233_v62, %v13383_v32 }
 0xeea   : > { %v6692_v38 = vpack.c.bf16 %v5183_v48, %v5179_v51  ;;  %v5192_v9 = vpop.permute.xlu1 %5191  ;;  %v6690_v63 = vpack.c.bf16 %v5184_v21, %v5180_v13  ;;  %v13384_v51 = vld [vmem:[#allocation23_spill] sm:$0xff]  ;;  %v5944_v21 = vld [vmem:[%s12496_s4 + $0x60] sm:$0xff] }
 0xeeb   : > { %v5204_v50 = vsel %vm983_vm7, %v5192_v9, %v13371_v15  ;;  %v5206_v57 = vsel %vm983_vm7, %v13372_v0, %v5192_v9  ;;  %v5244_v4 = vmul.f32 %v5239_v52, %v13384_v51 }
 0xeec   : > { %v5213_v47 = vmul.f32 %v5206_v57, %v13373_v60  ;;  %v5214_v18 = vmul.f32 %v5204_v50, %v13374_v55  ;;  %6691 = vmatprep.subr.bf16.mxu1 %v6690_v63 }
 0xeed   : > { %6693 = vmatpush1.bf16.msra.mxu1 %v6692_v38 }
 0xeee   : > { %v6660_v22 = vpack.c.bf16 %v5213_v47, %v5209_v2  ;;  %v5200_v33 = vpop.permute.xlu1 %5199  ;;  %v6658_v43 = vpack.c.bf16 %v5214_v18, %v5210_v37 }
 0xeef   : > { %v5202_v26 = vsel %vm983_vm7, %v13371_v15, %v5200_v33  ;;  %v5208_v39 = vsel %vm983_vm7, %v5200_v33, %v13372_v0 }
 0xef0   : > { %v5215_v23 = vmul.f32 %v5202_v26, %v13375_v40  ;;  %v5216_v20 = vmul.f32 %v5208_v39, %v13376_v36  ;;  %6659 = vmatprep.subr.bf16.mxu0 %v6658_v43 }
 0xef1   : > { %6661 = vmatpush1.bf16.msra.mxu0 %v6660_v22 }
 0xef2   : > { %v6696_v31 = vpack.c.bf16 %v5215_v23, %v5211_v12  ;;  %v5224_v5 = vpop.permute.xlu1 %5223  ;;  %v6694_v27 = vpack.c.bf16 %v5216_v20, %v5212_v58 }
 0xef3   : > { %v5236_v59 = vsel %vm1053_vm8, %v5224_v5, %v13379_v42  ;;  %v5238_v30 = vsel %vm1053_vm8, %v13380_v19, %v5224_v5 }
 0xef4   : > { %v5245_v11 = vmul.f32 %v5238_v30, %v13381_v25  ;;  %v5246_v8 = vmul.f32 %v5236_v59, %v13382_v29  ;;  %6695 = vmatprep.subr.bf16.mxu1 %v6694_v27  ;;  %v4628_v9 = vpop.permute.xlu0 %4627 }
 0xef5   : > { %6697 = vmatpush1.bf16.msra.mxu1 %v6696_v31 }
 0xef6   : > { %v6664_v45 = vpack.c.bf16 %v5245_v11, %v5241_v46  ;;  %v5232_v7 = vpop.permute.xlu1 %5231  ;;  %v6662_v35 = vpack.c.bf16 %v5246_v8, %v5242_v16  ;;  %v5467_v46 = vld [vmem:[%s12499_s7] sm:$0xff] }
 0xef7   : > { %v5234_v61 = vsel %vm1053_vm8, %v13379_v42, %v5232_v7  ;;  %v5240_v24 = vsel %vm1053_vm8, %v5232_v7, %v13380_v19 }
 0xef8   : > { %v5247_v13 = vmul.f32 %v5234_v61, %v13383_v32  ;;  %v5248_v48 = vmul.f32 %v5240_v24, %v13384_v51  ;;  %6663 = vmatprep.subr.bf16.mxu0 %v6662_v35  ;;  %v5257_v26 = vpop.permute.xlu0 %5256 }
 0xef9   : > { %6665 = vmatpush1.bf16.msra.mxu0 %v6664_v45 }
 0xefa   : > { %v6700_v1 = vpack.c.bf16 %v5247_v13, %v5243_v3  ;;  %v6698_v54 = vpack.c.bf16 %v5248_v48, %v5244_v4 }
 0xefc   : > { %5330 = vmatmul.mubr.f32.vlgmr.msra.gmra.mrb[60].mxu0 %v5944_v21  ;;  %6699 = vmatprep.subr.bf16.mxu1 %v6698_v54 }
 0xefd   : > { %6701 = vmatpush1.bf16.msra.mxu1 %v6700_v1  ;;  %5981 = vmatprep.mubr.msk.f32.mxu0 %vm1764_vm9, %v5947_v34 }
 0xf00   : > { %5336 = vmatmul.mubr.f32.gmra.mrb[62].mxu0 %v5946_v56  ;;  %5407 = vmatmul.mubr.f32.vlgmr.msra.gmra.mrb[60].mxu1 %v5944_v21 }
 0xf01   : > { %5983 = vmatprep.mubr.msk.f32.mxu1 %vm1764_vm9, %v5947_v34  ;;  %5542 = vmatprep.mubr.f32.mxu0 %v7269_v41 }
 0xf04   : > { %5413 = vmatmul.mubr.f32.gmra.mrb[62].mxu1 %v5946_v56 }
 0xf05   : > { %5613 = vmatprep.mubr.f32.mxu1 %v7269_v41 }
 0xf07   : > { %v5252_v38 = vpop.permute.xlu1 %5251 }
 0xf08   : > { %v6726_v63 = vadd.f32 %v5252_v38, %v4628_v9 }
 0xf0b   : > { %v5472_v62 = vpop.permute.xlu1 %5471 }
 0xfcf   : > { %v5331_v15 = vpop.f32.mrb[60].mxu0 }
 0xfd0   : > { %v6727_v50 = vadd.f32 %v6726_v63, %v5331_v15  ;;  %v5333_v0 = vpop.f32.mrb[61].mxu0  ;;  %v5648_v15 = vpop.permute.xlu0 %5647 }
 0xfd1   : > { %v6729_v57 = vadd.f32 %v6726_v63, %v5333_v0 }
 0xfd2   : > { %v5984_v60 = vmul.f32 -1.442695, %v6727_v50 }
 0xfd3   : > { %v5985_v2 = vmul.f32 -1.442695, %v6729_v57  ;;  %v5337_v55 = vpop.f32.mrb[62].mxu0  ;;  %v5408_v37 = vpop.f32.mrb[60].mxu1 }
 0xfd4   : > { %7179 = vpow2.f32 %v5984_v60  ;;  %v6731_v47 = vadd.f32 %v6726_v63, %v5408_v37  ;;  %v5339_v18 = vpop.f32.mrb[63].mxu0  ;;  %v5410_v10 = vpop.f32.mrb[61].mxu1  ;;  %v5338_v39 = vadd.f32 %v5337_v55, %v5257_v26 }
 0xfd5   : > { %7181 = vpow2.f32 %v5985_v2  ;;  %v6733_v49 = vadd.f32 %v6726_v63, %v5410_v10  ;;  %v5340_v40 = vadd.f32 %v5339_v18, %v5257_v26 }
 0xfd6   : > { %v5986_v14 = vmul.f32 -1.442695, %v6731_v47 }
 0xfd7   : > { %v5987_v22 = vmul.f32 -1.442695, %v6733_v49  ;;  %v5414_v33 = vpop.f32.mrb[62].mxu1 }
 0xfd8   : > { %7183 = vpow2.f32 %v5986_v14  ;;  %v5416_v43 = vpop.f32.mrb[63].mxu1  ;;  %v5415_v23 = vadd.f32 %v5414_v33, %v5257_v26 }
 0xfd9   : > { %7185 = vpow2.f32 %v5987_v22  ;;  %v5417_v6 = vadd.f32 %v5416_v43, %v5257_v26 }
 0xfda   : > { %7187 = vtanh.f32 %v5338_v39 }
 0xfdb   : > { %7189 = vtanh.f32 %v5340_v40 }
 0xfde   : > { %v7180_v12 = vpop.eup %7179 }
 0xfdf   : > { %v7182_v36 = vpop.eup %7181  ;;  %v5435_v58 = vadd.f32 1.0, %v7180_v12 }
 0xfe0   : > { %v5436_v20 = vadd.f32 1.0, %v7182_v36 }
 0xfe1   : > { %7191 = vrcp.f32 %v5435_v58 }
 0xfe2   : > { %v7184_v17 = vpop.eup %7183  ;;  %7193 = vrcp.f32 %v5436_v20 }
 0xfe3   : > { %v7186_v53 = vpop.eup %7185  ;;  %v5437_v28 = vadd.f32 1.0, %v7184_v17  ;;  %7195 = vtanh.f32 %v5415_v23 }
 0xfe4   : > { %v5438_v31 = vadd.f32 1.0, %v7186_v53  ;;  %7197 = vtanh.f32 %v5417_v6  ;;  %v7188_v44 = vpop.eup %7187 }
 0xfe5   : > { %7199 = vrcp.f32 %v5437_v28  ;;  %v7190_v5 = vpop.eup %7189 }
 0xfe6   : > { %7201 = vrcp.f32 %v5438_v31 }
 0xfeb   : > { %v7192_v27 = vpop.eup %7191 }
 0xfec   : > { %v7194_v42 = vpop.eup %7193  ;;  %v5451_v59 = vmul.f32 %v7192_v27, %v7188_v44 }
 0xfed   : > { %v7196_v19 = vpop.eup %7195  ;;  %v5452_v30 = vmul.f32 %v7194_v42, %v7190_v5 }
 0xfee   : > { %v7198_v25 = vpop.eup %7197  ;;  %5455 = vst [vmem:[#allocation2 + $0x60] sm:$0xff] %v5451_v59 }
 0xfef   : > { %v7200_v29 = vpop.eup %7199  ;;  %5456 = vst [vmem:[#allocation2 + $0x68] sm:$0xff] %v5452_v30  ;;  %5478 = vmatprep.subr.mxu0 %v5452_v30 }
 0xff0   : > { %v7202_v16 = vpop.eup %7201  ;;  %5479 = vmatpush1.msra.mxu0 %v5451_v59  ;;  %v5453_v11 = vmul.f32 %v7200_v29, %v7196_v19 }
 0xff1   : > { %5988 = vmatmul.mubr.msk.f32.vlgmr.msra.gmra.mrb[64].mxu0 %vm5474_vm10, %v5467_v46  ;;  %v5454_v8 = vmul.f32 %v7202_v16, %v7198_v25 }
 0xff2   : > { %5457 = vst [vmem:[#allocation2 + $0x70] sm:$0xff] %v5453_v11 }
 0xff3   : > { %5458 = vst [vmem:[#allocation2 + $0x78] sm:$0xff] %v5454_v8  ;;  %5549 = vmatprep.subr.mxu1 %v5454_v8 }
 0xff4   : > { %5550 = vmatpush1.msra.mxu1 %v5453_v11 }
 0xff5   : > { %5989 = vmatmul.mubr.msk.f32.vlgmr.msra.gmra.mrb[64].mxu1 %vm5474_vm10, %v5467_v46 }
0x10c4   : > { %v5544_v52 = vpop.f32.mrb[64].mxu0 }
0x10c5   : > { %v5545_v45 = vadd.f32 %v5544_v52, %v5472_v62  ;;  %v5546_v7 = vpop.f32.mrb[65].mxu0 }
0x10c6   : > { %v5547_v35 = vadd.f32 %v5546_v7, %v5472_v62 }
0x10c7   : > { %v5990_v61 = vmul.f32 -1.442695, %v5545_v45 }
0x10c8   : > { %v5991_v24 = vmul.f32 -1.442695, %v5547_v35  ;;  %v5615_v32 = vpop.f32.mrb[64].mxu1 }
0x10c9   : > { %7203 = vpow2.f32 %v5990_v61  ;;  %v5616_v3 = vadd.f32 %v5615_v32, %v5472_v62  ;;  %v5617_v51 = vpop.f32.mrb[65].mxu1 }
0x10ca   : > { %7205 = vpow2.f32 %v5991_v24  ;;  %v5618_v4 = vadd.f32 %v5617_v51, %v5472_v62 }
0x10cb   : > { %v5992_v13 = vmul.f32 -1.442695, %v5616_v3 }
0x10cc   : > { %v5993_v48 = vmul.f32 -1.442695, %v5618_v4 }
0x10cd   : > { %7207 = vpow2.f32 %v5992_v13 }
0x10ce   : > { %7209 = vpow2.f32 %v5993_v48 }
0x10d3   : > { %v7204_v21 = vpop.eup %7203 }
0x10d4   : > { %v7206_v1 = vpop.eup %7205  ;;  %v5633_v54 = vadd.f32 1.0, %v7204_v21 }
0x10d5   : > { %v5634_v34 = vadd.f32 1.0, %v7206_v1 }
0x10d6   : > { %7211 = vrcp.f32 %v5633_v54 }
0x10d7   : > { %v7208_v56 = vpop.eup %7207  ;;  %7213 = vrcp.f32 %v5634_v34 }
0x10d8   : > { %v7210_v41 = vpop.eup %7209  ;;  %v5635_v38 = vadd.f32 1.0, %v7208_v56 }
0x10d9   : > { %v5636_v9 = vadd.f32 1.0, %v7210_v41 }
0x10da   : > { %7215 = vrcp.f32 %v5635_v38 }
0x10db   : > { %7217 = vrcp.f32 %v5636_v9 }
0x10e0   : > { %v7212_v63 = vpop.eup %7211 }
0x10e1   : > { %v7214_v50 = vpop.eup %7213  ;;  %v5650_v0 = vmul.f32 %v7212_v63, %v5648_v15 }
0x10e2   : > { %v5651_v57 = vmul.f32 %v7214_v50, %v5648_v15 }
0x10e3   : > { %5654 = vst [vmem:[#allocation5] sm:$0xff] %v5650_v0  ;;  %5658 = vst [vmem:[%s7352_s23] sm:$0xff] %v5650_v0 }
0x10e4   : > { %v7216_v60 = vpop.eup %7215  ;;  %5655 = vst [vmem:[#allocation5 + $0x8] sm:$0xff] %v5651_v57  ;;  %5659 = vst [vmem:[%s7352_s23 + $0x8] sm:$0xff] %v5651_v57 }
0x10e5   : > { %v7218_v2 = vpop.eup %7217  ;;  %v5652_v55 = vmul.f32 %v7216_v60, %v5648_v15 }
0x10e6   : > { %v5653_v37 = vmul.f32 %v7218_v2, %v5648_v15 }
0x10e7   : > { %5656 = vst [vmem:[#allocation5 + $0x10] sm:$0xff] %v5652_v55  ;;  %5660 = vst [vmem:[%s7352_s23 + $0x10] sm:$0xff] %v5652_v55 }
0x10e8   : > { %5657 = vst [vmem:[#allocation5 + $0x18] sm:$0xff] %v5653_v37  ;;  %5661 = vst [vmem:[%s7352_s23 + $0x18] sm:$0xff] %v5653_v37 }
0x10e9 PF: > { %s20_s15 = sadd.s32 1, %s7257_s15   ;;  %s13385_s13 = smov %s7253_s14 }
0x10ea   : > { %p17_p8 = scmp.ge.s32.totalorder %s20_s15, 7   ;;  %s13386_s14 = smov %s13388_s16 }
0x10ec   :  { %19 = sbr.rel (!%p17_p8) target bundleno = 2 (0x2), region = 118 }

</bundles_post_ra>
